<compile_context>
chip_gen: v7x
topology: tpu7x:2x2x1
jax: 0.10.0
libtpu: 0.0.40
codegen_flags: <defaults>
</compile_context>

<pallas_src>
import jax
import jax.numpy as jnp
from jax.experimental import pallas as pl
from jax.experimental.pallas import tpu as pltpu  # noqa: F401  (TPU backend)

HIDDEN = 128
NUM_LAYERS = 3
GATES = 4 * HIDDEN


# ------------------------------ fused Pallas kernel ------------------------------ #

def _lstm_cell(gates, c_prev):
    """PyTorch gate order i, f, g, o; all slices are 128-lane aligned."""
    i = jax.nn.sigmoid(gates[:, 0 * HIDDEN:1 * HIDDEN])
    f = jax.nn.sigmoid(gates[:, 1 * HIDDEN:2 * HIDDEN])
    g = jnp.tanh(gates[:, 2 * HIDDEN:3 * HIDDEN])
    o = jax.nn.sigmoid(gates[:, 3 * HIDDEN:4 * HIDDEN])
    c_new = f * c_prev + i * g
    h_new = o * jnp.tanh(c_new)
    return h_new, c_new


def _fused_lstm_kernel(x_ref,
                       wih0_ref, whh0_ref, b0_ref,
                       wih1_ref, whh1_ref, b1_ref,
                       wih2_ref, whh2_ref, b2_ref,
                       fcw_ref, fcb_ref,
                       out_ref):
    """x_ref: (T, B, 1); wih0: (1, 4H); wih1/2: (H, 4H); whh*: (H, 4H); b*: (1, 4H);
    fcw: (1, H); fcb: (1, 1); out_ref: (B, 1).  Everything is VMEM-resident."""
    T, B, _ = x_ref.shape

    wih = (wih0_ref[...], wih1_ref[...], wih2_ref[...])
    whh = (whh0_ref[...], whh1_ref[...], whh2_ref[...])
    bias = (b0_ref[...], b1_ref[...], b2_ref[...])

    zeros = jnp.zeros((B, HIDDEN), jnp.float32)
    h = [zeros] * NUM_LAYERS
    c = [zeros] * NUM_LAYERS

    # Wavefront over super-steps: layer l processes time t = s - l.  Within a
    # super-step every active layer reads only values produced in earlier
    # super-steps (old h / c), so the layer-steps are mutually independent.
    for s in range(T + NUM_LAYERS - 1):
        new_h = list(h)
        new_c = list(c)
        for l in range(NUM_LAYERS):
            t = s - l
            if not (0 <= t < T):
                continue
            if l == 0:
                # Din = 1: input projection is a VPU broadcast, not a padded matmul.
                gx = x_ref[t] * wih[0] + bias[0]                  # (B,1)*(1,4H)
            else:
                gx = jnp.dot(h[l - 1], wih[l],
                             preferred_element_type=jnp.float32) + bias[l]
            gates = gx + jnp.dot(h[l], whh[l],
                                 preferred_element_type=jnp.float32)
            new_h[l], new_c[l] = _lstm_cell(gates, c[l])
        h, c = new_h, new_c

    # Fused FC head (out_features=1): VPU multiply + lane reduce.
    out_ref[...] = (jnp.sum(h[-1] * fcw_ref[...], axis=-1, keepdims=True)
                    + fcb_ref[...])


# ------------------------------- wrappers ---------------------------------------- #

def prepare_params(params):
    """Pre-transpose / pre-combine weights once (outside the per-call graph)."""
    prep = []
    for layer in range(NUM_LAYERS):
        wih_t = params[f"wih{layer}"].T                            # (Din, 4H)
        whh_t = params[f"whh{layer}"].T                            # (H, 4H)
        bias = (params[f"bih{layer}"] + params[f"bhh{layer}"]).reshape(1, GATES)
        prep += [wih_t, whh_t, bias]
    prep.append(params["fc_w"].reshape(1, HIDDEN))                 # (1, H)
    prep.append(params["fc_b"].reshape(1, 1))                      # (1, 1)
    return tuple(prep)


def lstm_classifier_forward(x, prep):
    """x: (B, T, 1) float32 -> (B, 1).  Single fused pallas_call."""
    B, T, din = x.shape
    assert din == 1
    B_pad = ((B + 7) // 8) * 8                                     # sublane height = 8
    x_tb = jnp.transpose(x, (1, 0, 2)).astype(jnp.float32)         # (T, B, 1) time-major
    if B_pad != B:
        x_tb = jnp.pad(x_tb, ((0, 0), (0, B_pad - B), (0, 0)))

    out_pad = pl.pallas_call(
        _fused_lstm_kernel,
        out_shape=jax.ShapeDtypeStruct((B_pad, 1), jnp.float32),
    )(x_tb, *prep)
    return out_pad[:B]


# ------------------------------ reference (pure JAX) ------------------------------ #

def ref_forward(x, params):
    B = x.shape[0]
    inp = x.astype(jnp.float32)
    for layer in range(NUM_LAYERS):
        wih = params[f"wih{layer}"]
        whh = params[f"whh{layer}"]
        b = params[f"bih{layer}"] + params[f"bhh{layer}"]

        def step(carry, x_t, wih=wih, whh=whh, b=b):
            h, c = carry
            gates = x_t @ wih.T + h @ whh.T + b
            i, f, g, o = jnp.split(gates, 4, axis=-1)
            c = jax.nn.sigmoid(f) * c + jax.nn.sigmoid(i) * jnp.tanh(g)
            h = jax.nn.sigmoid(o) * jnp.tanh(c)
            return (h, c), h

        init = (jnp.zeros((B, HIDDEN)), jnp.zeros((B, HIDDEN)))
        _, hs = jax.lax.scan(step, init, jnp.transpose(inp, (1, 0, 2)))
        inp = jnp.transpose(hs, (1, 0, 2))
    return inp[:, -1, :] @ params["fc_w"].T + params["fc_b"]


# ------------------------------ parameter init ------------------------------------ #

def init_params(key):
    params = {}
    bound = 1.0 / jnp.sqrt(jnp.float32(HIDDEN))
    for layer in range(NUM_LAYERS):
        din = 1 if layer == 0 else HIDDEN
        key, k1, k2, k3, k4 = jax.random.split(key, 5)
        params[f"wih{layer}"] = jax.random.uniform(k1, (GATES, din), jnp.float32, -bound, bound)
        params[f"whh{layer}"] = jax.random.uniform(k2, (GATES, HIDDEN), jnp.float32, -bound, bound)
        params[f"bih{layer}"] = jax.random.uniform(k3, (GATES,), jnp.float32, -bound, bound)
        params[f"bhh{layer}"] = jax.random.uniform(k4, (GATES,), jnp.float32, -bound, bound)
    key, k5, k6 = jax.random.split(key, 3)
    params["fc_w"] = jax.random.uniform(k5, (1, HIDDEN), jnp.float32, -bound, bound)
    params["fc_b"] = jax.random.uniform(k6, (1,), jnp.float32, -bound, bound)
    return params


# ----------------------------------- main ------------------------------------------ #

if __name__ == "__main__":
    key = jax.random.PRNGKey(0)
    kx, kp = jax.random.split(key)

    B, T = 4, 8
    x = jax.random.normal(kx, (B, T, 1), jnp.float32)   # (batch, seq, input_size=1)
    params = init_params(kp)
    prep = prepare_params(params)                        # one-time weight prep

    fwd = jax.jit(lstm_classifier_forward)
    out = jax.block_until_ready(fwd(x, prep))
    assert out.shape == (B, 1), out.shape

    ref = ref_forward(x, params)
    max_err = float(jnp.max(jnp.abs(out - ref)))
    assert max_err < 1e-3, f"mismatch vs reference: {max_err}"

    print("KERNEL_OK")
</pallas_src>

<mosaic_0001>
module attributes {stable_mosaic.version = 11 : i64} {
  func.func @_fused_lstm_kernel(%arg0: memref<8x8x1xf32, #tpu.memory_space<vmem>>, %arg1: memref<1x512xf32, #tpu.memory_space<vmem>>, %arg2: memref<128x512xf32, #tpu.memory_space<vmem>>, %arg3: memref<1x512xf32, #tpu.memory_space<vmem>>, %arg4: memref<128x512xf32, #tpu.memory_space<vmem>>, %arg5: memref<128x512xf32, #tpu.memory_space<vmem>>, %arg6: memref<1x512xf32, #tpu.memory_space<vmem>>, %arg7: memref<128x512xf32, #tpu.memory_space<vmem>>, %arg8: memref<128x512xf32, #tpu.memory_space<vmem>>, %arg9: memref<1x512xf32, #tpu.memory_space<vmem>>, %arg10: memref<1x128xf32, #tpu.memory_space<vmem>>, %arg11: memref<1x1xf32, #tpu.memory_space<vmem>>, %arg12: memref<8x1xf32, #tpu.memory_space<vmem>>) attributes {dimension_semantics = [], scalar_prefetch = 0 : i64, scratch_operands = 0 : i64, tpu.core_type = #tpu.core_type<tc>} {
    %c0 = arith.constant 0 : index
    %c0_0 = arith.constant 0 : index
    %0 = vector.load %arg1[%c0, %c0_0] : memref<1x512xf32, #tpu.memory_space<vmem>>, vector<1x512xf32>
    %c0_1 = arith.constant 0 : index
    %c0_2 = arith.constant 0 : index
    %1 = vector.load %arg4[%c0_1, %c0_2] : memref<128x512xf32, #tpu.memory_space<vmem>>, vector<128x512xf32>
    %c0_3 = arith.constant 0 : index
    %c0_4 = arith.constant 0 : index
    %2 = vector.load %arg7[%c0_3, %c0_4] : memref<128x512xf32, #tpu.memory_space<vmem>>, vector<128x512xf32>
    %c0_5 = arith.constant 0 : index
    %c0_6 = arith.constant 0 : index
    %3 = vector.load %arg2[%c0_5, %c0_6] : memref<128x512xf32, #tpu.memory_space<vmem>>, vector<128x512xf32>
    %c0_7 = arith.constant 0 : index
    %c0_8 = arith.constant 0 : index
    %4 = vector.load %arg5[%c0_7, %c0_8] : memref<128x512xf32, #tpu.memory_space<vmem>>, vector<128x512xf32>
    %c0_9 = arith.constant 0 : index
    %c0_10 = arith.constant 0 : index
    %5 = vector.load %arg8[%c0_9, %c0_10] : memref<128x512xf32, #tpu.memory_space<vmem>>, vector<128x512xf32>
    %c0_11 = arith.constant 0 : index
    %c0_12 = arith.constant 0 : index
    %6 = vector.load %arg3[%c0_11, %c0_12] : memref<1x512xf32, #tpu.memory_space<vmem>>, vector<1x512xf32>
    %c0_13 = arith.constant 0 : index
    %c0_14 = arith.constant 0 : index
    %7 = vector.load %arg6[%c0_13, %c0_14] : memref<1x512xf32, #tpu.memory_space<vmem>>, vector<1x512xf32>
    %c0_15 = arith.constant 0 : index
    %c0_16 = arith.constant 0 : index
    %8 = vector.load %arg9[%c0_15, %c0_16] : memref<1x512xf32, #tpu.memory_space<vmem>>, vector<1x512xf32>
    %cst = arith.constant 0.000000e+00 : f32
    %9 = vector.broadcast %cst : f32 to vector<8x128xf32>
    %c0_17 = arith.constant 0 : index
    %c0_18 = arith.constant 0 : index
    %c0_19 = arith.constant 0 : index
    %10 = vector.load %arg0[%c0_17, %c0_18, %c0_19] : memref<8x8x1xf32, #tpu.memory_space<vmem>>, vector<1x8x1xf32>
    %11 = vector.shape_cast %10 : vector<1x8x1xf32> to vector<8x1xf32>
    %12 = vector.broadcast %11 : vector<8x1xf32> to vector<8x512xf32>
    %13 = vector.broadcast %0 : vector<1x512xf32> to vector<8x512xf32>
    %14 = arith.mulf %12, %13 : vector<8x512xf32>
    %15 = vector.broadcast %6 : vector<1x512xf32> to vector<8x512xf32>
    %16 = arith.addf %14, %15 : vector<8x512xf32>
    %cst_20 = arith.constant dense<0.000000e+00> : vector<8x512xf32>
    %17 = tpu.matmul %9, %3, %cst_20 {dimension_numbers = #tpu.dot_dimension_numbers<[1], [0], [0], [1], [0, 0, 1, 1], [], []>} : vector<8x128xf32>, vector<128x512xf32>, vector<8x512xf32> -> vector<8x512xf32>
    %18 = arith.addf %16, %17 : vector<8x512xf32>
    %19 = vector.extract_strided_slice %18 {offsets = [0, 0], sizes = [8, 128], strides = [1, 1]} : vector<8x512xf32> to vector<8x128xf32>
    %20 = arith.negf %19 : vector<8x128xf32>
    %21 = math.exp %20 : vector<8x128xf32>
    %cst_21 = arith.constant 1.000000e+00 : f32
    %22 = vector.broadcast %cst_21 : f32 to vector<8x128xf32>
    %23 = arith.addf %22, %21 : vector<8x128xf32>
    %24 = arith.divf %22, %23 : vector<8x128xf32>
    %25 = vector.extract_strided_slice %18 {offsets = [0, 128], sizes = [8, 128], strides = [1, 1]} : vector<8x512xf32> to vector<8x128xf32>
    %26 = arith.negf %25 : vector<8x128xf32>
    %27 = math.exp %26 : vector<8x128xf32>
    %cst_22 = arith.constant 1.000000e+00 : f32
    %28 = vector.broadcast %cst_22 : f32 to vector<8x128xf32>
    %29 = arith.addf %28, %27 : vector<8x128xf32>
    %30 = arith.divf %28, %29 : vector<8x128xf32>
    %31 = vector.extract_strided_slice %18 {offsets = [0, 256], sizes = [8, 128], strides = [1, 1]} : vector<8x512xf32> to vector<8x128xf32>
    %32 = math.tanh %31 : vector<8x128xf32>
    %33 = vector.extract_strided_slice %18 {offsets = [0, 384], sizes = [8, 128], strides = [1, 1]} : vector<8x512xf32> to vector<8x128xf32>
    %34 = arith.negf %33 : vector<8x128xf32>
    %35 = math.exp %34 : vector<8x128xf32>
    %cst_23 = arith.constant 1.000000e+00 : f32
    %36 = vector.broadcast %cst_23 : f32 to vector<8x128xf32>
    %37 = arith.addf %36, %35 : vector<8x128xf32>
    %38 = arith.divf %36, %37 : vector<8x128xf32>
    %39 = arith.mulf %30, %9 : vector<8x128xf32>
    %40 = arith.mulf %24, %32 : vector<8x128xf32>
    %41 = arith.addf %39, %40 : vector<8x128xf32>
    %42 = math.tanh %41 : vector<8x128xf32>
    %43 = arith.mulf %38, %42 : vector<8x128xf32>
    %c1 = arith.constant 1 : index
    %c0_24 = arith.constant 0 : index
    %c0_25 = arith.constant 0 : index
    %44 = vector.load %arg0[%c1, %c0_24, %c0_25] : memref<8x8x1xf32, #tpu.memory_space<vmem>>, vector<1x8x1xf32>
    %45 = vector.shape_cast %44 : vector<1x8x1xf32> to vector<8x1xf32>
    %46 = vector.broadcast %45 : vector<8x1xf32> to vector<8x512xf32>
    %47 = vector.broadcast %0 : vector<1x512xf32> to vector<8x512xf32>
    %48 = arith.mulf %46, %47 : vector<8x512xf32>
    %49 = vector.broadcast %6 : vector<1x512xf32> to vector<8x512xf32>
    %50 = arith.addf %48, %49 : vector<8x512xf32>
    %cst_26 = arith.constant dense<0.000000e+00> : vector<8x512xf32>
    %51 = tpu.matmul %43, %3, %cst_26 {dimension_numbers = #tpu.dot_dimension_numbers<[1], [0], [0], [1], [0, 0, 1, 1], [], []>} : vector<8x128xf32>, vector<128x512xf32>, vector<8x512xf32> -> vector<8x512xf32>
    %52 = arith.addf %50, %51 : vector<8x512xf32>
    %53 = vector.extract_strided_slice %52 {offsets = [0, 0], sizes = [8, 128], strides = [1, 1]} : vector<8x512xf32> to vector<8x128xf32>
    %54 = arith.negf %53 : vector<8x128xf32>
    %55 = math.exp %54 : vector<8x128xf32>
    %cst_27 = arith.constant 1.000000e+00 : f32
    %56 = vector.broadcast %cst_27 : f32 to vector<8x128xf32>
    %57 = arith.addf %56, %55 : vector<8x128xf32>
    %58 = arith.divf %56, %57 : vector<8x128xf32>
    %59 = vector.extract_strided_slice %52 {offsets = [0, 128], sizes = [8, 128], strides = [1, 1]} : vector<8x512xf32> to vector<8x128xf32>
    %60 = arith.negf %59 : vector<8x128xf32>
    %61 = math.exp %60 : vector<8x128xf32>
    %cst_28 = arith.constant 1.000000e+00 : f32
    %62 = vector.broadcast %cst_28 : f32 to vector<8x128xf32>
    %63 = arith.addf %62, %61 : vector<8x128xf32>
    %64 = arith.divf %62, %63 : vector<8x128xf32>
    %65 = vector.extract_strided_slice %52 {offsets = [0, 256], sizes = [8, 128], strides = [1, 1]} : vector<8x512xf32> to vector<8x128xf32>
    %66 = math.tanh %65 : vector<8x128xf32>
    %67 = vector.extract_strided_slice %52 {offsets = [0, 384], sizes = [8, 128], strides = [1, 1]} : vector<8x512xf32> to vector<8x128xf32>
    %68 = arith.negf %67 : vector<8x128xf32>
    %69 = math.exp %68 : vector<8x128xf32>
    %cst_29 = arith.constant 1.000000e+00 : f32
    %70 = vector.broadcast %cst_29 : f32 to vector<8x128xf32>
    %71 = arith.addf %70, %69 : vector<8x128xf32>
    %72 = arith.divf %70, %71 : vector<8x128xf32>
    %73 = arith.mulf %64, %41 : vector<8x128xf32>
    %74 = arith.mulf %58, %66 : vector<8x128xf32>
    %75 = arith.addf %73, %74 : vector<8x128xf32>
    %76 = math.tanh %75 : vector<8x128xf32>
    %77 = arith.mulf %72, %76 : vector<8x128xf32>
    %cst_30 = arith.constant dense<0.000000e+00> : vector<8x512xf32>
    %78 = tpu.matmul %43, %1, %cst_30 {dimension_numbers = #tpu.dot_dimension_numbers<[1], [0], [0], [1], [0, 0, 1, 1], [], []>} : vector<8x128xf32>, vector<128x512xf32>, vector<8x512xf32> -> vector<8x512xf32>
    %79 = vector.broadcast %7 : vector<1x512xf32> to vector<8x512xf32>
    %80 = arith.addf %78, %79 : vector<8x512xf32>
    %cst_31 = arith.constant dense<0.000000e+00> : vector<8x512xf32>
    %81 = tpu.matmul %9, %4, %cst_31 {dimension_numbers = #tpu.dot_dimension_numbers<[1], [0], [0], [1], [0, 0, 1, 1], [], []>} : vector<8x128xf32>, vector<128x512xf32>, vector<8x512xf32> -> vector<8x512xf32>
    %82 = arith.addf %80, %81 : vector<8x512xf32>
    %83 = vector.extract_strided_slice %82 {offsets = [0, 0], sizes = [8, 128], strides = [1, 1]} : vector<8x512xf32> to vector<8x128xf32>
    %84 = arith.negf %83 : vector<8x128xf32>
    %85 = math.exp %84 : vector<8x128xf32>
    %cst_32 = arith.constant 1.000000e+00 : f32
    %86 = vector.broadcast %cst_32 : f32 to vector<8x128xf32>
    %87 = arith.addf %86, %85 : vector<8x128xf32>
    %88 = arith.divf %86, %87 : vector<8x128xf32>
    %89 = vector.extract_strided_slice %82 {offsets = [0, 128], sizes = [8, 128], strides = [1, 1]} : vector<8x512xf32> to vector<8x128xf32>
    %90 = arith.negf %89 : vector<8x128xf32>
    %91 = math.exp %90 : vector<8x128xf32>
    %cst_33 = arith.constant 1.000000e+00 : f32
    %92 = vector.broadcast %cst_33 : f32 to vector<8x128xf32>
    %93 = arith.addf %92, %91 : vector<8x128xf32>
    %94 = arith.divf %92, %93 : vector<8x128xf32>
    %95 = vector.extract_strided_slice %82 {offsets = [0, 256], sizes = [8, 128], strides = [1, 1]} : vector<8x512xf32> to vector<8x128xf32>
    %96 = math.tanh %95 : vector<8x128xf32>
    %97 = vector.extract_strided_slice %82 {offsets = [0, 384], sizes = [8, 128], strides = [1, 1]} : vector<8x512xf32> to vector<8x128xf32>
    %98 = arith.negf %97 : vector<8x128xf32>
    %99 = math.exp %98 : vector<8x128xf32>
    %cst_34 = arith.constant 1.000000e+00 : f32
    %100 = vector.broadcast %cst_34 : f32 to vector<8x128xf32>
    %101 = arith.addf %100, %99 : vector<8x128xf32>
    %102 = arith.divf %100, %101 : vector<8x128xf32>
    %103 = arith.mulf %94, %9 : vector<8x128xf32>
    %104 = arith.mulf %88, %96 : vector<8x128xf32>
    %105 = arith.addf %103, %104 : vector<8x128xf32>
    %106 = math.tanh %105 : vector<8x128xf32>
    %107 = arith.mulf %102, %106 : vector<8x128xf32>
    %c2 = arith.constant 2 : index
    %c0_35 = arith.constant 0 : index
    %c0_36 = arith.constant 0 : index
    %108 = vector.load %arg0[%c2, %c0_35, %c0_36] : memref<8x8x1xf32, #tpu.memory_space<vmem>>, vector<1x8x1xf32>
    %109 = vector.shape_cast %108 : vector<1x8x1xf32> to vector<8x1xf32>
    %110 = vector.broadcast %109 : vector<8x1xf32> to vector<8x512xf32>
    %111 = vector.broadcast %0 : vector<1x512xf32> to vector<8x512xf32>
    %112 = arith.mulf %110, %111 : vector<8x512xf32>
    %113 = vector.broadcast %6 : vector<1x512xf32> to vector<8x512xf32>
    %114 = arith.addf %112, %113 : vector<8x512xf32>
    %cst_37 = arith.constant dense<0.000000e+00> : vector<8x512xf32>
    %115 = tpu.matmul %77, %3, %cst_37 {dimension_numbers = #tpu.dot_dimension_numbers<[1], [0], [0], [1], [0, 0, 1, 1], [], []>} : vector<8x128xf32>, vector<128x512xf32>, vector<8x512xf32> -> vector<8x512xf32>
    %116 = arith.addf %114, %115 : vector<8x512xf32>
    %117 = vector.extract_strided_slice %116 {offsets = [0, 0], sizes = [8, 128], strides = [1, 1]} : vector<8x512xf32> to vector<8x128xf32>
    %118 = arith.negf %117 : vector<8x128xf32>
    %119 = math.exp %118 : vector<8x128xf32>
    %cst_38 = arith.constant 1.000000e+00 : f32
    %120 = vector.broadcast %cst_38 : f32 to vector<8x128xf32>
    %121 = arith.addf %120, %119 : vector<8x128xf32>
    %122 = arith.divf %120, %121 : vector<8x128xf32>
    %123 = vector.extract_strided_slice %116 {offsets = [0, 128], sizes = [8, 128], strides = [1, 1]} : vector<8x512xf32> to vector<8x128xf32>
    %124 = arith.negf %123 : vector<8x128xf32>
    %125 = math.exp %124 : vector<8x128xf32>
    %cst_39 = arith.constant 1.000000e+00 : f32
    %126 = vector.broadcast %cst_39 : f32 to vector<8x128xf32>
    %127 = arith.addf %126, %125 : vector<8x128xf32>
    %128 = arith.divf %126, %127 : vector<8x128xf32>
    %129 = vector.extract_strided_slice %116 {offsets = [0, 256], sizes = [8, 128], strides = [1, 1]} : vector<8x512xf32> to vector<8x128xf32>
    %130 = math.tanh %129 : vector<8x128xf32>
    %131 = vector.extract_strided_slice %116 {offsets = [0, 384], sizes = [8, 128], strides = [1, 1]} : vector<8x512xf32> to vector<8x128xf32>
    %132 = arith.negf %131 : vector<8x128xf32>
    %133 = math.exp %132 : vector<8x128xf32>
    %cst_40 = arith.constant 1.000000e+00 : f32
    %134 = vector.broadcast %cst_40 : f32 to vector<8x128xf32>
    %135 = arith.addf %134, %133 : vector<8x128xf32>
    %136 = arith.divf %134, %135 : vector<8x128xf32>
    %137 = arith.mulf %128, %75 : vector<8x128xf32>
    %138 = arith.mulf %122, %130 : vector<8x128xf32>
    %139 = arith.addf %137, %138 : vector<8x128xf32>
    %140 = math.tanh %139 : vector<8x128xf32>
    %141 = arith.mulf %136, %140 : vector<8x128xf32>
    %cst_41 = arith.constant dense<0.000000e+00> : vector<8x512xf32>
    %142 = tpu.matmul %77, %1, %cst_41 {dimension_numbers = #tpu.dot_dimension_numbers<[1], [0], [0], [1], [0, 0, 1, 1], [], []>} : vector<8x128xf32>, vector<128x512xf32>, vector<8x512xf32> -> vector<8x512xf32>
    %143 = vector.broadcast %7 : vector<1x512xf32> to vector<8x512xf32>
    %144 = arith.addf %142, %143 : vector<8x512xf32>
    %cst_42 = arith.constant dense<0.000000e+00> : vector<8x512xf32>
    %145 = tpu.matmul %107, %4, %cst_42 {dimension_numbers = #tpu.dot_dimension_numbers<[1], [0], [0], [1], [0, 0, 1, 1], [], []>} : vector<8x128xf32>, vector<128x512xf32>, vector<8x512xf32> -> vector<8x512xf32>
    %146 = arith.addf %144, %145 : vector<8x512xf32>
    %147 = vector.extract_strided_slice %146 {offsets = [0, 0], sizes = [8, 128], strides = [1, 1]} : vector<8x512xf32> to vector<8x128xf32>
    %148 = arith.negf %147 : vector<8x128xf32>
    %149 = math.exp %148 : vector<8x128xf32>
    %cst_43 = arith.constant 1.000000e+00 : f32
    %150 = vector.broadcast %cst_43 : f32 to vector<8x128xf32>
    %151 = arith.addf %150, %149 : vector<8x128xf32>
    %152 = arith.divf %150, %151 : vector<8x128xf32>
    %153 = vector.extract_strided_slice %146 {offsets = [0, 128], sizes = [8, 128], strides = [1, 1]} : vector<8x512xf32> to vector<8x128xf32>
    %154 = arith.negf %153 : vector<8x128xf32>
    %155 = math.exp %154 : vector<8x128xf32>
    %cst_44 = arith.constant 1.000000e+00 : f32
    %156 = vector.broadcast %cst_44 : f32 to vector<8x128xf32>
    %157 = arith.addf %156, %155 : vector<8x128xf32>
    %158 = arith.divf %156, %157 : vector<8x128xf32>
    %159 = vector.extract_strided_slice %146 {offsets = [0, 256], sizes = [8, 128], strides = [1, 1]} : vector<8x512xf32> to vector<8x128xf32>
    %160 = math.tanh %159 : vector<8x128xf32>
    %161 = vector.extract_strided_slice %146 {offsets = [0, 384], sizes = [8, 128], strides = [1, 1]} : vector<8x512xf32> to vector<8x128xf32>
    %162 = arith.negf %161 : vector<8x128xf32>
    %163 = math.exp %162 : vector<8x128xf32>
    %cst_45 = arith.constant 1.000000e+00 : f32
    %164 = vector.broadcast %cst_45 : f32 to vector<8x128xf32>
    %165 = arith.addf %164, %163 : vector<8x128xf32>
    %166 = arith.divf %164, %165 : vector<8x128xf32>
    %167 = arith.mulf %158, %105 : vector<8x128xf32>
    %168 = arith.mulf %152, %160 : vector<8x128xf32>
    %169 = arith.addf %167, %168 : vector<8x128xf32>
    %170 = math.tanh %169 : vector<8x128xf32>
    %171 = arith.mulf %166, %170 : vector<8x128xf32>
    %cst_46 = arith.constant dense<0.000000e+00> : vector<8x512xf32>
    %172 = tpu.matmul %107, %2, %cst_46 {dimension_numbers = #tpu.dot_dimension_numbers<[1], [0], [0], [1], [0, 0, 1, 1], [], []>} : vector<8x128xf32>, vector<128x512xf32>, vector<8x512xf32> -> vector<8x512xf32>
    %173 = vector.broadcast %8 : vector<1x512xf32> to vector<8x512xf32>
    %174 = arith.addf %172, %173 : vector<8x512xf32>
    %cst_47 = arith.constant dense<0.000000e+00> : vector<8x512xf32>
    %175 = tpu.matmul %9, %5, %cst_47 {dimension_numbers = #tpu.dot_dimension_numbers<[1], [0], [0], [1], [0, 0, 1, 1], [], []>} : vector<8x128xf32>, vector<128x512xf32>, vector<8x512xf32> -> vector<8x512xf32>
    %176 = arith.addf %174, %175 : vector<8x512xf32>
    %177 = vector.extract_strided_slice %176 {offsets = [0, 0], sizes = [8, 128], strides = [1, 1]} : vector<8x512xf32> to vector<8x128xf32>
    %178 = arith.negf %177 : vector<8x128xf32>
    %179 = math.exp %178 : vector<8x128xf32>
    %cst_48 = arith.constant 1.000000e+00 : f32
    %180 = vector.broadcast %cst_48 : f32 to vector<8x128xf32>
    %181 = arith.addf %180, %179 : vector<8x128xf32>
    %182 = arith.divf %180, %181 : vector<8x128xf32>
    %183 = vector.extract_strided_slice %176 {offsets = [0, 128], sizes = [8, 128], strides = [1, 1]} : vector<8x512xf32> to vector<8x128xf32>
    %184 = arith.negf %183 : vector<8x128xf32>
    %185 = math.exp %184 : vector<8x128xf32>
    %cst_49 = arith.constant 1.000000e+00 : f32
    %186 = vector.broadcast %cst_49 : f32 to vector<8x128xf32>
    %187 = arith.addf %186, %185 : vector<8x128xf32>
    %188 = arith.divf %186, %187 : vector<8x128xf32>
    %189 = vector.extract_strided_slice %176 {offsets = [0, 256], sizes = [8, 128], strides = [1, 1]} : vector<8x512xf32> to vector<8x128xf32>
    %190 = math.tanh %189 : vector<8x128xf32>
    %191 = vector.extract_strided_slice %176 {offsets = [0, 384], sizes = [8, 128], strides = [1, 1]} : vector<8x512xf32> to vector<8x128xf32>
    %192 = arith.negf %191 : vector<8x128xf32>
    %193 = math.exp %192 : vector<8x128xf32>
    %cst_50 = arith.constant 1.000000e+00 : f32
    %194 = vector.broadcast %cst_50 : f32 to vector<8x128xf32>
    %195 = arith.addf %194, %193 : vector<8x128xf32>
    %196 = arith.divf %194, %195 : vector<8x128xf32>
    %197 = arith.mulf %188, %9 : vector<8x128xf32>
    %198 = arith.mulf %182, %190 : vector<8x128xf32>
    %199 = arith.addf %197, %198 : vector<8x128xf32>
    %200 = math.tanh %199 : vector<8x128xf32>
    %201 = arith.mulf %196, %200 : vector<8x128xf32>
    %c3 = arith.constant 3 : index
    %c0_51 = arith.constant 0 : index
    %c0_52 = arith.constant 0 : index
    %202 = vector.load %arg0[%c3, %c0_51, %c0_52] : memref<8x8x1xf32, #tpu.memory_space<vmem>>, vector<1x8x1xf32>
    %203 = vector.shape_cast %202 : vector<1x8x1xf32> to vector<8x1xf32>
    %204 = vector.broadcast %203 : vector<8x1xf32> to vector<8x512xf32>
    %205 = vector.broadcast %0 : vector<1x512xf32> to vector<8x512xf32>
    %206 = arith.mulf %204, %205 : vector<8x512xf32>
    %207 = vector.broadcast %6 : vector<1x512xf32> to vector<8x512xf32>
    %208 = arith.addf %206, %207 : vector<8x512xf32>
    %cst_53 = arith.constant dense<0.000000e+00> : vector<8x512xf32>
    %209 = tpu.matmul %141, %3, %cst_53 {dimension_numbers = #tpu.dot_dimension_numbers<[1], [0], [0], [1], [0, 0, 1, 1], [], []>} : vector<8x128xf32>, vector<128x512xf32>, vector<8x512xf32> -> vector<8x512xf32>
    %210 = arith.addf %208, %209 : vector<8x512xf32>
    %211 = vector.extract_strided_slice %210 {offsets = [0, 0], sizes = [8, 128], strides = [1, 1]} : vector<8x512xf32> to vector<8x128xf32>
    %212 = arith.negf %211 : vector<8x128xf32>
    %213 = math.exp %212 : vector<8x128xf32>
    %cst_54 = arith.constant 1.000000e+00 : f32
    %214 = vector.broadcast %cst_54 : f32 to vector<8x128xf32>
    %215 = arith.addf %214, %213 : vector<8x128xf32>
    %216 = arith.divf %214, %215 : vector<8x128xf32>
    %217 = vector.extract_strided_slice %210 {offsets = [0, 128], sizes = [8, 128], strides = [1, 1]} : vector<8x512xf32> to vector<8x128xf32>
    %218 = arith.negf %217 : vector<8x128xf32>
    %219 = math.exp %218 : vector<8x128xf32>
    %cst_55 = arith.constant 1.000000e+00 : f32
    %220 = vector.broadcast %cst_55 : f32 to vector<8x128xf32>
    %221 = arith.addf %220, %219 : vector<8x128xf32>
    %222 = arith.divf %220, %221 : vector<8x128xf32>
    %223 = vector.extract_strided_slice %210 {offsets = [0, 256], sizes = [8, 128], strides = [1, 1]} : vector<8x512xf32> to vector<8x128xf32>
    %224 = math.tanh %223 : vector<8x128xf32>
    %225 = vector.extract_strided_slice %210 {offsets = [0, 384], sizes = [8, 128], strides = [1, 1]} : vector<8x512xf32> to vector<8x128xf32>
    %226 = arith.negf %225 : vector<8x128xf32>
    %227 = math.exp %226 : vector<8x128xf32>
    %cst_56 = arith.constant 1.000000e+00 : f32
    %228 = vector.broadcast %cst_56 : f32 to vector<8x128xf32>
    %229 = arith.addf %228, %227 : vector<8x128xf32>
    %230 = arith.divf %228, %229 : vector<8x128xf32>
    %231 = arith.mulf %222, %139 : vector<8x128xf32>
    %232 = arith.mulf %216, %224 : vector<8x128xf32>
    %233 = arith.addf %231, %232 : vector<8x128xf32>
    %234 = math.tanh %233 : vector<8x128xf32>
    %235 = arith.mulf %230, %234 : vector<8x128xf32>
    %cst_57 = arith.constant dense<0.000000e+00> : vector<8x512xf32>
    %236 = tpu.matmul %141, %1, %cst_57 {dimension_numbers = #tpu.dot_dimension_numbers<[1], [0], [0], [1], [0, 0, 1, 1], [], []>} : vector<8x128xf32>, vector<128x512xf32>, vector<8x512xf32> -> vector<8x512xf32>
    %237 = vector.broadcast %7 : vector<1x512xf32> to vector<8x512xf32>
    %238 = arith.addf %236, %237 : vector<8x512xf32>
    %cst_58 = arith.constant dense<0.000000e+00> : vector<8x512xf32>
    %239 = tpu.matmul %171, %4, %cst_58 {dimension_numbers = #tpu.dot_dimension_numbers<[1], [0], [0], [1], [0, 0, 1, 1], [], []>} : vector<8x128xf32>, vector<128x512xf32>, vector<8x512xf32> -> vector<8x512xf32>
    %240 = arith.addf %238, %239 : vector<8x512xf32>
    %241 = vector.extract_strided_slice %240 {offsets = [0, 0], sizes = [8, 128], strides = [1, 1]} : vector<8x512xf32> to vector<8x128xf32>
    %242 = arith.negf %241 : vector<8x128xf32>
    %243 = math.exp %242 : vector<8x128xf32>
    %cst_59 = arith.constant 1.000000e+00 : f32
    %244 = vector.broadcast %cst_59 : f32 to vector<8x128xf32>
    %245 = arith.addf %244, %243 : vector<8x128xf32>
    %246 = arith.divf %244, %245 : vector<8x128xf32>
    %247 = vector.extract_strided_slice %240 {offsets = [0, 128], sizes = [8, 128], strides = [1, 1]} : vector<8x512xf32> to vector<8x128xf32>
    %248 = arith.negf %247 : vector<8x128xf32>
    %249 = math.exp %248 : vector<8x128xf32>
    %cst_60 = arith.constant 1.000000e+00 : f32
    %250 = vector.broadcast %cst_60 : f32 to vector<8x128xf32>
    %251 = arith.addf %250, %249 : vector<8x128xf32>
    %252 = arith.divf %250, %251 : vector<8x128xf32>
    %253 = vector.extract_strided_slice %240 {offsets = [0, 256], sizes = [8, 128], strides = [1, 1]} : vector<8x512xf32> to vector<8x128xf32>
    %254 = math.tanh %253 : vector<8x128xf32>
    %255 = vector.extract_strided_slice %240 {offsets = [0, 384], sizes = [8, 128], strides = [1, 1]} : vector<8x512xf32> to vector<8x128xf32>
    %256 = arith.negf %255 : vector<8x128xf32>
    %257 = math.exp %256 : vector<8x128xf32>
    %cst_61 = arith.constant 1.000000e+00 : f32
    %258 = vector.broadcast %cst_61 : f32 to vector<8x128xf32>
    %259 = arith.addf %258, %257 : vector<8x128xf32>
    %260 = arith.divf %258, %259 : vector<8x128xf32>
    %261 = arith.mulf %252, %169 : vector<8x128xf32>
    %262 = arith.mulf %246, %254 : vector<8x128xf32>
    %263 = arith.addf %261, %262 : vector<8x128xf32>
    %264 = math.tanh %263 : vector<8x128xf32>
    %265 = arith.mulf %260, %264 : vector<8x128xf32>
    %cst_62 = arith.constant dense<0.000000e+00> : vector<8x512xf32>
    %266 = tpu.matmul %171, %2, %cst_62 {dimension_numbers = #tpu.dot_dimension_numbers<[1], [0], [0], [1], [0, 0, 1, 1], [], []>} : vector<8x128xf32>, vector<128x512xf32>, vector<8x512xf32> -> vector<8x512xf32>
    %267 = vector.broadcast %8 : vector<1x512xf32> to vector<8x512xf32>
    %268 = arith.addf %266, %267 : vector<8x512xf32>
    %cst_63 = arith.constant dense<0.000000e+00> : vector<8x512xf32>
    %269 = tpu.matmul %201, %5, %cst_63 {dimension_numbers = #tpu.dot_dimension_numbers<[1], [0], [0], [1], [0, 0, 1, 1], [], []>} : vector<8x128xf32>, vector<128x512xf32>, vector<8x512xf32> -> vector<8x512xf32>
    %270 = arith.addf %268, %269 : vector<8x512xf32>
    %271 = vector.extract_strided_slice %270 {offsets = [0, 0], sizes = [8, 128], strides = [1, 1]} : vector<8x512xf32> to vector<8x128xf32>
    %272 = arith.negf %271 : vector<8x128xf32>
    %273 = math.exp %272 : vector<8x128xf32>
    %cst_64 = arith.constant 1.000000e+00 : f32
    %274 = vector.broadcast %cst_64 : f32 to vector<8x128xf32>
    %275 = arith.addf %274, %273 : vector<8x128xf32>
    %276 = arith.divf %274, %275 : vector<8x128xf32>
    %277 = vector.extract_strided_slice %270 {offsets = [0, 128], sizes = [8, 128], strides = [1, 1]} : vector<8x512xf32> to vector<8x128xf32>
    %278 = arith.negf %277 : vector<8x128xf32>
    %279 = math.exp %278 : vector<8x128xf32>
    %cst_65 = arith.constant 1.000000e+00 : f32
    %280 = vector.broadcast %cst_65 : f32 to vector<8x128xf32>
    %281 = arith.addf %280, %279 : vector<8x128xf32>
    %282 = arith.divf %280, %281 : vector<8x128xf32>
    %283 = vector.extract_strided_slice %270 {offsets = [0, 256], sizes = [8, 128], strides = [1, 1]} : vector<8x512xf32> to vector<8x128xf32>
    %284 = math.tanh %283 : vector<8x128xf32>
    %285 = vector.extract_strided_slice %270 {offsets = [0, 384], sizes = [8, 128], strides = [1, 1]} : vector<8x512xf32> to vector<8x128xf32>
    %286 = arith.negf %285 : vector<8x128xf32>
    %287 = math.exp %286 : vector<8x128xf32>
    %cst_66 = arith.constant 1.000000e+00 : f32
    %288 = vector.broadcast %cst_66 : f32 to vector<8x128xf32>
    %289 = arith.addf %288, %287 : vector<8x128xf32>
    %290 = arith.divf %288, %289 : vector<8x128xf32>
    %291 = arith.mulf %282, %199 : vector<8x128xf32>
    %292 = arith.mulf %276, %284 : vector<8x128xf32>
    %293 = arith.addf %291, %292 : vector<8x128xf32>
    %294 = math.tanh %293 : vector<8x128xf32>
    %295 = arith.mulf %290, %294 : vector<8x128xf32>
    %c4 = arith.constant 4 : index
    %c0_67 = arith.constant 0 : index
    %c0_68 = arith.constant 0 : index
    %296 = vector.load %arg0[%c4, %c0_67, %c0_68] : memref<8x8x1xf32, #tpu.memory_space<vmem>>, vector<1x8x1xf32>
    %297 = vector.shape_cast %296 : vector<1x8x1xf32> to vector<8x1xf32>
    %298 = vector.broadcast %297 : vector<8x1xf32> to vector<8x512xf32>
    %299 = vector.broadcast %0 : vector<1x512xf32> to vector<8x512xf32>
    %300 = arith.mulf %298, %299 : vector<8x512xf32>
    %301 = vector.broadcast %6 : vector<1x512xf32> to vector<8x512xf32>
    %302 = arith.addf %300, %301 : vector<8x512xf32>
    %cst_69 = arith.constant dense<0.000000e+00> : vector<8x512xf32>
    %303 = tpu.matmul %235, %3, %cst_69 {dimension_numbers = #tpu.dot_dimension_numbers<[1], [0], [0], [1], [0, 0, 1, 1], [], []>} : vector<8x128xf32>, vector<128x512xf32>, vector<8x512xf32> -> vector<8x512xf32>
    %304 = arith.addf %302, %303 : vector<8x512xf32>
    %305 = vector.extract_strided_slice %304 {offsets = [0, 0], sizes = [8, 128], strides = [1, 1]} : vector<8x512xf32> to vector<8x128xf32>
    %306 = arith.negf %305 : vector<8x128xf32>
    %307 = math.exp %306 : vector<8x128xf32>
    %cst_70 = arith.constant 1.000000e+00 : f32
    %308 = vector.broadcast %cst_70 : f32 to vector<8x128xf32>
    %309 = arith.addf %308, %307 : vector<8x128xf32>
    %310 = arith.divf %308, %309 : vector<8x128xf32>
    %311 = vector.extract_strided_slice %304 {offsets = [0, 128], sizes = [8, 128], strides = [1, 1]} : vector<8x512xf32> to vector<8x128xf32>
    %312 = arith.negf %311 : vector<8x128xf32>
    %313 = math.exp %312 : vector<8x128xf32>
    %cst_71 = arith.constant 1.000000e+00 : f32
    %314 = vector.broadcast %cst_71 : f32 to vector<8x128xf32>
    %315 = arith.addf %314, %313 : vector<8x128xf32>
    %316 = arith.divf %314, %315 : vector<8x128xf32>
    %317 = vector.extract_strided_slice %304 {offsets = [0, 256], sizes = [8, 128], strides = [1, 1]} : vector<8x512xf32> to vector<8x128xf32>
    %318 = math.tanh %317 : vector<8x128xf32>
    %319 = vector.extract_strided_slice %304 {offsets = [0, 384], sizes = [8, 128], strides = [1, 1]} : vector<8x512xf32> to vector<8x128xf32>
    %320 = arith.negf %319 : vector<8x128xf32>
    %321 = math.exp %320 : vector<8x128xf32>
    %cst_72 = arith.constant 1.000000e+00 : f32
    %322 = vector.broadcast %cst_72 : f32 to vector<8x128xf32>
    %323 = arith.addf %322, %321 : vector<8x128xf32>
    %324 = arith.divf %322, %323 : vector<8x128xf32>
    %325 = arith.mulf %316, %233 : vector<8x128xf32>
    %326 = arith.mulf %310, %318 : vector<8x128xf32>
    %327 = arith.addf %325, %326 : vector<8x128xf32>
    %328 = math.tanh %327 : vector<8x128xf32>
    %329 = arith.mulf %324, %328 : vector<8x128xf32>
    %cst_73 = arith.constant dense<0.000000e+00> : vector<8x512xf32>
    %330 = tpu.matmul %235, %1, %cst_73 {dimension_numbers = #tpu.dot_dimension_numbers<[1], [0], [0], [1], [0, 0, 1, 1], [], []>} : vector<8x128xf32>, vector<128x512xf32>, vector<8x512xf32> -> vector<8x512xf32>
    %331 = vector.broadcast %7 : vector<1x512xf32> to vector<8x512xf32>
    %332 = arith.addf %330, %331 : vector<8x512xf32>
    %cst_74 = arith.constant dense<0.000000e+00> : vector<8x512xf32>
    %333 = tpu.matmul %265, %4, %cst_74 {dimension_numbers = #tpu.dot_dimension_numbers<[1], [0], [0], [1], [0, 0, 1, 1], [], []>} : vector<8x128xf32>, vector<128x512xf32>, vector<8x512xf32> -> vector<8x512xf32>
    %334 = arith.addf %332, %333 : vector<8x512xf32>
    %335 = vector.extract_strided_slice %334 {offsets = [0, 0], sizes = [8, 128], strides = [1, 1]} : vector<8x512xf32> to vector<8x128xf32>
    %336 = arith.negf %335 : vector<8x128xf32>
    %337 = math.exp %336 : vector<8x128xf32>
    %cst_75 = arith.constant 1.000000e+00 : f32
    %338 = vector.broadcast %cst_75 : f32 to vector<8x128xf32>
    %339 = arith.addf %338, %337 : vector<8x128xf32>
    %340 = arith.divf %338, %339 : vector<8x128xf32>
    %341 = vector.extract_strided_slice %334 {offsets = [0, 128], sizes = [8, 128], strides = [1, 1]} : vector<8x512xf32> to vector<8x128xf32>
    %342 = arith.negf %341 : vector<8x128xf32>
    %343 = math.exp %342 : vector<8x128xf32>
    %cst_76 = arith.constant 1.000000e+00 : f32
    %344 = vector.broadcast %cst_76 : f32 to vector<8x128xf32>
    %345 = arith.addf %344, %343 : vector<8x128xf32>
    %346 = arith.divf %344, %345 : vector<8x128xf32>
    %347 = vector.extract_strided_slice %334 {offsets = [0, 256], sizes = [8, 128], strides = [1, 1]} : vector<8x512xf32> to vector<8x128xf32>
    %348 = math.tanh %347 : vector<8x128xf32>
    %349 = vector.extract_strided_slice %334 {offsets = [0, 384], sizes = [8, 128], strides = [1, 1]} : vector<8x512xf32> to vector<8x128xf32>
    %350 = arith.negf %349 : vector<8x128xf32>
    %351 = math.exp %350 : vector<8x128xf32>
    %cst_77 = arith.constant 1.000000e+00 : f32
    %352 = vector.broadcast %cst_77 : f32 to vector<8x128xf32>
    %353 = arith.addf %352, %351 : vector<8x128xf32>
    %354 = arith.divf %352, %353 : vector<8x128xf32>
    %355 = arith.mulf %346, %263 : vector<8x128xf32>
    %356 = arith.mulf %340, %348 : vector<8x128xf32>
    %357 = arith.addf %355, %356 : vector<8x128xf32>
    %358 = math.tanh %357 : vector<8x128xf32>
    %359 = arith.mulf %354, %358 : vector<8x128xf32>
    %cst_78 = arith.constant dense<0.000000e+00> : vector<8x512xf32>
    %360 = tpu.matmul %265, %2, %cst_78 {dimension_numbers = #tpu.dot_dimension_numbers<[1], [0], [0], [1], [0, 0, 1, 1], [], []>} : vector<8x128xf32>, vector<128x512xf32>, vector<8x512xf32> -> vector<8x512xf32>
    %361 = vector.broadcast %8 : vector<1x512xf32> to vector<8x512xf32>
    %362 = arith.addf %360, %361 : vector<8x512xf32>
    %cst_79 = arith.constant dense<0.000000e+00> : vector<8x512xf32>
    %363 = tpu.matmul %295, %5, %cst_79 {dimension_numbers = #tpu.dot_dimension_numbers<[1], [0], [0], [1], [0, 0, 1, 1], [], []>} : vector<8x128xf32>, vector<128x512xf32>, vector<8x512xf32> -> vector<8x512xf32>
    %364 = arith.addf %362, %363 : vector<8x512xf32>
    %365 = vector.extract_strided_slice %364 {offsets = [0, 0], sizes = [8, 128], strides = [1, 1]} : vector<8x512xf32> to vector<8x128xf32>
    %366 = arith.negf %365 : vector<8x128xf32>
    %367 = math.exp %366 : vector<8x128xf32>
    %cst_80 = arith.constant 1.000000e+00 : f32
    %368 = vector.broadcast %cst_80 : f32 to vector<8x128xf32>
    %369 = arith.addf %368, %367 : vector<8x128xf32>
    %370 = arith.divf %368, %369 : vector<8x128xf32>
    %371 = vector.extract_strided_slice %364 {offsets = [0, 128], sizes = [8, 128], strides = [1, 1]} : vector<8x512xf32> to vector<8x128xf32>
    %372 = arith.negf %371 : vector<8x128xf32>
    %373 = math.exp %372 : vector<8x128xf32>
    %cst_81 = arith.constant 1.000000e+00 : f32
    %374 = vector.broadcast %cst_81 : f32 to vector<8x128xf32>
    %375 = arith.addf %374, %373 : vector<8x128xf32>
    %376 = arith.divf %374, %375 : vector<8x128xf32>
    %377 = vector.extract_strided_slice %364 {offsets = [0, 256], sizes = [8, 128], strides = [1, 1]} : vector<8x512xf32> to vector<8x128xf32>
    %378 = math.tanh %377 : vector<8x128xf32>
    %379 = vector.extract_strided_slice %364 {offsets = [0, 384], sizes = [8, 128], strides = [1, 1]} : vector<8x512xf32> to vector<8x128xf32>
    %380 = arith.negf %379 : vector<8x128xf32>
    %381 = math.exp %380 : vector<8x128xf32>
    %cst_82 = arith.constant 1.000000e+00 : f32
    %382 = vector.broadcast %cst_82 : f32 to vector<8x128xf32>
    %383 = arith.addf %382, %381 : vector<8x128xf32>
    %384 = arith.divf %382, %383 : vector<8x128xf32>
    %385 = arith.mulf %376, %293 : vector<8x128xf32>
    %386 = arith.mulf %370, %378 : vector<8x128xf32>
    %387 = arith.addf %385, %386 : vector<8x128xf32>
    %388 = math.tanh %387 : vector<8x128xf32>
    %389 = arith.mulf %384, %388 : vector<8x128xf32>
    %c5 = arith.constant 5 : index
    %c0_83 = arith.constant 0 : index
    %c0_84 = arith.constant 0 : index
    %390 = vector.load %arg0[%c5, %c0_83, %c0_84] : memref<8x8x1xf32, #tpu.memory_space<vmem>>, vector<1x8x1xf32>
    %391 = vector.shape_cast %390 : vector<1x8x1xf32> to vector<8x1xf32>
    %392 = vector.broadcast %391 : vector<8x1xf32> to vector<8x512xf32>
    %393 = vector.broadcast %0 : vector<1x512xf32> to vector<8x512xf32>
    %394 = arith.mulf %392, %393 : vector<8x512xf32>
    %395 = vector.broadcast %6 : vector<1x512xf32> to vector<8x512xf32>
    %396 = arith.addf %394, %395 : vector<8x512xf32>
    %cst_85 = arith.constant dense<0.000000e+00> : vector<8x512xf32>
    %397 = tpu.matmul %329, %3, %cst_85 {dimension_numbers = #tpu.dot_dimension_numbers<[1], [0], [0], [1], [0, 0, 1, 1], [], []>} : vector<8x128xf32>, vector<128x512xf32>, vector<8x512xf32> -> vector<8x512xf32>
    %398 = arith.addf %396, %397 : vector<8x512xf32>
    %399 = vector.extract_strided_slice %398 {offsets = [0, 0], sizes = [8, 128], strides = [1, 1]} : vector<8x512xf32> to vector<8x128xf32>
    %400 = arith.negf %399 : vector<8x128xf32>
    %401 = math.exp %400 : vector<8x128xf32>
    %cst_86 = arith.constant 1.000000e+00 : f32
    %402 = vector.broadcast %cst_86 : f32 to vector<8x128xf32>
    %403 = arith.addf %402, %401 : vector<8x128xf32>
    %404 = arith.divf %402, %403 : vector<8x128xf32>
    %405 = vector.extract_strided_slice %398 {offsets = [0, 128], sizes = [8, 128], strides = [1, 1]} : vector<8x512xf32> to vector<8x128xf32>
    %406 = arith.negf %405 : vector<8x128xf32>
    %407 = math.exp %406 : vector<8x128xf32>
    %cst_87 = arith.constant 1.000000e+00 : f32
    %408 = vector.broadcast %cst_87 : f32 to vector<8x128xf32>
    %409 = arith.addf %408, %407 : vector<8x128xf32>
    %410 = arith.divf %408, %409 : vector<8x128xf32>
    %411 = vector.extract_strided_slice %398 {offsets = [0, 256], sizes = [8, 128], strides = [1, 1]} : vector<8x512xf32> to vector<8x128xf32>
    %412 = math.tanh %411 : vector<8x128xf32>
    %413 = vector.extract_strided_slice %398 {offsets = [0, 384], sizes = [8, 128], strides = [1, 1]} : vector<8x512xf32> to vector<8x128xf32>
    %414 = arith.negf %413 : vector<8x128xf32>
    %415 = math.exp %414 : vector<8x128xf32>
    %cst_88 = arith.constant 1.000000e+00 : f32
    %416 = vector.broadcast %cst_88 : f32 to vector<8x128xf32>
    %417 = arith.addf %416, %415 : vector<8x128xf32>
    %418 = arith.divf %416, %417 : vector<8x128xf32>
    %419 = arith.mulf %410, %327 : vector<8x128xf32>
    %420 = arith.mulf %404, %412 : vector<8x128xf32>
    %421 = arith.addf %419, %420 : vector<8x128xf32>
    %422 = math.tanh %421 : vector<8x128xf32>
    %423 = arith.mulf %418, %422 : vector<8x128xf32>
    %cst_89 = arith.constant dense<0.000000e+00> : vector<8x512xf32>
    %424 = tpu.matmul %329, %1, %cst_89 {dimension_numbers = #tpu.dot_dimension_numbers<[1], [0], [0], [1], [0, 0, 1, 1], [], []>} : vector<8x128xf32>, vector<128x512xf32>, vector<8x512xf32> -> vector<8x512xf32>
    %425 = vector.broadcast %7 : vector<1x512xf32> to vector<8x512xf32>
    %426 = arith.addf %424, %425 : vector<8x512xf32>
    %cst_90 = arith.constant dense<0.000000e+00> : vector<8x512xf32>
    %427 = tpu.matmul %359, %4, %cst_90 {dimension_numbers = #tpu.dot_dimension_numbers<[1], [0], [0], [1], [0, 0, 1, 1], [], []>} : vector<8x128xf32>, vector<128x512xf32>, vector<8x512xf32> -> vector<8x512xf32>
    %428 = arith.addf %426, %427 : vector<8x512xf32>
    %429 = vector.extract_strided_slice %428 {offsets = [0, 0], sizes = [8, 128], strides = [1, 1]} : vector<8x512xf32> to vector<8x128xf32>
    %430 = arith.negf %429 : vector<8x128xf32>
    %431 = math.exp %430 : vector<8x128xf32>
    %cst_91 = arith.constant 1.000000e+00 : f32
    %432 = vector.broadcast %cst_91 : f32 to vector<8x128xf32>
    %433 = arith.addf %432, %431 : vector<8x128xf32>
    %434 = arith.divf %432, %433 : vector<8x128xf32>
    %435 = vector.extract_strided_slice %428 {offsets = [0, 128], sizes = [8, 128], strides = [1, 1]} : vector<8x512xf32> to vector<8x128xf32>
    %436 = arith.negf %435 : vector<8x128xf32>
    %437 = math.exp %436 : vector<8x128xf32>
    %cst_92 = arith.constant 1.000000e+00 : f32
    %438 = vector.broadcast %cst_92 : f32 to vector<8x128xf32>
    %439 = arith.addf %438, %437 : vector<8x128xf32>
    %440 = arith.divf %438, %439 : vector<8x128xf32>
    %441 = vector.extract_strided_slice %428 {offsets = [0, 256], sizes = [8, 128], strides = [1, 1]} : vector<8x512xf32> to vector<8x128xf32>
    %442 = math.tanh %441 : vector<8x128xf32>
    %443 = vector.extract_strided_slice %428 {offsets = [0, 384], sizes = [8, 128], strides = [1, 1]} : vector<8x512xf32> to vector<8x128xf32>
    %444 = arith.negf %443 : vector<8x128xf32>
    %445 = math.exp %444 : vector<8x128xf32>
    %cst_93 = arith.constant 1.000000e+00 : f32
    %446 = vector.broadcast %cst_93 : f32 to vector<8x128xf32>
    %447 = arith.addf %446, %445 : vector<8x128xf32>
    %448 = arith.divf %446, %447 : vector<8x128xf32>
    %449 = arith.mulf %440, %357 : vector<8x128xf32>
    %450 = arith.mulf %434, %442 : vector<8x128xf32>
    %451 = arith.addf %449, %450 : vector<8x128xf32>
    %452 = math.tanh %451 : vector<8x128xf32>
    %453 = arith.mulf %448, %452 : vector<8x128xf32>
    %cst_94 = arith.constant dense<0.000000e+00> : vector<8x512xf32>
    %454 = tpu.matmul %359, %2, %cst_94 {dimension_numbers = #tpu.dot_dimension_numbers<[1], [0], [0], [1], [0, 0, 1, 1], [], []>} : vector<8x128xf32>, vector<128x512xf32>, vector<8x512xf32> -> vector<8x512xf32>
    %455 = vector.broadcast %8 : vector<1x512xf32> to vector<8x512xf32>
    %456 = arith.addf %454, %455 : vector<8x512xf32>
    %cst_95 = arith.constant dense<0.000000e+00> : vector<8x512xf32>
    %457 = tpu.matmul %389, %5, %cst_95 {dimension_numbers = #tpu.dot_dimension_numbers<[1], [0], [0], [1], [0, 0, 1, 1], [], []>} : vector<8x128xf32>, vector<128x512xf32>, vector<8x512xf32> -> vector<8x512xf32>
    %458 = arith.addf %456, %457 : vector<8x512xf32>
    %459 = vector.extract_strided_slice %458 {offsets = [0, 0], sizes = [8, 128], strides = [1, 1]} : vector<8x512xf32> to vector<8x128xf32>
    %460 = arith.negf %459 : vector<8x128xf32>
    %461 = math.exp %460 : vector<8x128xf32>
    %cst_96 = arith.constant 1.000000e+00 : f32
    %462 = vector.broadcast %cst_96 : f32 to vector<8x128xf32>
    %463 = arith.addf %462, %461 : vector<8x128xf32>
    %464 = arith.divf %462, %463 : vector<8x128xf32>
    %465 = vector.extract_strided_slice %458 {offsets = [0, 128], sizes = [8, 128], strides = [1, 1]} : vector<8x512xf32> to vector<8x128xf32>
    %466 = arith.negf %465 : vector<8x128xf32>
    %467 = math.exp %466 : vector<8x128xf32>
    %cst_97 = arith.constant 1.000000e+00 : f32
    %468 = vector.broadcast %cst_97 : f32 to vector<8x128xf32>
    %469 = arith.addf %468, %467 : vector<8x128xf32>
    %470 = arith.divf %468, %469 : vector<8x128xf32>
    %471 = vector.extract_strided_slice %458 {offsets = [0, 256], sizes = [8, 128], strides = [1, 1]} : vector<8x512xf32> to vector<8x128xf32>
    %472 = math.tanh %471 : vector<8x128xf32>
    %473 = vector.extract_strided_slice %458 {offsets = [0, 384], sizes = [8, 128], strides = [1, 1]} : vector<8x512xf32> to vector<8x128xf32>
    %474 = arith.negf %473 : vector<8x128xf32>
    %475 = math.exp %474 : vector<8x128xf32>
    %cst_98 = arith.constant 1.000000e+00 : f32
    %476 = vector.broadcast %cst_98 : f32 to vector<8x128xf32>
    %477 = arith.addf %476, %475 : vector<8x128xf32>
    %478 = arith.divf %476, %477 : vector<8x128xf32>
    %479 = arith.mulf %470, %387 : vector<8x128xf32>
    %480 = arith.mulf %464, %472 : vector<8x128xf32>
    %481 = arith.addf %479, %480 : vector<8x128xf32>
    %482 = math.tanh %481 : vector<8x128xf32>
    %483 = arith.mulf %478, %482 : vector<8x128xf32>
    %c6 = arith.constant 6 : index
    %c0_99 = arith.constant 0 : index
    %c0_100 = arith.constant 0 : index
    %484 = vector.load %arg0[%c6, %c0_99, %c0_100] : memref<8x8x1xf32, #tpu.memory_space<vmem>>, vector<1x8x1xf32>
    %485 = vector.shape_cast %484 : vector<1x8x1xf32> to vector<8x1xf32>
    %486 = vector.broadcast %485 : vector<8x1xf32> to vector<8x512xf32>
    %487 = vector.broadcast %0 : vector<1x512xf32> to vector<8x512xf32>
    %488 = arith.mulf %486, %487 : vector<8x512xf32>
    %489 = vector.broadcast %6 : vector<1x512xf32> to vector<8x512xf32>
    %490 = arith.addf %488, %489 : vector<8x512xf32>
    %cst_101 = arith.constant dense<0.000000e+00> : vector<8x512xf32>
    %491 = tpu.matmul %423, %3, %cst_101 {dimension_numbers = #tpu.dot_dimension_numbers<[1], [0], [0], [1], [0, 0, 1, 1], [], []>} : vector<8x128xf32>, vector<128x512xf32>, vector<8x512xf32> -> vector<8x512xf32>
    %492 = arith.addf %490, %491 : vector<8x512xf32>
    %493 = vector.extract_strided_slice %492 {offsets = [0, 0], sizes = [8, 128], strides = [1, 1]} : vector<8x512xf32> to vector<8x128xf32>
    %494 = arith.negf %493 : vector<8x128xf32>
    %495 = math.exp %494 : vector<8x128xf32>
    %cst_102 = arith.constant 1.000000e+00 : f32
    %496 = vector.broadcast %cst_102 : f32 to vector<8x128xf32>
    %497 = arith.addf %496, %495 : vector<8x128xf32>
    %498 = arith.divf %496, %497 : vector<8x128xf32>
    %499 = vector.extract_strided_slice %492 {offsets = [0, 128], sizes = [8, 128], strides = [1, 1]} : vector<8x512xf32> to vector<8x128xf32>
    %500 = arith.negf %499 : vector<8x128xf32>
    %501 = math.exp %500 : vector<8x128xf32>
    %cst_103 = arith.constant 1.000000e+00 : f32
    %502 = vector.broadcast %cst_103 : f32 to vector<8x128xf32>
    %503 = arith.addf %502, %501 : vector<8x128xf32>
    %504 = arith.divf %502, %503 : vector<8x128xf32>
    %505 = vector.extract_strided_slice %492 {offsets = [0, 256], sizes = [8, 128], strides = [1, 1]} : vector<8x512xf32> to vector<8x128xf32>
    %506 = math.tanh %505 : vector<8x128xf32>
    %507 = vector.extract_strided_slice %492 {offsets = [0, 384], sizes = [8, 128], strides = [1, 1]} : vector<8x512xf32> to vector<8x128xf32>
    %508 = arith.negf %507 : vector<8x128xf32>
    %509 = math.exp %508 : vector<8x128xf32>
    %cst_104 = arith.constant 1.000000e+00 : f32
    %510 = vector.broadcast %cst_104 : f32 to vector<8x128xf32>
    %511 = arith.addf %510, %509 : vector<8x128xf32>
    %512 = arith.divf %510, %511 : vector<8x128xf32>
    %513 = arith.mulf %504, %421 : vector<8x128xf32>
    %514 = arith.mulf %498, %506 : vector<8x128xf32>
    %515 = arith.addf %513, %514 : vector<8x128xf32>
    %516 = math.tanh %515 : vector<8x128xf32>
    %517 = arith.mulf %512, %516 : vector<8x128xf32>
    %cst_105 = arith.constant dense<0.000000e+00> : vector<8x512xf32>
    %518 = tpu.matmul %423, %1, %cst_105 {dimension_numbers = #tpu.dot_dimension_numbers<[1], [0], [0], [1], [0, 0, 1, 1], [], []>} : vector<8x128xf32>, vector<128x512xf32>, vector<8x512xf32> -> vector<8x512xf32>
    %519 = vector.broadcast %7 : vector<1x512xf32> to vector<8x512xf32>
    %520 = arith.addf %518, %519 : vector<8x512xf32>
    %cst_106 = arith.constant dense<0.000000e+00> : vector<8x512xf32>
    %521 = tpu.matmul %453, %4, %cst_106 {dimension_numbers = #tpu.dot_dimension_numbers<[1], [0], [0], [1], [0, 0, 1, 1], [], []>} : vector<8x128xf32>, vector<128x512xf32>, vector<8x512xf32> -> vector<8x512xf32>
    %522 = arith.addf %520, %521 : vector<8x512xf32>
    %523 = vector.extract_strided_slice %522 {offsets = [0, 0], sizes = [8, 128], strides = [1, 1]} : vector<8x512xf32> to vector<8x128xf32>
    %524 = arith.negf %523 : vector<8x128xf32>
    %525 = math.exp %524 : vector<8x128xf32>
    %cst_107 = arith.constant 1.000000e+00 : f32
    %526 = vector.broadcast %cst_107 : f32 to vector<8x128xf32>
    %527 = arith.addf %526, %525 : vector<8x128xf32>
    %528 = arith.divf %526, %527 : vector<8x128xf32>
    %529 = vector.extract_strided_slice %522 {offsets = [0, 128], sizes = [8, 128], strides = [1, 1]} : vector<8x512xf32> to vector<8x128xf32>
    %530 = arith.negf %529 : vector<8x128xf32>
    %531 = math.exp %530 : vector<8x128xf32>
    %cst_108 = arith.constant 1.000000e+00 : f32
    %532 = vector.broadcast %cst_108 : f32 to vector<8x128xf32>
    %533 = arith.addf %532, %531 : vector<8x128xf32>
    %534 = arith.divf %532, %533 : vector<8x128xf32>
    %535 = vector.extract_strided_slice %522 {offsets = [0, 256], sizes = [8, 128], strides = [1, 1]} : vector<8x512xf32> to vector<8x128xf32>
    %536 = math.tanh %535 : vector<8x128xf32>
    %537 = vector.extract_strided_slice %522 {offsets = [0, 384], sizes = [8, 128], strides = [1, 1]} : vector<8x512xf32> to vector<8x128xf32>
    %538 = arith.negf %537 : vector<8x128xf32>
    %539 = math.exp %538 : vector<8x128xf32>
    %cst_109 = arith.constant 1.000000e+00 : f32
    %540 = vector.broadcast %cst_109 : f32 to vector<8x128xf32>
    %541 = arith.addf %540, %539 : vector<8x128xf32>
    %542 = arith.divf %540, %541 : vector<8x128xf32>
    %543 = arith.mulf %534, %451 : vector<8x128xf32>
    %544 = arith.mulf %528, %536 : vector<8x128xf32>
    %545 = arith.addf %543, %544 : vector<8x128xf32>
    %546 = math.tanh %545 : vector<8x128xf32>
    %547 = arith.mulf %542, %546 : vector<8x128xf32>
    %cst_110 = arith.constant dense<0.000000e+00> : vector<8x512xf32>
    %548 = tpu.matmul %453, %2, %cst_110 {dimension_numbers = #tpu.dot_dimension_numbers<[1], [0], [0], [1], [0, 0, 1, 1], [], []>} : vector<8x128xf32>, vector<128x512xf32>, vector<8x512xf32> -> vector<8x512xf32>
    %549 = vector.broadcast %8 : vector<1x512xf32> to vector<8x512xf32>
    %550 = arith.addf %548, %549 : vector<8x512xf32>
    %cst_111 = arith.constant dense<0.000000e+00> : vector<8x512xf32>
    %551 = tpu.matmul %483, %5, %cst_111 {dimension_numbers = #tpu.dot_dimension_numbers<[1], [0], [0], [1], [0, 0, 1, 1], [], []>} : vector<8x128xf32>, vector<128x512xf32>, vector<8x512xf32> -> vector<8x512xf32>
    %552 = arith.addf %550, %551 : vector<8x512xf32>
    %553 = vector.extract_strided_slice %552 {offsets = [0, 0], sizes = [8, 128], strides = [1, 1]} : vector<8x512xf32> to vector<8x128xf32>
    %554 = arith.negf %553 : vector<8x128xf32>
    %555 = math.exp %554 : vector<8x128xf32>
    %cst_112 = arith.constant 1.000000e+00 : f32
    %556 = vector.broadcast %cst_112 : f32 to vector<8x128xf32>
    %557 = arith.addf %556, %555 : vector<8x128xf32>
    %558 = arith.divf %556, %557 : vector<8x128xf32>
    %559 = vector.extract_strided_slice %552 {offsets = [0, 128], sizes = [8, 128], strides = [1, 1]} : vector<8x512xf32> to vector<8x128xf32>
    %560 = arith.negf %559 : vector<8x128xf32>
    %561 = math.exp %560 : vector<8x128xf32>
    %cst_113 = arith.constant 1.000000e+00 : f32
    %562 = vector.broadcast %cst_113 : f32 to vector<8x128xf32>
    %563 = arith.addf %562, %561 : vector<8x128xf32>
    %564 = arith.divf %562, %563 : vector<8x128xf32>
    %565 = vector.extract_strided_slice %552 {offsets = [0, 256], sizes = [8, 128], strides = [1, 1]} : vector<8x512xf32> to vector<8x128xf32>
    %566 = math.tanh %565 : vector<8x128xf32>
    %567 = vector.extract_strided_slice %552 {offsets = [0, 384], sizes = [8, 128], strides = [1, 1]} : vector<8x512xf32> to vector<8x128xf32>
    %568 = arith.negf %567 : vector<8x128xf32>
    %569 = math.exp %568 : vector<8x128xf32>
    %cst_114 = arith.constant 1.000000e+00 : f32
    %570 = vector.broadcast %cst_114 : f32 to vector<8x128xf32>
    %571 = arith.addf %570, %569 : vector<8x128xf32>
    %572 = arith.divf %570, %571 : vector<8x128xf32>
    %573 = arith.mulf %564, %481 : vector<8x128xf32>
    %574 = arith.mulf %558, %566 : vector<8x128xf32>
    %575 = arith.addf %573, %574 : vector<8x128xf32>
    %576 = math.tanh %575 : vector<8x128xf32>
    %577 = arith.mulf %572, %576 : vector<8x128xf32>
    %c7 = arith.constant 7 : index
    %c0_115 = arith.constant 0 : index
    %c0_116 = arith.constant 0 : index
    %578 = vector.load %arg0[%c7, %c0_115, %c0_116] : memref<8x8x1xf32, #tpu.memory_space<vmem>>, vector<1x8x1xf32>
    %579 = vector.shape_cast %578 : vector<1x8x1xf32> to vector<8x1xf32>
    %580 = vector.broadcast %579 : vector<8x1xf32> to vector<8x512xf32>
    %581 = vector.broadcast %0 : vector<1x512xf32> to vector<8x512xf32>
    %582 = arith.mulf %580, %581 : vector<8x512xf32>
    %583 = vector.broadcast %6 : vector<1x512xf32> to vector<8x512xf32>
    %584 = arith.addf %582, %583 : vector<8x512xf32>
    %cst_117 = arith.constant dense<0.000000e+00> : vector<8x512xf32>
    %585 = tpu.matmul %517, %3, %cst_117 {dimension_numbers = #tpu.dot_dimension_numbers<[1], [0], [0], [1], [0, 0, 1, 1], [], []>} : vector<8x128xf32>, vector<128x512xf32>, vector<8x512xf32> -> vector<8x512xf32>
    %586 = arith.addf %584, %585 : vector<8x512xf32>
    %587 = vector.extract_strided_slice %586 {offsets = [0, 0], sizes = [8, 128], strides = [1, 1]} : vector<8x512xf32> to vector<8x128xf32>
    %588 = arith.negf %587 : vector<8x128xf32>
    %589 = math.exp %588 : vector<8x128xf32>
    %cst_118 = arith.constant 1.000000e+00 : f32
    %590 = vector.broadcast %cst_118 : f32 to vector<8x128xf32>
    %591 = arith.addf %590, %589 : vector<8x128xf32>
    %592 = arith.divf %590, %591 : vector<8x128xf32>
    %593 = vector.extract_strided_slice %586 {offsets = [0, 128], sizes = [8, 128], strides = [1, 1]} : vector<8x512xf32> to vector<8x128xf32>
    %594 = arith.negf %593 : vector<8x128xf32>
    %595 = math.exp %594 : vector<8x128xf32>
    %cst_119 = arith.constant 1.000000e+00 : f32
    %596 = vector.broadcast %cst_119 : f32 to vector<8x128xf32>
    %597 = arith.addf %596, %595 : vector<8x128xf32>
    %598 = arith.divf %596, %597 : vector<8x128xf32>
    %599 = vector.extract_strided_slice %586 {offsets = [0, 256], sizes = [8, 128], strides = [1, 1]} : vector<8x512xf32> to vector<8x128xf32>
    %600 = math.tanh %599 : vector<8x128xf32>
    %601 = vector.extract_strided_slice %586 {offsets = [0, 384], sizes = [8, 128], strides = [1, 1]} : vector<8x512xf32> to vector<8x128xf32>
    %602 = arith.negf %601 : vector<8x128xf32>
    %603 = math.exp %602 : vector<8x128xf32>
    %cst_120 = arith.constant 1.000000e+00 : f32
    %604 = vector.broadcast %cst_120 : f32 to vector<8x128xf32>
    %605 = arith.addf %604, %603 : vector<8x128xf32>
    %606 = arith.divf %604, %605 : vector<8x128xf32>
    %607 = arith.mulf %598, %515 : vector<8x128xf32>
    %608 = arith.mulf %592, %600 : vector<8x128xf32>
    %609 = arith.addf %607, %608 : vector<8x128xf32>
    %610 = math.tanh %609 : vector<8x128xf32>
    %611 = arith.mulf %606, %610 : vector<8x128xf32>
    %cst_121 = arith.constant dense<0.000000e+00> : vector<8x512xf32>
    %612 = tpu.matmul %517, %1, %cst_121 {dimension_numbers = #tpu.dot_dimension_numbers<[1], [0], [0], [1], [0, 0, 1, 1], [], []>} : vector<8x128xf32>, vector<128x512xf32>, vector<8x512xf32> -> vector<8x512xf32>
    %613 = vector.broadcast %7 : vector<1x512xf32> to vector<8x512xf32>
    %614 = arith.addf %612, %613 : vector<8x512xf32>
    %cst_122 = arith.constant dense<0.000000e+00> : vector<8x512xf32>
    %615 = tpu.matmul %547, %4, %cst_122 {dimension_numbers = #tpu.dot_dimension_numbers<[1], [0], [0], [1], [0, 0, 1, 1], [], []>} : vector<8x128xf32>, vector<128x512xf32>, vector<8x512xf32> -> vector<8x512xf32>
    %616 = arith.addf %614, %615 : vector<8x512xf32>
    %617 = vector.extract_strided_slice %616 {offsets = [0, 0], sizes = [8, 128], strides = [1, 1]} : vector<8x512xf32> to vector<8x128xf32>
    %618 = arith.negf %617 : vector<8x128xf32>
    %619 = math.exp %618 : vector<8x128xf32>
    %cst_123 = arith.constant 1.000000e+00 : f32
    %620 = vector.broadcast %cst_123 : f32 to vector<8x128xf32>
    %621 = arith.addf %620, %619 : vector<8x128xf32>
    %622 = arith.divf %620, %621 : vector<8x128xf32>
    %623 = vector.extract_strided_slice %616 {offsets = [0, 128], sizes = [8, 128], strides = [1, 1]} : vector<8x512xf32> to vector<8x128xf32>
    %624 = arith.negf %623 : vector<8x128xf32>
    %625 = math.exp %624 : vector<8x128xf32>
    %cst_124 = arith.constant 1.000000e+00 : f32
    %626 = vector.broadcast %cst_124 : f32 to vector<8x128xf32>
    %627 = arith.addf %626, %625 : vector<8x128xf32>
    %628 = arith.divf %626, %627 : vector<8x128xf32>
    %629 = vector.extract_strided_slice %616 {offsets = [0, 256], sizes = [8, 128], strides = [1, 1]} : vector<8x512xf32> to vector<8x128xf32>
    %630 = math.tanh %629 : vector<8x128xf32>
    %631 = vector.extract_strided_slice %616 {offsets = [0, 384], sizes = [8, 128], strides = [1, 1]} : vector<8x512xf32> to vector<8x128xf32>
    %632 = arith.negf %631 : vector<8x128xf32>
    %633 = math.exp %632 : vector<8x128xf32>
    %cst_125 = arith.constant 1.000000e+00 : f32
    %634 = vector.broadcast %cst_125 : f32 to vector<8x128xf32>
    %635 = arith.addf %634, %633 : vector<8x128xf32>
    %636 = arith.divf %634, %635 : vector<8x128xf32>
    %637 = arith.mulf %628, %545 : vector<8x128xf32>
    %638 = arith.mulf %622, %630 : vector<8x128xf32>
    %639 = arith.addf %637, %638 : vector<8x128xf32>
    %640 = math.tanh %639 : vector<8x128xf32>
    %641 = arith.mulf %636, %640 : vector<8x128xf32>
    %cst_126 = arith.constant dense<0.000000e+00> : vector<8x512xf32>
    %642 = tpu.matmul %547, %2, %cst_126 {dimension_numbers = #tpu.dot_dimension_numbers<[1], [0], [0], [1], [0, 0, 1, 1], [], []>} : vector<8x128xf32>, vector<128x512xf32>, vector<8x512xf32> -> vector<8x512xf32>
    %643 = vector.broadcast %8 : vector<1x512xf32> to vector<8x512xf32>
    %644 = arith.addf %642, %643 : vector<8x512xf32>
    %cst_127 = arith.constant dense<0.000000e+00> : vector<8x512xf32>
    %645 = tpu.matmul %577, %5, %cst_127 {dimension_numbers = #tpu.dot_dimension_numbers<[1], [0], [0], [1], [0, 0, 1, 1], [], []>} : vector<8x128xf32>, vector<128x512xf32>, vector<8x512xf32> -> vector<8x512xf32>
    %646 = arith.addf %644, %645 : vector<8x512xf32>
    %647 = vector.extract_strided_slice %646 {offsets = [0, 0], sizes = [8, 128], strides = [1, 1]} : vector<8x512xf32> to vector<8x128xf32>
    %648 = arith.negf %647 : vector<8x128xf32>
    %649 = math.exp %648 : vector<8x128xf32>
    %cst_128 = arith.constant 1.000000e+00 : f32
    %650 = vector.broadcast %cst_128 : f32 to vector<8x128xf32>
    %651 = arith.addf %650, %649 : vector<8x128xf32>
    %652 = arith.divf %650, %651 : vector<8x128xf32>
    %653 = vector.extract_strided_slice %646 {offsets = [0, 128], sizes = [8, 128], strides = [1, 1]} : vector<8x512xf32> to vector<8x128xf32>
    %654 = arith.negf %653 : vector<8x128xf32>
    %655 = math.exp %654 : vector<8x128xf32>
    %cst_129 = arith.constant 1.000000e+00 : f32
    %656 = vector.broadcast %cst_129 : f32 to vector<8x128xf32>
    %657 = arith.addf %656, %655 : vector<8x128xf32>
    %658 = arith.divf %656, %657 : vector<8x128xf32>
    %659 = vector.extract_strided_slice %646 {offsets = [0, 256], sizes = [8, 128], strides = [1, 1]} : vector<8x512xf32> to vector<8x128xf32>
    %660 = math.tanh %659 : vector<8x128xf32>
    %661 = vector.extract_strided_slice %646 {offsets = [0, 384], sizes = [8, 128], strides = [1, 1]} : vector<8x512xf32> to vector<8x128xf32>
    %662 = arith.negf %661 : vector<8x128xf32>
    %663 = math.exp %662 : vector<8x128xf32>
    %cst_130 = arith.constant 1.000000e+00 : f32
    %664 = vector.broadcast %cst_130 : f32 to vector<8x128xf32>
    %665 = arith.addf %664, %663 : vector<8x128xf32>
    %666 = arith.divf %664, %665 : vector<8x128xf32>
    %667 = arith.mulf %658, %575 : vector<8x128xf32>
    %668 = arith.mulf %652, %660 : vector<8x128xf32>
    %669 = arith.addf %667, %668 : vector<8x128xf32>
    %670 = math.tanh %669 : vector<8x128xf32>
    %671 = arith.mulf %666, %670 : vector<8x128xf32>
    %cst_131 = arith.constant dense<0.000000e+00> : vector<8x512xf32>
    %672 = tpu.matmul %611, %1, %cst_131 {dimension_numbers = #tpu.dot_dimension_numbers<[1], [0], [0], [1], [0, 0, 1, 1], [], []>} : vector<8x128xf32>, vector<128x512xf32>, vector<8x512xf32> -> vector<8x512xf32>
    %673 = vector.broadcast %7 : vector<1x512xf32> to vector<8x512xf32>
    %674 = arith.addf %672, %673 : vector<8x512xf32>
    %cst_132 = arith.constant dense<0.000000e+00> : vector<8x512xf32>
    %675 = tpu.matmul %641, %4, %cst_132 {dimension_numbers = #tpu.dot_dimension_numbers<[1], [0], [0], [1], [0, 0, 1, 1], [], []>} : vector<8x128xf32>, vector<128x512xf32>, vector<8x512xf32> -> vector<8x512xf32>
    %676 = arith.addf %674, %675 : vector<8x512xf32>
    %677 = vector.extract_strided_slice %676 {offsets = [0, 0], sizes = [8, 128], strides = [1, 1]} : vector<8x512xf32> to vector<8x128xf32>
    %678 = arith.negf %677 : vector<8x128xf32>
    %679 = math.exp %678 : vector<8x128xf32>
    %cst_133 = arith.constant 1.000000e+00 : f32
    %680 = vector.broadcast %cst_133 : f32 to vector<8x128xf32>
    %681 = arith.addf %680, %679 : vector<8x128xf32>
    %682 = arith.divf %680, %681 : vector<8x128xf32>
    %683 = vector.extract_strided_slice %676 {offsets = [0, 128], sizes = [8, 128], strides = [1, 1]} : vector<8x512xf32> to vector<8x128xf32>
    %684 = arith.negf %683 : vector<8x128xf32>
    %685 = math.exp %684 : vector<8x128xf32>
    %cst_134 = arith.constant 1.000000e+00 : f32
    %686 = vector.broadcast %cst_134 : f32 to vector<8x128xf32>
    %687 = arith.addf %686, %685 : vector<8x128xf32>
    %688 = arith.divf %686, %687 : vector<8x128xf32>
    %689 = vector.extract_strided_slice %676 {offsets = [0, 256], sizes = [8, 128], strides = [1, 1]} : vector<8x512xf32> to vector<8x128xf32>
    %690 = math.tanh %689 : vector<8x128xf32>
    %691 = vector.extract_strided_slice %676 {offsets = [0, 384], sizes = [8, 128], strides = [1, 1]} : vector<8x512xf32> to vector<8x128xf32>
    %692 = arith.negf %691 : vector<8x128xf32>
    %693 = math.exp %692 : vector<8x128xf32>
    %cst_135 = arith.constant 1.000000e+00 : f32
    %694 = vector.broadcast %cst_135 : f32 to vector<8x128xf32>
    %695 = arith.addf %694, %693 : vector<8x128xf32>
    %696 = arith.divf %694, %695 : vector<8x128xf32>
    %697 = arith.mulf %688, %639 : vector<8x128xf32>
    %698 = arith.mulf %682, %690 : vector<8x128xf32>
    %699 = arith.addf %697, %698 : vector<8x128xf32>
    %700 = math.tanh %699 : vector<8x128xf32>
    %701 = arith.mulf %696, %700 : vector<8x128xf32>
    %cst_136 = arith.constant dense<0.000000e+00> : vector<8x512xf32>
    %702 = tpu.matmul %641, %2, %cst_136 {dimension_numbers = #tpu.dot_dimension_numbers<[1], [0], [0], [1], [0, 0, 1, 1], [], []>} : vector<8x128xf32>, vector<128x512xf32>, vector<8x512xf32> -> vector<8x512xf32>
    %703 = vector.broadcast %8 : vector<1x512xf32> to vector<8x512xf32>
    %704 = arith.addf %702, %703 : vector<8x512xf32>
    %cst_137 = arith.constant dense<0.000000e+00> : vector<8x512xf32>
    %705 = tpu.matmul %671, %5, %cst_137 {dimension_numbers = #tpu.dot_dimension_numbers<[1], [0], [0], [1], [0, 0, 1, 1], [], []>} : vector<8x128xf32>, vector<128x512xf32>, vector<8x512xf32> -> vector<8x512xf32>
    %706 = arith.addf %704, %705 : vector<8x512xf32>
    %707 = vector.extract_strided_slice %706 {offsets = [0, 0], sizes = [8, 128], strides = [1, 1]} : vector<8x512xf32> to vector<8x128xf32>
    %708 = arith.negf %707 : vector<8x128xf32>
    %709 = math.exp %708 : vector<8x128xf32>
    %cst_138 = arith.constant 1.000000e+00 : f32
    %710 = vector.broadcast %cst_138 : f32 to vector<8x128xf32>
    %711 = arith.addf %710, %709 : vector<8x128xf32>
    %712 = arith.divf %710, %711 : vector<8x128xf32>
    %713 = vector.extract_strided_slice %706 {offsets = [0, 128], sizes = [8, 128], strides = [1, 1]} : vector<8x512xf32> to vector<8x128xf32>
    %714 = arith.negf %713 : vector<8x128xf32>
    %715 = math.exp %714 : vector<8x128xf32>
    %cst_139 = arith.constant 1.000000e+00 : f32
    %716 = vector.broadcast %cst_139 : f32 to vector<8x128xf32>
    %717 = arith.addf %716, %715 : vector<8x128xf32>
    %718 = arith.divf %716, %717 : vector<8x128xf32>
    %719 = vector.extract_strided_slice %706 {offsets = [0, 256], sizes = [8, 128], strides = [1, 1]} : vector<8x512xf32> to vector<8x128xf32>
    %720 = math.tanh %719 : vector<8x128xf32>
    %721 = vector.extract_strided_slice %706 {offsets = [0, 384], sizes = [8, 128], strides = [1, 1]} : vector<8x512xf32> to vector<8x128xf32>
    %722 = arith.negf %721 : vector<8x128xf32>
    %723 = math.exp %722 : vector<8x128xf32>
    %cst_140 = arith.constant 1.000000e+00 : f32
    %724 = vector.broadcast %cst_140 : f32 to vector<8x128xf32>
    %725 = arith.addf %724, %723 : vector<8x128xf32>
    %726 = arith.divf %724, %725 : vector<8x128xf32>
    %727 = arith.mulf %718, %669 : vector<8x128xf32>
    %728 = arith.mulf %712, %720 : vector<8x128xf32>
    %729 = arith.addf %727, %728 : vector<8x128xf32>
    %730 = math.tanh %729 : vector<8x128xf32>
    %731 = arith.mulf %726, %730 : vector<8x128xf32>
    %cst_141 = arith.constant dense<0.000000e+00> : vector<8x512xf32>
    %732 = tpu.matmul %701, %2, %cst_141 {dimension_numbers = #tpu.dot_dimension_numbers<[1], [0], [0], [1], [0, 0, 1, 1], [], []>} : vector<8x128xf32>, vector<128x512xf32>, vector<8x512xf32> -> vector<8x512xf32>
    %733 = vector.broadcast %8 : vector<1x512xf32> to vector<8x512xf32>
    %734 = arith.addf %732, %733 : vector<8x512xf32>
    %cst_142 = arith.constant dense<0.000000e+00> : vector<8x512xf32>
    %735 = tpu.matmul %731, %5, %cst_142 {dimension_numbers = #tpu.dot_dimension_numbers<[1], [0], [0], [1], [0, 0, 1, 1], [], []>} : vector<8x128xf32>, vector<128x512xf32>, vector<8x512xf32> -> vector<8x512xf32>
    %736 = arith.addf %734, %735 : vector<8x512xf32>
    %737 = vector.extract_strided_slice %736 {offsets = [0, 0], sizes = [8, 128], strides = [1, 1]} : vector<8x512xf32> to vector<8x128xf32>
    %738 = arith.negf %737 : vector<8x128xf32>
    %739 = math.exp %738 : vector<8x128xf32>
    %cst_143 = arith.constant 1.000000e+00 : f32
    %740 = vector.broadcast %cst_143 : f32 to vector<8x128xf32>
    %741 = arith.addf %740, %739 : vector<8x128xf32>
    %742 = arith.divf %740, %741 : vector<8x128xf32>
    %743 = vector.extract_strided_slice %736 {offsets = [0, 128], sizes = [8, 128], strides = [1, 1]} : vector<8x512xf32> to vector<8x128xf32>
    %744 = arith.negf %743 : vector<8x128xf32>
    %745 = math.exp %744 : vector<8x128xf32>
    %cst_144 = arith.constant 1.000000e+00 : f32
    %746 = vector.broadcast %cst_144 : f32 to vector<8x128xf32>
    %747 = arith.addf %746, %745 : vector<8x128xf32>
    %748 = arith.divf %746, %747 : vector<8x128xf32>
    %749 = vector.extract_strided_slice %736 {offsets = [0, 256], sizes = [8, 128], strides = [1, 1]} : vector<8x512xf32> to vector<8x128xf32>
    %750 = math.tanh %749 : vector<8x128xf32>
    %751 = vector.extract_strided_slice %736 {offsets = [0, 384], sizes = [8, 128], strides = [1, 1]} : vector<8x512xf32> to vector<8x128xf32>
    %752 = arith.negf %751 : vector<8x128xf32>
    %753 = math.exp %752 : vector<8x128xf32>
    %cst_145 = arith.constant 1.000000e+00 : f32
    %754 = vector.broadcast %cst_145 : f32 to vector<8x128xf32>
    %755 = arith.addf %754, %753 : vector<8x128xf32>
    %756 = arith.divf %754, %755 : vector<8x128xf32>
    %757 = arith.mulf %748, %729 : vector<8x128xf32>
    %758 = arith.mulf %742, %750 : vector<8x128xf32>
    %759 = arith.addf %757, %758 : vector<8x128xf32>
    %760 = math.tanh %759 : vector<8x128xf32>
    %761 = arith.mulf %756, %760 : vector<8x128xf32>
    %c0_146 = arith.constant 0 : index
    %c0_147 = arith.constant 0 : index
    %762 = vector.load %arg10[%c0_146, %c0_147] : memref<1x128xf32, #tpu.memory_space<vmem>>, vector<1x128xf32>
    %763 = vector.broadcast %762 : vector<1x128xf32> to vector<8x128xf32>
    %764 = arith.mulf %761, %763 : vector<8x128xf32>
    %cst_148 = arith.constant dense<0.000000e+00> : vector<8xf32>
    %765 = vector.multi_reduction <add>, %764, %cst_148 [1] : vector<8x128xf32> to vector<8xf32>
    %766 = vector.shape_cast %765 : vector<8xf32> to vector<8x1xf32>
    %c0_149 = arith.constant 0 : index
    %c0_150 = arith.constant 0 : index
    %767 = vector.load %arg11[%c0_149, %c0_150] : memref<1x1xf32, #tpu.memory_space<vmem>>, vector<1x1xf32>
    %768 = vector.broadcast %767 : vector<1x1xf32> to vector<8x1xf32>
    %769 = arith.addf %766, %768 : vector<8x1xf32>
    %c0_151 = arith.constant 0 : index
    %c0_152 = arith.constant 0 : index
    %770 = vector.load %arg12[%c0_151, %c0_152] : memref<8x1xf32, #tpu.memory_space<vmem>>, vector<8x1xf32>
    tpu.vector_store %arg12[%c0_151, %c0_152], %769 {strides = array<i32>} : memref<8x1xf32, #tpu.memory_space<vmem>>, vector<8x1xf32>,
    return
  }
}

</mosaic_0001>

<bundles_post_ra>
// kernel: lstm_classifier_forward.1
= control target key start
LH: loop header
LB: loop body
LE: loop exit
PB: predicated region body
PF: predicated region fallthrough
CT: control target
= control target key end

     0   :  { %s12467_s0 = inlined_call_operand.vmem [shape: f32[8,8,1], index: 0, kind: input, shape index: {}]   ;;  %s12468_s1 = inlined_call_operand.vmem [shape: f32[1,512], index: 1, kind: input, shape index: {}]   ;;  %s12469_s2 = inlined_call_operand.hbm [shape: f32[128,512], index: 2, kind: input, shape index: {}]   ;;  %s12470_s3 = inlined_call_operand.vmem [shape: f32[1,512], index: 3, kind: input, shape index: {}]   ;;  %s12471_s4 = inlined_call_operand.hbm [shape: f32[128,512], index: 4, kind: input, shape index: {}]   ;;  %s12472_s5 = inlined_call_operand.hbm [shape: f32[128,512], index: 5, kind: input, shape index: {}]   ;;  %s12473_s6 = inlined_call_operand.vmem [shape: f32[1,512], index: 6, kind: input, shape index: {}]   ;;  %s12474_s7 = inlined_call_operand.hbm [shape: f32[128,512], index: 7, kind: input, shape index: {}]   ;;  %s12475_s8 = inlined_call_operand.hbm [shape: f32[128,512], index: 8, kind: input, shape index: {}]   ;;  %s12476_s9 = inlined_call_operand.vmem [shape: f32[1,512], index: 9, kind: input, shape index: {}]   ;;  %s12477_s10 = inlined_call_operand.vmem [shape: f32[1,128], index: 10, kind: input, shape index: {}]   ;;  %s12478_s11 = inlined_call_operand.<no memory space> [shape: f32[1,1], index: 11, kind: input, shape index: {}]   ;;  %s12479_s12 = inlined_call_operand.vmem [shape: f32[8,1], index: 12, kind: output, shape index: {}]  }
   0x1   :  { %v17_v0 = vstv %s12478_s11 }
   0x2   :  { %18 = vst [vmem:[#allocation2] sm:$0x1] %v17_v0 }
   0x3   :  { %19 = vsyncpa [#allocation4], 0 }
   0x4   :  { %20 = vsyncpa [#allocation6], 0 }
   0x5   :  { %21 = vsyncpa [#allocation9], 0  ;;  %s10297_s23 = smov [#allocation5]   ;;  %s10298_s25 = smov [#allocation8]  }
   0x6   :  { %s45_s24 = sshll.u32 %s10297_s23, 4  ;;  %s71_s26 = sshll.u32 %s10298_s25, 4  ;;  %s46_s24 = int_to_ptr.vmem [resolvable:$true] %s45_s24  ;;  %s10374_s26 = int_to_ptr.vmem [resolvable:$true] %s71_s26 }
   0x7   :  { %s10181_s29 = scalar_lea.hbm %s12471_s4, 8192 }
   0x8   :  { %p10182_p0 = scmp.ne.s32.totalorder %s12471_s4, %s10181_s29  ;;  %p10185_p1 = scmp.lt.u32.totalorder %s10181_s29, %s12471_s4 }
   0xa   :  { %p10187_p2 = pnand %p10185_p1, %p10182_p0 }
   0xc   :  { %10190 = shalt.err (!%p10187_p2)
}
   0xd   :  { %s10191_s15 = scalar_lea.vmem %s46_s24, 8192  ;;  %p10196_p4 = scmp.lt.s32.totalorder %s46_s24, %s46_s24 }
   0xe   :  { %p10192_p3 = scmp.ne.s32.totalorder %s46_s24, %s10191_s15  ;;  %p10197_p5 = scmp.lt.s32.totalorder %s10191_s15, %s10191_s15 }
  0x10   :  { %p10198_p6 = por %p10197_p5, %p10196_p4 }
  0x12   :  { %p10199_p7 = pnand %p10198_p6, %p10192_p3 }
  0x14   :  { %10202 = shalt.err (!%p10199_p7)
}
  0x15   :  { %s10299_s16 = smov 512   ;;  %s10300_s17 = smov 32  }
  0x16   :  { %51 = dma.hbm_to_vmem [thread:$0]  %s12471_s4, 8192, %s46_s24, [#allocation6], %s10299_s16, %s10299_s16, %s10300_s17  }
  0x17   :  { %s10203_s22 = scalar_lea.hbm %s12474_s7, 8192 }
  0x18   :  { %p10204_p8 = scmp.ne.s32.totalorder %s12474_s7, %s10203_s22  ;;  %p10207_p9 = scmp.lt.u32.totalorder %s10203_s22, %s12474_s7 }
  0x1a   :  { %p10209_p10 = pnand %p10207_p9, %p10204_p8 }
  0x1c   :  { %10212 = shalt.err (!%p10209_p10)
}
  0x1d   :  { %s10213_s29 = scalar_lea.vmem %s10374_s26, 8192  ;;  %p10218_p12 = scmp.lt.s32.totalorder %s10374_s26, %s10374_s26 }
  0x1e   :  { %p10214_p11 = scmp.ne.s32.totalorder %s10374_s26, %s10213_s29  ;;  %p10219_p13 = scmp.lt.s32.totalorder %s10213_s29, %s10213_s29 }
  0x20   :  { %p10220_p0 = por %p10219_p13, %p10218_p12 }
  0x22   :  { %p10221_p1 = pnand %p10220_p0, %p10214_p11 }
  0x24   :  { %10224 = shalt.err (!%p10221_p1)
}
  0x25   :  { %77 = dma.hbm_to_vmem [thread:$0]  %s12474_s7, 8192, %s10374_s26, [#allocation9], %s10299_s16, %s10299_s16, %s10300_s17  }
  0x26   :  { %s10301_s30 = smov [#allocation3]   ;;  %s10302_s11 = smov [#allocation7]  }
  0x27   :  { %s31_s13 = sshll.u32 %s10301_s30, 4  ;;  %s57_s14 = sshll.u32 %s10302_s11, 4  ;;  %s32_s13 = int_to_ptr.vmem [resolvable:$true] %s31_s13  ;;  %s10411_s14 = int_to_ptr.vmem [resolvable:$true] %s57_s14 }
  0x28   :  { %s10225_s19 = scalar_lea.hbm %s12469_s2, 8192 }
  0x29   :  { %p10226_p2 = scmp.ne.s32.totalorder %s12469_s2, %s10225_s19  ;;  %p10229_p3 = scmp.lt.u32.totalorder %s10225_s19, %s12469_s2 }
  0x2b   :  { %p10231_p4 = pnand %p10229_p3, %p10226_p2 }
  0x2d   :  { %10234 = shalt.err (!%p10231_p4)
}
  0x2e   :  { %s10235_s7 = scalar_lea.vmem %s32_s13, 8192  ;;  %p10240_p6 = scmp.lt.s32.totalorder %s32_s13, %s32_s13 }
  0x2f   :  { %p10236_p5 = scmp.ne.s32.totalorder %s32_s13, %s10235_s7  ;;  %p10241_p7 = scmp.lt.s32.totalorder %s10235_s7, %s10235_s7 }
  0x31   :  { %p10242_p8 = por %p10241_p7, %p10240_p6 }
  0x33   :  { %p10243_p9 = pnand %p10242_p8, %p10236_p5 }
  0x35   :  { %10246 = shalt.err (!%p10243_p9)
}
  0x36   :  { %37 = dma.hbm_to_vmem [thread:$0]  %s12469_s2, 8192, %s32_s13, [#allocation4], %s10299_s16, %s10299_s16, %s10300_s17  }
  0x37   :  { %s10247_s29 = scalar_lea.hbm %s12472_s5, 8192 }
  0x38   :  { %p10248_p10 = scmp.ne.s32.totalorder %s12472_s5, %s10247_s29  ;;  %p10251_p11 = scmp.lt.u32.totalorder %s10247_s29, %s12472_s5 }
  0x3a   :  { %p10253_p12 = pnand %p10251_p11, %p10248_p10 }
  0x3c   :  { %10256 = shalt.err (!%p10253_p12)
}
  0x3d   :  { %s10257_s15 = scalar_lea.vmem %s10411_s14, 8192  ;;  %p10262_p0 = scmp.lt.s32.totalorder %s10411_s14, %s10411_s14 }
  0x3e   :  { %p10258_p13 = scmp.ne.s32.totalorder %s10411_s14, %s10257_s15  ;;  %p10263_p1 = scmp.lt.s32.totalorder %s10257_s15, %s10257_s15 }
  0x40   :  { %p10264_p2 = por %p10263_p1, %p10262_p0 }
  0x42   :  { %p10265_p3 = pnand %p10264_p2, %p10258_p13 }
  0x44   :  { %10268 = shalt.err (!%p10265_p3)
}
  0x45   :  { %63 = dma.hbm_to_vmem [thread:$0]  %s12472_s5, 8192, %s10411_s14, [#allocation6], %s10299_s16, %s10299_s16, %s10300_s17  }
  0x46   :  { %s10303_s18 = smov [#allocation10]   ;;  %s10269_s22 = scalar_lea.hbm %s12475_s8, 8192 }
  0x47   :  { %s83_s19 = sshll.u32 %s10303_s18, 4  ;;  %p10270_p4 = scmp.ne.s32.totalorder %s12475_s8, %s10269_s22  ;;  %s84_s19 = int_to_ptr.vmem [resolvable:$true] %s83_s19 }
  0x48   :  { %p10273_p5 = scmp.lt.u32.totalorder %s10269_s22, %s12475_s8 }
  0x4a   :  { %p10275_p6 = pnand %p10273_p5, %p10270_p4 }
  0x4c   :  { %10278 = shalt.err (!%p10275_p6)
}
  0x4d   :  { %s10279_s27 = scalar_lea.vmem %s84_s19, 8192  ;;  %p10284_p8 = scmp.lt.s32.totalorder %s84_s19, %s84_s19 }
  0x4e   :  { %p10280_p7 = scmp.ne.s32.totalorder %s84_s19, %s10279_s27  ;;  %p10285_p9 = scmp.lt.s32.totalorder %s10279_s27, %s10279_s27 }
  0x50   :  { %p10286_p10 = por %p10285_p9, %p10284_p8 }
  0x52   :  { %p10287_p11 = pnand %p10286_p10, %p10280_p7 }
  0x54   :  { %10290 = shalt.err (!%p10287_p11)
}
  0x55   :  { %89 = dma.hbm_to_vmem [thread:$0]  %s12475_s8, 8192, %s84_s19, [#allocation9], %s10299_s16, %s10299_s16, %s10300_s17  }
  0x56   :  { %10291 = dma.done.wait [#allocation4], 8192  }
  0x57   :  { %10292 = vsyncadd [#allocation4], 4294959104 }
  0x58   :  { %10293 = dma.done.wait [#allocation6], 16384  }
  0x59   :  { %10294 = vsyncadd [#allocation6], 4294950912 }
  0x5a   :  { %10295 = dma.done.wait [#allocation9], 16384  }
  0x5b   :  { %10296 = vsyncadd [#allocation9], 4294950912  ;;  %v12480_v1 = vmov 0.0   ;;  %v10305_v2 = vmov 0   ;;  %v241_v3 = vld [vmem:[#allocation3 + $0x8] sm:$0xff]  ;;  %v243_v5 = vld [vmem:[#allocation3 + $0x18] sm:$0xff] }
  0x5c   :  { %555 = vmatprep.mubr.f32.mxu0 %v12480_v1  ;;  %626 = vmatprep.mubr.f32.mxu1 %v12480_v1  ;;  %v245_v4 = vld [vmem:[#allocation3 + $0x28] sm:$0xff]  ;;  %v247_v7 = vld [vmem:[#allocation3 + $0x38] sm:$0xff]  ;;  %v240_v8 = vld [vmem:[#allocation3] sm:$0xff]  ;;  %vm7008_vm0 = vcmask 7168  }
  0x5d   :  { %9795 = vset.pattern.permute.xlu0 %v10305_v2  ;;  %9796 = vset.pattern.permute.xlu1 %v10305_v2  ;;  %v10465_v6 = vpack.c.bf16 %v245_v4, %v241_v3  ;;  %v244_v9 = vld [vmem:[#allocation3 + $0x20] sm:$0xff]  ;;  %v10467_v10 = vpack.c.bf16 %v247_v7, %v243_v5  ;;  %v242_v12 = vld [vmem:[#allocation3 + $0x10] sm:$0xff]  ;;  %v249_v14 = vld [vmem:[#allocation3 + $0x48] sm:$0xff] }
  0x5e   :  { %v10469_v11 = vpack.c.bf16 %v244_v9, %v240_v8  ;;  %v246_v13 = vld [vmem:[#allocation3 + $0x30] sm:$0xff]  ;;  %v253_v16 = vld [vmem:[#allocation3 + $0x68] sm:$0xff]  ;;  %v251_v17 = vld [vmem:[#allocation3 + $0x58] sm:$0xff] }
  0x5f   :  { %12887 = vst [vmem:[#allocation14_spill] sm:$0xff] %v10465_v6  ;;  %12888 = vst [vmem:[#allocation15_spill] sm:$0xff] %v10467_v10  ;;  %7099 = vmatprep.subr.bf16.mxu0 %v10465_v6  ;;  %v10472_v15 = vpack.c.bf16 %v246_v13, %v242_v12  ;;  %v255_v18 = vld [vmem:[#allocation3 + $0x78] sm:$0xff]  ;;  %7131 = vmatprep.subr.bf16.mxu1 %v10467_v10  ;;  %v10476_v19 = vpack.c.bf16 %v253_v16, %v249_v14  ;;  %v248_v21 = vld [vmem:[#allocation3 + $0x40] sm:$0xff] }
  0x60   :  { %12889 = vst [vmem:[#allocation16_spill] sm:$0xff] %v10469_v11  ;;  %7101 = vmatpush1.bf16.msra.mxu0 %v10469_v11  ;;  %v10478_v20 = vpack.c.bf16 %v255_v18, %v251_v17  ;;  %v252_v22 = vld [vmem:[#allocation3 + $0x60] sm:$0xff]  ;;  %v250_v23 = vld [vmem:[#allocation3 + $0x50] sm:$0xff]  ;;  %v257_v26 = vld [vmem:[#allocation3 + $0x88] sm:$0xff] }
  0x61   :  { %12890 = vst [vmem:[#allocation17_spill] sm:$0xff] %v10472_v15  ;;  %12891 = vst [vmem:[#allocation18_spill] sm:$0xff] %v10476_v19  ;;  %7133 = vmatpush1.bf16.msra.mxu1 %v10472_v15  ;;  %v10481_v24 = vpack.c.bf16 %v252_v22, %v248_v21  ;;  %v254_v25 = vld [vmem:[#allocation3 + $0x70] sm:$0xff]  ;;  %v261_v27 = vld [vmem:[#allocation3 + $0xa8] sm:$0xff]  ;;  %7103 = vmatprep.subr.bf16.mxu0 %v10476_v19 }
  0x62   :  { %12892 = vst [vmem:[#allocation19_spill] sm:$0xff] %v10478_v20  ;;  %7135 = vmatprep.subr.bf16.mxu1 %v10478_v20  ;;  %v10485_v28 = vpack.c.bf16 %v254_v25, %v250_v23  ;;  %v10487_v29 = vpack.c.bf16 %v261_v27, %v257_v26  ;;  %v259_v30 = vld [vmem:[#allocation3 + $0x98] sm:$0xff]  ;;  %v256_v32 = vld [vmem:[#allocation3 + $0x80] sm:$0xff]  ;;  %v258_v35 = vld [vmem:[#allocation3 + $0x90] sm:$0xff] }
  0x63   :  { %12893 = vst [vmem:[#allocation20_spill] sm:$0xff] %v10481_v24  ;;  %v263_v31 = vld [vmem:[#allocation3 + $0xb8] sm:$0xff]  ;;  %v260_v34 = vld [vmem:[#allocation3 + $0xa0] sm:$0xff]  ;;  %v262_v36 = vld [vmem:[#allocation3 + $0xb0] sm:$0xff] }
  0x64   :  { %12894 = vst [vmem:[#allocation21_spill] sm:$0xff] %v10485_v28  ;;  %12895 = vst [vmem:[#allocation22_spill] sm:$0xff] %v10487_v29  ;;  %v10489_v33 = vpack.c.bf16 %v263_v31, %v259_v30  ;;  %7105 = vmatpush1.bf16.msra.mxu0 %v10481_v24  ;;  %v10492_v37 = vpack.c.bf16 %v260_v34, %v256_v32  ;;  %v265_v38 = vld [vmem:[#allocation3 + $0xc8] sm:$0xff]  ;;  %v267_v40 = vld [vmem:[#allocation3 + $0xd8] sm:$0xff]  ;;  %v10496_v41 = vpack.c.bf16 %v262_v36, %v258_v35 }
  0x65   :  { %v269_v39 = vld [vmem:[#allocation3 + $0xe8] sm:$0xff]  ;;  %7137 = vmatpush1.bf16.msra.mxu1 %v10485_v28  ;;  %7107 = vmatprep.subr.bf16.mxu0 %v10487_v29  ;;  %v271_v43 = vld [vmem:[#allocation3 + $0xf8] sm:$0xff]  ;;  %v264_v44 = vld [vmem:[#allocation3 + $0xc0] sm:$0xff] }
  0x66   :  { %12896 = vst [vmem:[#allocation23_spill] sm:$0xff] %v10489_v33  ;;  %12897 = vst [vmem:[#allocation24_spill] sm:$0xff] %v10492_v37  ;;  %v10498_v42 = vpack.c.bf16 %v269_v39, %v265_v38  ;;  %v268_v45 = vld [vmem:[#allocation3 + $0xe0] sm:$0xff]  ;;  %7139 = vmatprep.subr.bf16.mxu1 %v10489_v33  ;;  %v10501_v46 = vpack.c.bf16 %v271_v43, %v267_v40  ;;  %v266_v47 = vld [vmem:[#allocation3 + $0xd0] sm:$0xff] }
  0x67   :  { %12898 = vst [vmem:[#allocation25_spill] sm:$0xff] %v10496_v41  ;;  %v270_v48 = vld [vmem:[#allocation3 + $0xf0] sm:$0xff]  ;;  %v273_v49 = vld [vmem:[#allocation3 + $0x108] sm:$0xff]  ;;  %v275_v51 = vld [vmem:[#allocation3 + $0x118] sm:$0xff]  ;;  %v10504_v53 = vpack.c.bf16 %v268_v45, %v264_v44 }
  0x68   :  { %12899 = vst [vmem:[#allocation26_spill] sm:$0xff] %v10498_v42  ;;  %12900 = vst [vmem:[#allocation27_spill] sm:$0xff] %v10501_v46  ;;  %v277_v50 = vld [vmem:[#allocation3 + $0x128] sm:$0xff]  ;;  %v279_v52 = vld [vmem:[#allocation3 + $0x138] sm:$0xff]  ;;  %7109 = vmatpush1.bf16.msra.mxu0 %v10492_v37  ;;  %v10508_v54 = vpack.c.bf16 %v270_v48, %v266_v47 }
  0x69   :  { %12901 = vst [vmem:[#allocation28_spill] sm:$0xff] %v10504_v53  ;;  %7141 = vmatpush1.bf16.msra.mxu1 %v10496_v41  ;;  %7111 = vmatprep.subr.bf16.mxu0 %v10498_v42  ;;  %v10510_v55 = vpack.c.bf16 %v277_v50, %v273_v49  ;;  %v272_v56 = vld [vmem:[#allocation3 + $0x100] sm:$0xff]  ;;  %v274_v58 = vld [vmem:[#allocation3 + $0x110] sm:$0xff]  ;;  %v10513_v59 = vpack.c.bf16 %v279_v52, %v275_v51  ;;  %v281_v61 = vld [vmem:[#allocation3 + $0x148] sm:$0xff] }
  0x6a   :  { %12902 = vst [vmem:[#allocation29_spill] sm:$0xff] %v10508_v54  ;;  %v276_v57 = vld [vmem:[#allocation3 + $0x120] sm:$0xff]  ;;  %7143 = vmatprep.subr.bf16.mxu1 %v10501_v46  ;;  %v278_v60 = vld [vmem:[#allocation3 + $0x130] sm:$0xff]  ;;  %v285_v62 = vld [vmem:[#allocation3 + $0x168] sm:$0xff] }
  0x6b   :  { %12903 = vst [vmem:[#allocation30_spill] sm:$0xff] %v10510_v55  ;;  %12904 = vst [vmem:[#allocation31_spill] sm:$0xff] %v10513_v59  ;;  %v283_v63 = vld [vmem:[#allocation3 + $0x158] sm:$0xff]  ;;  %v10516_v2 = vpack.c.bf16 %v276_v57, %v272_v56  ;;  %v10520_v3 = vpack.c.bf16 %v278_v60, %v274_v58  ;;  %v10522_v4 = vpack.c.bf16 %v285_v62, %v281_v61  ;;  %v280_v5 = vld [vmem:[#allocation3 + $0x140] sm:$0xff] }
  0x6c   :  { %v287_v0 = vld [vmem:[#allocation3 + $0x178] sm:$0xff]  ;;  %7113 = vmatpush1.bf16.msra.mxu0 %v10504_v53  ;;  %v284_v7 = vld [vmem:[#allocation3 + $0x160] sm:$0xff]  ;;  %v282_v8 = vld [vmem:[#allocation3 + $0x150] sm:$0xff] }
  0x6d   :  { %12905 = vst [vmem:[#allocation32_spill] sm:$0xff] %v10516_v2  ;;  %7145 = vmatpush1.bf16.msra.mxu1 %v10508_v54  ;;  %7115 = vmatprep.subr.bf16.mxu0 %v10510_v55  ;;  %12906 = vst [vmem:[#allocation33_spill] sm:$0xff] %v10520_v3  ;;  %v10525_v9 = vpack.c.bf16 %v287_v0, %v283_v63  ;;  %v286_v12 = vld [vmem:[#allocation3 + $0x170] sm:$0xff]  ;;  %v289_v13 = vld [vmem:[#allocation3 + $0x188] sm:$0xff]  ;;  %v10528_v18 = vpack.c.bf16 %v284_v7, %v280_v5  ;;  %v442_v0 = vlaneseq }
  0x6e   :  { %12907 = vst [vmem:[#allocation34_spill] sm:$0xff] %v10522_v4  ;;  %7147 = vmatprep.subr.bf16.mxu1 %v10513_v59  ;;  %v293_v14 = vld [vmem:[#allocation3 + $0x1a8] sm:$0xff]  ;;  %v291_v16 = vld [vmem:[#allocation3 + $0x198] sm:$0xff]  ;;  %v288_v21 = vld [vmem:[#allocation3 + $0x180] sm:$0xff]  ;;  %v10532_v22 = vpack.c.bf16 %v286_v12, %v282_v8 }
  0x6f   :  { %12908 = vst [vmem:[#allocation35_spill] sm:$0xff] %v10525_v9  ;;  %v295_v17 = vld [vmem:[#allocation3 + $0x1b8] sm:$0xff]  ;;  %12909 = vst [vmem:[#allocation36_spill] sm:$0xff] %v10528_v18  ;;  %v10534_v23 = vpack.c.bf16 %v293_v14, %v289_v13  ;;  %v292_v25 = vld [vmem:[#allocation3 + $0x1a0] sm:$0xff]  ;;  %v443_v5 = vshrl.u32 %v442_v0, 7 }
  0x70   :  { %7117 = vmatpush1.bf16.msra.mxu0 %v10516_v2  ;;  %12910 = vst [vmem:[#allocation37_spill] sm:$0xff] %v10532_v22  ;;  %v290_v26 = vld [vmem:[#allocation3 + $0x190] sm:$0xff]  ;;  %v435_v27 = vld [vmem:[%s12467_s0] sm:$0xff]  ;;  %v10540_v30 = vpack.c.bf16 %v295_v17, %v291_v16  ;;  %v297_v32 = vld [vmem:[#allocation3 + $0x1c8] sm:$0xff]  ;;  %v10546_v39 = vpack.c.bf16 %v292_v25, %v288_v21 }
  0x71   :  { %7149 = vmatpush1.bf16.msra.mxu1 %v10520_v3  ;;  %7119 = vmatprep.subr.bf16.mxu0 %v10522_v4  ;;  %12911 = vst [vmem:[#allocation38_spill] sm:$0xff] %v10534_v23  ;;  %v294_v31 = vld [vmem:[#allocation3 + $0x1b0] sm:$0xff]  ;;  %v301_v34 = vld [vmem:[#allocation3 + $0x1e8] sm:$0xff]  ;;  %v299_v35 = vld [vmem:[#allocation3 + $0x1d8] sm:$0xff]  ;;  %v10615_v7 = vsub.s32 0, %v443_v5  ;;  %v10620_v12 = vsub.s32 1, %v443_v5 }
  0x72   :  { %7151 = vmatprep.subr.bf16.mxu1 %v10525_v9  ;;  %12912 = vst [vmem:[#allocation39_spill] sm:$0xff] %v10540_v30  ;;  %438 = vperm.xlu0 %9795, %v435_v27   ;;  %v303_v36 = vld [vmem:[#allocation3 + $0x1f8] sm:$0xff]  ;;  %v7020_v38 = vld [vmem:[%s12467_s0 + $0x8] sm:$0xff]  ;;  %12913 = vst [vmem:[#allocation40_spill] sm:$0xff] %v10546_v39  ;;  %v10550_v40 = vpack.c.bf16 %v294_v31, %v290_v26  ;;  %v10552_v43 = vpack.c.bf16 %v301_v34, %v297_v32  ;;  %v10631_v21 = vsub.s32 3, %v443_v5 }
  0x73   :  { %v296_v44 = vld [vmem:[#allocation3 + $0x1c0] sm:$0xff]  ;;  %v10555_v47 = vpack.c.bf16 %v303_v36, %v299_v35  ;;  %v298_v48 = vld [vmem:[#allocation3 + $0x1d0] sm:$0xff]  ;;  %v113_v57 = vld [vmem:[#allocation5 + $0x8] sm:$0xff]  ;;  %12921 = vst [vmem:[#allocation48_spill] sm:$0xff] %v10615_v7  ;;  %v10645_v35 = vsub.s32 2, %v443_v5 }
  0x74   :  { %7121 = vmatpush1.bf16.msra.mxu0 %v10528_v18  ;;  %12914 = vst [vmem:[#allocation41_spill] sm:$0xff] %v10550_v40  ;;  %12915 = vst [vmem:[#allocation42_spill] sm:$0xff] %v10552_v43  ;;  %v300_v45 = vld [vmem:[#allocation3 + $0x1e0] sm:$0xff]  ;;  %v302_v49 = vld [vmem:[#allocation3 + $0x1f0] sm:$0xff] }
  0x75   :  { %7153 = vmatpush1.bf16.msra.mxu1 %v10532_v22  ;;  %7123 = vmatprep.subr.bf16.mxu0 %v10534_v23  ;;  %12916 = vst [vmem:[#allocation43_spill] sm:$0xff] %v10555_v47  ;;  %v7047_v50 = vld [vmem:[%s12467_s0 + $0x20] sm:$0xff]  ;;  %v10561_v51 = vpack.c.bf16 %v300_v45, %v296_v44  ;;  %v10565_v52 = vpack.c.bf16 %v302_v49, %v298_v48  ;;  %v7067_v56 = vld [vmem:[%s12467_s0 + $0x30] sm:$0xff]  ;;  %12922 = vst [vmem:[#allocation49_spill] sm:$0xff] %v10620_v12 }
  0x76   :  { %7155 = vmatprep.subr.bf16.mxu1 %v10540_v30  ;;  %665 = vperm.xlu0 %9795, %v7020_v38   ;;  %v117_v58 = vld [vmem:[#allocation5 + $0x28] sm:$0xff]  ;;  %v115_v60 = vld [vmem:[#allocation5 + $0x18] sm:$0xff]  ;;  %12925 = vst [vmem:[#allocation52_spill] sm:$0xff] %v10631_v21  ;;  %12929 = vst [vmem:[#allocation56_spill] sm:$0xff] %v10645_v35 }
  0x77   :  { %12917 = vst [vmem:[#allocation44_spill] sm:$0xff] %v10561_v51  ;;  %12918 = vst [vmem:[#allocation45_spill] sm:$0xff] %v10565_v52  ;;  %v10609_v61 = vpack.c.bf16 %v117_v58, %v113_v57  ;;  %v119_v62 = vld [vmem:[#allocation5 + $0x38] sm:$0xff] }
  0x78   :  { %7125 = vmatpush1.bf16.msra.mxu0 %v10546_v39  ;;  %v10611_v63 = vpack.c.bf16 %v119_v62, %v115_v60  ;;  %v111_v8 = vld [vmem:[%s12468_s1] sm:$0xf] }
  0x79   :  { %7157 = vmatpush1.bf16.msra.mxu1 %v10550_v40  ;;  %7127 = vmatprep.subr.bf16.mxu0 %v10552_v43  ;;  %12919 = vst [vmem:[#allocation46_spill] sm:$0xff] %v10609_v61  ;;  %v10623_v13 = vrot.slane %v111_v8, %v10615_v7  ;;  %v432_v14 = vld [vmem:[%s12470_s3] sm:$0xf]  ;;  %v10629_v16 = vrot.slane %v111_v8, %v10620_v12 }
  0x7a   :  { %7159 = vmatprep.subr.bf16.mxu1 %v10555_v47  ;;  %2822 = vperm.xlu0 %9795, %v7047_v50   ;;  %12920 = vst [vmem:[#allocation47_spill] sm:$0xff] %v10611_v63  ;;  %v10635_v26 = vrot.slane %v432_v14, %v10615_v7  ;;  %v10639_v31 = vrot.slane %v432_v14, %v10620_v12  ;;  %v129_v12 = vld [vmem:[#allocation5 + $0x88] sm:$0xff] }
  0x7b   :  { %12923 = vst [vmem:[#allocation50_spill] sm:$0xff] %v10623_v13  ;;  %12924 = vst [vmem:[#allocation51_spill] sm:$0xff] %v10629_v16  ;;  %v10642_v32 = vrot.slane %v111_v8, %v10631_v21  ;;  %v10650_v45 = vrot.slane %v432_v14, %v10631_v21  ;;  %v10653_v49 = vrot.slane %v111_v8, %v10645_v35  ;;  %v133_v7 = vld [vmem:[#allocation5 + $0xa8] sm:$0xff] }
  0x7c   :  { %7129 = vmatpush1.bf16.msra.mxu0 %v10561_v51  ;;  %12926 = vst [vmem:[#allocation53_spill] sm:$0xff] %v10635_v26  ;;  %12927 = vst [vmem:[#allocation54_spill] sm:$0xff] %v10639_v31 }
  0x7d   :  { %7161 = vmatpush1.bf16.msra.mxu1 %v10565_v52  ;;  %7163 = vmatprep.subr.bf16.mxu0 %v10465_v6  ;;  %12928 = vst [vmem:[#allocation55_spill] sm:$0xff] %v10642_v32  ;;  %12930 = vst [vmem:[#allocation57_spill] sm:$0xff] %v10653_v49 }
  0x7e   :  { %4440 = vperm.xlu0 %9795, %v7067_v56   ;;  %7195 = vmatprep.subr.bf16.mxu1 %v10467_v10 }
  0x7f   :  { %556 = vmatmul.mubr.f32.vlgmr.msra.gmra.mrb[0].mxu0 %v12480_v1 }
  0x80   :  { %627 = vmatmul.mubr.f32.vlgmr.msra.gmra.mrb[0].mxu1 %v12480_v1  ;;  %7165 = vmatpush1.bf16.msra.mxu0 %v10469_v11 }
  0x81   :  { %7197 = vmatpush1.bf16.msra.mxu1 %v10472_v15  ;;  %7167 = vmatprep.subr.bf16.mxu0 %v10476_v19 }
  0x82   :  { %7199 = vmatprep.subr.bf16.mxu1 %v10478_v20  ;;  %740 = vmatprep.mubr.f32.mxu0 %v12480_v1 }
  0x83   :  { %811 = vmatprep.mubr.f32.mxu1 %v12480_v1 }
  0x84   :  { %7169 = vmatpush1.bf16.msra.mxu0 %v10481_v24 }
  0x85   :  { %7201 = vmatpush1.bf16.msra.mxu1 %v10485_v28  ;;  %7171 = vmatprep.subr.bf16.mxu0 %v10487_v29 }
  0x86   :  { %7203 = vmatprep.subr.bf16.mxu1 %v10489_v33 }
  0x88   :  { %7173 = vmatpush1.bf16.msra.mxu0 %v10492_v37 }
  0x89   :  { %7205 = vmatpush1.bf16.msra.mxu1 %v10496_v41  ;;  %7175 = vmatprep.subr.bf16.mxu0 %v10498_v42 }
  0x8a   :  { %7207 = vmatprep.subr.bf16.mxu1 %v10501_v46 }
  0x8c   :  { %7177 = vmatpush1.bf16.msra.mxu0 %v10504_v53 }
  0x8d   :  { %7209 = vmatpush1.bf16.msra.mxu1 %v10508_v54  ;;  %7179 = vmatprep.subr.bf16.mxu0 %v10510_v55 }
  0x8e   :  { %7211 = vmatprep.subr.bf16.mxu1 %v10513_v59 }
  0x90   :  { %7181 = vmatpush1.bf16.msra.mxu0 %v10516_v2 }
  0x91   :  { %7213 = vmatpush1.bf16.msra.mxu1 %v10520_v3  ;;  %7183 = vmatprep.subr.bf16.mxu0 %v10522_v4 }
  0x92   :  { %7215 = vmatprep.subr.bf16.mxu1 %v10525_v9 }
  0x94   :  { %7185 = vmatpush1.bf16.msra.mxu0 %v10528_v18 }
  0x95   :  { %7217 = vmatpush1.bf16.msra.mxu1 %v10532_v22  ;;  %7187 = vmatprep.subr.bf16.mxu0 %v10534_v23 }
  0x96   :  { %7219 = vmatprep.subr.bf16.mxu1 %v10540_v30 }
  0x98   :  { %7189 = vmatpush1.bf16.msra.mxu0 %v10546_v39 }
  0x99   :  { %7221 = vmatpush1.bf16.msra.mxu1 %v10550_v40  ;;  %7191 = vmatprep.subr.bf16.mxu0 %v10552_v43 }
  0x9a   :  { %7223 = vmatprep.subr.bf16.mxu1 %v10555_v47 }
  0x9c   :  { %7193 = vmatpush1.bf16.msra.mxu0 %v10561_v51 }
  0x9d   :  { %7225 = vmatpush1.bf16.msra.mxu1 %v10565_v52  ;;  %7227 = vmatprep.subr.bf16.mxu0 %v10609_v61 }
  0x9e   :  { %7259 = vmatprep.subr.bf16.mxu1 %v10611_v63 }
  0xf1   :  { %v439_v17 = vpop.permute.xlu0 %438 }
  0xf2   :  { %v462_v25 = vmul.f32 %v10623_v13, %v439_v17  ;;  %v463_v27 = vmul.f32 %v10629_v16, %v439_v17  ;;  %v465_v44 = vmul.f32 %v10642_v32, %v439_v17  ;;  %v464_v5 = vmul.f32 %v10653_v49, %v439_v17  ;;  %v147_v49 = vld [vmem:[#allocation5 + $0x118] sm:$0xff] }
  0xf4   :  { %v487_v34 = vadd.f32 %v10635_v26, %v462_v25  ;;  %v488_v36 = vadd.f32 %v10639_v31, %v463_v27  ;;  %v490_v0 = vadd.f32 %v10650_v45, %v465_v44  ;;  %v10658_v25 = vrot.slane %v432_v14, %v10645_v35  ;;  %v126_v35 = vld [vmem:[#allocation5 + $0x70] sm:$0xff] }
  0xf6   :  { %12931 = vst [vmem:[#allocation58_spill] sm:$0xff] %v10658_v25 }
 0x152   :  { %v557_v38 = vpop.f32.mrb[0].mxu0 }
 0x153   :  { %v633_v48 = vadd.f32 %v557_v38, %v487_v34  ;;  %v628_v50 = vpop.f32.mrb[0].mxu1  ;;  %v559_v56 = vpop.f32.mrb[1].mxu0  ;;  %v489_v34 = vadd.f32 %v10658_v25, %v464_v5  ;;  %v118_v5 = vld [vmem:[#allocation5 + $0x30] sm:$0xff]  ;;  %v135_v25 = vld [vmem:[#allocation5 + $0xb8] sm:$0xff] }
 0x154   :  { %v634_v57 = vadd.f32 %v559_v56, %v488_v36  ;;  %v630_v58 = vpop.f32.mrb[1].mxu1 }
 0x155   :  { %v7017_v60 = vmul.f32 -1.442695, %v633_v48  ;;  %v636_v27 = vadd.f32 %v630_v58, %v490_v0  ;;  %v635_v38 = vadd.f32 %v628_v50, %v489_v34  ;;  %v112_v50 = vld [vmem:[#allocation5] sm:$0xff]  ;;  %v123_v34 = vld [vmem:[#allocation5 + $0x58] sm:$0xff] }
 0x156   :  { %v7018_v62 = vmul.f32 -1.442695, %v634_v57  ;;  %v116_v0 = vld [vmem:[#allocation5 + $0x20] sm:$0xff] }
 0x157   :  { %9797 = vpow2.f32 %v7017_v60  ;;  %v7019_v8 = vmul.f32 -1.442695, %v636_v27  ;;  %v121_v27 = vld [vmem:[#allocation5 + $0x48] sm:$0xff] }
 0x158   :  { %9799 = vpow2.f32 %v7018_v62 }
 0x159   :  { %9801 = vpow2.f32 %v7019_v8  ;;  %v127_v8 = vld [vmem:[#allocation5 + $0x78] sm:$0xff] }
 0x15a   :  { %9803 = vtanh.f32 %v635_v38 }
 0x161   :  { %v9798_v1 = vpop.eup %9797 }
 0x162   :  { %v9800_v21 = vpop.eup %9799  ;;  %v640_v36 = vadd.f32 1.0, %v9798_v1  ;;  %v114_v1 = vld [vmem:[#allocation5 + $0x10] sm:$0xff] }
 0x163   :  { %v646_v48 = vadd.f32 1.0, %v9800_v21  ;;  %v9802_v44 = vpop.eup %9801  ;;  %v125_v21 = vld [vmem:[#allocation5 + $0x68] sm:$0xff] }
 0x164   :  { %9805 = vrcp.f32 %v640_v36  ;;  %v9804_v56 = vpop.eup %9803  ;;  %v653_v60 = vadd.f32 1.0, %v9802_v44  ;;  %v120_v44 = vld [vmem:[#allocation5 + $0x40] sm:$0xff] }
 0x165   :  { %9807 = vrcp.f32 %v646_v48  ;;  %v10664_v48 = vpack.c.bf16 %v116_v0, %v112_v50 }
 0x166   :  { %9809 = vrcp.f32 %v653_v60  ;;  %v10672_v60 = vpack.c.bf16 %v127_v8, %v123_v34  ;;  %v130_v34 = vld [vmem:[#allocation5 + $0x90] sm:$0xff] }
 0x167   :  { %12933 = vst [vmem:[#allocation60_spill] sm:$0xff] %v10664_v48  ;;  %v134_v8 = vld [vmem:[#allocation5 + $0xb0] sm:$0xff] }
 0x168   :  { %12936 = vst [vmem:[#allocation63_spill] sm:$0xff] %v10672_v60 }
 0x16e   :  { %v9806_v17 = vpop.eup %9805 }
 0x16f   :  { %v9808_v57 = vpop.eup %9807  ;;  %v657_v14 = vmul.f32 %v9806_v17, %v9804_v56  ;;  %v10666_v56 = vpack.c.bf16 %v118_v5, %v114_v1  ;;  %v124_v17 = vld [vmem:[#allocation5 + $0x60] sm:$0xff] }
 0x170   :  { %v656_v62 = vmul.f32 0.0, %v9808_v57  ;;  %v9810_v38 = vpop.eup %9809  ;;  %v10678_v50 = vpack.c.bf16 %v124_v17, %v120_v44  ;;  %v128_v1 = vld [vmem:[#allocation5 + $0x80] sm:$0xff]  ;;  %v12941_v44 = vmov 0.0  }
 0x171   :  { %12934 = vst [vmem:[#allocation61_spill] sm:$0xff] %v10666_v56  ;;  %v132_v5 = vld [vmem:[#allocation5 + $0xa0] sm:$0xff] }
 0x172   :  { %v10661_v58 = vadd.f32 %v657_v14, %v656_v62  ;;  %v10670_v14 = vpack.c.bf16 %v125_v21, %v121_v27  ;;  %v122_v62 = vld [vmem:[#allocation5 + $0x50] sm:$0xff]  ;;  %12937 = vst [vmem:[#allocation64_spill] sm:$0xff] %v10678_v50  ;;  %v10684_v27 = vpack.c.bf16 %v133_v7, %v129_v12  ;;  %v10694_v7 = vpack.c.bf16 %v134_v8, %v130_v34  ;;  %v136_v12 = vld [vmem:[#allocation5 + $0xc0] sm:$0xff] }
 0x173   :  { %v10680_v0 = vpack.c.bf16 %v126_v35, %v122_v62  ;;  %v10692_v35 = vpack.c.bf16 %v132_v5, %v128_v1  ;;  %v138_v62 = vld [vmem:[#allocation5 + $0xd0] sm:$0xff]  ;;  %v144_v34 = vld [vmem:[#allocation5 + $0x100] sm:$0xff] }
 0x174   :  { %12932 = vst [vmem:[#allocation59_spill] sm:$0xff] %v10661_v58  ;;  %9811 = vtanh.f32 %v10661_v58  ;;  %12935 = vst [vmem:[#allocation62_spill] sm:$0xff] %v10670_v14  ;;  %v131_v58 = vld [vmem:[#allocation5 + $0x98] sm:$0xff]  ;;  %v148_v8 = vld [vmem:[#allocation5 + $0x120] sm:$0xff] }
 0x175   :  { %12938 = vst [vmem:[#allocation65_spill] sm:$0xff] %v10680_v0  ;;  %12939 = vst [vmem:[#allocation66_spill] sm:$0xff] %v10684_v27  ;;  %v10686_v21 = vpack.c.bf16 %v135_v25, %v131_v58  ;;  %v140_v25 = vld [vmem:[#allocation5 + $0xe0] sm:$0xff] }
 0x176   :  { %12942 = vst [vmem:[#allocation68_spill] sm:$0xff] %v10692_v35  ;;  %12943 = vst [vmem:[#allocation69_spill] sm:$0xff] %v10694_v7  ;;  %v10704_v1 = vpack.c.bf16 %v140_v25, %v136_v12  ;;  %v152_v25 = vld [vmem:[#allocation5 + $0x140] sm:$0xff] }
 0x177   :  { %12940 = vst [vmem:[#allocation67_spill] sm:$0xff] %v10686_v21 }
 0x178   :  { %12946 = vst [vmem:[#allocation72_spill] sm:$0xff] %v10704_v1 }
 0x17e   :  { %v9812_v36 = vpop.eup %9811 }
 0x17f   :  { %v10668_v57 = vmul.f32 %v9812_v36, %v9810_v38  ;;  %v137_v38 = vld [vmem:[#allocation5 + $0xc8] sm:$0xff] }
 0x180   :  { %v141_v36 = vld [vmem:[#allocation5 + $0xe8] sm:$0xff] }
 0x181   :  { %741 = vmatmul.mubr.f32.vlgmr.msra.gmra.mrb[2].mxu0 %v10668_v57  ;;  %812 = vmatmul.mubr.f32.vlgmr.msra.gmra.mrb[2].mxu1 %v10668_v57  ;;  %v10698_v58 = vpack.c.bf16 %v141_v36, %v137_v38  ;;  %v146_v38 = vld [vmem:[#allocation5 + $0x110] sm:$0xff] }
 0x182   :  { %7229 = vmatpush1.bf16.msra.mxu0 %v10664_v48  ;;  %7261 = vmatpush1.bf16.msra.mxu1 %v10666_v56  ;;  %v139_v48 = vld [vmem:[#allocation5 + $0xd8] sm:$0xff]  ;;  %v150_v36 = vld [vmem:[#allocation5 + $0x130] sm:$0xff] }
 0x183   :  { %7231 = vmatprep.subr.bf16.mxu0 %v10670_v14  ;;  %7263 = vmatprep.subr.bf16.mxu1 %v10672_v60  ;;  %v143_v56 = vld [vmem:[#allocation5 + $0xf8] sm:$0xff]  ;;  %12944 = vst [vmem:[#allocation70_spill] sm:$0xff] %v10698_v58  ;;  %v142_v60 = vld [vmem:[#allocation5 + $0xf0] sm:$0xff]  ;;  %v145_v14 = vld [vmem:[#allocation5 + $0x108] sm:$0xff]  ;;  %v10718_v12 = vpack.c.bf16 %v150_v36, %v146_v38 }
 0x184   :  { %931 = vmatprep.mubr.f32.mxu0 %v12941_v44  ;;  %1002 = vmatprep.mubr.f32.mxu1 %v12941_v44  ;;  %v10700_v17 = vpack.c.bf16 %v143_v56, %v139_v48  ;;  %v10706_v5 = vpack.c.bf16 %v142_v60, %v138_v62  ;;  %v10716_v60 = vpack.c.bf16 %v148_v8, %v144_v34  ;;  %v156_v62 = vld [vmem:[#allocation5 + $0x160] sm:$0xff] }
 0x185   :  { %12951 = vst [vmem:[#allocation77_spill] sm:$0xff] %v10718_v12  ;;  %v10728_v34 = vpack.c.bf16 %v156_v62, %v152_v25  ;;  %v160_v38 = vld [vmem:[#allocation5 + $0x180] sm:$0xff] }
 0x186   :  { %7233 = vmatpush1.bf16.msra.mxu0 %v10678_v50  ;;  %7265 = vmatpush1.bf16.msra.mxu1 %v10680_v0  ;;  %12945 = vst [vmem:[#allocation71_spill] sm:$0xff] %v10700_v17  ;;  %v149_v50 = vld [vmem:[#allocation5 + $0x128] sm:$0xff]  ;;  %v151_v0 = vld [vmem:[#allocation5 + $0x138] sm:$0xff]  ;;  %12947 = vst [vmem:[#allocation73_spill] sm:$0xff] %v10706_v5 }
 0x187   :  { %7235 = vmatprep.subr.bf16.mxu0 %v10684_v27  ;;  %7267 = vmatprep.subr.bf16.mxu1 %v10686_v21  ;;  %v10710_v48 = vpack.c.bf16 %v149_v50, %v145_v14  ;;  %v10712_v56 = vpack.c.bf16 %v151_v0, %v147_v49  ;;  %v153_v21 = vld [vmem:[#allocation5 + $0x148] sm:$0xff]  ;;  %v155_v27 = vld [vmem:[#allocation5 + $0x158] sm:$0xff]  ;;  %12950 = vst [vmem:[#allocation76_spill] sm:$0xff] %v10716_v60  ;;  %v154_v50 = vld [vmem:[#allocation5 + $0x150] sm:$0xff] }
 0x188   :  { %v158_v0 = vld [vmem:[#allocation5 + $0x170] sm:$0xff]  ;;  %12954 = vst [vmem:[#allocation80_spill] sm:$0xff] %v10728_v34  ;;  %v164_v36 = vld [vmem:[#allocation5 + $0x1a0] sm:$0xff] }
 0x189   :  { %12948 = vst [vmem:[#allocation74_spill] sm:$0xff] %v10710_v48  ;;  %12949 = vst [vmem:[#allocation75_spill] sm:$0xff] %v10712_v56  ;;  %v10730_v8 = vpack.c.bf16 %v158_v0, %v154_v50  ;;  %v10740_v25 = vpack.c.bf16 %v164_v36, %v160_v38  ;;  %v168_v50 = vld [vmem:[#allocation5 + $0x1c0] sm:$0xff] }
 0x18a   :  { %7237 = vmatpush1.bf16.msra.mxu0 %v10692_v35  ;;  %7269 = vmatpush1.bf16.msra.mxu1 %v10694_v7  ;;  %v157_v35 = vld [vmem:[#allocation5 + $0x168] sm:$0xff]  ;;  %v159_v7 = vld [vmem:[#allocation5 + $0x178] sm:$0xff]  ;;  %v172_v0 = vld [vmem:[#allocation5 + $0x1e0] sm:$0xff] }
 0x18b   :  { %7239 = vmatprep.subr.bf16.mxu0 %v10698_v58  ;;  %7271 = vmatprep.subr.bf16.mxu1 %v10700_v17  ;;  %v10722_v49 = vpack.c.bf16 %v157_v35, %v153_v21  ;;  %v10724_v14 = vpack.c.bf16 %v159_v7, %v155_v27  ;;  %v161_v17 = vld [vmem:[#allocation5 + $0x188] sm:$0xff]  ;;  %v163_v58 = vld [vmem:[#allocation5 + $0x198] sm:$0xff]  ;;  %12955 = vst [vmem:[#allocation81_spill] sm:$0xff] %v10730_v8  ;;  %v162_v35 = vld [vmem:[#allocation5 + $0x190] sm:$0xff] }
 0x18c   :  { %v166_v7 = vld [vmem:[#allocation5 + $0x1b0] sm:$0xff]  ;;  %12958 = vst [vmem:[#allocation84_spill] sm:$0xff] %v10740_v25  ;;  %v10752_v38 = vpack.c.bf16 %v172_v0, %v168_v50 }
 0x18d   :  { %12952 = vst [vmem:[#allocation78_spill] sm:$0xff] %v10722_v49  ;;  %12953 = vst [vmem:[#allocation79_spill] sm:$0xff] %v10724_v14  ;;  %v10742_v62 = vpack.c.bf16 %v166_v7, %v162_v35  ;;  %v304_v35 = vld [vmem:[#allocation7] sm:$0xff] }
 0x18e   :  { %7241 = vmatpush1.bf16.msra.mxu0 %v10704_v1  ;;  %7273 = vmatpush1.bf16.msra.mxu1 %v10706_v5  ;;  %v165_v1 = vld [vmem:[#allocation5 + $0x1a8] sm:$0xff]  ;;  %v167_v5 = vld [vmem:[#allocation5 + $0x1b8] sm:$0xff]  ;;  %12962 = vst [vmem:[#allocation88_spill] sm:$0xff] %v10752_v38  ;;  %v308_v7 = vld [vmem:[#allocation7 + $0x20] sm:$0xff] }
 0x18f   :  { %7243 = vmatprep.subr.bf16.mxu0 %v10710_v48  ;;  %7275 = vmatprep.subr.bf16.mxu1 %v10712_v56  ;;  %v10734_v27 = vpack.c.bf16 %v165_v1, %v161_v17  ;;  %v10736_v21 = vpack.c.bf16 %v167_v5, %v163_v58  ;;  %v169_v56 = vld [vmem:[#allocation5 + $0x1c8] sm:$0xff]  ;;  %v171_v48 = vld [vmem:[#allocation5 + $0x1d8] sm:$0xff]  ;;  %12959 = vst [vmem:[#allocation85_spill] sm:$0xff] %v10742_v62  ;;  %v170_v1 = vld [vmem:[#allocation5 + $0x1d0] sm:$0xff] }
 0x190   :  { %v174_v5 = vld [vmem:[#allocation5 + $0x1f0] sm:$0xff]  ;;  %v10764_v50 = vpack.c.bf16 %v308_v7, %v304_v35 }
 0x191   :  { %12956 = vst [vmem:[#allocation82_spill] sm:$0xff] %v10734_v27  ;;  %12957 = vst [vmem:[#allocation83_spill] sm:$0xff] %v10736_v21  ;;  %v10754_v36 = vpack.c.bf16 %v174_v5, %v170_v1  ;;  %v312_v1 = vld [vmem:[#allocation7 + $0x40] sm:$0xff] }
 0x192   :  { %7245 = vmatpush1.bf16.msra.mxu0 %v10716_v60  ;;  %7277 = vmatpush1.bf16.msra.mxu1 %v10718_v12  ;;  %v173_v60 = vld [vmem:[#allocation5 + $0x1e8] sm:$0xff]  ;;  %v175_v12 = vld [vmem:[#allocation5 + $0x1f8] sm:$0xff]  ;;  %12966 = vst [vmem:[#allocation92_spill] sm:$0xff] %v10764_v50  ;;  %v316_v5 = vld [vmem:[#allocation7 + $0x60] sm:$0xff] }
 0x193   :  { %7247 = vmatprep.subr.bf16.mxu0 %v10722_v49  ;;  %7279 = vmatprep.subr.bf16.mxu1 %v10724_v14  ;;  %v10746_v58 = vpack.c.bf16 %v173_v60, %v169_v56  ;;  %v10748_v17 = vpack.c.bf16 %v175_v12, %v171_v48  ;;  %v305_v14 = vld [vmem:[#allocation7 + $0x8] sm:$0xff]  ;;  %v307_v49 = vld [vmem:[#allocation7 + $0x18] sm:$0xff]  ;;  %12963 = vst [vmem:[#allocation89_spill] sm:$0xff] %v10754_v36  ;;  %v306_v60 = vld [vmem:[#allocation7 + $0x10] sm:$0xff] }
 0x194   :  { %v310_v12 = vld [vmem:[#allocation7 + $0x30] sm:$0xff]  ;;  %v10778_v35 = vpack.c.bf16 %v316_v5, %v312_v1 }
 0x195   :  { %12960 = vst [vmem:[#allocation86_spill] sm:$0xff] %v10746_v58  ;;  %12961 = vst [vmem:[#allocation87_spill] sm:$0xff] %v10748_v17  ;;  %v10766_v0 = vpack.c.bf16 %v310_v12, %v306_v60  ;;  %v322_v60 = vld [vmem:[#allocation7 + $0x90] sm:$0xff]  ;;  %v329_v12 = vld [vmem:[#allocation7 + $0xc8] sm:$0xff] }
 0x196   :  { %7249 = vmatpush1.bf16.msra.mxu0 %v10728_v34  ;;  %7281 = vmatpush1.bf16.msra.mxu1 %v10730_v8  ;;  %v309_v34 = vld [vmem:[#allocation7 + $0x28] sm:$0xff]  ;;  %v311_v8 = vld [vmem:[#allocation7 + $0x38] sm:$0xff]  ;;  %12970 = vst [vmem:[#allocation96_spill] sm:$0xff] %v10778_v35 }
 0x197   :  { %7251 = vmatprep.subr.bf16.mxu0 %v10734_v27  ;;  %7283 = vmatprep.subr.bf16.mxu1 %v10736_v21  ;;  %v10758_v48 = vpack.c.bf16 %v309_v34, %v305_v14  ;;  %v10760_v56 = vpack.c.bf16 %v311_v8, %v307_v49  ;;  %v313_v21 = vld [vmem:[#allocation7 + $0x48] sm:$0xff]  ;;  %v315_v27 = vld [vmem:[#allocation7 + $0x58] sm:$0xff]  ;;  %12967 = vst [vmem:[#allocation93_spill] sm:$0xff] %v10766_v0  ;;  %v314_v34 = vld [vmem:[#allocation7 + $0x50] sm:$0xff] }
 0x198   :  { %v318_v8 = vld [vmem:[#allocation7 + $0x70] sm:$0xff] }
 0x199   :  { %12964 = vst [vmem:[#allocation90_spill] sm:$0xff] %v10758_v48  ;;  %12965 = vst [vmem:[#allocation91_spill] sm:$0xff] %v10760_v56 }
 0x19a   :  { %7253 = vmatpush1.bf16.msra.mxu0 %v10740_v25  ;;  %7285 = vmatpush1.bf16.msra.mxu1 %v10742_v62  ;;  %v317_v25 = vld [vmem:[#allocation7 + $0x68] sm:$0xff]  ;;  %v319_v62 = vld [vmem:[#allocation7 + $0x78] sm:$0xff] }
 0x19b   :  { %7255 = vmatprep.subr.bf16.mxu0 %v10746_v58  ;;  %7287 = vmatprep.subr.bf16.mxu1 %v10748_v17  ;;  %v10770_v49 = vpack.c.bf16 %v317_v25, %v313_v21  ;;  %v10772_v14 = vpack.c.bf16 %v319_v62, %v315_v27  ;;  %v321_v17 = vld [vmem:[#allocation7 + $0x88] sm:$0xff]  ;;  %v323_v58 = vld [vmem:[#allocation7 + $0x98] sm:$0xff]  ;;  %v10780_v21 = vpack.c.bf16 %v318_v8, %v314_v34  ;;  %v320_v27 = vld [vmem:[#allocation7 + $0x80] sm:$0xff] }
 0x19c   :  { %v324_v25 = vld [vmem:[#allocation7 + $0xa0] sm:$0xff]  ;;  %v330_v34 = vld [vmem:[#allocation7 + $0xd0] sm:$0xff] }
 0x19d   :  { %12968 = vst [vmem:[#allocation94_spill] sm:$0xff] %v10770_v49  ;;  %12969 = vst [vmem:[#allocation95_spill] sm:$0xff] %v10772_v14  ;;  %v10792_v1 = vpack.c.bf16 %v324_v25, %v320_v27  ;;  %v334_v8 = vld [vmem:[#allocation7 + $0xf0] sm:$0xff] }
 0x19e   :  { %7257 = vmatpush1.bf16.msra.mxu0 %v10752_v38  ;;  %7289 = vmatpush1.bf16.msra.mxu1 %v10754_v36  ;;  %v325_v38 = vld [vmem:[#allocation7 + $0xa8] sm:$0xff]  ;;  %v327_v36 = vld [vmem:[#allocation7 + $0xb8] sm:$0xff]  ;;  %12971 = vst [vmem:[#allocation97_spill] sm:$0xff] %v10780_v21  ;;  %v10806_v25 = vpack.c.bf16 %v334_v8, %v330_v34  ;;  %v344_v34 = vld [vmem:[#allocation7 + $0x140] sm:$0xff] }
 0x19f   :  { %7291 = vmatprep.subr.bf16.mxu0 %v10758_v48  ;;  %7323 = vmatprep.subr.bf16.mxu1 %v10760_v56  ;;  %v10784_v62 = vpack.c.bf16 %v325_v38, %v321_v17  ;;  %v10786_v7 = vpack.c.bf16 %v327_v36, %v323_v58  ;;  %v331_v56 = vld [vmem:[#allocation7 + $0xd8] sm:$0xff]  ;;  %12974 = vst [vmem:[#allocation100_spill] sm:$0xff] %v10792_v1  ;;  %v328_v58 = vld [vmem:[#allocation7 + $0xc0] sm:$0xff] }
 0x1a0   :  { %v332_v38 = vld [vmem:[#allocation7 + $0xe0] sm:$0xff]  ;;  %12979 = vst [vmem:[#allocation105_spill] sm:$0xff] %v10806_v25 }
 0x1a1   :  { %932 = vmatmul.mubr.f32.vlgmr.msra.gmra.mrb[4].mxu0 %v10668_v57  ;;  %1003 = vmatmul.mubr.f32.vlgmr.msra.gmra.mrb[4].mxu1 %v10668_v57  ;;  %12972 = vst [vmem:[#allocation98_spill] sm:$0xff] %v10784_v62  ;;  %12973 = vst [vmem:[#allocation99_spill] sm:$0xff] %v10786_v7  ;;  %v326_v57 = vld [vmem:[#allocation7 + $0xb0] sm:$0xff]  ;;  %v10804_v27 = vpack.c.bf16 %v332_v38, %v328_v58  ;;  %v348_v8 = vld [vmem:[#allocation7 + $0x160] sm:$0xff] }
 0x1a2   :  { %7293 = vmatpush1.bf16.msra.mxu0 %v10764_v50  ;;  %7325 = vmatpush1.bf16.msra.mxu1 %v10766_v0  ;;  %v333_v50 = vld [vmem:[#allocation7 + $0xe8] sm:$0xff]  ;;  %v335_v0 = vld [vmem:[#allocation7 + $0xf8] sm:$0xff]  ;;  %v10794_v17 = vpack.c.bf16 %v326_v57, %v322_v60  ;;  %v336_v60 = vld [vmem:[#allocation7 + $0x100] sm:$0xff] }
 0x1a3   :  { %7295 = vmatprep.subr.bf16.mxu0 %v10770_v49  ;;  %7327 = vmatprep.subr.bf16.mxu1 %v10772_v14  ;;  %v10798_v36 = vpack.c.bf16 %v333_v50, %v329_v12  ;;  %v10800_v5 = vpack.c.bf16 %v335_v0, %v331_v56  ;;  %v337_v14 = vld [vmem:[#allocation7 + $0x108] sm:$0xff]  ;;  %v339_v49 = vld [vmem:[#allocation7 + $0x118] sm:$0xff]  ;;  %12978 = vst [vmem:[#allocation104_spill] sm:$0xff] %v10804_v27  ;;  %v340_v57 = vld [vmem:[#allocation7 + $0x120] sm:$0xff] }
 0x1a4   :  { %1073 = vmatprep.mubr.f32.mxu0 %v12941_v44  ;;  %1144 = vmatprep.mubr.f32.mxu1 %v12941_v44  ;;  %12975 = vst [vmem:[#allocation101_spill] sm:$0xff] %v10794_v17  ;;  %v338_v0 = vld [vmem:[#allocation7 + $0x110] sm:$0xff]  ;;  %v10816_v58 = vpack.c.bf16 %v340_v57, %v336_v60  ;;  %v10828_v60 = vpack.c.bf16 %v348_v8, %v344_v34 }
 0x1a5   :  { %12976 = vst [vmem:[#allocation102_spill] sm:$0xff] %v10798_v36  ;;  %12977 = vst [vmem:[#allocation103_spill] sm:$0xff] %v10800_v5  ;;  %v342_v12 = vld [vmem:[#allocation7 + $0x130] sm:$0xff] }
 0x1a6   :  { %7297 = vmatpush1.bf16.msra.mxu0 %v10778_v35  ;;  %7329 = vmatpush1.bf16.msra.mxu1 %v10780_v21  ;;  %v341_v35 = vld [vmem:[#allocation7 + $0x128] sm:$0xff]  ;;  %v343_v21 = vld [vmem:[#allocation7 + $0x138] sm:$0xff]  ;;  %12982 = vst [vmem:[#allocation108_spill] sm:$0xff] %v10816_v58  ;;  %v10818_v38 = vpack.c.bf16 %v342_v12, %v338_v0  ;;  %12986 = vst [vmem:[#allocation112_spill] sm:$0xff] %v10828_v60 }
 0x1a7   :  { %7299 = vmatprep.subr.bf16.mxu0 %v10784_v62  ;;  %7331 = vmatprep.subr.bf16.mxu1 %v10786_v7  ;;  %v10810_v56 = vpack.c.bf16 %v341_v35, %v337_v14  ;;  %v10812_v50 = vpack.c.bf16 %v343_v21, %v339_v49  ;;  %v345_v7 = vld [vmem:[#allocation7 + $0x148] sm:$0xff]  ;;  %v347_v62 = vld [vmem:[#allocation7 + $0x158] sm:$0xff]  ;;  %v346_v35 = vld [vmem:[#allocation7 + $0x150] sm:$0xff] }
 0x1a8   :  { %12983 = vst [vmem:[#allocation109_spill] sm:$0xff] %v10818_v38  ;;  %v350_v21 = vld [vmem:[#allocation7 + $0x170] sm:$0xff]  ;;  %v352_v0 = vld [vmem:[#allocation7 + $0x180] sm:$0xff] }
 0x1a9   :  { %12980 = vst [vmem:[#allocation106_spill] sm:$0xff] %v10810_v56  ;;  %12981 = vst [vmem:[#allocation107_spill] sm:$0xff] %v10812_v50  ;;  %v10830_v57 = vpack.c.bf16 %v350_v21, %v346_v35  ;;  %v356_v12 = vld [vmem:[#allocation7 + $0x1a0] sm:$0xff]  ;;  %v366_v21 = vld [vmem:[#allocation7 + $0x1f0] sm:$0xff] }
 0x1aa   :  { %7301 = vmatpush1.bf16.msra.mxu0 %v10792_v1  ;;  %7333 = vmatpush1.bf16.msra.mxu1 %v10794_v17  ;;  %v349_v1 = vld [vmem:[#allocation7 + $0x168] sm:$0xff]  ;;  %v351_v17 = vld [vmem:[#allocation7 + $0x178] sm:$0xff]  ;;  %v10840_v34 = vpack.c.bf16 %v356_v12, %v352_v0  ;;  %v360_v35 = vld [vmem:[#allocation7 + $0x1c0] sm:$0xff] }
 0x1ab   :  { %7303 = vmatprep.subr.bf16.mxu0 %v10798_v36  ;;  %7335 = vmatprep.subr.bf16.mxu1 %v10800_v5  ;;  %v10822_v49 = vpack.c.bf16 %v349_v1, %v345_v7  ;;  %v10824_v14 = vpack.c.bf16 %v351_v17, %v347_v62  ;;  %v353_v5 = vld [vmem:[#allocation7 + $0x188] sm:$0xff]  ;;  %v355_v36 = vld [vmem:[#allocation7 + $0x198] sm:$0xff]  ;;  %12987 = vst [vmem:[#allocation113_spill] sm:$0xff] %v10830_v57  ;;  %v354_v1 = vld [vmem:[#allocation7 + $0x190] sm:$0xff] }
 0x1ac   :  { %v358_v17 = vld [vmem:[#allocation7 + $0x1b0] sm:$0xff]  ;;  %12990 = vst [vmem:[#allocation116_spill] sm:$0xff] %v10840_v34 }
 0x1ad   :  { %12984 = vst [vmem:[#allocation110_spill] sm:$0xff] %v10822_v49  ;;  %12985 = vst [vmem:[#allocation111_spill] sm:$0xff] %v10824_v14  ;;  %v10842_v8 = vpack.c.bf16 %v358_v17, %v354_v1  ;;  %v7057_v17 = vld [vmem:[%s12467_s0 + $0x28] sm:$0xff] }
 0x1ae   :  { %7305 = vmatpush1.bf16.msra.mxu0 %v10804_v27  ;;  %7337 = vmatpush1.bf16.msra.mxu1 %v10806_v25  ;;  %v357_v27 = vld [vmem:[#allocation7 + $0x1a8] sm:$0xff]  ;;  %v359_v25 = vld [vmem:[#allocation7 + $0x1b8] sm:$0xff] }
 0x1af   :  { %7307 = vmatprep.subr.bf16.mxu0 %v10810_v56  ;;  %7339 = vmatprep.subr.bf16.mxu1 %v10812_v50  ;;  %v10834_v62 = vpack.c.bf16 %v357_v27, %v353_v5  ;;  %v10836_v7 = vpack.c.bf16 %v359_v25, %v355_v36  ;;  %v361_v50 = vld [vmem:[#allocation7 + $0x1c8] sm:$0xff]  ;;  %v363_v56 = vld [vmem:[#allocation7 + $0x1d8] sm:$0xff]  ;;  %12991 = vst [vmem:[#allocation117_spill] sm:$0xff] %v10842_v8  ;;  %v364_v27 = vld [vmem:[#allocation7 + $0x1e0] sm:$0xff] }
 0x1b0   :  { %v362_v25 = vld [vmem:[#allocation7 + $0x1d0] sm:$0xff]  ;;  %v10852_v0 = vpack.c.bf16 %v364_v27, %v360_v35 }
 0x1b1   :  { %12988 = vst [vmem:[#allocation114_spill] sm:$0xff] %v10834_v62  ;;  %12989 = vst [vmem:[#allocation115_spill] sm:$0xff] %v10836_v7  ;;  %v10854_v12 = vpack.c.bf16 %v366_v21, %v362_v25 }
 0x1b2   :  { %7309 = vmatpush1.bf16.msra.mxu0 %v10816_v58  ;;  %7341 = vmatpush1.bf16.msra.mxu1 %v10818_v38  ;;  %v365_v58 = vld [vmem:[#allocation7 + $0x1e8] sm:$0xff]  ;;  %v367_v38 = vld [vmem:[#allocation7 + $0x1f8] sm:$0xff]  ;;  %12994 = vst [vmem:[#allocation120_spill] sm:$0xff] %v10852_v0 }
 0x1b3   :  { %7311 = vmatprep.subr.bf16.mxu0 %v10822_v49  ;;  %7343 = vmatprep.subr.bf16.mxu1 %v10824_v14  ;;  %v10846_v36 = vpack.c.bf16 %v365_v58, %v361_v50  ;;  %v10848_v5 = vpack.c.bf16 %v367_v38, %v363_v56  ;;  %12995 = vst [vmem:[#allocation121_spill] sm:$0xff] %v10854_v12  ;;  %v7027_v56 = vld [vmem:[%s12467_s0 + $0x10] sm:$0xff]  ;;  %v7037_v50 = vld [vmem:[%s12467_s0 + $0x18] sm:$0xff]  ;;  %v666_v58 = vpop.permute.xlu0 %665 }
 0x1b4   :  { %1183 = vperm.xlu1 %9796, %v7027_v56   ;;  %v668_v38 = vmul.f32 %v666_v58, %v10623_v13  ;;  %v669_v1 = vmul.f32 %v666_v58, %v10629_v16  ;;  %v7077_v56 = vld [vmem:[%s12467_s0 + $0x38] sm:$0xff] }
 0x1b5   :  { %12992 = vst [vmem:[#allocation118_spill] sm:$0xff] %v10846_v36  ;;  %12993 = vst [vmem:[#allocation119_spill] sm:$0xff] %v10848_v5 }
 0x1b6   :  { %7313 = vmatpush1.bf16.msra.mxu0 %v10828_v60  ;;  %7345 = vmatpush1.bf16.msra.mxu1 %v10830_v57  ;;  %v672_v35 = vadd.f32 %v668_v38, %v10635_v26  ;;  %v673_v21 = vadd.f32 %v669_v1, %v10639_v31  ;;  %v12997_v31 = vld [vmem:[#allocation58_spill] sm:$0xff] }
 0x1b7   :  { %7315 = vmatprep.subr.bf16.mxu0 %v10834_v62  ;;  %7347 = vmatprep.subr.bf16.mxu1 %v10836_v7 }
 0x1b8   :  { %2013 = vperm.xlu1 %9796, %v7037_v50  }
 0x1ba   :  { %7317 = vmatpush1.bf16.msra.mxu0 %v10840_v34  ;;  %7349 = vmatpush1.bf16.msra.mxu1 %v10842_v8 }
 0x1bb   :  { %7319 = vmatprep.subr.bf16.mxu0 %v10846_v36  ;;  %7351 = vmatprep.subr.bf16.mxu1 %v10848_v5 }
 0x1bc   :  { %3631 = vperm.xlu1 %9796, %v7057_v17   ;;  %v12996_v17 = vld [vmem:[#allocation57_spill] sm:$0xff] }
 0x1bd   :  { %v670_v26 = vmul.f32 %v666_v58, %v12996_v17 }
 0x1be   :  { %7321 = vmatpush1.bf16.msra.mxu0 %v10852_v0  ;;  %7353 = vmatpush1.bf16.msra.mxu1 %v10854_v12 }
 0x1bf   :  { %7355 = vmatprep.subr.bf16.mxu0 %v10465_v6  ;;  %7387 = vmatprep.subr.bf16.mxu1 %v10467_v10 }
 0x1c0   :  { %5249 = vperm.xlu1 %9796, %v7077_v56  }
 0x1c1   :  { %1074 = vmatmul.mubr.f32.vlgmr.msra.gmra.mrb[4].mxu0 %v12941_v44  ;;  %1145 = vmatmul.mubr.f32.vlgmr.msra.gmra.mrb[4].mxu1 %v12941_v44 }
 0x1c2   :  { %7357 = vmatpush1.bf16.msra.mxu0 %v10469_v11  ;;  %7389 = vmatpush1.bf16.msra.mxu1 %v10472_v15 }
 0x1c3   :  { %7359 = vmatprep.subr.bf16.mxu0 %v10476_v19  ;;  %7391 = vmatprep.subr.bf16.mxu1 %v10478_v20 }
 0x1c4   :  { %1258 = vmatprep.mubr.f32.mxu0 %v12941_v44  ;;  %1329 = vmatprep.mubr.f32.mxu1 %v12941_v44 }
 0x1c6   :  { %7361 = vmatpush1.bf16.msra.mxu0 %v10481_v24  ;;  %7393 = vmatpush1.bf16.msra.mxu1 %v10485_v28 }
 0x1c7   :  { %7363 = vmatprep.subr.bf16.mxu0 %v10487_v29  ;;  %7395 = vmatprep.subr.bf16.mxu1 %v10489_v33 }
 0x1ca   :  { %7365 = vmatpush1.bf16.msra.mxu0 %v10492_v37  ;;  %7397 = vmatpush1.bf16.msra.mxu1 %v10496_v41 }
 0x1cb   :  { %7367 = vmatprep.subr.bf16.mxu0 %v10498_v42  ;;  %7399 = vmatprep.subr.bf16.mxu1 %v10501_v46 }
 0x1ce   :  { %7369 = vmatpush1.bf16.msra.mxu0 %v10504_v53  ;;  %7401 = vmatpush1.bf16.msra.mxu1 %v10508_v54 }
 0x1cf   :  { %7371 = vmatprep.subr.bf16.mxu0 %v10510_v55  ;;  %7403 = vmatprep.subr.bf16.mxu1 %v10513_v59 }
 0x1d2   :  { %7373 = vmatpush1.bf16.msra.mxu0 %v10516_v2  ;;  %7405 = vmatpush1.bf16.msra.mxu1 %v10520_v3 }
 0x1d3   :  { %7375 = vmatprep.subr.bf16.mxu0 %v10522_v4  ;;  %7407 = vmatprep.subr.bf16.mxu1 %v10525_v9 }
 0x1d6   :  { %7377 = vmatpush1.bf16.msra.mxu0 %v10528_v18  ;;  %7409 = vmatpush1.bf16.msra.mxu1 %v10532_v22 }
 0x1d7   :  { %7379 = vmatprep.subr.bf16.mxu0 %v10534_v23  ;;  %7411 = vmatprep.subr.bf16.mxu1 %v10540_v30 }
 0x1da   :  { %7381 = vmatpush1.bf16.msra.mxu0 %v10546_v39  ;;  %7413 = vmatpush1.bf16.msra.mxu1 %v10550_v40 }
 0x1db   :  { %7383 = vmatprep.subr.bf16.mxu0 %v10552_v43  ;;  %7415 = vmatprep.subr.bf16.mxu1 %v10555_v47  ;;  %v674_v47 = vadd.f32 %v670_v26, %v12997_v31 }
 0x1de   :  { %7385 = vmatpush1.bf16.msra.mxu0 %v10561_v51  ;;  %7417 = vmatpush1.bf16.msra.mxu1 %v10565_v52 }
 0x1df   :  { %7419 = vmatprep.subr.bf16.mxu0 %v10609_v61  ;;  %7451 = vmatprep.subr.bf16.mxu1 %v10611_v63  ;;  %v671_v61 = vmul.f32 %v666_v58, %v10642_v32  ;;  %v12998_v58 = vld [vmem:[#allocation59_spill] sm:$0xff] }
 0x1e1   :  { %v675_v38 = vadd.f32 %v671_v61, %v10650_v45 }
 0x254   :  { %v742_v27 = vpop.f32.mrb[2].mxu0  ;;  %v813_v25 = vpop.f32.mrb[2].mxu1 }
 0x255   :  { %v818_v50 = vadd.f32 %v742_v27, %v672_v35  ;;  %v744_v63 = vpop.f32.mrb[3].mxu0  ;;  %v815_v13 = vpop.f32.mrb[3].mxu1  ;;  %v820_v40 = vadd.f32 %v813_v25, %v674_v47  ;;  %v13001_v25 = vld [vmem:[#allocation62_spill] sm:$0xff] }
 0x256   :  { %v819_v16 = vadd.f32 %v744_v63, %v673_v21  ;;  %v821_v1 = vadd.f32 %v815_v13, %v675_v38  ;;  %v13002_v38 = vld [vmem:[#allocation63_spill] sm:$0xff] }
 0x257   :  { %v7021_v52 = vmul.f32 -1.442695, %v818_v50 }
 0x258   :  { %v7022_v51 = vmul.f32 -1.442695, %v819_v16  ;;  %v7023_v43 = vmul.f32 -1.442695, %v821_v1  ;;  %v13003_v1 = vld [vmem:[#allocation64_spill] sm:$0xff] }
 0x259   :  { %9813 = vpow2.f32 %v7021_v52 }
 0x25a   :  { %9815 = vpow2.f32 %v7022_v51 }
 0x25b   :  { %9817 = vpow2.f32 %v7023_v43 }
 0x25c   :  { %9819 = vtanh.f32 %v820_v40  ;;  %v13000_v40 = vld [vmem:[#allocation61_spill] sm:$0xff] }
 0x263   :  { %v9814_v35 = vpop.eup %9813 }
 0x264   :  { %v9816_v27 = vpop.eup %9815  ;;  %v825_v39 = vadd.f32 1.0, %v9814_v35  ;;  %v13004_v35 = vld [vmem:[#allocation65_spill] sm:$0xff] }
 0x265   :  { %v831_v63 = vadd.f32 1.0, %v9816_v27  ;;  %v9818_v16 = vpop.eup %9817  ;;  %v13005_v27 = vld [vmem:[#allocation66_spill] sm:$0xff] }
 0x266   :  { %9821 = vrcp.f32 %v825_v39  ;;  %v9820_v52 = vpop.eup %9819  ;;  %v838_v56 = vadd.f32 1.0, %v9818_v16  ;;  %v12999_v39 = vld [vmem:[#allocation60_spill] sm:$0xff] }
 0x267   :  { %9823 = vrcp.f32 %v831_v63  ;;  %v13006_v63 = vld [vmem:[#allocation67_spill] sm:$0xff]  ;;  %v13007_v16 = vld [vmem:[#allocation68_spill] sm:$0xff] }
 0x268   :  { %9825 = vrcp.f32 %v838_v56  ;;  %v13011_v56 = vld [vmem:[#allocation72_spill] sm:$0xff] }
 0x270   :  { %v9822_v51 = vpop.eup %9821 }
 0x271   :  { %v9824_v21 = vpop.eup %9823  ;;  %v842_v61 = vmul.f32 %v9822_v51, %v9820_v52  ;;  %v13008_v52 = vld [vmem:[#allocation69_spill] sm:$0xff]  ;;  %v13009_v51 = vld [vmem:[#allocation70_spill] sm:$0xff] }
 0x272   :  { %v841_v13 = vmul.f32 %v9824_v21, %v12998_v58  ;;  %v9826_v47 = vpop.eup %9825  ;;  %v13010_v21 = vld [vmem:[#allocation71_spill] sm:$0xff]  ;;  %v13012_v58 = vld [vmem:[#allocation73_spill] sm:$0xff] }
 0x274   :  { %v10919_v50 = vadd.f32 %v842_v61, %v841_v13  ;;  %v433_v61 = vld [vmem:[%s12473_s6] sm:$0xf] }
 0x275   :  { %v13013_v13 = vld [vmem:[#allocation74_spill] sm:$0xff] }
 0x276   :  { %9827 = vtanh.f32 %v10919_v50 }
 0x280   :  { %v9828_v26 = vpop.eup %9827 }
 0x281   :  { %v845_v43 = vmul.f32 %v9828_v26, %v9826_v47  ;;  %v13014_v47 = vld [vmem:[#allocation75_spill] sm:$0xff]  ;;  %v13015_v26 = vld [vmem:[#allocation48_spill] sm:$0xff] }
 0x283   :  { %1259 = vmatmul.mubr.f32.vlgmr.msra.gmra.mrb[6].mxu0 %v845_v43  ;;  %1330 = vmatmul.mubr.f32.vlgmr.msra.gmra.mrb[6].mxu1 %v845_v43 }
 0x284   :  { %7421 = vmatpush1.bf16.msra.mxu0 %v12999_v39  ;;  %7453 = vmatpush1.bf16.msra.mxu1 %v13000_v40  ;;  %v13025_v39 = vld [vmem:[#allocation80_spill] sm:$0xff] }
 0x285   :  { %7423 = vmatprep.subr.bf16.mxu0 %v13001_v25  ;;  %7455 = vmatprep.subr.bf16.mxu1 %v13002_v38  ;;  %v13021_v38 = vld [vmem:[#allocation78_spill] sm:$0xff] }
 0x286   :  { %1428 = vmatprep.mubr.f32.mxu0 %v12941_v44  ;;  %1499 = vmatprep.mubr.f32.mxu1 %v12941_v44 }
 0x288   :  { %7425 = vmatpush1.bf16.msra.mxu0 %v13003_v1  ;;  %7457 = vmatpush1.bf16.msra.mxu1 %v13004_v35  ;;  %v13020_v35 = vld [vmem:[#allocation77_spill] sm:$0xff] }
 0x289   :  { %7427 = vmatprep.subr.bf16.mxu0 %v13005_v27  ;;  %7459 = vmatprep.subr.bf16.mxu1 %v13006_v63  ;;  %v13019_v27 = vld [vmem:[#allocation76_spill] sm:$0xff] }
 0x28c   :  { %7429 = vmatpush1.bf16.msra.mxu0 %v13007_v16  ;;  %7461 = vmatpush1.bf16.msra.mxu1 %v13008_v52  ;;  %v10944_v16 = vrot.slane %v433_v61, %v13015_v26  ;;  %v13017_v52 = vld [vmem:[#allocation49_spill] sm:$0xff] }
 0x28d   :  { %7431 = vmatprep.subr.bf16.mxu0 %v13009_v51  ;;  %7463 = vmatprep.subr.bf16.mxu1 %v13010_v21  ;;  %v10947_v63 = vrot.slane %v433_v61, %v13017_v52  ;;  %v13023_v52 = vld [vmem:[#allocation52_spill] sm:$0xff] }
 0x28e   :  { %13016 = vst [vmem:[#allocation59_spill] sm:$0xff] %v10944_v16  ;;  %v10956_v40 = vrot.slane %v433_v61, %v13023_v52  ;;  %v13033_v52 = vld [vmem:[#allocation86_spill] sm:$0xff] }
 0x28f   :  { %13018 = vst [vmem:[#allocation122_spill] sm:$0xff] %v10947_v63 }
 0x290   :  { %7433 = vmatpush1.bf16.msra.mxu0 %v13011_v56  ;;  %7465 = vmatpush1.bf16.msra.mxu1 %v13012_v58  ;;  %13024 = vst [vmem:[#allocation123_spill] sm:$0xff] %v10956_v40 }
 0x291   :  { %7435 = vmatprep.subr.bf16.mxu0 %v13013_v13  ;;  %7467 = vmatprep.subr.bf16.mxu1 %v13014_v47  ;;  %v13022_v13 = vld [vmem:[#allocation79_spill] sm:$0xff] }
 0x294   :  { %v1075_v51 = vpop.f32.mrb[4].mxu0  ;;  %v1146_v21 = vpop.f32.mrb[4].mxu1  ;;  %7437 = vmatpush1.bf16.msra.mxu0 %v13019_v27  ;;  %7469 = vmatpush1.bf16.msra.mxu1 %v13020_v35  ;;  %v13026_v27 = vld [vmem:[#allocation81_spill] sm:$0xff]  ;;  %v13027_v35 = vld [vmem:[#allocation82_spill] sm:$0xff] }
 0x295   :  { %v9658_v56 = vadd.f32 %v1075_v51, %v10944_v16  ;;  %v1077_v1 = vpop.f32.mrb[5].mxu0  ;;  %v1148_v58 = vpop.f32.mrb[5].mxu1  ;;  %7439 = vmatprep.subr.bf16.mxu0 %v13021_v38  ;;  %7471 = vmatprep.subr.bf16.mxu1 %v13022_v13  ;;  %v13028_v51 = vld [vmem:[#allocation83_spill] sm:$0xff]  ;;  %v13029_v13 = vld [vmem:[#allocation84_spill] sm:$0xff] }
 0x296   :  { %v9659_v26 = vadd.f32 %v1077_v1, %v10947_v63  ;;  %v9661_v38 = vadd.f32 %v1148_v58, %v10956_v40  ;;  %v13030_v1 = vld [vmem:[#allocation85_spill] sm:$0xff]  ;;  %v13037_v58 = vld [vmem:[#allocation91_spill] sm:$0xff] }
 0x297   :  { %v7024_v47 = vmul.f32 -1.442695, %v9658_v56  ;;  %v13031_v56 = vld [vmem:[#allocation56_spill] sm:$0xff] }
 0x298   :  { %v7025_v25 = vmul.f32 -1.442695, %v9659_v26  ;;  %7441 = vmatpush1.bf16.msra.mxu0 %v13025_v39  ;;  %7473 = vmatpush1.bf16.msra.mxu1 %v13026_v27  ;;  %v10966_v26 = vrot.slane %v433_v61, %v13031_v56  ;;  %v13034_v39 = vld [vmem:[#allocation87_spill] sm:$0xff]  ;;  %v7026_v27 = vmul.f32 -1.442695, %v9661_v38 }
 0x299   :  { %9829 = vpow2.f32 %v7024_v47  ;;  %7443 = vmatprep.subr.bf16.mxu0 %v13027_v35  ;;  %7475 = vmatprep.subr.bf16.mxu1 %v13028_v51  ;;  %v13035_v47 = vld [vmem:[#allocation88_spill] sm:$0xff]  ;;  %v13036_v35 = vld [vmem:[#allocation89_spill] sm:$0xff] }
 0x29a   :  { %9831 = vpow2.f32 %v7025_v25  ;;  %13032 = vst [vmem:[#allocation83_spill] sm:$0xff] %v10966_v26  ;;  %v9660_v25 = vadd.f32 %v1146_v21, %v10966_v26  ;;  %v13043_v21 = vld [vmem:[#allocation97_spill] sm:$0xff] }
 0x29b   :  { %9833 = vpow2.f32 %v7026_v27  ;;  %v13044_v27 = vld [vmem:[#allocation98_spill] sm:$0xff] }
 0x29c   :  { %7445 = vmatpush1.bf16.msra.mxu0 %v13029_v13  ;;  %7477 = vmatpush1.bf16.msra.mxu1 %v13030_v1  ;;  %9835 = vtanh.f32 %v9660_v25  ;;  %v13046_v25 = vld [vmem:[#allocation100_spill] sm:$0xff] }
 0x29d   :  { %7447 = vmatprep.subr.bf16.mxu0 %v13033_v52  ;;  %7479 = vmatprep.subr.bf16.mxu1 %v13034_v39  ;;  %v13038_v52 = vld [vmem:[#allocation92_spill] sm:$0xff]  ;;  %v13039_v39 = vld [vmem:[#allocation93_spill] sm:$0xff] }
 0x2a0   :  { %7449 = vmatpush1.bf16.msra.mxu0 %v13035_v47  ;;  %7481 = vmatpush1.bf16.msra.mxu1 %v13036_v35  ;;  %v13040_v47 = vld [vmem:[#allocation94_spill] sm:$0xff]  ;;  %v13041_v35 = vld [vmem:[#allocation95_spill] sm:$0xff] }
 0x2a1   :  { %7483 = vmatprep.subr.bf16.mxu0 %v10758_v48  ;;  %7515 = vmatprep.subr.bf16.mxu1 %v13037_v58  ;;  %v13052_v48 = vld [vmem:[#allocation106_spill] sm:$0xff] }
 0x2a3   :  { %v9830_v13 = vpop.eup %9829  ;;  %1429 = vmatmul.mubr.f32.vlgmr.msra.gmra.mrb[8].mxu0 %v845_v43  ;;  %1500 = vmatmul.mubr.f32.vlgmr.msra.gmra.mrb[8].mxu1 %v845_v43  ;;  %v13042_v43 = vld [vmem:[#allocation96_spill] sm:$0xff] }
 0x2a4   :  { %v9832_v61 = vpop.eup %9831  ;;  %v1158_v56 = vadd.f32 1.0, %v9830_v13  ;;  %7485 = vmatpush1.bf16.msra.mxu0 %v13038_v52  ;;  %7517 = vmatpush1.bf16.msra.mxu1 %v13039_v39  ;;  %v13045_v13 = vld [vmem:[#allocation99_spill] sm:$0xff] }
 0x2a5   :  { %v1164_v38 = vadd.f32 1.0, %v9832_v61  ;;  %7487 = vmatprep.subr.bf16.mxu0 %v13040_v47  ;;  %7519 = vmatprep.subr.bf16.mxu1 %v13041_v35  ;;  %v13047_v61 = vld [vmem:[#allocation101_spill] sm:$0xff]  ;;  %v13048_v47 = vld [vmem:[#allocation102_spill] sm:$0xff]  ;;  %v9834_v35 = vpop.eup %9833 }
 0x2a6   :  { %9837 = vrcp.f32 %v1158_v56  ;;  %1570 = vmatprep.mubr.f32.mxu0 %v12941_v44  ;;  %1641 = vmatprep.mubr.f32.mxu1 %v12941_v44  ;;  %v13049_v56 = vld [vmem:[#allocation103_spill] sm:$0xff]  ;;  %v9836_v39 = vpop.eup %9835 }
 0x2a7   :  { %9839 = vrcp.f32 %v1164_v38  ;;  %v13050_v38 = vld [vmem:[#allocation104_spill] sm:$0xff] }
 0x2a8   :  { %7489 = vmatpush1.bf16.msra.mxu0 %v13042_v43  ;;  %7521 = vmatpush1.bf16.msra.mxu1 %v13043_v21  ;;  %v13051_v43 = vld [vmem:[#allocation105_spill] sm:$0xff] }
 0x2a9   :  { %7491 = vmatprep.subr.bf16.mxu0 %v13044_v27  ;;  %7523 = vmatprep.subr.bf16.mxu1 %v13045_v13  ;;  %v1171_v27 = vadd.f32 1.0, %v9834_v35  ;;  %v13053_v13 = vld [vmem:[#allocation107_spill] sm:$0xff] }
 0x2aa   :  { %v181_v35 = vld [vmem:[#allocation8 + $0x28] sm:$0xff] }
 0x2ab   :  { %9841 = vrcp.f32 %v1171_v27  ;;  %v180_v27 = vld [vmem:[#allocation8 + $0x20] sm:$0xff] }
 0x2ac   :  { %7493 = vmatpush1.bf16.msra.mxu0 %v13046_v25  ;;  %7525 = vmatpush1.bf16.msra.mxu1 %v13047_v61 }
 0x2ad   :  { %7495 = vmatprep.subr.bf16.mxu0 %v13048_v47  ;;  %7527 = vmatprep.subr.bf16.mxu1 %v13049_v56  ;;  %v13055_v47 = vld [vmem:[#allocation108_spill] sm:$0xff]  ;;  %v13056_v56 = vld [vmem:[#allocation109_spill] sm:$0xff] }
 0x2b0   :  { %v9838_v52 = vpop.eup %9837  ;;  %7497 = vmatpush1.bf16.msra.mxu0 %v13050_v38  ;;  %7529 = vmatpush1.bf16.msra.mxu1 %v13051_v43 }
 0x2b1   :  { %v9840_v21 = vpop.eup %9839  ;;  %v1175_v58 = vmul.f32 %v9838_v52, %v9836_v39  ;;  %7499 = vmatprep.subr.bf16.mxu0 %v13052_v48  ;;  %7531 = vmatprep.subr.bf16.mxu1 %v13053_v13  ;;  %v177_v39 = vld [vmem:[#allocation8 + $0x8] sm:$0xff]  ;;  %v179_v52 = vld [vmem:[#allocation8 + $0x18] sm:$0xff] }
 0x2b2   :  { %v1174_v25 = vmul.f32 0.0, %v9840_v21  ;;  %v176_v21 = vld [vmem:[#allocation8] sm:$0xff]  ;;  %v193_v13 = vld [vmem:[#allocation8 + $0x88] sm:$0xff] }
 0x2b4   :  { %v10993_v61 = vadd.f32 %v1175_v58, %v1174_v25  ;;  %7501 = vmatpush1.bf16.msra.mxu0 %v13055_v47  ;;  %7533 = vmatpush1.bf16.msra.mxu1 %v13056_v56  ;;  %v183_v58 = vld [vmem:[#allocation8 + $0x38] sm:$0xff]  ;;  %v11008_v25 = vpack.c.bf16 %v181_v35, %v177_v39  ;;  %v184_v39 = vld [vmem:[#allocation8 + $0x40] sm:$0xff] }
 0x2b5   :  { %7503 = vmatprep.subr.bf16.mxu0 %v10822_v49  ;;  %7535 = vmatprep.subr.bf16.mxu1 %v10824_v14  ;;  %v189_v14 = vld [vmem:[#allocation8 + $0x68] sm:$0xff]  ;;  %v187_v49 = vld [vmem:[#allocation8 + $0x58] sm:$0xff]  ;;  %v9842_v47 = vpop.eup %9841  ;;  %v188_v35 = vld [vmem:[#allocation8 + $0x60] sm:$0xff] }
 0x2b6   :  { %13054 = vst [vmem:[#allocation124_spill] sm:$0xff] %v10993_v61  ;;  %9843 = vtanh.f32 %v10993_v61  ;;  %13057 = vst [vmem:[#allocation125_spill] sm:$0xff] %v11008_v25  ;;  %v191_v56 = vld [vmem:[#allocation8 + $0x78] sm:$0xff]  ;;  %v186_v61 = vld [vmem:[#allocation8 + $0x50] sm:$0xff] }
 0x2b8   :  { %7505 = vmatpush1.bf16.msra.mxu0 %v10828_v60  ;;  %7537 = vmatpush1.bf16.msra.mxu1 %v10830_v57  ;;  %v11010_v57 = vpack.c.bf16 %v183_v58, %v179_v52  ;;  %v185_v60 = vld [vmem:[#allocation8 + $0x48] sm:$0xff] }
 0x2b9   :  { %7507 = vmatprep.subr.bf16.mxu0 %v10834_v62  ;;  %7539 = vmatprep.subr.bf16.mxu1 %v10836_v7  ;;  %v178_v62 = vld [vmem:[#allocation8 + $0x10] sm:$0xff]  ;;  %v11022_v58 = vpack.c.bf16 %v189_v14, %v185_v60  ;;  %v196_v60 = vld [vmem:[#allocation8 + $0xa0] sm:$0xff] }
 0x2ba   :  { %13058 = vst [vmem:[#allocation126_spill] sm:$0xff] %v11010_v57  ;;  %v182_v7 = vld [vmem:[#allocation8 + $0x30] sm:$0xff] }
 0x2bb   :  { %13061 = vst [vmem:[#allocation129_spill] sm:$0xff] %v11022_v58 }
 0x2bc   :  { %7509 = vmatpush1.bf16.msra.mxu0 %v10840_v34  ;;  %7541 = vmatpush1.bf16.msra.mxu1 %v10842_v8  ;;  %v11014_v8 = vpack.c.bf16 %v180_v27, %v176_v21  ;;  %v195_v21 = vld [vmem:[#allocation8 + $0x98] sm:$0xff] }
 0x2bd   :  { %7511 = vmatprep.subr.bf16.mxu0 %v10846_v36  ;;  %7543 = vmatprep.subr.bf16.mxu1 %v10848_v5  ;;  %v11016_v36 = vpack.c.bf16 %v182_v7, %v178_v62  ;;  %v11024_v5 = vpack.c.bf16 %v191_v56, %v187_v49  ;;  %v199_v27 = vld [vmem:[#allocation8 + $0xb8] sm:$0xff]  ;;  %v11030_v62 = vpack.c.bf16 %v188_v35, %v184_v39  ;;  %v192_v49 = vld [vmem:[#allocation8 + $0x80] sm:$0xff]  ;;  %v198_v56 = vld [vmem:[#allocation8 + $0xb0] sm:$0xff] }
 0x2be   :  { %13059 = vst [vmem:[#allocation127_spill] sm:$0xff] %v11014_v8 }
 0x2bf   :  { %13060 = vst [vmem:[#allocation128_spill] sm:$0xff] %v11016_v36  ;;  %13062 = vst [vmem:[#allocation130_spill] sm:$0xff] %v11024_v5 }
 0x2c0   :  { %v9844_v34 = vpop.eup %9843  ;;  %7513 = vmatpush1.bf16.msra.mxu0 %v10852_v0  ;;  %7545 = vmatpush1.bf16.msra.mxu1 %v10854_v12  ;;  %v190_v0 = vld [vmem:[#allocation8 + $0x70] sm:$0xff]  ;;  %v197_v12 = vld [vmem:[#allocation8 + $0xa8] sm:$0xff]  ;;  %13063 = vst [vmem:[#allocation131_spill] sm:$0xff] %v11030_v62 }
 0x2c1   :  { %v11018_v52 = vmul.f32 %v9844_v34, %v9842_v47  ;;  %7547 = vmatprep.subr.bf16.mxu0 %v11008_v25  ;;  %7579 = vmatprep.subr.bf16.mxu1 %v11010_v57  ;;  %v11032_v14 = vpack.c.bf16 %v190_v0, %v186_v61  ;;  %v11036_v7 = vpack.c.bf16 %v197_v12, %v193_v13  ;;  %v194_v47 = vld [vmem:[#allocation8 + $0x90] sm:$0xff]  ;;  %v201_v57 = vld [vmem:[#allocation8 + $0xc8] sm:$0xff]  ;;  %v203_v25 = vld [vmem:[#allocation8 + $0xd8] sm:$0xff] }
 0x2c2   :  { %v11038_v34 = vpack.c.bf16 %v199_v27, %v195_v21  ;;  %v11044_v0 = vpack.c.bf16 %v196_v60, %v192_v49  ;;  %v11046_v12 = vpack.c.bf16 %v198_v56, %v194_v47  ;;  %v200_v13 = vld [vmem:[#allocation8 + $0xc0] sm:$0xff]  ;;  %v202_v21 = vld [vmem:[#allocation8 + $0xd0] sm:$0xff] }
 0x2c3   :  { %1571 = vmatmul.mubr.f32.vlgmr.msra.gmra.mrb[8].mxu0 %v11018_v52  ;;  %1642 = vmatmul.mubr.f32.vlgmr.msra.gmra.mrb[8].mxu1 %v11018_v52  ;;  %13064 = vst [vmem:[#allocation132_spill] sm:$0xff] %v11032_v14  ;;  %13065 = vst [vmem:[#allocation133_spill] sm:$0xff] %v11036_v7  ;;  %v204_v61 = vld [vmem:[#allocation8 + $0xe0] sm:$0xff]  ;;  %v206_v27 = vld [vmem:[#allocation8 + $0xf0] sm:$0xff] }
 0x2c4   :  { %7549 = vmatpush1.bf16.msra.mxu0 %v11014_v8  ;;  %7581 = vmatpush1.bf16.msra.mxu1 %v11016_v36  ;;  %13066 = vst [vmem:[#allocation134_spill] sm:$0xff] %v11038_v34  ;;  %v205_v8 = vld [vmem:[#allocation8 + $0xe8] sm:$0xff]  ;;  %v207_v36 = vld [vmem:[#allocation8 + $0xf8] sm:$0xff]  ;;  %13067 = vst [vmem:[#allocation135_spill] sm:$0xff] %v11044_v0  ;;  %v11056_v49 = vpack.c.bf16 %v204_v61, %v200_v13  ;;  %v11058_v60 = vpack.c.bf16 %v206_v27, %v202_v21 }
 0x2c5   :  { %7551 = vmatprep.subr.bf16.mxu0 %v11022_v58  ;;  %7583 = vmatprep.subr.bf16.mxu1 %v11024_v5  ;;  %13068 = vst [vmem:[#allocation136_spill] sm:$0xff] %v11046_v12  ;;  %v11050_v39 = vpack.c.bf16 %v205_v8, %v201_v57  ;;  %v11052_v35 = vpack.c.bf16 %v207_v36, %v203_v25  ;;  %v209_v5 = vld [vmem:[#allocation8 + $0x108] sm:$0xff]  ;;  %v211_v58 = vld [vmem:[#allocation8 + $0x118] sm:$0xff]  ;;  %v208_v47 = vld [vmem:[#allocation8 + $0x100] sm:$0xff] }
 0x2c6   :  { %1761 = vmatprep.mubr.f32.mxu0 %v12941_v44  ;;  %1832 = vmatprep.mubr.f32.mxu1 %v12941_v44  ;;  %13071 = vst [vmem:[#allocation139_spill] sm:$0xff] %v11056_v49  ;;  %13072 = vst [vmem:[#allocation140_spill] sm:$0xff] %v11058_v60  ;;  %v212_v56 = vld [vmem:[#allocation8 + $0x120] sm:$0xff]  ;;  %v210_v36 = vld [vmem:[#allocation8 + $0x110] sm:$0xff] }
 0x2c7   :  { %13069 = vst [vmem:[#allocation137_spill] sm:$0xff] %v11050_v39  ;;  %13070 = vst [vmem:[#allocation138_spill] sm:$0xff] %v11052_v35  ;;  %v214_v25 = vld [vmem:[#allocation8 + $0x130] sm:$0xff]  ;;  %v11068_v13 = vpack.c.bf16 %v212_v56, %v208_v47  ;;  %v216_v21 = vld [vmem:[#allocation8 + $0x140] sm:$0xff] }
 0x2c8   :  { %7553 = vmatpush1.bf16.msra.mxu0 %v11030_v62  ;;  %7585 = vmatpush1.bf16.msra.mxu1 %v11032_v14  ;;  %v213_v62 = vld [vmem:[#allocation8 + $0x128] sm:$0xff]  ;;  %v215_v14 = vld [vmem:[#allocation8 + $0x138] sm:$0xff]  ;;  %v11070_v61 = vpack.c.bf16 %v214_v25, %v210_v36  ;;  %v220_v27 = vld [vmem:[#allocation8 + $0x160] sm:$0xff] }
 0x2c9   :  { %7555 = vmatprep.subr.bf16.mxu0 %v11036_v7  ;;  %7587 = vmatprep.subr.bf16.mxu1 %v11038_v34  ;;  %v11062_v57 = vpack.c.bf16 %v213_v62, %v209_v5  ;;  %v11064_v8 = vpack.c.bf16 %v215_v14, %v211_v58  ;;  %v217_v34 = vld [vmem:[#allocation8 + $0x148] sm:$0xff]  ;;  %v219_v7 = vld [vmem:[#allocation8 + $0x158] sm:$0xff]  ;;  %13075 = vst [vmem:[#allocation143_spill] sm:$0xff] %v11068_v13  ;;  %v218_v62 = vld [vmem:[#allocation8 + $0x150] sm:$0xff] }
 0x2ca   :  { %13076 = vst [vmem:[#allocation144_spill] sm:$0xff] %v11070_v61  ;;  %v222_v14 = vld [vmem:[#allocation8 + $0x170] sm:$0xff]  ;;  %v11080_v47 = vpack.c.bf16 %v220_v27, %v216_v21  ;;  %v224_v36 = vld [vmem:[#allocation8 + $0x180] sm:$0xff] }
 0x2cb   :  { %13073 = vst [vmem:[#allocation141_spill] sm:$0xff] %v11062_v57  ;;  %13074 = vst [vmem:[#allocation142_spill] sm:$0xff] %v11064_v8  ;;  %v11082_v56 = vpack.c.bf16 %v222_v14, %v218_v62  ;;  %v228_v25 = vld [vmem:[#allocation8 + $0x1a0] sm:$0xff] }
 0x2cc   :  { %7557 = vmatpush1.bf16.msra.mxu0 %v11044_v0  ;;  %7589 = vmatpush1.bf16.msra.mxu1 %v11046_v12  ;;  %v221_v0 = vld [vmem:[#allocation8 + $0x168] sm:$0xff]  ;;  %v223_v12 = vld [vmem:[#allocation8 + $0x178] sm:$0xff]  ;;  %13079 = vst [vmem:[#allocation147_spill] sm:$0xff] %v11080_v47  ;;  %v11092_v21 = vpack.c.bf16 %v228_v25, %v224_v36  ;;  %v232_v62 = vld [vmem:[#allocation8 + $0x1c0] sm:$0xff] }
 0x2cd   :  { %7559 = vmatprep.subr.bf16.mxu0 %v11050_v39  ;;  %7591 = vmatprep.subr.bf16.mxu1 %v11052_v35  ;;  %v11074_v5 = vpack.c.bf16 %v221_v0, %v217_v34  ;;  %v11076_v58 = vpack.c.bf16 %v223_v12, %v219_v7  ;;  %v225_v35 = vld [vmem:[#allocation8 + $0x188] sm:$0xff]  ;;  %v227_v39 = vld [vmem:[#allocation8 + $0x198] sm:$0xff]  ;;  %13080 = vst [vmem:[#allocation148_spill] sm:$0xff] %v11082_v56  ;;  %v226_v0 = vld [vmem:[#allocation8 + $0x190] sm:$0xff] }
 0x2ce   :  { %v230_v12 = vld [vmem:[#allocation8 + $0x1b0] sm:$0xff]  ;;  %13083 = vst [vmem:[#allocation151_spill] sm:$0xff] %v11092_v21  ;;  %v236_v14 = vld [vmem:[#allocation8 + $0x1e0] sm:$0xff] }
 0x2cf   :  { %13077 = vst [vmem:[#allocation145_spill] sm:$0xff] %v11074_v5  ;;  %13078 = vst [vmem:[#allocation146_spill] sm:$0xff] %v11076_v58  ;;  %v11094_v27 = vpack.c.bf16 %v230_v12, %v226_v0  ;;  %v11104_v36 = vpack.c.bf16 %v236_v14, %v232_v62  ;;  %v368_v0 = vld [vmem:[#allocation10] sm:$0xff] }
 0x2d0   :  { %7561 = vmatpush1.bf16.msra.mxu0 %v11056_v49  ;;  %7593 = vmatpush1.bf16.msra.mxu1 %v11058_v60  ;;  %v229_v49 = vld [vmem:[#allocation8 + $0x1a8] sm:$0xff]  ;;  %v231_v60 = vld [vmem:[#allocation8 + $0x1b8] sm:$0xff]  ;;  %v372_v12 = vld [vmem:[#allocation10 + $0x20] sm:$0xff] }
 0x2d1   :  { %7563 = vmatprep.subr.bf16.mxu0 %v11062_v57  ;;  %7595 = vmatprep.subr.bf16.mxu1 %v11064_v8  ;;  %v11086_v7 = vpack.c.bf16 %v229_v49, %v225_v35  ;;  %v11088_v34 = vpack.c.bf16 %v231_v60, %v227_v39  ;;  %v233_v8 = vld [vmem:[#allocation8 + $0x1c8] sm:$0xff]  ;;  %v235_v57 = vld [vmem:[#allocation8 + $0x1d8] sm:$0xff]  ;;  %13084 = vst [vmem:[#allocation152_spill] sm:$0xff] %v11094_v27  ;;  %v234_v49 = vld [vmem:[#allocation8 + $0x1d0] sm:$0xff] }
 0x2d2   :  { %v238_v60 = vld [vmem:[#allocation8 + $0x1f0] sm:$0xff]  ;;  %13087 = vst [vmem:[#allocation155_spill] sm:$0xff] %v11104_v36  ;;  %v11116_v62 = vpack.c.bf16 %v372_v12, %v368_v0 }
 0x2d3   :  { %13081 = vst [vmem:[#allocation149_spill] sm:$0xff] %v11086_v7  ;;  %13082 = vst [vmem:[#allocation150_spill] sm:$0xff] %v11088_v34  ;;  %v11106_v25 = vpack.c.bf16 %v238_v60, %v234_v49  ;;  %v376_v49 = vld [vmem:[#allocation10 + $0x40] sm:$0xff] }
 0x2d4   :  { %7565 = vmatpush1.bf16.msra.mxu0 %v11068_v13  ;;  %7597 = vmatpush1.bf16.msra.mxu1 %v11070_v61  ;;  %v237_v13 = vld [vmem:[#allocation8 + $0x1e8] sm:$0xff]  ;;  %v239_v61 = vld [vmem:[#allocation8 + $0x1f8] sm:$0xff]  ;;  %13091 = vst [vmem:[#allocation159_spill] sm:$0xff] %v11116_v62  ;;  %v380_v60 = vld [vmem:[#allocation10 + $0x60] sm:$0xff] }
 0x2d5   :  { %7567 = vmatprep.subr.bf16.mxu0 %v11074_v5  ;;  %7599 = vmatprep.subr.bf16.mxu1 %v11076_v58  ;;  %v11098_v39 = vpack.c.bf16 %v237_v13, %v233_v8  ;;  %v11100_v35 = vpack.c.bf16 %v239_v61, %v235_v57  ;;  %v369_v58 = vld [vmem:[#allocation10 + $0x8] sm:$0xff]  ;;  %v371_v5 = vld [vmem:[#allocation10 + $0x18] sm:$0xff]  ;;  %13088 = vst [vmem:[#allocation156_spill] sm:$0xff] %v11106_v25  ;;  %v370_v13 = vld [vmem:[#allocation10 + $0x10] sm:$0xff] }
 0x2d6   :  { %v374_v61 = vld [vmem:[#allocation10 + $0x30] sm:$0xff]  ;;  %v11130_v0 = vpack.c.bf16 %v380_v60, %v376_v49 }
 0x2d7   :  { %13085 = vst [vmem:[#allocation153_spill] sm:$0xff] %v11098_v39  ;;  %13086 = vst [vmem:[#allocation154_spill] sm:$0xff] %v11100_v35  ;;  %v11118_v14 = vpack.c.bf16 %v374_v61, %v370_v13  ;;  %v386_v13 = vld [vmem:[#allocation10 + $0x90] sm:$0xff]  ;;  %v393_v61 = vld [vmem:[#allocation10 + $0xc8] sm:$0xff] }
 0x2d8   :  { %7569 = vmatpush1.bf16.msra.mxu0 %v11080_v47  ;;  %7601 = vmatpush1.bf16.msra.mxu1 %v11082_v56  ;;  %v373_v47 = vld [vmem:[#allocation10 + $0x28] sm:$0xff]  ;;  %v375_v56 = vld [vmem:[#allocation10 + $0x38] sm:$0xff]  ;;  %13095 = vst [vmem:[#allocation163_spill] sm:$0xff] %v11130_v0 }
 0x2d9   :  { %7571 = vmatprep.subr.bf16.mxu0 %v11086_v7  ;;  %7603 = vmatprep.subr.bf16.mxu1 %v11088_v34  ;;  %v11110_v57 = vpack.c.bf16 %v373_v47, %v369_v58  ;;  %v11112_v8 = vpack.c.bf16 %v375_v56, %v371_v5  ;;  %v377_v34 = vld [vmem:[#allocation10 + $0x48] sm:$0xff]  ;;  %v379_v7 = vld [vmem:[#allocation10 + $0x58] sm:$0xff]  ;;  %13092 = vst [vmem:[#allocation160_spill] sm:$0xff] %v11118_v14  ;;  %v378_v47 = vld [vmem:[#allocation10 + $0x50] sm:$0xff] }
 0x2da   :  { %v382_v56 = vld [vmem:[#allocation10 + $0x70] sm:$0xff] }
 0x2db   :  { %13089 = vst [vmem:[#allocation157_spill] sm:$0xff] %v11110_v57  ;;  %13090 = vst [vmem:[#allocation158_spill] sm:$0xff] %v11112_v8 }
 0x2dc   :  { %7573 = vmatpush1.bf16.msra.mxu0 %v11092_v21  ;;  %7605 = vmatpush1.bf16.msra.mxu1 %v11094_v27  ;;  %v381_v21 = vld [vmem:[#allocation10 + $0x68] sm:$0xff]  ;;  %v383_v27 = vld [vmem:[#allocation10 + $0x78] sm:$0xff] }
 0x2dd   :  { %7575 = vmatprep.subr.bf16.mxu0 %v11098_v39  ;;  %7607 = vmatprep.subr.bf16.mxu1 %v11100_v35  ;;  %v11122_v5 = vpack.c.bf16 %v381_v21, %v377_v34  ;;  %v11124_v58 = vpack.c.bf16 %v383_v27, %v379_v7  ;;  %v385_v35 = vld [vmem:[#allocation10 + $0x88] sm:$0xff]  ;;  %v387_v39 = vld [vmem:[#allocation10 + $0x98] sm:$0xff]  ;;  %v11132_v34 = vpack.c.bf16 %v382_v56, %v378_v47  ;;  %v384_v7 = vld [vmem:[#allocation10 + $0x80] sm:$0xff] }
 0x2de   :  { %v388_v21 = vld [vmem:[#allocation10 + $0xa0] sm:$0xff]  ;;  %v394_v47 = vld [vmem:[#allocation10 + $0xd0] sm:$0xff] }
 0x2df   :  { %13093 = vst [vmem:[#allocation161_spill] sm:$0xff] %v11122_v5  ;;  %13094 = vst [vmem:[#allocation162_spill] sm:$0xff] %v11124_v58  ;;  %v11144_v49 = vpack.c.bf16 %v388_v21, %v384_v7  ;;  %v398_v56 = vld [vmem:[#allocation10 + $0xf0] sm:$0xff] }
 0x2e0   :  { %7577 = vmatpush1.bf16.msra.mxu0 %v11104_v36  ;;  %7609 = vmatpush1.bf16.msra.mxu1 %v11106_v25  ;;  %v389_v36 = vld [vmem:[#allocation10 + $0xa8] sm:$0xff]  ;;  %v391_v25 = vld [vmem:[#allocation10 + $0xb8] sm:$0xff]  ;;  %13096 = vst [vmem:[#allocation164_spill] sm:$0xff] %v11132_v34  ;;  %v11158_v21 = vpack.c.bf16 %v398_v56, %v394_v47  ;;  %v408_v47 = vld [vmem:[#allocation10 + $0x140] sm:$0xff] }
 0x2e1   :  { %7611 = vmatprep.subr.bf16.mxu0 %v11110_v57  ;;  %7643 = vmatprep.subr.bf16.mxu1 %v11112_v8  ;;  %v11136_v27 = vpack.c.bf16 %v389_v36, %v385_v35  ;;  %v11138_v12 = vpack.c.bf16 %v391_v25, %v387_v39  ;;  %v395_v8 = vld [vmem:[#allocation10 + $0xd8] sm:$0xff]  ;;  %13099 = vst [vmem:[#allocation167_spill] sm:$0xff] %v11144_v49  ;;  %v392_v39 = vld [vmem:[#allocation10 + $0xc0] sm:$0xff] }
 0x2e2   :  { %v396_v36 = vld [vmem:[#allocation10 + $0xe0] sm:$0xff]  ;;  %13104 = vst [vmem:[#allocation172_spill] sm:$0xff] %v11158_v21 }
 0x2e3   :  { %1762 = vmatmul.mubr.f32.vlgmr.msra.gmra.mrb[10].mxu0 %v11018_v52  ;;  %1833 = vmatmul.mubr.f32.vlgmr.msra.gmra.mrb[10].mxu1 %v11018_v52  ;;  %13097 = vst [vmem:[#allocation165_spill] sm:$0xff] %v11136_v27  ;;  %13098 = vst [vmem:[#allocation166_spill] sm:$0xff] %v11138_v12  ;;  %v390_v52 = vld [vmem:[#allocation10 + $0xb0] sm:$0xff]  ;;  %v11156_v7 = vpack.c.bf16 %v396_v36, %v392_v39  ;;  %v412_v56 = vld [vmem:[#allocation10 + $0x160] sm:$0xff] }
 0x2e4   :  { %7613 = vmatpush1.bf16.msra.mxu0 %v11116_v62  ;;  %7645 = vmatpush1.bf16.msra.mxu1 %v11118_v14  ;;  %v397_v62 = vld [vmem:[#allocation10 + $0xe8] sm:$0xff]  ;;  %v399_v14 = vld [vmem:[#allocation10 + $0xf8] sm:$0xff]  ;;  %v11146_v35 = vpack.c.bf16 %v390_v52, %v386_v13  ;;  %v400_v13 = vld [vmem:[#allocation10 + $0x100] sm:$0xff] }
 0x2e5   :  { %7615 = vmatprep.subr.bf16.mxu0 %v11122_v5  ;;  %7647 = vmatprep.subr.bf16.mxu1 %v11124_v58  ;;  %v11150_v25 = vpack.c.bf16 %v397_v62, %v393_v61  ;;  %v11152_v60 = vpack.c.bf16 %v399_v14, %v395_v8  ;;  %v401_v58 = vld [vmem:[#allocation10 + $0x108] sm:$0xff]  ;;  %v403_v5 = vld [vmem:[#allocation10 + $0x118] sm:$0xff]  ;;  %13103 = vst [vmem:[#allocation171_spill] sm:$0xff] %v11156_v7  ;;  %v404_v52 = vld [vmem:[#allocation10 + $0x120] sm:$0xff] }
 0x2e6   :  { %1903 = vmatprep.mubr.f32.mxu0 %v12941_v44  ;;  %1974 = vmatprep.mubr.f32.mxu1 %v12941_v44  ;;  %13100 = vst [vmem:[#allocation168_spill] sm:$0xff] %v11146_v35  ;;  %v402_v14 = vld [vmem:[#allocation10 + $0x110] sm:$0xff]  ;;  %v11168_v39 = vpack.c.bf16 %v404_v52, %v400_v13  ;;  %v11180_v13 = vpack.c.bf16 %v412_v56, %v408_v47 }
 0x2e7   :  { %13101 = vst [vmem:[#allocation169_spill] sm:$0xff] %v11150_v25  ;;  %13102 = vst [vmem:[#allocation170_spill] sm:$0xff] %v11152_v60  ;;  %v406_v61 = vld [vmem:[#allocation10 + $0x130] sm:$0xff] }
 0x2e8   :  { %7617 = vmatpush1.bf16.msra.mxu0 %v11130_v0  ;;  %7649 = vmatpush1.bf16.msra.mxu1 %v11132_v34  ;;  %v405_v0 = vld [vmem:[#allocation10 + $0x128] sm:$0xff]  ;;  %v407_v34 = vld [vmem:[#allocation10 + $0x138] sm:$0xff]  ;;  %13107 = vst [vmem:[#allocation175_spill] sm:$0xff] %v11168_v39  ;;  %v11170_v36 = vpack.c.bf16 %v406_v61, %v402_v14  ;;  %13111 = vst [vmem:[#allocation179_spill] sm:$0xff] %v11180_v13 }
 0x2e9   :  { %7619 = vmatprep.subr.bf16.mxu0 %v11136_v27  ;;  %7651 = vmatprep.subr.bf16.mxu1 %v11138_v12  ;;  %v11162_v8 = vpack.c.bf16 %v405_v0, %v401_v58  ;;  %v11164_v62 = vpack.c.bf16 %v407_v34, %v403_v5  ;;  %v409_v12 = vld [vmem:[#allocation10 + $0x148] sm:$0xff]  ;;  %v411_v27 = vld [vmem:[#allocation10 + $0x158] sm:$0xff]  ;;  %v410_v0 = vld [vmem:[#allocation10 + $0x150] sm:$0xff] }
 0x2ea   :  { %13108 = vst [vmem:[#allocation176_spill] sm:$0xff] %v11170_v36  ;;  %v414_v34 = vld [vmem:[#allocation10 + $0x170] sm:$0xff]  ;;  %v416_v14 = vld [vmem:[#allocation10 + $0x180] sm:$0xff] }
 0x2eb   :  { %13105 = vst [vmem:[#allocation173_spill] sm:$0xff] %v11162_v8  ;;  %13106 = vst [vmem:[#allocation174_spill] sm:$0xff] %v11164_v62  ;;  %v11182_v52 = vpack.c.bf16 %v414_v34, %v410_v0  ;;  %v420_v61 = vld [vmem:[#allocation10 + $0x1a0] sm:$0xff]  ;;  %v430_v34 = vld [vmem:[#allocation10 + $0x1f0] sm:$0xff] }
 0x2ec   :  { %7621 = vmatpush1.bf16.msra.mxu0 %v11144_v49  ;;  %7653 = vmatpush1.bf16.msra.mxu1 %v11146_v35  ;;  %v413_v49 = vld [vmem:[#allocation10 + $0x168] sm:$0xff]  ;;  %v415_v35 = vld [vmem:[#allocation10 + $0x178] sm:$0xff]  ;;  %v11192_v47 = vpack.c.bf16 %v420_v61, %v416_v14  ;;  %v424_v0 = vld [vmem:[#allocation10 + $0x1c0] sm:$0xff] }
 0x2ed   :  { %7623 = vmatprep.subr.bf16.mxu0 %v11150_v25  ;;  %7655 = vmatprep.subr.bf16.mxu1 %v11152_v60  ;;  %v11174_v5 = vpack.c.bf16 %v413_v49, %v409_v12  ;;  %v11176_v58 = vpack.c.bf16 %v415_v35, %v411_v27  ;;  %v417_v60 = vld [vmem:[#allocation10 + $0x188] sm:$0xff]  ;;  %v419_v25 = vld [vmem:[#allocation10 + $0x198] sm:$0xff]  ;;  %13112 = vst [vmem:[#allocation180_spill] sm:$0xff] %v11182_v52  ;;  %v418_v49 = vld [vmem:[#allocation10 + $0x190] sm:$0xff] }
 0x2ee   :  { %v422_v35 = vld [vmem:[#allocation10 + $0x1b0] sm:$0xff]  ;;  %13115 = vst [vmem:[#allocation183_spill] sm:$0xff] %v11192_v47 }
 0x2ef   :  { %13109 = vst [vmem:[#allocation177_spill] sm:$0xff] %v11174_v5  ;;  %13110 = vst [vmem:[#allocation178_spill] sm:$0xff] %v11176_v58  ;;  %v11194_v56 = vpack.c.bf16 %v422_v35, %v418_v49  ;;  %v13125_v49 = vld [vmem:[#allocation44_spill] sm:$0xff]  ;;  %v13126_v35 = vld [vmem:[#allocation45_spill] sm:$0xff] }
 0x2f0   :  { %7625 = vmatpush1.bf16.msra.mxu0 %v11156_v7  ;;  %7657 = vmatpush1.bf16.msra.mxu1 %v11158_v21  ;;  %v421_v7 = vld [vmem:[#allocation10 + $0x1a8] sm:$0xff]  ;;  %v423_v21 = vld [vmem:[#allocation10 + $0x1b8] sm:$0xff] }
 0x2f1   :  { %7627 = vmatprep.subr.bf16.mxu0 %v11162_v8  ;;  %7659 = vmatprep.subr.bf16.mxu1 %v11164_v62  ;;  %v11186_v27 = vpack.c.bf16 %v421_v7, %v417_v60  ;;  %v11188_v12 = vpack.c.bf16 %v423_v21, %v419_v25  ;;  %v425_v62 = vld [vmem:[#allocation10 + $0x1c8] sm:$0xff]  ;;  %v427_v8 = vld [vmem:[#allocation10 + $0x1d8] sm:$0xff]  ;;  %13116 = vst [vmem:[#allocation184_spill] sm:$0xff] %v11194_v56  ;;  %v428_v7 = vld [vmem:[#allocation10 + $0x1e0] sm:$0xff] }
 0x2f2   :  { %v426_v21 = vld [vmem:[#allocation10 + $0x1d0] sm:$0xff]  ;;  %v11204_v14 = vpack.c.bf16 %v428_v7, %v424_v0  ;;  %v13127_v0 = vld [vmem:[#allocation46_spill] sm:$0xff]  ;;  %v13128_v7 = vld [vmem:[#allocation47_spill] sm:$0xff] }
 0x2f3   :  { %13113 = vst [vmem:[#allocation181_spill] sm:$0xff] %v11186_v27  ;;  %13114 = vst [vmem:[#allocation182_spill] sm:$0xff] %v11188_v12  ;;  %v11206_v61 = vpack.c.bf16 %v430_v34, %v426_v21  ;;  %v1184_v21 = vpop.permute.xlu1 %1183  ;;  %v13129_v34 = vld [vmem:[#allocation50_spill] sm:$0xff] }
 0x2f4   :  { %7629 = vmatpush1.bf16.msra.mxu0 %v11168_v39  ;;  %7661 = vmatpush1.bf16.msra.mxu1 %v11170_v36  ;;  %v429_v39 = vld [vmem:[#allocation10 + $0x1e8] sm:$0xff]  ;;  %v431_v36 = vld [vmem:[#allocation10 + $0x1f8] sm:$0xff]  ;;  %13119 = vst [vmem:[#allocation187_spill] sm:$0xff] %v11204_v14 }
 0x2f5   :  { %7631 = vmatprep.subr.bf16.mxu0 %v11174_v5  ;;  %7663 = vmatprep.subr.bf16.mxu1 %v11176_v58  ;;  %v11198_v25 = vpack.c.bf16 %v429_v39, %v425_v62  ;;  %v11200_v60 = vpack.c.bf16 %v431_v36, %v427_v8  ;;  %13120 = vst [vmem:[#allocation188_spill] sm:$0xff] %v11206_v61  ;;  %v13121_v8 = vld [vmem:[#allocation40_spill] sm:$0xff]  ;;  %v13122_v62 = vld [vmem:[#allocation41_spill] sm:$0xff]  ;;  %v13123_v39 = vld [vmem:[#allocation42_spill] sm:$0xff] }
 0x2f6   :  { %v13124_v36 = vld [vmem:[#allocation43_spill] sm:$0xff] }
 0x2f7   :  { %13117 = vst [vmem:[#allocation185_spill] sm:$0xff] %v11198_v25  ;;  %13118 = vst [vmem:[#allocation186_spill] sm:$0xff] %v11200_v60 }
 0x2f8   :  { %7633 = vmatpush1.bf16.msra.mxu0 %v11180_v13  ;;  %7665 = vmatpush1.bf16.msra.mxu1 %v11182_v52 }
 0x2f9   :  { %7635 = vmatprep.subr.bf16.mxu0 %v11186_v27  ;;  %7667 = vmatprep.subr.bf16.mxu1 %v11188_v12 }
 0x2fc   :  { %7637 = vmatpush1.bf16.msra.mxu0 %v11192_v47  ;;  %7669 = vmatpush1.bf16.msra.mxu1 %v11194_v56 }
 0x2fd   :  { %7639 = vmatprep.subr.bf16.mxu0 %v11198_v25  ;;  %7671 = vmatprep.subr.bf16.mxu1 %v11200_v60 }
 0x300   :  { %7641 = vmatpush1.bf16.msra.mxu0 %v11204_v14  ;;  %7673 = vmatpush1.bf16.msra.mxu1 %v11206_v61 }
 0x301   :  { %7675 = vmatprep.subr.bf16.mxu0 %v10465_v6  ;;  %7707 = vmatprep.subr.bf16.mxu1 %v10467_v10 }
 0x303   :  { %1904 = vmatmul.mubr.f32.vlgmr.msra.gmra.mrb[10].mxu0 %v12941_v44  ;;  %1975 = vmatmul.mubr.f32.vlgmr.msra.gmra.mrb[10].mxu1 %v12941_v44 }
 0x304   :  { %7677 = vmatpush1.bf16.msra.mxu0 %v10469_v11  ;;  %7709 = vmatpush1.bf16.msra.mxu1 %v10472_v15 }
 0x305   :  { %7679 = vmatprep.subr.bf16.mxu0 %v10476_v19  ;;  %7711 = vmatprep.subr.bf16.mxu1 %v10478_v20 }
 0x306   :  { %2088 = vmatprep.mubr.f32.mxu0 %v12941_v44  ;;  %2159 = vmatprep.mubr.f32.mxu1 %v12941_v44 }
 0x308   :  { %7681 = vmatpush1.bf16.msra.mxu0 %v10481_v24  ;;  %7713 = vmatpush1.bf16.msra.mxu1 %v10485_v28 }
 0x309   :  { %7683 = vmatprep.subr.bf16.mxu0 %v10487_v29  ;;  %7715 = vmatprep.subr.bf16.mxu1 %v10489_v33 }
 0x30c   :  { %7685 = vmatpush1.bf16.msra.mxu0 %v10492_v37  ;;  %7717 = vmatpush1.bf16.msra.mxu1 %v10496_v41 }
 0x30d   :  { %7687 = vmatprep.subr.bf16.mxu0 %v10498_v42  ;;  %7719 = vmatprep.subr.bf16.mxu1 %v10501_v46 }
 0x310   :  { %7689 = vmatpush1.bf16.msra.mxu0 %v10504_v53  ;;  %7721 = vmatpush1.bf16.msra.mxu1 %v10508_v54 }
 0x311   :  { %7691 = vmatprep.subr.bf16.mxu0 %v10510_v55  ;;  %7723 = vmatprep.subr.bf16.mxu1 %v10513_v59 }
 0x314   :  { %7693 = vmatpush1.bf16.msra.mxu0 %v10516_v2  ;;  %7725 = vmatpush1.bf16.msra.mxu1 %v10520_v3 }
 0x315   :  { %7695 = vmatprep.subr.bf16.mxu0 %v10522_v4  ;;  %7727 = vmatprep.subr.bf16.mxu1 %v10525_v9 }
 0x318   :  { %7697 = vmatpush1.bf16.msra.mxu0 %v10528_v18  ;;  %7729 = vmatpush1.bf16.msra.mxu1 %v10532_v22 }
 0x319   :  { %7699 = vmatprep.subr.bf16.mxu0 %v10534_v23  ;;  %7731 = vmatprep.subr.bf16.mxu1 %v10540_v30  ;;  %v1186_v23 = vmul.f32 %v1184_v21, %v13129_v34  ;;  %v13130_v30 = vld [vmem:[#allocation51_spill] sm:$0xff]  ;;  %v1188_v34 = vmul.f32 %v1184_v21, %v12996_v17 }
 0x31a   :  { %v1187_v22 = vmul.f32 %v1184_v21, %v13130_v30 }
 0x31c   :  { %7701 = vmatpush1.bf16.msra.mxu0 %v13121_v8  ;;  %7733 = vmatpush1.bf16.msra.mxu1 %v13122_v62  ;;  %v13131_v8 = vld [vmem:[#allocation53_spill] sm:$0xff]  ;;  %v13132_v62 = vld [vmem:[#allocation54_spill] sm:$0xff] }
 0x31d   :  { %7703 = vmatprep.subr.bf16.mxu0 %v13123_v39  ;;  %7735 = vmatprep.subr.bf16.mxu1 %v13124_v36  ;;  %v1190_v18 = vadd.f32 %v1186_v23, %v13131_v8  ;;  %v1191_v9 = vadd.f32 %v1187_v22, %v13132_v62  ;;  %v1189_v36 = vmul.f32 %v1184_v21, %v10642_v32  ;;  %v13139_v21 = vld [vmem:[#allocation66_spill] sm:$0xff] }
 0x31e   :  { %v1192_v23 = vadd.f32 %v1188_v34, %v12997_v31  ;;  %v13140_v34 = vld [vmem:[#allocation67_spill] sm:$0xff] }
 0x320   :  { %7705 = vmatpush1.bf16.msra.mxu0 %v13125_v49  ;;  %7737 = vmatpush1.bf16.msra.mxu1 %v13126_v35 }
 0x321   :  { %7739 = vmatprep.subr.bf16.mxu0 %v13127_v0  ;;  %7771 = vmatprep.subr.bf16.mxu1 %v13128_v7  ;;  %v1193_v7 = vadd.f32 %v1189_v36, %v10650_v45 }
 0x356   :  { %v1260_v39 = vpop.f32.mrb[6].mxu0  ;;  %v1331_v4 = vpop.f32.mrb[6].mxu1 }
 0x357   :  { %v1336_v49 = vadd.f32 %v1260_v39, %v1190_v18  ;;  %v1262_v3 = vpop.f32.mrb[7].mxu0  ;;  %v1333_v35 = vpop.f32.mrb[7].mxu1  ;;  %v1338_v62 = vadd.f32 %v1331_v4, %v1192_v23  ;;  %v13141_v23 = vld [vmem:[#allocation68_spill] sm:$0xff] }
 0x358   :  { %v1337_v2 = vadd.f32 %v1262_v3, %v1191_v9  ;;  %v1339_v30 = vadd.f32 %v1333_v35, %v1193_v7  ;;  %v13138_v7 = vld [vmem:[#allocation65_spill] sm:$0xff] }
 0x359   :  { %v7028_v0 = vmul.f32 -1.442695, %v1336_v49 }
 0x35a   :  { %v7029_v59 = vmul.f32 -1.442695, %v1337_v2  ;;  %v7030_v22 = vmul.f32 -1.442695, %v1339_v30 }
 0x35b   :  { %9845 = vpow2.f32 %v7028_v0  ;;  %v13136_v0 = vld [vmem:[#allocation63_spill] sm:$0xff] }
 0x35c   :  { %9847 = vpow2.f32 %v7029_v59 }
 0x35d   :  { %9849 = vpow2.f32 %v7030_v22  ;;  %v13142_v22 = vld [vmem:[#allocation69_spill] sm:$0xff] }
 0x35e   :  { %9851 = vtanh.f32 %v1338_v62  ;;  %v13135_v62 = vld [vmem:[#allocation62_spill] sm:$0xff] }
 0x365   :  { %v9846_v8 = vpop.eup %9845 }
 0x366   :  { %v9848_v55 = vpop.eup %9847  ;;  %v1343_v32 = vadd.f32 1.0, %v9846_v8 }
 0x367   :  { %v1349_v18 = vadd.f32 1.0, %v9848_v55  ;;  %v9850_v2 = vpop.eup %9849  ;;  %v13133_v55 = vld [vmem:[#allocation60_spill] sm:$0xff] }
 0x368   :  { %9853 = vrcp.f32 %v1343_v32  ;;  %v9852_v3 = vpop.eup %9851  ;;  %v1356_v49 = vadd.f32 1.0, %v9850_v2  ;;  %v13134_v32 = vld [vmem:[#allocation61_spill] sm:$0xff]  ;;  %v13144_v2 = vld [vmem:[#allocation71_spill] sm:$0xff] }
 0x369   :  { %9855 = vrcp.f32 %v1349_v18  ;;  %v13143_v18 = vld [vmem:[#allocation70_spill] sm:$0xff] }
 0x36a   :  { %9857 = vrcp.f32 %v1356_v49 }
 0x372   :  { %v9854_v9 = vpop.eup %9853 }
 0x373   :  { %v9856_v39 = vpop.eup %9855  ;;  %v1360_v36 = vmul.f32 %v9854_v9, %v9852_v3  ;;  %v13145_v3 = vld [vmem:[#allocation72_spill] sm:$0xff]  ;;  %v13146_v9 = vld [vmem:[#allocation73_spill] sm:$0xff] }
 0x374   :  { %v1359_v59 = vmul.f32 %v9856_v39, %v10919_v50  ;;  %v9858_v4 = vpop.eup %9857  ;;  %v13137_v50 = vld [vmem:[#allocation64_spill] sm:$0xff]  ;;  %v13147_v39 = vld [vmem:[#allocation74_spill] sm:$0xff] }
 0x376   :  { %v11259_v35 = vadd.f32 %v1360_v36, %v1359_v59  ;;  %v13148_v36 = vld [vmem:[#allocation75_spill] sm:$0xff] }
 0x378   :  { %9859 = vtanh.f32 %v11259_v35 }
 0x382   :  { %v9860_v30 = vpop.eup %9859 }
 0x383   :  { %v1363_v8 = vmul.f32 %v9860_v30, %v9858_v4  ;;  %v13149_v4 = vld [vmem:[#allocation76_spill] sm:$0xff]  ;;  %v13150_v30 = vld [vmem:[#allocation77_spill] sm:$0xff] }
 0x385   :  { %2089 = vmatmul.mubr.f32.vlgmr.msra.gmra.mrb[12].mxu0 %v1363_v8  ;;  %2160 = vmatmul.mubr.f32.vlgmr.msra.gmra.mrb[12].mxu1 %v1363_v8 }
 0x386   :  { %7741 = vmatpush1.bf16.msra.mxu0 %v13133_v55  ;;  %7773 = vmatpush1.bf16.msra.mxu1 %v13134_v32 }
 0x387   :  { %7743 = vmatprep.subr.bf16.mxu0 %v13135_v62  ;;  %7775 = vmatprep.subr.bf16.mxu1 %v13136_v0 }
 0x388   :  { %2258 = vmatprep.mubr.f32.mxu0 %v12941_v44  ;;  %2329 = vmatprep.mubr.f32.mxu1 %v12941_v44 }
 0x38a   :  { %7745 = vmatpush1.bf16.msra.mxu0 %v13137_v50  ;;  %7777 = vmatpush1.bf16.msra.mxu1 %v13138_v7 }
 0x38b   :  { %7747 = vmatprep.subr.bf16.mxu0 %v13139_v21  ;;  %7779 = vmatprep.subr.bf16.mxu1 %v13140_v34  ;;  %v13151_v34 = vld [vmem:[#allocation78_spill] sm:$0xff]  ;;  %v13153_v21 = vld [vmem:[#allocation80_spill] sm:$0xff] }
 0x38e   :  { %7749 = vmatpush1.bf16.msra.mxu0 %v13141_v23  ;;  %7781 = vmatpush1.bf16.msra.mxu1 %v13142_v22 }
 0x38f   :  { %7751 = vmatprep.subr.bf16.mxu0 %v13143_v18  ;;  %7783 = vmatprep.subr.bf16.mxu1 %v13144_v2  ;;  %v13152_v2 = vld [vmem:[#allocation79_spill] sm:$0xff] }
 0x392   :  { %7753 = vmatpush1.bf16.msra.mxu0 %v13145_v3  ;;  %7785 = vmatpush1.bf16.msra.mxu1 %v13146_v9 }
 0x393   :  { %7755 = vmatprep.subr.bf16.mxu0 %v13147_v39  ;;  %7787 = vmatprep.subr.bf16.mxu1 %v13148_v36  ;;  %v13154_v36 = vld [vmem:[#allocation81_spill] sm:$0xff] }
 0x396   :  { %v1572_v49 = vpop.f32.mrb[8].mxu0  ;;  %v1643_v59 = vpop.f32.mrb[8].mxu1  ;;  %7757 = vmatpush1.bf16.msra.mxu0 %v13149_v4  ;;  %7789 = vmatpush1.bf16.msra.mxu1 %v13150_v30  ;;  %v13155_v4 = vld [vmem:[#allocation82_spill] sm:$0xff] }
 0x397   :  { %v9662_v22 = vadd.f32 %v1572_v49, %v10944_v16  ;;  %v1574_v23 = vpop.f32.mrb[9].mxu0  ;;  %v1645_v18 = vpop.f32.mrb[9].mxu1  ;;  %7759 = vmatprep.subr.bf16.mxu0 %v13151_v34  ;;  %7791 = vmatprep.subr.bf16.mxu1 %v13152_v2  ;;  %v13156_v16 = vld [vmem:[#allocation84_spill] sm:$0xff]  ;;  %v13157_v2 = vld [vmem:[#allocation86_spill] sm:$0xff] }
 0x398   :  { %v9663_v9 = vadd.f32 %v1574_v23, %v10947_v63  ;;  %v9665_v49 = vadd.f32 %v1645_v18, %v10956_v40  ;;  %v13158_v23 = vld [vmem:[#allocation87_spill] sm:$0xff] }
 0x399   :  { %v7031_v3 = vmul.f32 -1.442695, %v9662_v22  ;;  %v13220_v40 = vld [vmem:[#allocation147_spill] sm:$0xff] }
 0x39a   :  { %v7032_v39 = vmul.f32 -1.442695, %v9663_v9  ;;  %7761 = vmatpush1.bf16.msra.mxu0 %v13153_v21  ;;  %7793 = vmatpush1.bf16.msra.mxu1 %v13154_v36  ;;  %v7033_v22 = vmul.f32 -1.442695, %v9665_v49  ;;  %v13159_v9 = vld [vmem:[#allocation88_spill] sm:$0xff]  ;;  %v13160_v36 = vld [vmem:[#allocation89_spill] sm:$0xff] }
 0x39b   :  { %9861 = vpow2.f32 %v7031_v3  ;;  %7763 = vmatprep.subr.bf16.mxu0 %v13155_v4  ;;  %7795 = vmatprep.subr.bf16.mxu1 %v13028_v51  ;;  %v9664_v3 = vadd.f32 %v1643_v59, %v10966_v26  ;;  %v13161_v4 = vld [vmem:[#allocation90_spill] sm:$0xff]  ;;  %v13168_v59 = vld [vmem:[#allocation97_spill] sm:$0xff] }
 0x39c   :  { %9863 = vpow2.f32 %v7032_v39  ;;  %v13162_v39 = vld [vmem:[#allocation91_spill] sm:$0xff] }
 0x39d   :  { %9865 = vpow2.f32 %v7033_v22  ;;  %v13169_v22 = vld [vmem:[#allocation98_spill] sm:$0xff] }
 0x39e   :  { %7765 = vmatpush1.bf16.msra.mxu0 %v13156_v16  ;;  %7797 = vmatpush1.bf16.msra.mxu1 %v13030_v1  ;;  %9867 = vtanh.f32 %v9664_v3  ;;  %v13171_v3 = vld [vmem:[#allocation100_spill] sm:$0xff] }
 0x39f   :  { %7767 = vmatprep.subr.bf16.mxu0 %v13157_v2  ;;  %7799 = vmatprep.subr.bf16.mxu1 %v13158_v23  ;;  %v13163_v2 = vld [vmem:[#allocation92_spill] sm:$0xff]  ;;  %v13164_v23 = vld [vmem:[#allocation93_spill] sm:$0xff] }
 0x3a2   :  { %7769 = vmatpush1.bf16.msra.mxu0 %v13159_v9  ;;  %7801 = vmatpush1.bf16.msra.mxu1 %v13160_v36  ;;  %v13165_v9 = vld [vmem:[#allocation94_spill] sm:$0xff]  ;;  %v13166_v36 = vld [vmem:[#allocation95_spill] sm:$0xff] }
 0x3a3   :  { %7803 = vmatprep.subr.bf16.mxu0 %v13161_v4  ;;  %7835 = vmatprep.subr.bf16.mxu1 %v13162_v39  ;;  %v13180_v39 = vld [vmem:[#allocation110_spill] sm:$0xff] }
 0x3a5   :  { %v9862_v18 = vpop.eup %9861  ;;  %2259 = vmatmul.mubr.f32.vlgmr.msra.gmra.mrb[14].mxu0 %v1363_v8  ;;  %2330 = vmatmul.mubr.f32.vlgmr.msra.gmra.mrb[14].mxu1 %v1363_v8  ;;  %v13167_v8 = vld [vmem:[#allocation96_spill] sm:$0xff] }
 0x3a6   :  { %v9864_v16 = vpop.eup %9863  ;;  %v1655_v1 = vadd.f32 1.0, %v9862_v18  ;;  %7805 = vmatpush1.bf16.msra.mxu0 %v13163_v2  ;;  %7837 = vmatpush1.bf16.msra.mxu1 %v13164_v23  ;;  %v13170_v18 = vld [vmem:[#allocation99_spill] sm:$0xff] }
 0x3a7   :  { %v1661_v49 = vadd.f32 1.0, %v9864_v16  ;;  %7807 = vmatprep.subr.bf16.mxu0 %v13165_v9  ;;  %7839 = vmatprep.subr.bf16.mxu1 %v13166_v36  ;;  %v13172_v16 = vld [vmem:[#allocation101_spill] sm:$0xff]  ;;  %v13173_v9 = vld [vmem:[#allocation102_spill] sm:$0xff]  ;;  %v9866_v36 = vpop.eup %9865 }
 0x3a8   :  { %9869 = vrcp.f32 %v1655_v1  ;;  %2400 = vmatprep.mubr.f32.mxu0 %v12941_v44  ;;  %2471 = vmatprep.mubr.f32.mxu1 %v12941_v44  ;;  %v13174_v1 = vld [vmem:[#allocation103_spill] sm:$0xff]  ;;  %v9868_v23 = vpop.eup %9867 }
 0x3a9   :  { %9871 = vrcp.f32 %v1661_v49 }
 0x3aa   :  { %7809 = vmatpush1.bf16.msra.mxu0 %v13167_v8  ;;  %7841 = vmatpush1.bf16.msra.mxu1 %v13168_v59 }
 0x3ab   :  { %7811 = vmatprep.subr.bf16.mxu0 %v13169_v22  ;;  %7843 = vmatprep.subr.bf16.mxu1 %v13170_v18  ;;  %v1668_v22 = vadd.f32 1.0, %v9866_v36  ;;  %v13175_v18 = vld [vmem:[#allocation107_spill] sm:$0xff]  ;;  %v13183_v36 = vld [vmem:[#allocation113_spill] sm:$0xff] }
 0x3ad   :  { %9873 = vrcp.f32 %v1668_v22  ;;  %v13189_v22 = vld [vmem:[#allocation119_spill] sm:$0xff] }
 0x3ae   :  { %7813 = vmatpush1.bf16.msra.mxu0 %v13171_v3  ;;  %7845 = vmatpush1.bf16.msra.mxu1 %v13172_v16  ;;  %v13176_v3 = vld [vmem:[#allocation124_spill] sm:$0xff] }
 0x3af   :  { %7815 = vmatprep.subr.bf16.mxu0 %v13173_v9  ;;  %7847 = vmatprep.subr.bf16.mxu1 %v13174_v1  ;;  %v13178_v9 = vld [vmem:[#allocation108_spill] sm:$0xff]  ;;  %v13179_v1 = vld [vmem:[#allocation109_spill] sm:$0xff] }
 0x3b2   :  { %v9870_v2 = vpop.eup %9869  ;;  %7817 = vmatpush1.bf16.msra.mxu0 %v13050_v38  ;;  %7849 = vmatpush1.bf16.msra.mxu1 %v13051_v43  ;;  %v13181_v38 = vld [vmem:[#allocation111_spill] sm:$0xff]  ;;  %v13216_v43 = vld [vmem:[#allocation145_spill] sm:$0xff] }
 0x3b3   :  { %v9872_v49 = vpop.eup %9871  ;;  %v1672_v59 = vmul.f32 %v9870_v2, %v9868_v23  ;;  %7819 = vmatprep.subr.bf16.mxu0 %v13052_v48  ;;  %7851 = vmatprep.subr.bf16.mxu1 %v13175_v18  ;;  %v13182_v2 = vld [vmem:[#allocation112_spill] sm:$0xff]  ;;  %v13184_v23 = vld [vmem:[#allocation114_spill] sm:$0xff] }
 0x3b4   :  { %v1671_v16 = vmul.f32 %v9872_v49, %v13176_v3  ;;  %v13185_v3 = vld [vmem:[#allocation115_spill] sm:$0xff]  ;;  %v13188_v49 = vld [vmem:[#allocation118_spill] sm:$0xff]  ;;  %v13215_v18 = vld [vmem:[#allocation144_spill] sm:$0xff] }
 0x3b6   :  { %v11319_v8 = vadd.f32 %v1672_v59, %v1671_v16  ;;  %7821 = vmatpush1.bf16.msra.mxu0 %v13178_v9  ;;  %7853 = vmatpush1.bf16.msra.mxu1 %v13179_v1  ;;  %v13186_v59 = vld [vmem:[#allocation116_spill] sm:$0xff]  ;;  %v13187_v16 = vld [vmem:[#allocation117_spill] sm:$0xff] }
 0x3b7   :  { %7823 = vmatprep.subr.bf16.mxu0 %v13180_v39  ;;  %7855 = vmatprep.subr.bf16.mxu1 %v13181_v38  ;;  %v9874_v39 = vpop.eup %9873  ;;  %v13190_v1 = vld [vmem:[#allocation120_spill] sm:$0xff]  ;;  %v13191_v9 = vld [vmem:[#allocation121_spill] sm:$0xff] }
 0x3b8   :  { %13177 = vst [vmem:[#allocation60_spill] sm:$0xff] %v11319_v8  ;;  %9875 = vtanh.f32 %v11319_v8  ;;  %v13214_v8 = vld [vmem:[#allocation143_spill] sm:$0xff] }
 0x3ba   :  { %7825 = vmatpush1.bf16.msra.mxu0 %v13182_v2  ;;  %7857 = vmatpush1.bf16.msra.mxu1 %v13183_v36  ;;  %v13192_v36 = vld [vmem:[#allocation125_spill] sm:$0xff] }
 0x3bb   :  { %7827 = vmatprep.subr.bf16.mxu0 %v13184_v23  ;;  %7859 = vmatprep.subr.bf16.mxu1 %v13185_v3  ;;  %v13193_v23 = vld [vmem:[#allocation126_spill] sm:$0xff] }
 0x3be   :  { %7829 = vmatpush1.bf16.msra.mxu0 %v13186_v59  ;;  %7861 = vmatpush1.bf16.msra.mxu1 %v13187_v16  ;;  %v13194_v59 = vld [vmem:[#allocation127_spill] sm:$0xff]  ;;  %v13195_v16 = vld [vmem:[#allocation128_spill] sm:$0xff] }
 0x3bf   :  { %7831 = vmatprep.subr.bf16.mxu0 %v13188_v49  ;;  %7863 = vmatprep.subr.bf16.mxu1 %v13189_v22  ;;  %v13196_v49 = vld [vmem:[#allocation129_spill] sm:$0xff]  ;;  %v13197_v22 = vld [vmem:[#allocation130_spill] sm:$0xff] }
 0x3c2   :  { %v9876_v38 = vpop.eup %9875  ;;  %7833 = vmatpush1.bf16.msra.mxu0 %v13190_v1  ;;  %7865 = vmatpush1.bf16.msra.mxu1 %v13191_v9  ;;  %v13198_v9 = vld [vmem:[#allocation131_spill] sm:$0xff] }
 0x3c3   :  { %v1675_v2 = vmul.f32 %v9876_v38, %v9874_v39  ;;  %7867 = vmatprep.subr.bf16.mxu0 %v13192_v36  ;;  %7899 = vmatprep.subr.bf16.mxu1 %v13193_v23  ;;  %v13199_v38 = vld [vmem:[#allocation132_spill] sm:$0xff]  ;;  %v13200_v39 = vld [vmem:[#allocation133_spill] sm:$0xff]  ;;  %v13201_v23 = vld [vmem:[#allocation134_spill] sm:$0xff] }
 0x3c4   :  { %v13202_v36 = vld [vmem:[#allocation135_spill] sm:$0xff] }
 0x3c5   :  { %2401 = vmatmul.mubr.f32.vlgmr.msra.gmra.mrb[14].mxu0 %v1675_v2  ;;  %2472 = vmatmul.mubr.f32.vlgmr.msra.gmra.mrb[14].mxu1 %v1675_v2  ;;  %v13206_v1 = vld [vmem:[#allocation139_spill] sm:$0xff] }
 0x3c6   :  { %7869 = vmatpush1.bf16.msra.mxu0 %v13194_v59  ;;  %7901 = vmatpush1.bf16.msra.mxu1 %v13195_v16  ;;  %v13203_v59 = vld [vmem:[#allocation136_spill] sm:$0xff]  ;;  %v13204_v16 = vld [vmem:[#allocation137_spill] sm:$0xff] }
 0x3c7   :  { %7871 = vmatprep.subr.bf16.mxu0 %v13196_v49  ;;  %7903 = vmatprep.subr.bf16.mxu1 %v13197_v22  ;;  %v13205_v49 = vld [vmem:[#allocation138_spill] sm:$0xff] }
 0x3c8   :  { %2570 = vmatprep.mubr.f32.mxu0 %v12941_v44  ;;  %2641 = vmatprep.mubr.f32.mxu1 %v12941_v44  ;;  %v434_v22 = vld [vmem:[%s12476_s9] sm:$0xf] }
 0x3ca   :  { %7873 = vmatpush1.bf16.msra.mxu0 %v13198_v9  ;;  %7905 = vmatpush1.bf16.msra.mxu1 %v13199_v38  ;;  %v13207_v9 = vld [vmem:[#allocation140_spill] sm:$0xff]  ;;  %v13208_v38 = vld [vmem:[#allocation141_spill] sm:$0xff] }
 0x3cb   :  { %7875 = vmatprep.subr.bf16.mxu0 %v13200_v39  ;;  %7907 = vmatprep.subr.bf16.mxu1 %v13201_v23  ;;  %v13209_v39 = vld [vmem:[#allocation142_spill] sm:$0xff]  ;;  %v13210_v23 = vld [vmem:[#allocation48_spill] sm:$0xff] }
 0x3ce   :  { %7877 = vmatpush1.bf16.msra.mxu0 %v13202_v36  ;;  %7909 = vmatpush1.bf16.msra.mxu1 %v13203_v59  ;;  %v11360_v36 = vrot.slane %v434_v22, %v13210_v23  ;;  %v13212_v59 = vld [vmem:[#allocation49_spill] sm:$0xff] }
 0x3cf   :  { %7879 = vmatprep.subr.bf16.mxu0 %v13204_v16  ;;  %7911 = vmatprep.subr.bf16.mxu1 %v13205_v49  ;;  %v11363_v3 = vrot.slane %v434_v22, %v13212_v59  ;;  %v13218_v59 = vld [vmem:[#allocation52_spill] sm:$0xff] }
 0x3d0   :  { %13211 = vst [vmem:[#allocation61_spill] sm:$0xff] %v11360_v36  ;;  %v11372_v26 = vrot.slane %v434_v22, %v13218_v59  ;;  %v13228_v59 = vld [vmem:[#allocation153_spill] sm:$0xff] }
 0x3d1   :  { %13213 = vst [vmem:[#allocation62_spill] sm:$0xff] %v11363_v3 }
 0x3d2   :  { %7881 = vmatpush1.bf16.msra.mxu0 %v13206_v1  ;;  %7913 = vmatpush1.bf16.msra.mxu1 %v13207_v9  ;;  %13219 = vst [vmem:[#allocation63_spill] sm:$0xff] %v11372_v26 }
 0x3d3   :  { %7883 = vmatprep.subr.bf16.mxu0 %v13208_v38  ;;  %7915 = vmatprep.subr.bf16.mxu1 %v13209_v39  ;;  %v13217_v38 = vld [vmem:[#allocation146_spill] sm:$0xff] }
 0x3d6   :  { %v1905_v16 = vpop.f32.mrb[10].mxu0  ;;  %v1976_v49 = vpop.f32.mrb[10].mxu1  ;;  %7885 = vmatpush1.bf16.msra.mxu0 %v13214_v8  ;;  %7917 = vmatpush1.bf16.msra.mxu1 %v13215_v18  ;;  %v13221_v8 = vld [vmem:[#allocation148_spill] sm:$0xff]  ;;  %v13222_v18 = vld [vmem:[#allocation149_spill] sm:$0xff] }
 0x3d7   :  { %v9666_v1 = vadd.f32 %v1905_v16, %v11360_v36  ;;  %v1907_v48 = vpop.f32.mrb[11].mxu0  ;;  %v1978_v9 = vpop.f32.mrb[11].mxu1  ;;  %7887 = vmatprep.subr.bf16.mxu0 %v13216_v43  ;;  %7919 = vmatprep.subr.bf16.mxu1 %v13217_v38  ;;  %v13223_v16 = vld [vmem:[#allocation150_spill] sm:$0xff]  ;;  %v13224_v38 = vld [vmem:[#allocation151_spill] sm:$0xff] }
 0x3d8   :  { %v9667_v23 = vadd.f32 %v1907_v48, %v11363_v3  ;;  %v9669_v43 = vadd.f32 %v1978_v9, %v11372_v26  ;;  %v13225_v48 = vld [vmem:[#allocation152_spill] sm:$0xff]  ;;  %v13232_v9 = vld [vmem:[#allocation158_spill] sm:$0xff] }
 0x3d9   :  { %v7034_v39 = vmul.f32 -1.442695, %v9666_v1  ;;  %v13226_v1 = vld [vmem:[#allocation56_spill] sm:$0xff] }
 0x3da   :  { %v7035_v4 = vmul.f32 -1.442695, %v9667_v23  ;;  %7889 = vmatpush1.bf16.msra.mxu0 %v13220_v40  ;;  %7921 = vmatpush1.bf16.msra.mxu1 %v13221_v8  ;;  %v11382_v23 = vrot.slane %v434_v22, %v13226_v1  ;;  %v13229_v40 = vld [vmem:[#allocation154_spill] sm:$0xff]  ;;  %v7036_v8 = vmul.f32 -1.442695, %v9669_v43 }
 0x3db   :  { %9877 = vpow2.f32 %v7034_v39  ;;  %7891 = vmatprep.subr.bf16.mxu0 %v13222_v18  ;;  %7923 = vmatprep.subr.bf16.mxu1 %v13223_v16  ;;  %v13230_v39 = vld [vmem:[#allocation155_spill] sm:$0xff]  ;;  %v13231_v18 = vld [vmem:[#allocation156_spill] sm:$0xff] }
 0x3dc   :  { %9879 = vpow2.f32 %v7035_v4  ;;  %13227 = vst [vmem:[#allocation64_spill] sm:$0xff] %v11382_v23  ;;  %v9668_v4 = vadd.f32 %v1976_v49, %v11382_v23  ;;  %v13238_v49 = vld [vmem:[#allocation164_spill] sm:$0xff] }
 0x3dd   :  { %9881 = vpow2.f32 %v7036_v8  ;;  %v13239_v8 = vld [vmem:[#allocation165_spill] sm:$0xff] }
 0x3de   :  { %7893 = vmatpush1.bf16.msra.mxu0 %v13224_v38  ;;  %7925 = vmatpush1.bf16.msra.mxu1 %v13225_v48  ;;  %9883 = vtanh.f32 %v9668_v4  ;;  %v13241_v4 = vld [vmem:[#allocation167_spill] sm:$0xff] }
 0x3df   :  { %7895 = vmatprep.subr.bf16.mxu0 %v13228_v59  ;;  %7927 = vmatprep.subr.bf16.mxu1 %v13229_v40  ;;  %v13233_v59 = vld [vmem:[#allocation159_spill] sm:$0xff]  ;;  %v13234_v40 = vld [vmem:[#allocation160_spill] sm:$0xff] }
 0x3e2   :  { %7897 = vmatpush1.bf16.msra.mxu0 %v13230_v39  ;;  %7929 = vmatpush1.bf16.msra.mxu1 %v13231_v18  ;;  %v13235_v39 = vld [vmem:[#allocation161_spill] sm:$0xff]  ;;  %v13236_v18 = vld [vmem:[#allocation162_spill] sm:$0xff] }
 0x3e3   :  { %7931 = vmatprep.subr.bf16.mxu0 %v11110_v57  ;;  %7963 = vmatprep.subr.bf16.mxu1 %v13232_v9  ;;  %v13247_v57 = vld [vmem:[#allocation173_spill] sm:$0xff] }
 0x3e5   :  { %v9878_v38 = vpop.eup %9877  ;;  %2571 = vmatmul.mubr.f32.vlgmr.msra.gmra.mrb[16].mxu0 %v1675_v2  ;;  %2642 = vmatmul.mubr.f32.vlgmr.msra.gmra.mrb[16].mxu1 %v1675_v2  ;;  %v13237_v2 = vld [vmem:[#allocation163_spill] sm:$0xff] }
 0x3e6   :  { %v9880_v22 = vpop.eup %9879  ;;  %v1988_v1 = vadd.f32 1.0, %v9878_v38  ;;  %7933 = vmatpush1.bf16.msra.mxu0 %v13233_v59  ;;  %7965 = vmatpush1.bf16.msra.mxu1 %v13234_v40  ;;  %v13240_v38 = vld [vmem:[#allocation166_spill] sm:$0xff] }
 0x3e7   :  { %v1994_v43 = vadd.f32 1.0, %v9880_v22  ;;  %7935 = vmatprep.subr.bf16.mxu0 %v13235_v39  ;;  %7967 = vmatprep.subr.bf16.mxu1 %v13236_v18  ;;  %v13242_v22 = vld [vmem:[#allocation168_spill] sm:$0xff]  ;;  %v13243_v39 = vld [vmem:[#allocation169_spill] sm:$0xff]  ;;  %v9882_v18 = vpop.eup %9881 }
 0x3e8   :  { %9885 = vrcp.f32 %v1988_v1  ;;  %2712 = vmatprep.mubr.f32.mxu0 %v12941_v44  ;;  %2783 = vmatprep.mubr.f32.mxu1 %v12941_v44  ;;  %v13244_v1 = vld [vmem:[#allocation170_spill] sm:$0xff]  ;;  %v9884_v40 = vpop.eup %9883 }
 0x3e9   :  { %9887 = vrcp.f32 %v1994_v43  ;;  %v13245_v43 = vld [vmem:[#allocation171_spill] sm:$0xff] }
 0x3ea   :  { %7937 = vmatpush1.bf16.msra.mxu0 %v13237_v2  ;;  %7969 = vmatpush1.bf16.msra.mxu1 %v13238_v49  ;;  %v13246_v2 = vld [vmem:[#allocation172_spill] sm:$0xff] }
 0x3eb   :  { %7939 = vmatprep.subr.bf16.mxu0 %v13239_v8  ;;  %7971 = vmatprep.subr.bf16.mxu1 %v13240_v38  ;;  %v2001_v8 = vadd.f32 1.0, %v9882_v18  ;;  %v13248_v38 = vld [vmem:[#allocation174_spill] sm:$0xff] }
 0x3ed   :  { %9889 = vrcp.f32 %v2001_v8  ;;  %v13253_v8 = vld [vmem:[#allocation32_spill] sm:$0xff] }
 0x3ee   :  { %7941 = vmatpush1.bf16.msra.mxu0 %v13241_v4  ;;  %7973 = vmatpush1.bf16.msra.mxu1 %v13242_v22 }
 0x3ef   :  { %7943 = vmatprep.subr.bf16.mxu0 %v13243_v39  ;;  %7975 = vmatprep.subr.bf16.mxu1 %v13244_v1  ;;  %v13249_v39 = vld [vmem:[#allocation175_spill] sm:$0xff]  ;;  %v13250_v1 = vld [vmem:[#allocation176_spill] sm:$0xff] }
 0x3f2   :  { %v9886_v59 = vpop.eup %9885  ;;  %7945 = vmatpush1.bf16.msra.mxu0 %v13245_v43  ;;  %7977 = vmatpush1.bf16.msra.mxu1 %v13246_v2 }
 0x3f3   :  { %v9888_v49 = vpop.eup %9887  ;;  %v2005_v9 = vmul.f32 %v9886_v59, %v9884_v40  ;;  %7947 = vmatprep.subr.bf16.mxu0 %v13247_v57  ;;  %7979 = vmatprep.subr.bf16.mxu1 %v13248_v38 }
 0x3f4   :  { %v2004_v4 = vmul.f32 0.0, %v9888_v49  ;;  %v13252_v49 = vld [vmem:[#allocation31_spill] sm:$0xff] }
 0x3f6   :  { %v11409_v22 = vadd.f32 %v2005_v9, %v2004_v4  ;;  %7949 = vmatpush1.bf16.msra.mxu0 %v13249_v39  ;;  %7981 = vmatpush1.bf16.msra.mxu1 %v13250_v1  ;;  %v13251_v9 = vld [vmem:[#allocation30_spill] sm:$0xff]  ;;  %v13254_v4 = vld [vmem:[#allocation33_spill] sm:$0xff] }
 0x3f7   :  { %7951 = vmatprep.subr.bf16.mxu0 %v11174_v5  ;;  %7983 = vmatprep.subr.bf16.mxu1 %v11176_v58  ;;  %v9890_v40 = vpop.eup %9889 }
 0x3f8   :  { %9891 = vtanh.f32 %v11409_v22 }
 0x3fa   :  { %7953 = vmatpush1.bf16.msra.mxu0 %v11180_v13  ;;  %7985 = vmatpush1.bf16.msra.mxu1 %v11182_v52 }
 0x3fb   :  { %7955 = vmatprep.subr.bf16.mxu0 %v11186_v27  ;;  %7987 = vmatprep.subr.bf16.mxu1 %v11188_v12 }
 0x3fe   :  { %7957 = vmatpush1.bf16.msra.mxu0 %v11192_v47  ;;  %7989 = vmatpush1.bf16.msra.mxu1 %v11194_v56 }
 0x3ff   :  { %7959 = vmatprep.subr.bf16.mxu0 %v11198_v25  ;;  %7991 = vmatprep.subr.bf16.mxu1 %v11200_v60 }
 0x402   :  { %v9892_v18 = vpop.eup %9891  ;;  %7961 = vmatpush1.bf16.msra.mxu0 %v11204_v14  ;;  %7993 = vmatpush1.bf16.msra.mxu1 %v11206_v61 }
 0x403   :  { %v2008_v59 = vmul.f32 %v9892_v18, %v9890_v40  ;;  %7995 = vmatprep.subr.bf16.mxu0 %v10465_v6  ;;  %8027 = vmatprep.subr.bf16.mxu1 %v10467_v10  ;;  %v13255_v40 = vld [vmem:[#allocation34_spill] sm:$0xff]  ;;  %v13256_v18 = vld [vmem:[#allocation35_spill] sm:$0xff] }
 0x405   :  { %2713 = vmatmul.mubr.f32.vlgmr.msra.gmra.mrb[16].mxu0 %v2008_v59  ;;  %2784 = vmatmul.mubr.f32.vlgmr.msra.gmra.mrb[16].mxu1 %v2008_v59  ;;  %v13257_v59 = vld [vmem:[#allocation36_spill] sm:$0xff] }
 0x406   :  { %7997 = vmatpush1.bf16.msra.mxu0 %v10469_v11  ;;  %8029 = vmatpush1.bf16.msra.mxu1 %v10472_v15 }
 0x407   :  { %7999 = vmatprep.subr.bf16.mxu0 %v10476_v19  ;;  %8031 = vmatprep.subr.bf16.mxu1 %v10478_v20 }
 0x408   :  { %2897 = vmatprep.mubr.f32.mxu0 %v12941_v44  ;;  %2968 = vmatprep.mubr.f32.mxu1 %v12941_v44 }
 0x40a   :  { %8001 = vmatpush1.bf16.msra.mxu0 %v10481_v24  ;;  %8033 = vmatpush1.bf16.msra.mxu1 %v10485_v28 }
 0x40b   :  { %8003 = vmatprep.subr.bf16.mxu0 %v10487_v29  ;;  %8035 = vmatprep.subr.bf16.mxu1 %v10489_v33 }
 0x40e   :  { %8005 = vmatpush1.bf16.msra.mxu0 %v10492_v37  ;;  %8037 = vmatpush1.bf16.msra.mxu1 %v10496_v41 }
 0x40f   :  { %8007 = vmatprep.subr.bf16.mxu0 %v10498_v42  ;;  %8039 = vmatprep.subr.bf16.mxu1 %v10501_v46  ;;  %v13258_v42 = vld [vmem:[#allocation37_spill] sm:$0xff]  ;;  %v13259_v46 = vld [vmem:[#allocation38_spill] sm:$0xff] }
 0x412   :  { %8009 = vmatpush1.bf16.msra.mxu0 %v10504_v53  ;;  %8041 = vmatpush1.bf16.msra.mxu1 %v10508_v54  ;;  %v13260_v53 = vld [vmem:[#allocation39_spill] sm:$0xff]  ;;  %v13261_v54 = vld [vmem:[#allocation40_spill] sm:$0xff] }
 0x413   :  { %8011 = vmatprep.subr.bf16.mxu0 %v13251_v9  ;;  %8043 = vmatprep.subr.bf16.mxu1 %v13252_v49  ;;  %v13262_v9 = vld [vmem:[#allocation41_spill] sm:$0xff]  ;;  %v13263_v49 = vld [vmem:[#allocation42_spill] sm:$0xff] }
 0x416   :  { %8013 = vmatpush1.bf16.msra.mxu0 %v13253_v8  ;;  %8045 = vmatpush1.bf16.msra.mxu1 %v13254_v4  ;;  %v13264_v8 = vld [vmem:[#allocation43_spill] sm:$0xff]  ;;  %v13265_v4 = vld [vmem:[#allocation44_spill] sm:$0xff] }
 0x417   :  { %8015 = vmatprep.subr.bf16.mxu0 %v13255_v40  ;;  %8047 = vmatprep.subr.bf16.mxu1 %v13256_v18  ;;  %v13266_v40 = vld [vmem:[#allocation45_spill] sm:$0xff]  ;;  %v13267_v18 = vld [vmem:[#allocation46_spill] sm:$0xff] }
 0x41a   :  { %8017 = vmatpush1.bf16.msra.mxu0 %v13257_v59  ;;  %8049 = vmatpush1.bf16.msra.mxu1 %v13258_v42  ;;  %v13268_v59 = vld [vmem:[#allocation47_spill] sm:$0xff]  ;;  %v2014_v42 = vpop.permute.xlu1 %2013 }
 0x41b   :  { %8019 = vmatprep.subr.bf16.mxu0 %v13259_v46  ;;  %8051 = vmatprep.subr.bf16.mxu1 %v13260_v53  ;;  %v13269_v46 = vld [vmem:[#allocation50_spill] sm:$0xff]  ;;  %v13270_v53 = vld [vmem:[#allocation51_spill] sm:$0xff] }
 0x41c   :  { %v2016_v41 = vmul.f32 %v2014_v42, %v13269_v46  ;;  %v2017_v37 = vmul.f32 %v2014_v42, %v13270_v53  ;;  %v2018_v53 = vmul.f32 %v2014_v42, %v12996_v17 }
 0x41e   :  { %8021 = vmatpush1.bf16.msra.mxu0 %v13261_v54  ;;  %8053 = vmatpush1.bf16.msra.mxu1 %v13262_v9  ;;  %v13271_v54 = vld [vmem:[#allocation53_spill] sm:$0xff] }
 0x41f   :  { %8023 = vmatprep.subr.bf16.mxu0 %v13263_v49  ;;  %8055 = vmatprep.subr.bf16.mxu1 %v13264_v8  ;;  %v2020_v33 = vadd.f32 %v2016_v41, %v13271_v54  ;;  %v13272_v49 = vld [vmem:[#allocation54_spill] sm:$0xff]  ;;  %v2022_v41 = vadd.f32 %v2018_v53, %v12997_v31 }
 0x420   :  { %v2021_v28 = vadd.f32 %v2017_v37, %v13272_v49 }
 0x422   :  { %8025 = vmatpush1.bf16.msra.mxu0 %v13265_v4  ;;  %8057 = vmatpush1.bf16.msra.mxu1 %v13266_v40  ;;  %v13273_v40 = vld [vmem:[#allocation55_spill] sm:$0xff] }
 0x423   :  { %8059 = vmatprep.subr.bf16.mxu0 %v13267_v18  ;;  %8091 = vmatprep.subr.bf16.mxu1 %v13268_v59  ;;  %v2019_v19 = vmul.f32 %v2014_v42, %v13273_v40 }
 0x425   :  { %v2023_v46 = vadd.f32 %v2019_v19, %v10650_v45 }
 0x458   :  { %v2090_v9 = vpop.f32.mrb[12].mxu0  ;;  %v2161_v29 = vpop.f32.mrb[12].mxu1 }
 0x459   :  { %v2166_v8 = vadd.f32 %v2090_v9, %v2020_v33  ;;  %v2092_v24 = vpop.f32.mrb[13].mxu0  ;;  %v2163_v4 = vpop.f32.mrb[13].mxu1  ;;  %v2168_v11 = vadd.f32 %v2161_v29, %v2022_v41  ;;  %v13278_v41 = vld [vmem:[#allocation70_spill] sm:$0xff] }
 0x45a   :  { %v2167_v20 = vadd.f32 %v2092_v24, %v2021_v28  ;;  %v2169_v59 = vadd.f32 %v2163_v4, %v2023_v46  ;;  %v13276_v4 = vld [vmem:[#allocation68_spill] sm:$0xff] }
 0x45b   :  { %v7038_v18 = vmul.f32 -1.442695, %v2166_v8 }
 0x45c   :  { %v7039_v15 = vmul.f32 -1.442695, %v2167_v20  ;;  %v7040_v54 = vmul.f32 -1.442695, %v2169_v59  ;;  %v13277_v59 = vld [vmem:[#allocation69_spill] sm:$0xff] }
 0x45d   :  { %9893 = vpow2.f32 %v7038_v18 }
 0x45e   :  { %9895 = vpow2.f32 %v7039_v15 }
 0x45f   :  { %9897 = vpow2.f32 %v7040_v54 }
 0x460   :  { %9899 = vtanh.f32 %v2168_v11  ;;  %v13274_v11 = vld [vmem:[#allocation66_spill] sm:$0xff] }
 0x467   :  { %v9894_v37 = vpop.eup %9893 }
 0x468   :  { %v9896_v33 = vpop.eup %9895  ;;  %v2173_v9 = vadd.f32 1.0, %v9894_v37  ;;  %v13279_v37 = vld [vmem:[#allocation71_spill] sm:$0xff] }
 0x469   :  { %v2179_v24 = vadd.f32 1.0, %v9896_v33  ;;  %v9898_v20 = vpop.eup %9897  ;;  %v13280_v33 = vld [vmem:[#allocation72_spill] sm:$0xff] }
 0x46a   :  { %9901 = vrcp.f32 %v2173_v9  ;;  %v9900_v28 = vpop.eup %9899  ;;  %v2186_v18 = vadd.f32 1.0, %v9898_v20  ;;  %v13281_v9 = vld [vmem:[#allocation73_spill] sm:$0xff]  ;;  %v13283_v20 = vld [vmem:[#allocation75_spill] sm:$0xff] }
 0x46b   :  { %9903 = vrcp.f32 %v2179_v24  ;;  %v13282_v24 = vld [vmem:[#allocation74_spill] sm:$0xff] }
 0x46c   :  { %9905 = vrcp.f32 %v2186_v18 }
 0x474   :  { %v9902_v15 = vpop.eup %9901 }
 0x475   :  { %v9904_v8 = vpop.eup %9903  ;;  %v2190_v19 = vmul.f32 %v9902_v15, %v9900_v28 }
 0x476   :  { %v2189_v42 = vmul.f32 %v9904_v8, %v11259_v35  ;;  %v9906_v29 = vpop.eup %9905  ;;  %v13275_v35 = vld [vmem:[#allocation67_spill] sm:$0xff]  ;;  %v13284_v8 = vld [vmem:[#allocation76_spill] sm:$0xff] }
 0x478   :  { %v11471_v46 = vadd.f32 %v2190_v19, %v2189_v42  ;;  %v13285_v19 = vld [vmem:[#allocation59_spill] sm:$0xff] }
 0x47a   :  { %9907 = vtanh.f32 %v11471_v46 }
 0x484   :  { %v9908_v53 = vpop.eup %9907 }
 0x485   :  { %v2193_v54 = vmul.f32 %v9908_v53, %v9906_v29  ;;  %v13286_v53 = vld [vmem:[#allocation79_spill] sm:$0xff] }
 0x487   :  { %2898 = vmatmul.mubr.f32.vlgmr.msra.gmra.mrb[18].mxu0 %v2193_v54  ;;  %2969 = vmatmul.mubr.f32.vlgmr.msra.gmra.mrb[18].mxu1 %v2193_v54 }
 0x488   :  { %8061 = vmatpush1.bf16.msra.mxu0 %v13133_v55  ;;  %8093 = vmatpush1.bf16.msra.mxu1 %v13134_v32 }
 0x489   :  { %8063 = vmatprep.subr.bf16.mxu0 %v13135_v62  ;;  %8095 = vmatprep.subr.bf16.mxu1 %v13136_v0 }
 0x48a   :  { %3067 = vmatprep.mubr.f32.mxu0 %v12941_v44  ;;  %3138 = vmatprep.mubr.f32.mxu1 %v12941_v44 }
 0x48c   :  { %8065 = vmatpush1.bf16.msra.mxu0 %v13137_v50  ;;  %8097 = vmatpush1.bf16.msra.mxu1 %v13138_v7 }
 0x48d   :  { %8067 = vmatprep.subr.bf16.mxu0 %v13274_v11  ;;  %8099 = vmatprep.subr.bf16.mxu1 %v13275_v35 }
 0x490   :  { %8069 = vmatpush1.bf16.msra.mxu0 %v13276_v4  ;;  %8101 = vmatpush1.bf16.msra.mxu1 %v13277_v59 }
 0x491   :  { %8071 = vmatprep.subr.bf16.mxu0 %v13278_v41  ;;  %8103 = vmatprep.subr.bf16.mxu1 %v13279_v37 }
 0x494   :  { %8073 = vmatpush1.bf16.msra.mxu0 %v13280_v33  ;;  %8105 = vmatpush1.bf16.msra.mxu1 %v13281_v9 }
 0x495   :  { %8075 = vmatprep.subr.bf16.mxu0 %v13282_v24  ;;  %8107 = vmatprep.subr.bf16.mxu1 %v13283_v20  ;;  %v13287_v20 = vld [vmem:[#allocation81_spill] sm:$0xff] }
 0x498   :  { %v2402_v28 = vpop.f32.mrb[14].mxu0  ;;  %v2473_v15 = vpop.f32.mrb[14].mxu1  ;;  %8077 = vmatpush1.bf16.msra.mxu0 %v13284_v8  ;;  %8109 = vmatpush1.bf16.msra.mxu1 %v13150_v30  ;;  %v13288_v8 = vld [vmem:[#allocation82_spill] sm:$0xff]  ;;  %v13290_v30 = vld [vmem:[#allocation84_spill] sm:$0xff] }
 0x499   :  { %v9670_v18 = vadd.f32 %v2402_v28, %v13285_v19  ;;  %v2404_v42 = vpop.f32.mrb[15].mxu0  ;;  %v2475_v29 = vpop.f32.mrb[15].mxu1  ;;  %8079 = vmatprep.subr.bf16.mxu0 %v13151_v34  ;;  %8111 = vmatprep.subr.bf16.mxu1 %v13286_v53  ;;  %v13289_v28 = vld [vmem:[#allocation123_spill] sm:$0xff]  ;;  %v13291_v34 = vld [vmem:[#allocation85_spill] sm:$0xff]  ;;  %v13292_v53 = vld [vmem:[#allocation86_spill] sm:$0xff] }
 0x49a   :  { %v9671_v9 = vadd.f32 %v2404_v42, %v10947_v63  ;;  %v9673_v19 = vadd.f32 %v2475_v29, %v13289_v28  ;;  %v13294_v42 = vld [vmem:[#allocation88_spill] sm:$0xff]  ;;  %v13319_v28 = vld [vmem:[#allocation110_spill] sm:$0xff] }
 0x49b   :  { %v7041_v33 = vmul.f32 -1.442695, %v9670_v18  ;;  %v13293_v18 = vld [vmem:[#allocation87_spill] sm:$0xff] }
 0x49c   :  { %v7042_v24 = vmul.f32 -1.442695, %v9671_v9  ;;  %8081 = vmatpush1.bf16.msra.mxu0 %v13153_v21  ;;  %8113 = vmatpush1.bf16.msra.mxu1 %v13287_v20  ;;  %v7043_v9 = vmul.f32 -1.442695, %v9673_v19  ;;  %v13295_v20 = vld [vmem:[#allocation89_spill] sm:$0xff]  ;;  %v13297_v21 = vld [vmem:[#allocation90_spill] sm:$0xff] }
 0x49d   :  { %9909 = vpow2.f32 %v7041_v33  ;;  %8083 = vmatprep.subr.bf16.mxu0 %v13288_v8  ;;  %8115 = vmatprep.subr.bf16.mxu1 %v13028_v51  ;;  %v13296_v33 = vld [vmem:[#allocation83_spill] sm:$0xff] }
 0x49e   :  { %9911 = vpow2.f32 %v7042_v24  ;;  %v9672_v8 = vadd.f32 %v2473_v15, %v13296_v33  ;;  %v13298_v24 = vld [vmem:[#allocation91_spill] sm:$0xff]  ;;  %v13304_v15 = vld [vmem:[#allocation97_spill] sm:$0xff] }
 0x49f   :  { %9913 = vpow2.f32 %v7043_v9  ;;  %v13305_v9 = vld [vmem:[#allocation98_spill] sm:$0xff] }
 0x4a0   :  { %8085 = vmatpush1.bf16.msra.mxu0 %v13290_v30  ;;  %8117 = vmatpush1.bf16.msra.mxu1 %v13291_v34  ;;  %9915 = vtanh.f32 %v9672_v8  ;;  %v13307_v8 = vld [vmem:[#allocation100_spill] sm:$0xff] }
 0x4a1   :  { %8087 = vmatprep.subr.bf16.mxu0 %v13292_v53  ;;  %8119 = vmatprep.subr.bf16.mxu1 %v13293_v18  ;;  %v13299_v53 = vld [vmem:[#allocation92_spill] sm:$0xff]  ;;  %v13300_v18 = vld [vmem:[#allocation93_spill] sm:$0xff] }
 0x4a4   :  { %8089 = vmatpush1.bf16.msra.mxu0 %v13294_v42  ;;  %8121 = vmatpush1.bf16.msra.mxu1 %v13295_v20  ;;  %v13301_v42 = vld [vmem:[#allocation94_spill] sm:$0xff]  ;;  %v13302_v20 = vld [vmem:[#allocation95_spill] sm:$0xff] }
 0x4a5   :  { %8123 = vmatprep.subr.bf16.mxu0 %v13297_v21  ;;  %8155 = vmatprep.subr.bf16.mxu1 %v13298_v24  ;;  %v13313_v21 = vld [vmem:[#allocation106_spill] sm:$0xff] }
 0x4a7   :  { %v9910_v29 = vpop.eup %9909  ;;  %3068 = vmatmul.mubr.f32.vlgmr.msra.gmra.mrb[20].mxu0 %v2193_v54  ;;  %3139 = vmatmul.mubr.f32.vlgmr.msra.gmra.mrb[20].mxu1 %v2193_v54  ;;  %v13303_v54 = vld [vmem:[#allocation96_spill] sm:$0xff] }
 0x4a8   :  { %v9912_v30 = vpop.eup %9911  ;;  %v2485_v34 = vadd.f32 1.0, %v9910_v29  ;;  %8125 = vmatpush1.bf16.msra.mxu0 %v13299_v53  ;;  %8157 = vmatpush1.bf16.msra.mxu1 %v13300_v18  ;;  %v13306_v29 = vld [vmem:[#allocation99_spill] sm:$0xff] }
 0x4a9   :  { %v2491_v19 = vadd.f32 1.0, %v9912_v30  ;;  %8127 = vmatprep.subr.bf16.mxu0 %v13301_v42  ;;  %8159 = vmatprep.subr.bf16.mxu1 %v13302_v20  ;;  %v13308_v30 = vld [vmem:[#allocation101_spill] sm:$0xff]  ;;  %v13309_v42 = vld [vmem:[#allocation102_spill] sm:$0xff]  ;;  %v9914_v20 = vpop.eup %9913 }
 0x4aa   :  { %9917 = vrcp.f32 %v2485_v34  ;;  %3209 = vmatprep.mubr.f32.mxu0 %v12941_v44  ;;  %3280 = vmatprep.mubr.f32.mxu1 %v12941_v44  ;;  %v13310_v34 = vld [vmem:[#allocation103_spill] sm:$0xff]  ;;  %v9916_v18 = vpop.eup %9915 }
 0x4ab   :  { %9919 = vrcp.f32 %v2491_v19  ;;  %v13311_v19 = vld [vmem:[#allocation104_spill] sm:$0xff] }
 0x4ac   :  { %8129 = vmatpush1.bf16.msra.mxu0 %v13303_v54  ;;  %8161 = vmatpush1.bf16.msra.mxu1 %v13304_v15  ;;  %v13312_v54 = vld [vmem:[#allocation105_spill] sm:$0xff] }
 0x4ad   :  { %8131 = vmatprep.subr.bf16.mxu0 %v13305_v9  ;;  %8163 = vmatprep.subr.bf16.mxu1 %v13306_v29  ;;  %v2498_v9 = vadd.f32 1.0, %v9914_v20  ;;  %v13314_v29 = vld [vmem:[#allocation107_spill] sm:$0xff]  ;;  %v13321_v20 = vld [vmem:[#allocation112_spill] sm:$0xff] }
 0x4af   :  { %9921 = vrcp.f32 %v2498_v9  ;;  %v13328_v9 = vld [vmem:[#allocation119_spill] sm:$0xff] }
 0x4b0   :  { %8133 = vmatpush1.bf16.msra.mxu0 %v13307_v8  ;;  %8165 = vmatpush1.bf16.msra.mxu1 %v13308_v30  ;;  %v13315_v8 = vld [vmem:[#allocation60_spill] sm:$0xff] }
 0x4b1   :  { %8135 = vmatprep.subr.bf16.mxu0 %v13309_v42  ;;  %8167 = vmatprep.subr.bf16.mxu1 %v13310_v34  ;;  %v13317_v42 = vld [vmem:[#allocation108_spill] sm:$0xff]  ;;  %v13318_v34 = vld [vmem:[#allocation109_spill] sm:$0xff] }
 0x4b4   :  { %v9918_v53 = vpop.eup %9917  ;;  %8137 = vmatpush1.bf16.msra.mxu0 %v13311_v19  ;;  %8169 = vmatpush1.bf16.msra.mxu1 %v13312_v54  ;;  %v13320_v19 = vld [vmem:[#allocation111_spill] sm:$0xff] }
 0x4b5   :  { %v9920_v15 = vpop.eup %9919  ;;  %v2502_v24 = vmul.f32 %v9918_v53, %v9916_v18  ;;  %8139 = vmatprep.subr.bf16.mxu0 %v13313_v21  ;;  %8171 = vmatprep.subr.bf16.mxu1 %v13314_v29  ;;  %v13322_v53 = vld [vmem:[#allocation113_spill] sm:$0xff]  ;;  %v13323_v18 = vld [vmem:[#allocation114_spill] sm:$0xff]  ;;  %v13353_v21 = vld [vmem:[#allocation147_spill] sm:$0xff] }
 0x4b6   :  { %v2501_v30 = vmul.f32 %v9920_v15, %v13315_v8  ;;  %v13324_v15 = vld [vmem:[#allocation115_spill] sm:$0xff]  ;;  %v13326_v8 = vld [vmem:[#allocation117_spill] sm:$0xff] }
 0x4b7   :  { %v13351_v29 = vld [vmem:[#allocation145_spill] sm:$0xff] }
 0x4b8   :  { %v11531_v33 = vadd.f32 %v2502_v24, %v2501_v30  ;;  %8141 = vmatpush1.bf16.msra.mxu0 %v13317_v42  ;;  %8173 = vmatpush1.bf16.msra.mxu1 %v13318_v34  ;;  %v13325_v24 = vld [vmem:[#allocation116_spill] sm:$0xff]  ;;  %v13327_v30 = vld [vmem:[#allocation118_spill] sm:$0xff]  ;;  %v13330_v42 = vld [vmem:[#allocation121_spill] sm:$0xff] }
 0x4b9   :  { %8143 = vmatprep.subr.bf16.mxu0 %v13319_v28  ;;  %8175 = vmatprep.subr.bf16.mxu1 %v13320_v19  ;;  %v9922_v28 = vpop.eup %9921  ;;  %v13329_v34 = vld [vmem:[#allocation120_spill] sm:$0xff] }
 0x4ba   :  { %13316 = vst [vmem:[#allocation65_spill] sm:$0xff] %v11531_v33  ;;  %9923 = vtanh.f32 %v11531_v33  ;;  %v13349_v33 = vld [vmem:[#allocation143_spill] sm:$0xff] }
 0x4bc   :  { %8145 = vmatpush1.bf16.msra.mxu0 %v13321_v20  ;;  %8177 = vmatpush1.bf16.msra.mxu1 %v13322_v53  ;;  %v13331_v53 = vld [vmem:[#allocation125_spill] sm:$0xff] }
 0x4bd   :  { %8147 = vmatprep.subr.bf16.mxu0 %v13323_v18  ;;  %8179 = vmatprep.subr.bf16.mxu1 %v13324_v15  ;;  %v13332_v18 = vld [vmem:[#allocation126_spill] sm:$0xff]  ;;  %v13347_v15 = vld [vmem:[#allocation141_spill] sm:$0xff] }
 0x4c0   :  { %8149 = vmatpush1.bf16.msra.mxu0 %v13325_v24  ;;  %8181 = vmatpush1.bf16.msra.mxu1 %v13326_v8  ;;  %v13333_v24 = vld [vmem:[#allocation127_spill] sm:$0xff]  ;;  %v13334_v8 = vld [vmem:[#allocation128_spill] sm:$0xff] }
 0x4c1   :  { %8151 = vmatprep.subr.bf16.mxu0 %v13327_v30  ;;  %8183 = vmatprep.subr.bf16.mxu1 %v13328_v9  ;;  %v13335_v30 = vld [vmem:[#allocation129_spill] sm:$0xff]  ;;  %v13336_v9 = vld [vmem:[#allocation130_spill] sm:$0xff] }
 0x4c4   :  { %v9924_v19 = vpop.eup %9923  ;;  %8153 = vmatpush1.bf16.msra.mxu0 %v13329_v34  ;;  %8185 = vmatpush1.bf16.msra.mxu1 %v13330_v42  ;;  %v13337_v42 = vld [vmem:[#allocation131_spill] sm:$0xff]  ;;  %v13346_v34 = vld [vmem:[#allocation140_spill] sm:$0xff] }
 0x4c5   :  { %v2505_v20 = vmul.f32 %v9924_v19, %v9922_v28  ;;  %8187 = vmatprep.subr.bf16.mxu0 %v13331_v53  ;;  %8219 = vmatprep.subr.bf16.mxu1 %v13332_v18  ;;  %v13338_v28 = vld [vmem:[#allocation132_spill] sm:$0xff]  ;;  %v13339_v19 = vld [vmem:[#allocation133_spill] sm:$0xff]  ;;  %v13340_v18 = vld [vmem:[#allocation134_spill] sm:$0xff] }
 0x4c6   :  { %v13341_v53 = vld [vmem:[#allocation135_spill] sm:$0xff] }
 0x4c7   :  { %3210 = vmatmul.mubr.f32.vlgmr.msra.gmra.mrb[20].mxu0 %v2505_v20  ;;  %3281 = vmatmul.mubr.f32.vlgmr.msra.gmra.mrb[20].mxu1 %v2505_v20 }
 0x4c8   :  { %8189 = vmatpush1.bf16.msra.mxu0 %v13333_v24  ;;  %8221 = vmatpush1.bf16.msra.mxu1 %v13334_v8  ;;  %v13342_v24 = vld [vmem:[#allocation136_spill] sm:$0xff]  ;;  %v13343_v8 = vld [vmem:[#allocation137_spill] sm:$0xff] }
 0x4c9   :  { %8191 = vmatprep.subr.bf16.mxu0 %v13335_v30  ;;  %8223 = vmatprep.subr.bf16.mxu1 %v13336_v9  ;;  %v13344_v30 = vld [vmem:[#allocation138_spill] sm:$0xff]  ;;  %v13345_v9 = vld [vmem:[#allocation139_spill] sm:$0xff] }
 0x4ca   :  { %3379 = vmatprep.mubr.f32.mxu0 %v12941_v44  ;;  %3450 = vmatprep.mubr.f32.mxu1 %v12941_v44 }
 0x4cc   :  { %8193 = vmatpush1.bf16.msra.mxu0 %v13337_v42  ;;  %8225 = vmatpush1.bf16.msra.mxu1 %v13338_v28  ;;  %v13348_v42 = vld [vmem:[#allocation142_spill] sm:$0xff] }
 0x4cd   :  { %8195 = vmatprep.subr.bf16.mxu0 %v13339_v19  ;;  %8227 = vmatprep.subr.bf16.mxu1 %v13340_v18  ;;  %v13350_v18 = vld [vmem:[#allocation144_spill] sm:$0xff] }
 0x4d0   :  { %8197 = vmatpush1.bf16.msra.mxu0 %v13341_v53  ;;  %8229 = vmatpush1.bf16.msra.mxu1 %v13342_v24 }
 0x4d1   :  { %8199 = vmatprep.subr.bf16.mxu0 %v13343_v8  ;;  %8231 = vmatprep.subr.bf16.mxu1 %v13344_v30  ;;  %v13352_v30 = vld [vmem:[#allocation146_spill] sm:$0xff] }
 0x4d4   :  { %8201 = vmatpush1.bf16.msra.mxu0 %v13345_v9  ;;  %8233 = vmatpush1.bf16.msra.mxu1 %v13346_v34 }
 0x4d5   :  { %8203 = vmatprep.subr.bf16.mxu0 %v13347_v15  ;;  %8235 = vmatprep.subr.bf16.mxu1 %v13348_v42  ;;  %v13354_v42 = vld [vmem:[#allocation148_spill] sm:$0xff] }
 0x4d8   :  { %v2714_v28 = vpop.f32.mrb[16].mxu0  ;;  %v2785_v19 = vpop.f32.mrb[16].mxu1  ;;  %8205 = vmatpush1.bf16.msra.mxu0 %v13349_v33  ;;  %8237 = vmatpush1.bf16.msra.mxu1 %v13350_v18  ;;  %v13355_v33 = vld [vmem:[#allocation149_spill] sm:$0xff] }
 0x4d9   :  { %v9674_v24 = vadd.f32 %v2714_v28, %v11360_v36  ;;  %v2716_v53 = vpop.f32.mrb[17].mxu0  ;;  %v2787_v8 = vpop.f32.mrb[17].mxu1  ;;  %8207 = vmatprep.subr.bf16.mxu0 %v13351_v29  ;;  %8239 = vmatprep.subr.bf16.mxu1 %v13352_v30  ;;  %v13356_v36 = vld [vmem:[#allocation151_spill] sm:$0xff]  ;;  %v13357_v30 = vld [vmem:[#allocation153_spill] sm:$0xff] }
 0x4da   :  { %v9675_v34 = vadd.f32 %v2716_v53, %v11363_v3  ;;  %v9677_v28 = vadd.f32 %v2787_v8, %v11372_v26  ;;  %v13358_v53 = vld [vmem:[#allocation154_spill] sm:$0xff] }
 0x4db   :  { %v7044_v9 = vmul.f32 -1.442695, %v9674_v24  ;;  %v13359_v24 = vld [vmem:[#allocation155_spill] sm:$0xff] }
 0x4dc   :  { %v7045_v15 = vmul.f32 -1.442695, %v9675_v34  ;;  %8209 = vmatpush1.bf16.msra.mxu0 %v13353_v21  ;;  %8241 = vmatpush1.bf16.msra.mxu1 %v13354_v42  ;;  %v7046_v34 = vmul.f32 -1.442695, %v9677_v28  ;;  %v13360_v42 = vld [vmem:[#allocation156_spill] sm:$0xff] }
 0x4dd   :  { %9925 = vpow2.f32 %v7044_v9  ;;  %8211 = vmatprep.subr.bf16.mxu0 %v13355_v33  ;;  %8243 = vmatprep.subr.bf16.mxu1 %v13223_v16  ;;  %v9676_v9 = vadd.f32 %v2785_v19, %v11382_v23  ;;  %v13361_v33 = vld [vmem:[#allocation157_spill] sm:$0xff]  ;;  %v13368_v19 = vld [vmem:[#allocation164_spill] sm:$0xff] }
 0x4de   :  { %9927 = vpow2.f32 %v7045_v15  ;;  %v13362_v15 = vld [vmem:[#allocation158_spill] sm:$0xff] }
 0x4df   :  { %9929 = vpow2.f32 %v7046_v34  ;;  %v13369_v34 = vld [vmem:[#allocation165_spill] sm:$0xff] }
 0x4e0   :  { %8213 = vmatpush1.bf16.msra.mxu0 %v13356_v36  ;;  %8245 = vmatpush1.bf16.msra.mxu1 %v13225_v48  ;;  %9931 = vtanh.f32 %v9676_v9  ;;  %v13371_v9 = vld [vmem:[#allocation167_spill] sm:$0xff] }
 0x4e1   :  { %8215 = vmatprep.subr.bf16.mxu0 %v13357_v30  ;;  %8247 = vmatprep.subr.bf16.mxu1 %v13358_v53  ;;  %v13363_v30 = vld [vmem:[#allocation159_spill] sm:$0xff]  ;;  %v13364_v53 = vld [vmem:[#allocation160_spill] sm:$0xff] }
 0x4e4   :  { %8217 = vmatpush1.bf16.msra.mxu0 %v13359_v24  ;;  %8249 = vmatpush1.bf16.msra.mxu1 %v13360_v42  ;;  %v13365_v24 = vld [vmem:[#allocation161_spill] sm:$0xff]  ;;  %v13366_v42 = vld [vmem:[#allocation162_spill] sm:$0xff] }
 0x4e5   :  { %8251 = vmatprep.subr.bf16.mxu0 %v13361_v33  ;;  %8283 = vmatprep.subr.bf16.mxu1 %v13362_v15 }
 0x4e7   :  { %v9926_v8 = vpop.eup %9925  ;;  %3380 = vmatmul.mubr.f32.vlgmr.msra.gmra.mrb[22].mxu0 %v2505_v20  ;;  %3451 = vmatmul.mubr.f32.vlgmr.msra.gmra.mrb[22].mxu1 %v2505_v20  ;;  %v13367_v20 = vld [vmem:[#allocation163_spill] sm:$0xff] }
 0x4e8   :  { %v9928_v36 = vpop.eup %9927  ;;  %v2797_v48 = vadd.f32 1.0, %v9926_v8  ;;  %8253 = vmatpush1.bf16.msra.mxu0 %v13363_v30  ;;  %8285 = vmatpush1.bf16.msra.mxu1 %v13364_v53  ;;  %v13370_v8 = vld [vmem:[#allocation166_spill] sm:$0xff] }
 0x4e9   :  { %v2803_v28 = vadd.f32 1.0, %v9928_v36  ;;  %8255 = vmatprep.subr.bf16.mxu0 %v13365_v24  ;;  %8287 = vmatprep.subr.bf16.mxu1 %v13366_v42  ;;  %v13372_v36 = vld [vmem:[#allocation168_spill] sm:$0xff]  ;;  %v13373_v24 = vld [vmem:[#allocation169_spill] sm:$0xff]  ;;  %v9930_v42 = vpop.eup %9929 }
 0x4ea   :  { %9933 = vrcp.f32 %v2797_v48  ;;  %3521 = vmatprep.mubr.f32.mxu0 %v12941_v44  ;;  %3592 = vmatprep.mubr.f32.mxu1 %v12941_v44  ;;  %v13374_v48 = vld [vmem:[#allocation170_spill] sm:$0xff]  ;;  %v9932_v53 = vpop.eup %9931 }
 0x4eb   :  { %9935 = vrcp.f32 %v2803_v28 }
 0x4ec   :  { %8257 = vmatpush1.bf16.msra.mxu0 %v13367_v20  ;;  %8289 = vmatpush1.bf16.msra.mxu1 %v13368_v19 }
 0x4ed   :  { %8259 = vmatprep.subr.bf16.mxu0 %v13369_v34  ;;  %8291 = vmatprep.subr.bf16.mxu1 %v13370_v8  ;;  %v2810_v34 = vadd.f32 1.0, %v9930_v42 }
 0x4ef   :  { %9937 = vrcp.f32 %v2810_v34  ;;  %v13377_v34 = vld [vmem:[#allocation18_spill] sm:$0xff] }
 0x4f0   :  { %8261 = vmatpush1.bf16.msra.mxu0 %v13371_v9  ;;  %8293 = vmatpush1.bf16.msra.mxu1 %v13372_v36 }
 0x4f1   :  { %8263 = vmatprep.subr.bf16.mxu0 %v13373_v24  ;;  %8295 = vmatprep.subr.bf16.mxu1 %v13374_v48 }
 0x4f4   :  { %v9934_v30 = vpop.eup %9933  ;;  %8265 = vmatpush1.bf16.msra.mxu0 %v13245_v43  ;;  %8297 = vmatpush1.bf16.msra.mxu1 %v13246_v2 }
 0x4f5   :  { %v9936_v28 = vpop.eup %9935  ;;  %v2814_v19 = vmul.f32 %v9934_v30, %v9932_v53  ;;  %8267 = vmatprep.subr.bf16.mxu0 %v13247_v57  ;;  %8299 = vmatprep.subr.bf16.mxu1 %v13248_v38  ;;  %v13375_v53 = vld [vmem:[#allocation16_spill] sm:$0xff] }
 0x4f6   :  { %v2813_v36 = vmul.f32 %v9936_v28, %v11409_v22  ;;  %v13379_v28 = vld [vmem:[#allocation20_spill] sm:$0xff] }
 0x4f8   :  { %v11607_v9 = vadd.f32 %v2814_v19, %v2813_v36  ;;  %8269 = vmatpush1.bf16.msra.mxu0 %v13249_v39  ;;  %8301 = vmatpush1.bf16.msra.mxu1 %v13250_v1  ;;  %v13376_v19 = vld [vmem:[#allocation17_spill] sm:$0xff]  ;;  %v13378_v36 = vld [vmem:[#allocation19_spill] sm:$0xff] }
 0x4f9   :  { %8271 = vmatprep.subr.bf16.mxu0 %v11174_v5  ;;  %8303 = vmatprep.subr.bf16.mxu1 %v11176_v58  ;;  %v9938_v22 = vpop.eup %9937 }
 0x4fa   :  { %9939 = vtanh.f32 %v11607_v9 }
 0x4fc   :  { %8273 = vmatpush1.bf16.msra.mxu0 %v11180_v13  ;;  %8305 = vmatpush1.bf16.msra.mxu1 %v11182_v52 }
 0x4fd   :  { %8275 = vmatprep.subr.bf16.mxu0 %v11186_v27  ;;  %8307 = vmatprep.subr.bf16.mxu1 %v11188_v12 }
 0x500   :  { %8277 = vmatpush1.bf16.msra.mxu0 %v11192_v47  ;;  %8309 = vmatpush1.bf16.msra.mxu1 %v11194_v56 }
 0x501   :  { %8279 = vmatprep.subr.bf16.mxu0 %v11198_v25  ;;  %8311 = vmatprep.subr.bf16.mxu1 %v11200_v60 }
 0x504   :  { %v9940_v42 = vpop.eup %9939  ;;  %8281 = vmatpush1.bf16.msra.mxu0 %v11204_v14  ;;  %8313 = vmatpush1.bf16.msra.mxu1 %v11206_v61  ;;  %v13389_v61 = vld [vmem:[#allocation30_spill] sm:$0xff] }
 0x505   :  { %v2817_v30 = vmul.f32 %v9940_v42, %v9938_v22  ;;  %8315 = vmatprep.subr.bf16.mxu0 %v10465_v6  ;;  %8347 = vmatprep.subr.bf16.mxu1 %v10467_v10  ;;  %v13380_v22 = vld [vmem:[#allocation21_spill] sm:$0xff]  ;;  %v13381_v42 = vld [vmem:[#allocation22_spill] sm:$0xff]  ;;  %v13382_v10 = vld [vmem:[#allocation23_spill] sm:$0xff] }
 0x506   :  { %v13388_v6 = vld [vmem:[#allocation29_spill] sm:$0xff] }
 0x507   :  { %3522 = vmatmul.mubr.f32.vlgmr.msra.gmra.mrb[22].mxu0 %v2817_v30  ;;  %3593 = vmatmul.mubr.f32.vlgmr.msra.gmra.mrb[22].mxu1 %v2817_v30  ;;  %v13383_v30 = vld [vmem:[#allocation24_spill] sm:$0xff] }
 0x508   :  { %8317 = vmatpush1.bf16.msra.mxu0 %v13375_v53  ;;  %8349 = vmatpush1.bf16.msra.mxu1 %v13376_v19  ;;  %v13384_v53 = vld [vmem:[#allocation25_spill] sm:$0xff]  ;;  %v13385_v19 = vld [vmem:[#allocation26_spill] sm:$0xff] }
 0x509   :  { %8319 = vmatprep.subr.bf16.mxu0 %v13377_v34  ;;  %8351 = vmatprep.subr.bf16.mxu1 %v13378_v36  ;;  %v13386_v34 = vld [vmem:[#allocation27_spill] sm:$0xff]  ;;  %v13387_v36 = vld [vmem:[#allocation28_spill] sm:$0xff] }
 0x50a   :  { %3706 = vmatprep.mubr.f32.mxu0 %v12941_v44  ;;  %3777 = vmatprep.mubr.f32.mxu1 %v12941_v44 }
 0x50c   :  { %8321 = vmatpush1.bf16.msra.mxu0 %v13379_v28  ;;  %8353 = vmatpush1.bf16.msra.mxu1 %v13380_v22  ;;  %v13390_v28 = vld [vmem:[#allocation31_spill] sm:$0xff]  ;;  %v13391_v22 = vld [vmem:[#allocation32_spill] sm:$0xff] }
 0x50d   :  { %8323 = vmatprep.subr.bf16.mxu0 %v13381_v42  ;;  %8355 = vmatprep.subr.bf16.mxu1 %v13382_v10  ;;  %v13392_v42 = vld [vmem:[#allocation33_spill] sm:$0xff]  ;;  %v13393_v10 = vld [vmem:[#allocation34_spill] sm:$0xff] }
 0x510   :  { %8325 = vmatpush1.bf16.msra.mxu0 %v13383_v30  ;;  %8357 = vmatpush1.bf16.msra.mxu1 %v13384_v53  ;;  %v13394_v30 = vld [vmem:[#allocation35_spill] sm:$0xff]  ;;  %v13395_v53 = vld [vmem:[#allocation36_spill] sm:$0xff] }
 0x511   :  { %8327 = vmatprep.subr.bf16.mxu0 %v13385_v19  ;;  %8359 = vmatprep.subr.bf16.mxu1 %v13386_v34  ;;  %v13396_v19 = vld [vmem:[#allocation37_spill] sm:$0xff]  ;;  %v13397_v34 = vld [vmem:[#allocation38_spill] sm:$0xff] }
 0x514   :  { %8329 = vmatpush1.bf16.msra.mxu0 %v13387_v36  ;;  %8361 = vmatpush1.bf16.msra.mxu1 %v13388_v6  ;;  %v13398_v36 = vld [vmem:[#allocation39_spill] sm:$0xff]  ;;  %v13399_v6 = vld [vmem:[#allocation40_spill] sm:$0xff] }
 0x515   :  { %8331 = vmatprep.subr.bf16.mxu0 %v13389_v61  ;;  %8363 = vmatprep.subr.bf16.mxu1 %v13390_v28  ;;  %v13400_v61 = vld [vmem:[#allocation41_spill] sm:$0xff]  ;;  %v13401_v28 = vld [vmem:[#allocation42_spill] sm:$0xff] }
 0x518   :  { %8333 = vmatpush1.bf16.msra.mxu0 %v13391_v22  ;;  %8365 = vmatpush1.bf16.msra.mxu1 %v13392_v42  ;;  %v13402_v22 = vld [vmem:[#allocation43_spill] sm:$0xff]  ;;  %v13403_v42 = vld [vmem:[#allocation44_spill] sm:$0xff] }
 0x519   :  { %8335 = vmatprep.subr.bf16.mxu0 %v13393_v10  ;;  %8367 = vmatprep.subr.bf16.mxu1 %v13394_v30  ;;  %v13404_v10 = vld [vmem:[#allocation45_spill] sm:$0xff]  ;;  %v13405_v30 = vld [vmem:[#allocation46_spill] sm:$0xff] }
 0x51c   :  { %8337 = vmatpush1.bf16.msra.mxu0 %v13395_v53  ;;  %8369 = vmatpush1.bf16.msra.mxu1 %v13396_v19  ;;  %v13406_v53 = vld [vmem:[#allocation47_spill] sm:$0xff]  ;;  %v2823_v19 = vpop.permute.xlu0 %2822 }
 0x51d   :  { %8339 = vmatprep.subr.bf16.mxu0 %v13397_v34  ;;  %8371 = vmatprep.subr.bf16.mxu1 %v13398_v36  ;;  %v13407_v34 = vld [vmem:[#allocation50_spill] sm:$0xff]  ;;  %v13408_v36 = vld [vmem:[#allocation51_spill] sm:$0xff] }
 0x51e   :  { %v2825_v14 = vmul.f32 %v2823_v19, %v13407_v34  ;;  %v2826_v60 = vmul.f32 %v2823_v19, %v13408_v36  ;;  %v2827_v36 = vmul.f32 %v2823_v19, %v12996_v17 }
 0x520   :  { %8341 = vmatpush1.bf16.msra.mxu0 %v13399_v6  ;;  %8373 = vmatpush1.bf16.msra.mxu1 %v13400_v61  ;;  %v13409_v6 = vld [vmem:[#allocation53_spill] sm:$0xff] }
 0x521   :  { %8343 = vmatprep.subr.bf16.mxu0 %v13401_v28  ;;  %8375 = vmatprep.subr.bf16.mxu1 %v13402_v22  ;;  %v2829_v25 = vadd.f32 %v2825_v14, %v13409_v6  ;;  %v2830_v28 = vadd.f32 %v2826_v60, %v13272_v49  ;;  %v2831_v14 = vadd.f32 %v2827_v36, %v12997_v31  ;;  %v13412_v36 = vld [vmem:[#allocation74_spill] sm:$0xff] }
 0x524   :  { %8345 = vmatpush1.bf16.msra.mxu0 %v13403_v42  ;;  %8377 = vmatpush1.bf16.msra.mxu1 %v13404_v10  ;;  %v2828_v10 = vmul.f32 %v2823_v19, %v13273_v40 }
 0x525   :  { %8379 = vmatprep.subr.bf16.mxu0 %v13405_v30  ;;  %8411 = vmatprep.subr.bf16.mxu1 %v13406_v53 }
 0x526   :  { %v2832_v34 = vadd.f32 %v2828_v10, %v10650_v45 }
 0x55a   :  { %v2899_v61 = vpop.f32.mrb[18].mxu0  ;;  %v2970_v56 = vpop.f32.mrb[18].mxu1 }
 0x55b   :  { %v2975_v22 = vadd.f32 %v2899_v61, %v2829_v25  ;;  %v2901_v47 = vpop.f32.mrb[19].mxu0  ;;  %v2972_v42 = vpop.f32.mrb[19].mxu1  ;;  %v2977_v52 = vadd.f32 %v2970_v56, %v2831_v14 }
 0x55c   :  { %v2976_v12 = vadd.f32 %v2901_v47, %v2830_v28  ;;  %v2978_v53 = vadd.f32 %v2972_v42, %v2832_v34  ;;  %v13413_v42 = vld [vmem:[#allocation75_spill] sm:$0xff] }
 0x55d   :  { %v7048_v30 = vmul.f32 -1.442695, %v2975_v22 }
 0x55e   :  { %v7049_v27 = vmul.f32 -1.442695, %v2976_v12  ;;  %v7050_v6 = vmul.f32 -1.442695, %v2978_v53 }
 0x55f   :  { %9941 = vpow2.f32 %v7048_v30 }
 0x560   :  { %9943 = vpow2.f32 %v7049_v27 }
 0x561   :  { %9945 = vpow2.f32 %v7050_v6 }
 0x562   :  { %9947 = vtanh.f32 %v2977_v52  ;;  %v13410_v52 = vld [vmem:[#allocation72_spill] sm:$0xff] }
 0x569   :  { %v9942_v60 = vpop.eup %9941 }
 0x56a   :  { %v9944_v25 = vpop.eup %9943  ;;  %v2982_v61 = vadd.f32 1.0, %v9942_v60 }
 0x56b   :  { %v2988_v47 = vadd.f32 1.0, %v9944_v25  ;;  %v9946_v12 = vpop.eup %9945  ;;  %v13414_v25 = vld [vmem:[#allocation76_spill] sm:$0xff] }
 0x56c   :  { %9949 = vrcp.f32 %v2982_v61  ;;  %v9948_v28 = vpop.eup %9947  ;;  %v2995_v30 = vadd.f32 1.0, %v9946_v12  ;;  %v13415_v61 = vld [vmem:[#allocation77_spill] sm:$0xff] }
 0x56d   :  { %9951 = vrcp.f32 %v2988_v47  ;;  %v13416_v47 = vld [vmem:[#allocation59_spill] sm:$0xff] }
 0x56e   :  { %9953 = vrcp.f32 %v2995_v30 }
 0x576   :  { %v9950_v27 = vpop.eup %9949 }
 0x577   :  { %v9952_v22 = vpop.eup %9951  ;;  %v2999_v10 = vmul.f32 %v9950_v27, %v9948_v28 }
 0x578   :  { %v2998_v19 = vmul.f32 %v9952_v22, %v11471_v46  ;;  %v9954_v56 = vpop.eup %9953  ;;  %v13411_v46 = vld [vmem:[#allocation73_spill] sm:$0xff]  ;;  %v13417_v22 = vld [vmem:[#allocation78_spill] sm:$0xff] }
 0x57a   :  { %v11669_v34 = vadd.f32 %v2999_v10, %v2998_v19  ;;  %v13418_v10 = vld [vmem:[#allocation79_spill] sm:$0xff] }
 0x57c   :  { %9955 = vtanh.f32 %v11669_v34 }
 0x586   :  { %v9956_v53 = vpop.eup %9955 }
 0x587   :  { %v3002_v6 = vmul.f32 %v9956_v53, %v9954_v56  ;;  %v13419_v53 = vld [vmem:[#allocation80_spill] sm:$0xff] }
 0x589   :  { %3707 = vmatmul.mubr.f32.vlgmr.msra.gmra.mrb[24].mxu0 %v3002_v6  ;;  %3778 = vmatmul.mubr.f32.vlgmr.msra.gmra.mrb[24].mxu1 %v3002_v6 }
 0x58a   :  { %8381 = vmatpush1.bf16.msra.mxu0 %v13133_v55  ;;  %8413 = vmatpush1.bf16.msra.mxu1 %v13134_v32 }
 0x58b   :  { %8383 = vmatprep.subr.bf16.mxu0 %v13135_v62  ;;  %8415 = vmatprep.subr.bf16.mxu1 %v13136_v0 }
 0x58c   :  { %3876 = vmatprep.mubr.f32.mxu0 %v12941_v44  ;;  %3947 = vmatprep.mubr.f32.mxu1 %v12941_v44 }
 0x58e   :  { %8385 = vmatpush1.bf16.msra.mxu0 %v13137_v50  ;;  %8417 = vmatpush1.bf16.msra.mxu1 %v13138_v7 }
 0x58f   :  { %8387 = vmatprep.subr.bf16.mxu0 %v13274_v11  ;;  %8419 = vmatprep.subr.bf16.mxu1 %v13275_v35 }
 0x592   :  { %8389 = vmatpush1.bf16.msra.mxu0 %v13276_v4  ;;  %8421 = vmatpush1.bf16.msra.mxu1 %v13277_v59 }
 0x593   :  { %8391 = vmatprep.subr.bf16.mxu0 %v13278_v41  ;;  %8423 = vmatprep.subr.bf16.mxu1 %v13279_v37 }
 0x596   :  { %8393 = vmatpush1.bf16.msra.mxu0 %v13410_v52  ;;  %8425 = vmatpush1.bf16.msra.mxu1 %v13411_v46 }
 0x597   :  { %8395 = vmatprep.subr.bf16.mxu0 %v13412_v36  ;;  %8427 = vmatprep.subr.bf16.mxu1 %v13413_v42  ;;  %v13420_v42 = vld [vmem:[#allocation81_spill] sm:$0xff] }
 0x59a   :  { %v3211_v14 = vpop.f32.mrb[20].mxu0  ;;  %v3282_v60 = vpop.f32.mrb[20].mxu1  ;;  %8397 = vmatpush1.bf16.msra.mxu0 %v13414_v25  ;;  %8429 = vmatpush1.bf16.msra.mxu1 %v13415_v61  ;;  %v13421_v25 = vld [vmem:[#allocation82_spill] sm:$0xff]  ;;  %v13423_v61 = vld [vmem:[#allocation84_spill] sm:$0xff] }
 0x59b   :  { %v9678_v12 = vadd.f32 %v3211_v14, %v13416_v47  ;;  %v3213_v28 = vpop.f32.mrb[21].mxu0  ;;  %v3284_v27 = vpop.f32.mrb[21].mxu1  ;;  %8399 = vmatprep.subr.bf16.mxu0 %v13417_v22  ;;  %8431 = vmatprep.subr.bf16.mxu1 %v13418_v10  ;;  %v13422_v14 = vld [vmem:[#allocation123_spill] sm:$0xff]  ;;  %v13424_v22 = vld [vmem:[#allocation85_spill] sm:$0xff]  ;;  %v13425_v10 = vld [vmem:[#allocation86_spill] sm:$0xff] }
 0x59c   :  { %v9679_v30 = vadd.f32 %v3213_v28, %v10947_v63  ;;  %v9681_v47 = vadd.f32 %v3284_v27, %v13422_v14 }
 0x59d   :  { %v7051_v19 = vmul.f32 -1.442695, %v9678_v12  ;;  %v13426_v12 = vld [vmem:[#allocation87_spill] sm:$0xff] }
 0x59e   :  { %v7052_v56 = vmul.f32 -1.442695, %v9679_v30  ;;  %8401 = vmatpush1.bf16.msra.mxu0 %v13419_v53  ;;  %8433 = vmatpush1.bf16.msra.mxu1 %v13420_v42  ;;  %v7053_v28 = vmul.f32 -1.442695, %v9681_v47  ;;  %v13427_v30 = vld [vmem:[#allocation88_spill] sm:$0xff]  ;;  %v13428_v42 = vld [vmem:[#allocation89_spill] sm:$0xff] }
 0x59f   :  { %9957 = vpow2.f32 %v7051_v19  ;;  %8403 = vmatprep.subr.bf16.mxu0 %v13421_v25  ;;  %8435 = vmatprep.subr.bf16.mxu1 %v13028_v51  ;;  %v13429_v19 = vld [vmem:[#allocation83_spill] sm:$0xff]  ;;  %v13430_v53 = vld [vmem:[#allocation90_spill] sm:$0xff] }
 0x5a0   :  { %9959 = vpow2.f32 %v7052_v56  ;;  %v9680_v25 = vadd.f32 %v3282_v60, %v13429_v19  ;;  %v13431_v56 = vld [vmem:[#allocation91_spill] sm:$0xff]  ;;  %v13437_v60 = vld [vmem:[#allocation97_spill] sm:$0xff]  ;;  %v13451_v19 = vld [vmem:[#allocation110_spill] sm:$0xff] }
 0x5a1   :  { %9961 = vpow2.f32 %v7053_v28  ;;  %v13438_v28 = vld [vmem:[#allocation98_spill] sm:$0xff] }
 0x5a2   :  { %8405 = vmatpush1.bf16.msra.mxu0 %v13423_v61  ;;  %8437 = vmatpush1.bf16.msra.mxu1 %v13424_v22  ;;  %9963 = vtanh.f32 %v9680_v25  ;;  %v13440_v25 = vld [vmem:[#allocation100_spill] sm:$0xff] }
 0x5a3   :  { %8407 = vmatprep.subr.bf16.mxu0 %v13425_v10  ;;  %8439 = vmatprep.subr.bf16.mxu1 %v13426_v12  ;;  %v13432_v10 = vld [vmem:[#allocation92_spill] sm:$0xff]  ;;  %v13433_v12 = vld [vmem:[#allocation93_spill] sm:$0xff] }
 0x5a6   :  { %8409 = vmatpush1.bf16.msra.mxu0 %v13427_v30  ;;  %8441 = vmatpush1.bf16.msra.mxu1 %v13428_v42  ;;  %v13434_v30 = vld [vmem:[#allocation94_spill] sm:$0xff]  ;;  %v13435_v42 = vld [vmem:[#allocation95_spill] sm:$0xff] }
 0x5a7   :  { %8443 = vmatprep.subr.bf16.mxu0 %v13430_v53  ;;  %8475 = vmatprep.subr.bf16.mxu1 %v13431_v56  ;;  %v13445_v56 = vld [vmem:[#allocation106_spill] sm:$0xff] }
 0x5a9   :  { %v9958_v27 = vpop.eup %9957  ;;  %3877 = vmatmul.mubr.f32.vlgmr.msra.gmra.mrb[26].mxu0 %v3002_v6  ;;  %3948 = vmatmul.mubr.f32.vlgmr.msra.gmra.mrb[26].mxu1 %v3002_v6  ;;  %v13436_v6 = vld [vmem:[#allocation96_spill] sm:$0xff] }
 0x5aa   :  { %v9960_v61 = vpop.eup %9959  ;;  %v3294_v22 = vadd.f32 1.0, %v9958_v27  ;;  %8445 = vmatpush1.bf16.msra.mxu0 %v13432_v10  ;;  %8477 = vmatpush1.bf16.msra.mxu1 %v13433_v12  ;;  %v13439_v27 = vld [vmem:[#allocation99_spill] sm:$0xff] }
 0x5ab   :  { %v3300_v47 = vadd.f32 1.0, %v9960_v61  ;;  %8447 = vmatprep.subr.bf16.mxu0 %v13434_v30  ;;  %8479 = vmatprep.subr.bf16.mxu1 %v13435_v42  ;;  %v13441_v61 = vld [vmem:[#allocation101_spill] sm:$0xff]  ;;  %v13442_v30 = vld [vmem:[#allocation102_spill] sm:$0xff]  ;;  %v9962_v42 = vpop.eup %9961 }
 0x5ac   :  { %9965 = vrcp.f32 %v3294_v22  ;;  %4018 = vmatprep.mubr.f32.mxu0 %v12941_v44  ;;  %4089 = vmatprep.mubr.f32.mxu1 %v12941_v44  ;;  %v13443_v22 = vld [vmem:[#allocation103_spill] sm:$0xff]  ;;  %v9964_v12 = vpop.eup %9963 }
 0x5ad   :  { %9967 = vrcp.f32 %v3300_v47  ;;  %v13444_v47 = vld [vmem:[#allocation104_spill] sm:$0xff] }
 0x5ae   :  { %8449 = vmatpush1.bf16.msra.mxu0 %v13436_v6  ;;  %8481 = vmatpush1.bf16.msra.mxu1 %v13437_v60 }
 0x5af   :  { %8451 = vmatprep.subr.bf16.mxu0 %v13438_v28  ;;  %8483 = vmatprep.subr.bf16.mxu1 %v13439_v27  ;;  %v3307_v28 = vadd.f32 1.0, %v9962_v42  ;;  %v13446_v27 = vld [vmem:[#allocation107_spill] sm:$0xff]  ;;  %v13453_v42 = vld [vmem:[#allocation112_spill] sm:$0xff] }
 0x5b1   :  { %9969 = vrcp.f32 %v3307_v28  ;;  %v13460_v28 = vld [vmem:[#allocation119_spill] sm:$0xff] }
 0x5b2   :  { %8453 = vmatpush1.bf16.msra.mxu0 %v13440_v25  ;;  %8485 = vmatpush1.bf16.msra.mxu1 %v13441_v61  ;;  %v13447_v25 = vld [vmem:[#allocation65_spill] sm:$0xff] }
 0x5b3   :  { %8455 = vmatprep.subr.bf16.mxu0 %v13442_v30  ;;  %8487 = vmatprep.subr.bf16.mxu1 %v13443_v22  ;;  %v13449_v30 = vld [vmem:[#allocation108_spill] sm:$0xff]  ;;  %v13450_v22 = vld [vmem:[#allocation109_spill] sm:$0xff] }
 0x5b6   :  { %v9966_v10 = vpop.eup %9965  ;;  %8457 = vmatpush1.bf16.msra.mxu0 %v13444_v47  ;;  %8489 = vmatpush1.bf16.msra.mxu1 %v13312_v54  ;;  %v13452_v47 = vld [vmem:[#allocation111_spill] sm:$0xff] }
 0x5b7   :  { %v9968_v60 = vpop.eup %9967  ;;  %v3311_v6 = vmul.f32 %v9966_v10, %v9964_v12  ;;  %8459 = vmatprep.subr.bf16.mxu0 %v13445_v56  ;;  %8491 = vmatprep.subr.bf16.mxu1 %v13446_v27  ;;  %v13454_v10 = vld [vmem:[#allocation113_spill] sm:$0xff]  ;;  %v13455_v12 = vld [vmem:[#allocation114_spill] sm:$0xff] }
 0x5b8   :  { %v3310_v61 = vmul.f32 %v9968_v60, %v13447_v25  ;;  %v13456_v60 = vld [vmem:[#allocation115_spill] sm:$0xff]  ;;  %v13458_v25 = vld [vmem:[#allocation117_spill] sm:$0xff] }
 0x5ba   :  { %v11729_v53 = vadd.f32 %v3311_v6, %v3310_v61  ;;  %8461 = vmatpush1.bf16.msra.mxu0 %v13449_v30  ;;  %8493 = vmatpush1.bf16.msra.mxu1 %v13450_v22  ;;  %v13457_v6 = vld [vmem:[#allocation116_spill] sm:$0xff]  ;;  %v13459_v61 = vld [vmem:[#allocation118_spill] sm:$0xff]  ;;  %v13462_v30 = vld [vmem:[#allocation121_spill] sm:$0xff] }
 0x5bb   :  { %8463 = vmatprep.subr.bf16.mxu0 %v13451_v19  ;;  %8495 = vmatprep.subr.bf16.mxu1 %v13452_v47  ;;  %v9970_v19 = vpop.eup %9969  ;;  %v13461_v22 = vld [vmem:[#allocation120_spill] sm:$0xff] }
 0x5bc   :  { %13448 = vst [vmem:[#allocation124_spill] sm:$0xff] %v11729_v53  ;;  %9971 = vtanh.f32 %v11729_v53  ;;  %v13481_v53 = vld [vmem:[#allocation143_spill] sm:$0xff] }
 0x5be   :  { %8465 = vmatpush1.bf16.msra.mxu0 %v13453_v42  ;;  %8497 = vmatpush1.bf16.msra.mxu1 %v13454_v10  ;;  %v13463_v10 = vld [vmem:[#allocation125_spill] sm:$0xff] }
 0x5bf   :  { %8467 = vmatprep.subr.bf16.mxu0 %v13455_v12  ;;  %8499 = vmatprep.subr.bf16.mxu1 %v13456_v60  ;;  %v13464_v12 = vld [vmem:[#allocation126_spill] sm:$0xff]  ;;  %v13479_v60 = vld [vmem:[#allocation141_spill] sm:$0xff] }
 0x5c2   :  { %8469 = vmatpush1.bf16.msra.mxu0 %v13457_v6  ;;  %8501 = vmatpush1.bf16.msra.mxu1 %v13458_v25  ;;  %v13465_v6 = vld [vmem:[#allocation127_spill] sm:$0xff]  ;;  %v13466_v25 = vld [vmem:[#allocation128_spill] sm:$0xff] }
 0x5c3   :  { %8471 = vmatprep.subr.bf16.mxu0 %v13459_v61  ;;  %8503 = vmatprep.subr.bf16.mxu1 %v13460_v28  ;;  %v13467_v61 = vld [vmem:[#allocation129_spill] sm:$0xff]  ;;  %v13468_v28 = vld [vmem:[#allocation130_spill] sm:$0xff] }
 0x5c6   :  { %v9972_v47 = vpop.eup %9971  ;;  %8473 = vmatpush1.bf16.msra.mxu0 %v13461_v22  ;;  %8505 = vmatpush1.bf16.msra.mxu1 %v13462_v30  ;;  %v13469_v30 = vld [vmem:[#allocation131_spill] sm:$0xff]  ;;  %v13478_v22 = vld [vmem:[#allocation140_spill] sm:$0xff] }
 0x5c7   :  { %v3314_v42 = vmul.f32 %v9972_v47, %v9970_v19  ;;  %8507 = vmatprep.subr.bf16.mxu0 %v13463_v10  ;;  %8539 = vmatprep.subr.bf16.mxu1 %v13464_v12  ;;  %v13470_v19 = vld [vmem:[#allocation132_spill] sm:$0xff]  ;;  %v13471_v47 = vld [vmem:[#allocation133_spill] sm:$0xff]  ;;  %v13472_v12 = vld [vmem:[#allocation134_spill] sm:$0xff] }
 0x5c8   :  { %v13473_v10 = vld [vmem:[#allocation135_spill] sm:$0xff] }
 0x5c9   :  { %4019 = vmatmul.mubr.f32.vlgmr.msra.gmra.mrb[26].mxu0 %v3314_v42  ;;  %4090 = vmatmul.mubr.f32.vlgmr.msra.gmra.mrb[26].mxu1 %v3314_v42 }
 0x5ca   :  { %8509 = vmatpush1.bf16.msra.mxu0 %v13465_v6  ;;  %8541 = vmatpush1.bf16.msra.mxu1 %v13466_v25  ;;  %v13474_v6 = vld [vmem:[#allocation136_spill] sm:$0xff]  ;;  %v13475_v25 = vld [vmem:[#allocation137_spill] sm:$0xff] }
 0x5cb   :  { %8511 = vmatprep.subr.bf16.mxu0 %v13467_v61  ;;  %8543 = vmatprep.subr.bf16.mxu1 %v13468_v28  ;;  %v13476_v61 = vld [vmem:[#allocation138_spill] sm:$0xff]  ;;  %v13477_v28 = vld [vmem:[#allocation139_spill] sm:$0xff] }
 0x5cc   :  { %4188 = vmatprep.mubr.f32.mxu0 %v12941_v44  ;;  %4259 = vmatprep.mubr.f32.mxu1 %v12941_v44 }
 0x5ce   :  { %8513 = vmatpush1.bf16.msra.mxu0 %v13469_v30  ;;  %8545 = vmatpush1.bf16.msra.mxu1 %v13470_v19  ;;  %v13480_v30 = vld [vmem:[#allocation142_spill] sm:$0xff] }
 0x5cf   :  { %8515 = vmatprep.subr.bf16.mxu0 %v13471_v47  ;;  %8547 = vmatprep.subr.bf16.mxu1 %v13472_v12 }
 0x5d2   :  { %8517 = vmatpush1.bf16.msra.mxu0 %v13473_v10  ;;  %8549 = vmatpush1.bf16.msra.mxu1 %v13474_v6  ;;  %v13482_v10 = vld [vmem:[#allocation61_spill] sm:$0xff] }
 0x5d3   :  { %8519 = vmatprep.subr.bf16.mxu0 %v13475_v25  ;;  %8551 = vmatprep.subr.bf16.mxu1 %v13476_v61  ;;  %v13483_v61 = vld [vmem:[#allocation146_spill] sm:$0xff] }
 0x5d6   :  { %8521 = vmatpush1.bf16.msra.mxu0 %v13477_v28  ;;  %8553 = vmatpush1.bf16.msra.mxu1 %v13478_v22 }
 0x5d7   :  { %8523 = vmatprep.subr.bf16.mxu0 %v13479_v60  ;;  %8555 = vmatprep.subr.bf16.mxu1 %v13480_v30  ;;  %v13484_v30 = vld [vmem:[#allocation148_spill] sm:$0xff] }
 0x5da   :  { %v3523_v19 = vpop.f32.mrb[22].mxu0  ;;  %v3594_v47 = vpop.f32.mrb[22].mxu1  ;;  %8525 = vmatpush1.bf16.msra.mxu0 %v13481_v53  ;;  %8557 = vmatpush1.bf16.msra.mxu1 %v13350_v18  ;;  %v13485_v53 = vld [vmem:[#allocation149_spill] sm:$0xff] }
 0x5db   :  { %v9682_v6 = vadd.f32 %v3523_v19, %v13482_v10  ;;  %v3525_v12 = vpop.f32.mrb[23].mxu0  ;;  %v3596_v25 = vpop.f32.mrb[23].mxu1  ;;  %8527 = vmatprep.subr.bf16.mxu0 %v13351_v29  ;;  %8559 = vmatprep.subr.bf16.mxu1 %v13483_v61  ;;  %v13486_v10 = vld [vmem:[#allocation151_spill] sm:$0xff]  ;;  %v13487_v29 = vld [vmem:[#allocation152_spill] sm:$0xff]  ;;  %v13488_v61 = vld [vmem:[#allocation153_spill] sm:$0xff] }
 0x5dc   :  { %v9683_v22 = vadd.f32 %v3525_v12, %v11363_v3  ;;  %v9685_v19 = vadd.f32 %v3596_v25, %v11372_v26  ;;  %v13489_v12 = vld [vmem:[#allocation154_spill] sm:$0xff] }
 0x5dd   :  { %v7054_v28 = vmul.f32 -1.442695, %v9682_v6  ;;  %v13490_v6 = vld [vmem:[#allocation155_spill] sm:$0xff] }
 0x5de   :  { %v7055_v60 = vmul.f32 -1.442695, %v9683_v22  ;;  %8529 = vmatpush1.bf16.msra.mxu0 %v13353_v21  ;;  %8561 = vmatpush1.bf16.msra.mxu1 %v13484_v30  ;;  %v7056_v22 = vmul.f32 -1.442695, %v9685_v19  ;;  %v13491_v30 = vld [vmem:[#allocation156_spill] sm:$0xff] }
 0x5df   :  { %9973 = vpow2.f32 %v7054_v28  ;;  %8531 = vmatprep.subr.bf16.mxu0 %v13485_v53  ;;  %8563 = vmatprep.subr.bf16.mxu1 %v13223_v16  ;;  %v9684_v28 = vadd.f32 %v3594_v47, %v11382_v23  ;;  %v13497_v47 = vld [vmem:[#allocation165_spill] sm:$0xff] }
 0x5e0   :  { %9975 = vpow2.f32 %v7055_v60 }
 0x5e1   :  { %9977 = vpow2.f32 %v7056_v22  ;;  %v13498_v22 = vld [vmem:[#allocation167_spill] sm:$0xff] }
 0x5e2   :  { %8533 = vmatpush1.bf16.msra.mxu0 %v13486_v10  ;;  %8565 = vmatpush1.bf16.msra.mxu1 %v13487_v29  ;;  %9979 = vtanh.f32 %v9684_v28  ;;  %v13499_v28 = vld [vmem:[#allocation168_spill] sm:$0xff] }
 0x5e3   :  { %8535 = vmatprep.subr.bf16.mxu0 %v13488_v61  ;;  %8567 = vmatprep.subr.bf16.mxu1 %v13489_v12  ;;  %v13492_v61 = vld [vmem:[#allocation159_spill] sm:$0xff]  ;;  %v13493_v12 = vld [vmem:[#allocation160_spill] sm:$0xff] }
 0x5e6   :  { %8537 = vmatpush1.bf16.msra.mxu0 %v13490_v6  ;;  %8569 = vmatpush1.bf16.msra.mxu1 %v13491_v30  ;;  %v13494_v6 = vld [vmem:[#allocation161_spill] sm:$0xff]  ;;  %v13495_v30 = vld [vmem:[#allocation162_spill] sm:$0xff] }
 0x5e7   :  { %8571 = vmatprep.subr.bf16.mxu0 %v13361_v33  ;;  %8603 = vmatprep.subr.bf16.mxu1 %v13362_v15 }
 0x5e9   :  { %v9974_v60 = vpop.eup %9973  ;;  %4189 = vmatmul.mubr.f32.vlgmr.msra.gmra.mrb[28].mxu0 %v3314_v42  ;;  %4260 = vmatmul.mubr.f32.vlgmr.msra.gmra.mrb[28].mxu1 %v3314_v42  ;;  %v13496_v42 = vld [vmem:[#allocation164_spill] sm:$0xff] }
 0x5ea   :  { %v9976_v25 = vpop.eup %9975  ;;  %v3606_v29 = vadd.f32 1.0, %v9974_v60  ;;  %8573 = vmatpush1.bf16.msra.mxu0 %v13492_v61  ;;  %8605 = vmatpush1.bf16.msra.mxu1 %v13493_v12 }
 0x5eb   :  { %v3612_v19 = vadd.f32 1.0, %v9976_v25  ;;  %8575 = vmatprep.subr.bf16.mxu0 %v13494_v6  ;;  %8607 = vmatprep.subr.bf16.mxu1 %v13495_v30 }
 0x5ec   :  { %9981 = vrcp.f32 %v3606_v29  ;;  %4330 = vmatprep.mubr.f32.mxu0 %v12941_v44  ;;  %4401 = vmatprep.mubr.f32.mxu1 %v12941_v44  ;;  %v9978_v29 = vpop.eup %9977 }
 0x5ed   :  { %9983 = vrcp.f32 %v3612_v19  ;;  %v9980_v60 = vpop.eup %9979 }
 0x5ee   :  { %8577 = vmatpush1.bf16.msra.mxu0 %v13367_v20  ;;  %8609 = vmatpush1.bf16.msra.mxu1 %v13496_v42 }
 0x5ef   :  { %8579 = vmatprep.subr.bf16.mxu0 %v13497_v47  ;;  %8611 = vmatprep.subr.bf16.mxu1 %v13370_v8  ;;  %v3619_v47 = vadd.f32 1.0, %v9978_v29  ;;  %v13501_v29 = vld [vmem:[#allocation180_spill] sm:$0xff] }
 0x5f1   :  { %9985 = vrcp.f32 %v3619_v47  ;;  %v13507_v47 = vld [vmem:[#allocation186_spill] sm:$0xff] }
 0x5f2   :  { %8581 = vmatpush1.bf16.msra.mxu0 %v13498_v22  ;;  %8613 = vmatpush1.bf16.msra.mxu1 %v13499_v28 }
 0x5f3   :  { %8583 = vmatprep.subr.bf16.mxu0 %v13373_v24  ;;  %8615 = vmatprep.subr.bf16.mxu1 %v13374_v48 }
 0x5f6   :  { %v9982_v25 = vpop.eup %9981  ;;  %8585 = vmatpush1.bf16.msra.mxu0 %v13245_v43  ;;  %8617 = vmatpush1.bf16.msra.mxu1 %v13246_v2 }
 0x5f7   :  { %v9984_v19 = vpop.eup %9983  ;;  %v3623_v42 = vmul.f32 %v9982_v25, %v9980_v60  ;;  %8587 = vmatprep.subr.bf16.mxu0 %v13247_v57  ;;  %8619 = vmatprep.subr.bf16.mxu1 %v13248_v38  ;;  %v13502_v60 = vld [vmem:[#allocation181_spill] sm:$0xff] }
 0x5f8   :  { %v3622_v28 = vmul.f32 %v9984_v19, %v11607_v9  ;;  %v13503_v9 = vld [vmem:[#allocation182_spill] sm:$0xff]  ;;  %v13506_v25 = vld [vmem:[#allocation185_spill] sm:$0xff] }
 0x5fa   :  { %v11805_v22 = vadd.f32 %v3623_v42, %v3622_v28  ;;  %8589 = vmatpush1.bf16.msra.mxu0 %v13249_v39  ;;  %8621 = vmatpush1.bf16.msra.mxu1 %v13250_v1  ;;  %v13504_v42 = vld [vmem:[#allocation183_spill] sm:$0xff]  ;;  %v13505_v28 = vld [vmem:[#allocation184_spill] sm:$0xff] }
 0x5fb   :  { %8591 = vmatprep.subr.bf16.mxu0 %v11174_v5  ;;  %8623 = vmatprep.subr.bf16.mxu1 %v11176_v58  ;;  %v9986_v19 = vpop.eup %9985  ;;  %v13508_v5 = vld [vmem:[#allocation187_spill] sm:$0xff]  ;;  %v13509_v1 = vld [vmem:[#allocation188_spill] sm:$0xff] }
 0x5fc   :  { %13500 = vst [vmem:[#allocation48_spill] sm:$0xff] %v11805_v22  ;;  %9987 = vtanh.f32 %v11805_v22 }
 0x5fe   :  { %8593 = vmatpush1.bf16.msra.mxu0 %v11180_v13  ;;  %8625 = vmatpush1.bf16.msra.mxu1 %v13501_v29  ;;  %v13510_v29 = vld [vmem:[#allocation14_spill] sm:$0xff] }
 0x5ff   :  { %8595 = vmatprep.subr.bf16.mxu0 %v13502_v60  ;;  %8627 = vmatprep.subr.bf16.mxu1 %v13503_v9  ;;  %v13511_v60 = vld [vmem:[#allocation15_spill] sm:$0xff] }
 0x602   :  { %8597 = vmatpush1.bf16.msra.mxu0 %v13504_v42  ;;  %8629 = vmatpush1.bf16.msra.mxu1 %v13505_v28  ;;  %v13512_v42 = vld [vmem:[#allocation16_spill] sm:$0xff]  ;;  %v13513_v28 = vld [vmem:[#allocation17_spill] sm:$0xff] }
 0x603   :  { %8599 = vmatprep.subr.bf16.mxu0 %v13506_v25  ;;  %8631 = vmatprep.subr.bf16.mxu1 %v13507_v47  ;;  %v13514_v25 = vld [vmem:[#allocation18_spill] sm:$0xff]  ;;  %v13515_v47 = vld [vmem:[#allocation19_spill] sm:$0xff] }
 0x606   :  { %v9988_v58 = vpop.eup %9987  ;;  %8601 = vmatpush1.bf16.msra.mxu0 %v13508_v5  ;;  %8633 = vmatpush1.bf16.msra.mxu1 %v13509_v1  ;;  %v13516_v1 = vld [vmem:[#allocation20_spill] sm:$0xff]  ;;  %v13526_v5 = vld [vmem:[#allocation30_spill] sm:$0xff] }
 0x607   :  { %v3626_v13 = vmul.f32 %v9988_v58, %v9986_v19  ;;  %8635 = vmatprep.subr.bf16.mxu0 %v13510_v29  ;;  %8667 = vmatprep.subr.bf16.mxu1 %v13511_v60  ;;  %v13517_v58 = vld [vmem:[#allocation21_spill] sm:$0xff]  ;;  %v13518_v19 = vld [vmem:[#allocation22_spill] sm:$0xff]  ;;  %v13519_v60 = vld [vmem:[#allocation23_spill] sm:$0xff] }
 0x608   :  { %v13525_v29 = vld [vmem:[#allocation29_spill] sm:$0xff] }
 0x609   :  { %4331 = vmatmul.mubr.f32.vlgmr.msra.gmra.mrb[28].mxu0 %v3626_v13  ;;  %4402 = vmatmul.mubr.f32.vlgmr.msra.gmra.mrb[28].mxu1 %v3626_v13  ;;  %v13520_v13 = vld [vmem:[#allocation24_spill] sm:$0xff] }
 0x60a   :  { %8637 = vmatpush1.bf16.msra.mxu0 %v13512_v42  ;;  %8669 = vmatpush1.bf16.msra.mxu1 %v13513_v28  ;;  %v13521_v42 = vld [vmem:[#allocation25_spill] sm:$0xff]  ;;  %v13522_v28 = vld [vmem:[#allocation26_spill] sm:$0xff] }
 0x60b   :  { %8639 = vmatprep.subr.bf16.mxu0 %v13514_v25  ;;  %8671 = vmatprep.subr.bf16.mxu1 %v13515_v47  ;;  %v13523_v25 = vld [vmem:[#allocation27_spill] sm:$0xff]  ;;  %v13524_v47 = vld [vmem:[#allocation28_spill] sm:$0xff] }
 0x60c   :  { %4515 = vmatprep.mubr.f32.mxu0 %v12941_v44  ;;  %4586 = vmatprep.mubr.f32.mxu1 %v12941_v44 }
 0x60e   :  { %8641 = vmatpush1.bf16.msra.mxu0 %v13516_v1  ;;  %8673 = vmatpush1.bf16.msra.mxu1 %v13517_v58  ;;  %v13527_v1 = vld [vmem:[#allocation31_spill] sm:$0xff]  ;;  %v13528_v58 = vld [vmem:[#allocation32_spill] sm:$0xff] }
 0x60f   :  { %8643 = vmatprep.subr.bf16.mxu0 %v13518_v19  ;;  %8675 = vmatprep.subr.bf16.mxu1 %v13519_v60  ;;  %v13529_v19 = vld [vmem:[#allocation33_spill] sm:$0xff]  ;;  %v13530_v60 = vld [vmem:[#allocation34_spill] sm:$0xff] }
 0x612   :  { %8645 = vmatpush1.bf16.msra.mxu0 %v13520_v13  ;;  %8677 = vmatpush1.bf16.msra.mxu1 %v13521_v42  ;;  %v13531_v13 = vld [vmem:[#allocation35_spill] sm:$0xff]  ;;  %v13532_v42 = vld [vmem:[#allocation36_spill] sm:$0xff] }
 0x613   :  { %8647 = vmatprep.subr.bf16.mxu0 %v13522_v28  ;;  %8679 = vmatprep.subr.bf16.mxu1 %v13523_v25  ;;  %v13533_v28 = vld [vmem:[#allocation37_spill] sm:$0xff]  ;;  %v13534_v25 = vld [vmem:[#allocation38_spill] sm:$0xff] }
 0x616   :  { %8649 = vmatpush1.bf16.msra.mxu0 %v13524_v47  ;;  %8681 = vmatpush1.bf16.msra.mxu1 %v13525_v29  ;;  %v13535_v47 = vld [vmem:[#allocation39_spill] sm:$0xff]  ;;  %v13536_v29 = vld [vmem:[#allocation40_spill] sm:$0xff] }
 0x617   :  { %8651 = vmatprep.subr.bf16.mxu0 %v13526_v5  ;;  %8683 = vmatprep.subr.bf16.mxu1 %v13527_v1  ;;  %v13537_v5 = vld [vmem:[#allocation41_spill] sm:$0xff]  ;;  %v13538_v1 = vld [vmem:[#allocation42_spill] sm:$0xff] }
 0x61a   :  { %8653 = vmatpush1.bf16.msra.mxu0 %v13528_v58  ;;  %8685 = vmatpush1.bf16.msra.mxu1 %v13529_v19  ;;  %v13539_v58 = vld [vmem:[#allocation43_spill] sm:$0xff]  ;;  %v13540_v19 = vld [vmem:[#allocation44_spill] sm:$0xff] }
 0x61b   :  { %8655 = vmatprep.subr.bf16.mxu0 %v13530_v60  ;;  %8687 = vmatprep.subr.bf16.mxu1 %v13531_v13  ;;  %v13541_v60 = vld [vmem:[#allocation45_spill] sm:$0xff]  ;;  %v13542_v13 = vld [vmem:[#allocation46_spill] sm:$0xff] }
 0x61e   :  { %8657 = vmatpush1.bf16.msra.mxu0 %v13532_v42  ;;  %8689 = vmatpush1.bf16.msra.mxu1 %v13533_v28  ;;  %v13543_v42 = vld [vmem:[#allocation47_spill] sm:$0xff]  ;;  %v3632_v28 = vpop.permute.xlu1 %3631 }
 0x61f   :  { %8659 = vmatprep.subr.bf16.mxu0 %v13534_v25  ;;  %8691 = vmatprep.subr.bf16.mxu1 %v13535_v47  ;;  %v13544_v25 = vld [vmem:[#allocation50_spill] sm:$0xff]  ;;  %v13545_v47 = vld [vmem:[#allocation51_spill] sm:$0xff] }
 0x620   :  { %v3634_v9 = vmul.f32 %v3632_v28, %v13544_v25  ;;  %v3635_v39 = vmul.f32 %v3632_v28, %v13545_v47  ;;  %v3636_v47 = vmul.f32 %v3632_v28, %v12996_v17 }
 0x622   :  { %8661 = vmatpush1.bf16.msra.mxu0 %v13536_v29  ;;  %8693 = vmatpush1.bf16.msra.mxu1 %v13537_v5  ;;  %v13546_v29 = vld [vmem:[#allocation53_spill] sm:$0xff] }
 0x623   :  { %8663 = vmatprep.subr.bf16.mxu0 %v13538_v1  ;;  %8695 = vmatprep.subr.bf16.mxu1 %v13539_v58  ;;  %v3638_v22 = vadd.f32 %v3634_v9, %v13546_v29  ;;  %v3639_v1 = vadd.f32 %v3635_v39, %v13272_v49  ;;  %v3640_v9 = vadd.f32 %v3636_v47, %v12997_v31 }
 0x626   :  { %8665 = vmatpush1.bf16.msra.mxu0 %v13540_v19  ;;  %8697 = vmatpush1.bf16.msra.mxu1 %v13541_v60  ;;  %v3637_v60 = vmul.f32 %v3632_v28, %v13273_v40 }
 0x627   :  { %8699 = vmatprep.subr.bf16.mxu0 %v13542_v13  ;;  %8731 = vmatprep.subr.bf16.mxu1 %v13543_v42 }
 0x628   :  { %v3641_v25 = vadd.f32 %v3637_v60, %v10650_v45 }
 0x65c   :  { %v3708_v5 = vpop.f32.mrb[24].mxu0  ;;  %v3779_v38 = vpop.f32.mrb[24].mxu1 }
 0x65d   :  { %v3784_v58 = vadd.f32 %v3708_v5, %v3638_v22  ;;  %v3710_v57 = vpop.f32.mrb[25].mxu0  ;;  %v3781_v19 = vpop.f32.mrb[25].mxu1  ;;  %v3786_v48 = vadd.f32 %v3779_v38, %v3640_v9  ;;  %v13549_v9 = vld [vmem:[#allocation77_spill] sm:$0xff] }
 0x65e   :  { %v3785_v2 = vadd.f32 %v3710_v57, %v3639_v1  ;;  %v3787_v42 = vadd.f32 %v3781_v19, %v3641_v25  ;;  %v13548_v19 = vld [vmem:[#allocation76_spill] sm:$0xff] }
 0x65f   :  { %v7058_v13 = vmul.f32 -1.442695, %v3784_v58 }
 0x660   :  { %v7059_v43 = vmul.f32 -1.442695, %v3785_v2  ;;  %v7060_v29 = vmul.f32 -1.442695, %v3787_v42 }
 0x661   :  { %9989 = vpow2.f32 %v7058_v13 }
 0x662   :  { %9991 = vpow2.f32 %v7059_v43 }
 0x663   :  { %9993 = vpow2.f32 %v7060_v29 }
 0x664   :  { %9995 = vtanh.f32 %v3786_v48  ;;  %v13547_v48 = vld [vmem:[#allocation75_spill] sm:$0xff] }
 0x66b   :  { %v9990_v39 = vpop.eup %9989 }
 0x66c   :  { %v9992_v5 = vpop.eup %9991  ;;  %v3791_v22 = vadd.f32 1.0, %v9990_v39  ;;  %v13550_v39 = vld [vmem:[#allocation59_spill] sm:$0xff] }
 0x66d   :  { %v3797_v57 = vadd.f32 1.0, %v9992_v5  ;;  %v9994_v2 = vpop.eup %9993 }
 0x66e   :  { %9997 = vrcp.f32 %v3791_v22  ;;  %v9996_v1 = vpop.eup %9995  ;;  %v3804_v13 = vadd.f32 1.0, %v9994_v2  ;;  %v13551_v2 = vld [vmem:[#allocation78_spill] sm:$0xff] }
 0x66f   :  { %9999 = vrcp.f32 %v3797_v57 }
 0x670   :  { %10001 = vrcp.f32 %v3804_v13  ;;  %v13553_v13 = vld [vmem:[#allocation80_spill] sm:$0xff] }
 0x678   :  { %v9998_v43 = vpop.eup %9997 }
 0x679   :  { %v10000_v58 = vpop.eup %9999  ;;  %v3808_v60 = vmul.f32 %v9998_v43, %v9996_v1  ;;  %v13552_v1 = vld [vmem:[#allocation79_spill] sm:$0xff] }
 0x67a   :  { %v3807_v28 = vmul.f32 %v10000_v58, %v11669_v34  ;;  %v10002_v38 = vpop.eup %10001 }
 0x67c   :  { %v11867_v25 = vadd.f32 %v3808_v60, %v3807_v28  ;;  %v13554_v28 = vld [vmem:[#allocation81_spill] sm:$0xff] }
 0x67e   :  { %10003 = vtanh.f32 %v11867_v25 }
 0x688   :  { %v10004_v42 = vpop.eup %10003 }
 0x689   :  { %v3811_v29 = vmul.f32 %v10004_v42, %v10002_v38  ;;  %v13555_v38 = vld [vmem:[#allocation82_spill] sm:$0xff] }
 0x68b   :  { %4516 = vmatmul.mubr.f32.vlgmr.msra.gmra.mrb[30].mxu0 %v3811_v29  ;;  %4587 = vmatmul.mubr.f32.vlgmr.msra.gmra.mrb[30].mxu1 %v3811_v29 }
 0x68c   :  { %8701 = vmatpush1.bf16.msra.mxu0 %v13133_v55  ;;  %8733 = vmatpush1.bf16.msra.mxu1 %v13134_v32 }
 0x68d   :  { %8703 = vmatprep.subr.bf16.mxu0 %v13135_v62  ;;  %8735 = vmatprep.subr.bf16.mxu1 %v13136_v0 }
 0x68e   :  { %4685 = vmatprep.mubr.f32.mxu0 %v12941_v44  ;;  %4756 = vmatprep.mubr.f32.mxu1 %v12941_v44 }
 0x690   :  { %8705 = vmatpush1.bf16.msra.mxu0 %v13137_v50  ;;  %8737 = vmatpush1.bf16.msra.mxu1 %v13138_v7 }
 0x691   :  { %8707 = vmatprep.subr.bf16.mxu0 %v13274_v11  ;;  %8739 = vmatprep.subr.bf16.mxu1 %v13275_v35 }
 0x694   :  { %8709 = vmatpush1.bf16.msra.mxu0 %v13276_v4  ;;  %8741 = vmatpush1.bf16.msra.mxu1 %v13277_v59 }
 0x695   :  { %8711 = vmatprep.subr.bf16.mxu0 %v13278_v41  ;;  %8743 = vmatprep.subr.bf16.mxu1 %v13279_v37 }
 0x698   :  { %8713 = vmatpush1.bf16.msra.mxu0 %v13410_v52  ;;  %8745 = vmatpush1.bf16.msra.mxu1 %v13411_v46 }
 0x699   :  { %8715 = vmatprep.subr.bf16.mxu0 %v13412_v36  ;;  %8747 = vmatprep.subr.bf16.mxu1 %v13547_v48 }
 0x69c   :  { %v4020_v34 = vpop.f32.mrb[26].mxu0  ;;  %v4091_v47 = vpop.f32.mrb[26].mxu1  ;;  %8717 = vmatpush1.bf16.msra.mxu0 %v13548_v19  ;;  %8749 = vmatpush1.bf16.msra.mxu1 %v13549_v9 }
 0x69d   :  { %v9686_v5 = vadd.f32 %v4020_v34, %v13550_v39  ;;  %v4022_v22 = vpop.f32.mrb[27].mxu0  ;;  %v4093_v57 = vpop.f32.mrb[27].mxu1  ;;  %8719 = vmatprep.subr.bf16.mxu0 %v13551_v2  ;;  %8751 = vmatprep.subr.bf16.mxu1 %v13552_v1  ;;  %v13556_v34 = vld [vmem:[#allocation84_spill] sm:$0xff]  ;;  %v13557_v2 = vld [vmem:[#allocation85_spill] sm:$0xff]  ;;  %v13558_v1 = vld [vmem:[#allocation86_spill] sm:$0xff] }
 0x69e   :  { %v9687_v43 = vadd.f32 %v4022_v22, %v10947_v63  ;;  %v9689_v42 = vadd.f32 %v4093_v57, %v13422_v14 }
 0x69f   :  { %v7061_v58 = vmul.f32 -1.442695, %v9686_v5  ;;  %v13559_v5 = vld [vmem:[#allocation87_spill] sm:$0xff] }
 0x6a0   :  { %v7062_v60 = vmul.f32 -1.442695, %v9687_v43  ;;  %8721 = vmatpush1.bf16.msra.mxu0 %v13553_v13  ;;  %8753 = vmatpush1.bf16.msra.mxu1 %v13554_v28  ;;  %v7063_v22 = vmul.f32 -1.442695, %v9689_v42  ;;  %v13560_v43 = vld [vmem:[#allocation88_spill] sm:$0xff]  ;;  %v13561_v28 = vld [vmem:[#allocation89_spill] sm:$0xff] }
 0x6a1   :  { %10005 = vpow2.f32 %v7061_v58  ;;  %8723 = vmatprep.subr.bf16.mxu0 %v13555_v38  ;;  %8755 = vmatprep.subr.bf16.mxu1 %v13028_v51  ;;  %v13562_v58 = vld [vmem:[#allocation83_spill] sm:$0xff]  ;;  %v13563_v13 = vld [vmem:[#allocation90_spill] sm:$0xff] }
 0x6a2   :  { %10007 = vpow2.f32 %v7062_v60  ;;  %v9688_v38 = vadd.f32 %v4091_v47, %v13562_v58  ;;  %v13564_v60 = vld [vmem:[#allocation91_spill] sm:$0xff]  ;;  %v13570_v47 = vld [vmem:[#allocation97_spill] sm:$0xff] }
 0x6a3   :  { %10009 = vpow2.f32 %v7063_v22  ;;  %v13571_v22 = vld [vmem:[#allocation98_spill] sm:$0xff] }
 0x6a4   :  { %8725 = vmatpush1.bf16.msra.mxu0 %v13556_v34  ;;  %8757 = vmatpush1.bf16.msra.mxu1 %v13557_v2  ;;  %10011 = vtanh.f32 %v9688_v38  ;;  %v13573_v38 = vld [vmem:[#allocation100_spill] sm:$0xff] }
 0x6a5   :  { %8727 = vmatprep.subr.bf16.mxu0 %v13558_v1  ;;  %8759 = vmatprep.subr.bf16.mxu1 %v13559_v5  ;;  %v13565_v1 = vld [vmem:[#allocation92_spill] sm:$0xff]  ;;  %v13566_v5 = vld [vmem:[#allocation93_spill] sm:$0xff] }
 0x6a8   :  { %8729 = vmatpush1.bf16.msra.mxu0 %v13560_v43  ;;  %8761 = vmatpush1.bf16.msra.mxu1 %v13561_v28  ;;  %v13567_v43 = vld [vmem:[#allocation94_spill] sm:$0xff]  ;;  %v13568_v28 = vld [vmem:[#allocation95_spill] sm:$0xff] }
 0x6a9   :  { %8763 = vmatprep.subr.bf16.mxu0 %v13563_v13  ;;  %8795 = vmatprep.subr.bf16.mxu1 %v13564_v60  ;;  %v13582_v60 = vld [vmem:[#allocation110_spill] sm:$0xff] }
 0x6ab   :  { %v10006_v57 = vpop.eup %10005  ;;  %4686 = vmatmul.mubr.f32.vlgmr.msra.gmra.mrb[32].mxu0 %v3811_v29  ;;  %4757 = vmatmul.mubr.f32.vlgmr.msra.gmra.mrb[32].mxu1 %v3811_v29  ;;  %v13569_v29 = vld [vmem:[#allocation96_spill] sm:$0xff] }
 0x6ac   :  { %v10008_v34 = vpop.eup %10007  ;;  %v4103_v2 = vadd.f32 1.0, %v10006_v57  ;;  %8765 = vmatpush1.bf16.msra.mxu0 %v13565_v1  ;;  %8797 = vmatpush1.bf16.msra.mxu1 %v13566_v5  ;;  %v13572_v57 = vld [vmem:[#allocation99_spill] sm:$0xff] }
 0x6ad   :  { %v4109_v42 = vadd.f32 1.0, %v10008_v34  ;;  %8767 = vmatprep.subr.bf16.mxu0 %v13567_v43  ;;  %8799 = vmatprep.subr.bf16.mxu1 %v13568_v28  ;;  %v13574_v34 = vld [vmem:[#allocation101_spill] sm:$0xff]  ;;  %v13575_v43 = vld [vmem:[#allocation102_spill] sm:$0xff]  ;;  %v10010_v28 = vpop.eup %10009 }
 0x6ae   :  { %10013 = vrcp.f32 %v4103_v2  ;;  %4827 = vmatprep.mubr.f32.mxu0 %v12941_v44  ;;  %4898 = vmatprep.mubr.f32.mxu1 %v12941_v44  ;;  %v13576_v2 = vld [vmem:[#allocation103_spill] sm:$0xff]  ;;  %v10012_v5 = vpop.eup %10011 }
 0x6af   :  { %10015 = vrcp.f32 %v4109_v42  ;;  %v13577_v42 = vld [vmem:[#allocation104_spill] sm:$0xff] }
 0x6b0   :  { %8769 = vmatpush1.bf16.msra.mxu0 %v13569_v29  ;;  %8801 = vmatpush1.bf16.msra.mxu1 %v13570_v47 }
 0x6b1   :  { %8771 = vmatprep.subr.bf16.mxu0 %v13571_v22  ;;  %8803 = vmatprep.subr.bf16.mxu1 %v13572_v57  ;;  %v4116_v22 = vadd.f32 1.0, %v10010_v28  ;;  %v13585_v28 = vld [vmem:[#allocation113_spill] sm:$0xff] }
 0x6b3   :  { %10017 = vrcp.f32 %v4116_v22  ;;  %v13591_v22 = vld [vmem:[#allocation119_spill] sm:$0xff] }
 0x6b4   :  { %8773 = vmatpush1.bf16.msra.mxu0 %v13573_v38  ;;  %8805 = vmatpush1.bf16.msra.mxu1 %v13574_v34  ;;  %v13578_v38 = vld [vmem:[#allocation124_spill] sm:$0xff] }
 0x6b5   :  { %8775 = vmatprep.subr.bf16.mxu0 %v13575_v43  ;;  %8807 = vmatprep.subr.bf16.mxu1 %v13576_v2  ;;  %v13580_v43 = vld [vmem:[#allocation108_spill] sm:$0xff]  ;;  %v13581_v2 = vld [vmem:[#allocation109_spill] sm:$0xff] }
 0x6b8   :  { %v10014_v1 = vpop.eup %10013  ;;  %8777 = vmatpush1.bf16.msra.mxu0 %v13577_v42  ;;  %8809 = vmatpush1.bf16.msra.mxu1 %v13312_v54  ;;  %v13583_v42 = vld [vmem:[#allocation111_spill] sm:$0xff] }
 0x6b9   :  { %v10016_v47 = vpop.eup %10015  ;;  %v4120_v29 = vmul.f32 %v10014_v1, %v10012_v5  ;;  %8779 = vmatprep.subr.bf16.mxu0 %v13445_v56  ;;  %8811 = vmatprep.subr.bf16.mxu1 %v13446_v27  ;;  %v13584_v1 = vld [vmem:[#allocation112_spill] sm:$0xff]  ;;  %v13586_v5 = vld [vmem:[#allocation114_spill] sm:$0xff]  ;;  %v13614_v27 = vld [vmem:[#allocation145_spill] sm:$0xff] }
 0x6ba   :  { %v4119_v34 = vmul.f32 %v10016_v47, %v13578_v38  ;;  %v13587_v47 = vld [vmem:[#allocation115_spill] sm:$0xff]  ;;  %v13589_v38 = vld [vmem:[#allocation117_spill] sm:$0xff] }
 0x6bc   :  { %v11927_v57 = vadd.f32 %v4120_v29, %v4119_v34  ;;  %8781 = vmatpush1.bf16.msra.mxu0 %v13580_v43  ;;  %8813 = vmatpush1.bf16.msra.mxu1 %v13581_v2  ;;  %v13588_v29 = vld [vmem:[#allocation116_spill] sm:$0xff]  ;;  %v13590_v34 = vld [vmem:[#allocation118_spill] sm:$0xff]  ;;  %v13593_v43 = vld [vmem:[#allocation121_spill] sm:$0xff] }
 0x6bd   :  { %8783 = vmatprep.subr.bf16.mxu0 %v13582_v60  ;;  %8815 = vmatprep.subr.bf16.mxu1 %v13583_v42  ;;  %v10018_v60 = vpop.eup %10017  ;;  %v13592_v2 = vld [vmem:[#allocation120_spill] sm:$0xff] }
 0x6be   :  { %13579 = vst [vmem:[#allocation49_spill] sm:$0xff] %v11927_v57  ;;  %10019 = vtanh.f32 %v11927_v57  ;;  %v13612_v57 = vld [vmem:[#allocation143_spill] sm:$0xff] }
 0x6c0   :  { %8785 = vmatpush1.bf16.msra.mxu0 %v13584_v1  ;;  %8817 = vmatpush1.bf16.msra.mxu1 %v13585_v28  ;;  %v13594_v28 = vld [vmem:[#allocation125_spill] sm:$0xff] }
 0x6c1   :  { %8787 = vmatprep.subr.bf16.mxu0 %v13586_v5  ;;  %8819 = vmatprep.subr.bf16.mxu1 %v13587_v47  ;;  %v13595_v5 = vld [vmem:[#allocation126_spill] sm:$0xff]  ;;  %v13610_v47 = vld [vmem:[#allocation141_spill] sm:$0xff] }
 0x6c4   :  { %8789 = vmatpush1.bf16.msra.mxu0 %v13588_v29  ;;  %8821 = vmatpush1.bf16.msra.mxu1 %v13589_v38  ;;  %v13596_v29 = vld [vmem:[#allocation127_spill] sm:$0xff]  ;;  %v13597_v38 = vld [vmem:[#allocation128_spill] sm:$0xff] }
 0x6c5   :  { %8791 = vmatprep.subr.bf16.mxu0 %v13590_v34  ;;  %8823 = vmatprep.subr.bf16.mxu1 %v13591_v22  ;;  %v13598_v34 = vld [vmem:[#allocation129_spill] sm:$0xff]  ;;  %v13599_v22 = vld [vmem:[#allocation130_spill] sm:$0xff] }
 0x6c8   :  { %v10020_v42 = vpop.eup %10019  ;;  %8793 = vmatpush1.bf16.msra.mxu0 %v13592_v2  ;;  %8825 = vmatpush1.bf16.msra.mxu1 %v13593_v43  ;;  %v13600_v43 = vld [vmem:[#allocation131_spill] sm:$0xff]  ;;  %v13609_v2 = vld [vmem:[#allocation140_spill] sm:$0xff] }
 0x6c9   :  { %v4123_v1 = vmul.f32 %v10020_v42, %v10018_v60  ;;  %8827 = vmatprep.subr.bf16.mxu0 %v13594_v28  ;;  %8859 = vmatprep.subr.bf16.mxu1 %v13595_v5  ;;  %v13601_v60 = vld [vmem:[#allocation132_spill] sm:$0xff]  ;;  %v13602_v42 = vld [vmem:[#allocation133_spill] sm:$0xff]  ;;  %v13603_v5 = vld [vmem:[#allocation134_spill] sm:$0xff] }
 0x6ca   :  { %v13604_v28 = vld [vmem:[#allocation135_spill] sm:$0xff] }
 0x6cb   :  { %4828 = vmatmul.mubr.f32.vlgmr.msra.gmra.mrb[32].mxu0 %v4123_v1  ;;  %4899 = vmatmul.mubr.f32.vlgmr.msra.gmra.mrb[32].mxu1 %v4123_v1 }
 0x6cc   :  { %8829 = vmatpush1.bf16.msra.mxu0 %v13596_v29  ;;  %8861 = vmatpush1.bf16.msra.mxu1 %v13597_v38  ;;  %v13605_v29 = vld [vmem:[#allocation136_spill] sm:$0xff]  ;;  %v13606_v38 = vld [vmem:[#allocation137_spill] sm:$0xff] }
 0x6cd   :  { %8831 = vmatprep.subr.bf16.mxu0 %v13598_v34  ;;  %8863 = vmatprep.subr.bf16.mxu1 %v13599_v22  ;;  %v13607_v34 = vld [vmem:[#allocation138_spill] sm:$0xff]  ;;  %v13608_v22 = vld [vmem:[#allocation139_spill] sm:$0xff] }
 0x6ce   :  { %4997 = vmatprep.mubr.f32.mxu0 %v12941_v44  ;;  %5068 = vmatprep.mubr.f32.mxu1 %v12941_v44 }
 0x6d0   :  { %8833 = vmatpush1.bf16.msra.mxu0 %v13600_v43  ;;  %8865 = vmatpush1.bf16.msra.mxu1 %v13601_v60  ;;  %v13611_v43 = vld [vmem:[#allocation142_spill] sm:$0xff] }
 0x6d1   :  { %8835 = vmatprep.subr.bf16.mxu0 %v13602_v42  ;;  %8867 = vmatprep.subr.bf16.mxu1 %v13603_v5 }
 0x6d4   :  { %8837 = vmatpush1.bf16.msra.mxu0 %v13604_v28  ;;  %8869 = vmatpush1.bf16.msra.mxu1 %v13605_v29  ;;  %v13613_v28 = vld [vmem:[#allocation61_spill] sm:$0xff] }
 0x6d5   :  { %8839 = vmatprep.subr.bf16.mxu0 %v13606_v38  ;;  %8871 = vmatprep.subr.bf16.mxu1 %v13607_v34  ;;  %v13615_v34 = vld [vmem:[#allocation146_spill] sm:$0xff] }
 0x6d8   :  { %8841 = vmatpush1.bf16.msra.mxu0 %v13608_v22  ;;  %8873 = vmatpush1.bf16.msra.mxu1 %v13609_v2 }
 0x6d9   :  { %8843 = vmatprep.subr.bf16.mxu0 %v13610_v47  ;;  %8875 = vmatprep.subr.bf16.mxu1 %v13611_v43  ;;  %v13616_v43 = vld [vmem:[#allocation148_spill] sm:$0xff] }
 0x6dc   :  { %v4332_v60 = vpop.f32.mrb[28].mxu0  ;;  %v4403_v42 = vpop.f32.mrb[28].mxu1  ;;  %8845 = vmatpush1.bf16.msra.mxu0 %v13612_v57  ;;  %8877 = vmatpush1.bf16.msra.mxu1 %v13350_v18 }
 0x6dd   :  { %v9690_v29 = vadd.f32 %v4332_v60, %v13613_v28  ;;  %v4334_v5 = vpop.f32.mrb[29].mxu0  ;;  %v4405_v38 = vpop.f32.mrb[29].mxu1  ;;  %8847 = vmatprep.subr.bf16.mxu0 %v13614_v27  ;;  %8879 = vmatprep.subr.bf16.mxu1 %v13615_v34  ;;  %v13617_v27 = vld [vmem:[#allocation152_spill] sm:$0xff]  ;;  %v13618_v34 = vld [vmem:[#allocation153_spill] sm:$0xff] }
 0x6de   :  { %v9691_v2 = vadd.f32 %v4334_v5, %v11363_v3  ;;  %v9693_v60 = vadd.f32 %v4405_v38, %v11372_v26  ;;  %v13619_v5 = vld [vmem:[#allocation154_spill] sm:$0xff] }
 0x6df   :  { %v7064_v22 = vmul.f32 -1.442695, %v9690_v29  ;;  %v13620_v29 = vld [vmem:[#allocation155_spill] sm:$0xff] }
 0x6e0   :  { %v7065_v47 = vmul.f32 -1.442695, %v9691_v2  ;;  %8849 = vmatpush1.bf16.msra.mxu0 %v13353_v21  ;;  %8881 = vmatpush1.bf16.msra.mxu1 %v13616_v43  ;;  %v7066_v2 = vmul.f32 -1.442695, %v9693_v60  ;;  %v13621_v43 = vld [vmem:[#allocation156_spill] sm:$0xff] }
 0x6e1   :  { %10021 = vpow2.f32 %v7064_v22  ;;  %8851 = vmatprep.subr.bf16.mxu0 %v13485_v53  ;;  %8883 = vmatprep.subr.bf16.mxu1 %v13223_v16  ;;  %v9692_v22 = vadd.f32 %v4403_v42, %v11382_v23  ;;  %v13623_v42 = vld [vmem:[#allocation165_spill] sm:$0xff] }
 0x6e2   :  { %10023 = vpow2.f32 %v7065_v47 }
 0x6e3   :  { %10025 = vpow2.f32 %v7066_v2  ;;  %v13624_v2 = vld [vmem:[#allocation167_spill] sm:$0xff] }
 0x6e4   :  { %8853 = vmatpush1.bf16.msra.mxu0 %v13486_v10  ;;  %8885 = vmatpush1.bf16.msra.mxu1 %v13617_v27  ;;  %10027 = vtanh.f32 %v9692_v22  ;;  %v13625_v22 = vld [vmem:[#allocation168_spill] sm:$0xff] }
 0x6e5   :  { %8855 = vmatprep.subr.bf16.mxu0 %v13618_v34  ;;  %8887 = vmatprep.subr.bf16.mxu1 %v13619_v5 }
 0x6e8   :  { %8857 = vmatpush1.bf16.msra.mxu0 %v13620_v29  ;;  %8889 = vmatpush1.bf16.msra.mxu1 %v13621_v43 }
 0x6e9   :  { %8891 = vmatprep.subr.bf16.mxu0 %v13361_v33  ;;  %8923 = vmatprep.subr.bf16.mxu1 %v13362_v15  ;;  %v13635_v15 = vld [vmem:[#allocation177_spill] sm:$0xff] }
 0x6eb   :  { %v10022_v47 = vpop.eup %10021  ;;  %4998 = vmatmul.mubr.f32.vlgmr.msra.gmra.mrb[34].mxu0 %v4123_v1  ;;  %5069 = vmatmul.mubr.f32.vlgmr.msra.gmra.mrb[34].mxu1 %v4123_v1  ;;  %v13622_v1 = vld [vmem:[#allocation164_spill] sm:$0xff] }
 0x6ec   :  { %v10024_v38 = vpop.eup %10023  ;;  %v4415_v27 = vadd.f32 1.0, %v10022_v47  ;;  %8893 = vmatpush1.bf16.msra.mxu0 %v13492_v61  ;;  %8925 = vmatpush1.bf16.msra.mxu1 %v13493_v12  ;;  %v13629_v12 = vld [vmem:[#allocation173_spill] sm:$0xff] }
 0x6ed   :  { %v4421_v60 = vadd.f32 1.0, %v10024_v38  ;;  %8895 = vmatprep.subr.bf16.mxu0 %v13494_v6  ;;  %8927 = vmatprep.subr.bf16.mxu1 %v13495_v30  ;;  %v10026_v47 = vpop.eup %10025 }
 0x6ee   :  { %10029 = vrcp.f32 %v4415_v27  ;;  %5139 = vmatprep.mubr.f32.mxu0 %v12941_v44  ;;  %5210 = vmatprep.mubr.f32.mxu1 %v12941_v44  ;;  %v13626_v27 = vld [vmem:[#allocation170_spill] sm:$0xff]  ;;  %v10028_v38 = vpop.eup %10027 }
 0x6ef   :  { %10031 = vrcp.f32 %v4421_v60  ;;  %v13627_v60 = vld [vmem:[#allocation171_spill] sm:$0xff] }
 0x6f0   :  { %8897 = vmatpush1.bf16.msra.mxu0 %v13367_v20  ;;  %8929 = vmatpush1.bf16.msra.mxu1 %v13622_v1  ;;  %v13628_v20 = vld [vmem:[#allocation172_spill] sm:$0xff] }
 0x6f1   :  { %8899 = vmatprep.subr.bf16.mxu0 %v13623_v42  ;;  %8931 = vmatprep.subr.bf16.mxu1 %v13370_v8  ;;  %v4428_v42 = vadd.f32 1.0, %v10026_v47  ;;  %v13630_v8 = vld [vmem:[#allocation174_spill] sm:$0xff]  ;;  %v13638_v47 = vld [vmem:[#allocation180_spill] sm:$0xff] }
 0x6f3   :  { %10033 = vrcp.f32 %v4428_v42  ;;  %v13644_v42 = vld [vmem:[#allocation186_spill] sm:$0xff] }
 0x6f4   :  { %8901 = vmatpush1.bf16.msra.mxu0 %v13624_v2  ;;  %8933 = vmatpush1.bf16.msra.mxu1 %v13625_v22  ;;  %v13631_v2 = vld [vmem:[#allocation48_spill] sm:$0xff] }
 0x6f5   :  { %8903 = vmatprep.subr.bf16.mxu0 %v13373_v24  ;;  %8935 = vmatprep.subr.bf16.mxu1 %v13626_v27  ;;  %v13633_v24 = vld [vmem:[#allocation175_spill] sm:$0xff]  ;;  %v13634_v27 = vld [vmem:[#allocation176_spill] sm:$0xff] }
 0x6f8   :  { %v10030_v30 = vpop.eup %10029  ;;  %8905 = vmatpush1.bf16.msra.mxu0 %v13627_v60  ;;  %8937 = vmatpush1.bf16.msra.mxu1 %v13628_v20  ;;  %v13636_v60 = vld [vmem:[#allocation178_spill] sm:$0xff] }
 0x6f9   :  { %v10032_v1 = vpop.eup %10031  ;;  %v4432_v6 = vmul.f32 %v10030_v30, %v10028_v38  ;;  %8907 = vmatprep.subr.bf16.mxu0 %v13629_v12  ;;  %8939 = vmatprep.subr.bf16.mxu1 %v13630_v8  ;;  %v13637_v30 = vld [vmem:[#allocation179_spill] sm:$0xff]  ;;  %v13639_v38 = vld [vmem:[#allocation181_spill] sm:$0xff] }
 0x6fa   :  { %v4431_v22 = vmul.f32 %v10032_v1, %v13631_v2  ;;  %v13640_v1 = vld [vmem:[#allocation182_spill] sm:$0xff]  ;;  %v13642_v2 = vld [vmem:[#allocation184_spill] sm:$0xff] }
 0x6fc   :  { %v12003_v61 = vadd.f32 %v4432_v6, %v4431_v22  ;;  %8909 = vmatpush1.bf16.msra.mxu0 %v13633_v24  ;;  %8941 = vmatpush1.bf16.msra.mxu1 %v13634_v27  ;;  %v13641_v6 = vld [vmem:[#allocation183_spill] sm:$0xff]  ;;  %v13643_v22 = vld [vmem:[#allocation185_spill] sm:$0xff]  ;;  %v13646_v24 = vld [vmem:[#allocation188_spill] sm:$0xff] }
 0x6fd   :  { %8911 = vmatprep.subr.bf16.mxu0 %v13635_v15  ;;  %8943 = vmatprep.subr.bf16.mxu1 %v13636_v60  ;;  %v10034_v15 = vpop.eup %10033  ;;  %v13645_v27 = vld [vmem:[#allocation187_spill] sm:$0xff] }
 0x6fe   :  { %13632 = vst [vmem:[#allocation52_spill] sm:$0xff] %v12003_v61  ;;  %10035 = vtanh.f32 %v12003_v61 }
 0x700   :  { %8913 = vmatpush1.bf16.msra.mxu0 %v13637_v30  ;;  %8945 = vmatpush1.bf16.msra.mxu1 %v13638_v47  ;;  %v13647_v47 = vld [vmem:[#allocation14_spill] sm:$0xff] }
 0x701   :  { %8915 = vmatprep.subr.bf16.mxu0 %v13639_v38  ;;  %8947 = vmatprep.subr.bf16.mxu1 %v13640_v1  ;;  %v13648_v38 = vld [vmem:[#allocation15_spill] sm:$0xff] }
 0x704   :  { %8917 = vmatpush1.bf16.msra.mxu0 %v13641_v6  ;;  %8949 = vmatpush1.bf16.msra.mxu1 %v13642_v2  ;;  %v13649_v6 = vld [vmem:[#allocation16_spill] sm:$0xff]  ;;  %v13650_v2 = vld [vmem:[#allocation17_spill] sm:$0xff] }
 0x705   :  { %8919 = vmatprep.subr.bf16.mxu0 %v13643_v22  ;;  %8951 = vmatprep.subr.bf16.mxu1 %v13644_v42  ;;  %v13651_v22 = vld [vmem:[#allocation18_spill] sm:$0xff]  ;;  %v13652_v42 = vld [vmem:[#allocation19_spill] sm:$0xff] }
 0x708   :  { %v10036_v60 = vpop.eup %10035  ;;  %8921 = vmatpush1.bf16.msra.mxu0 %v13645_v27  ;;  %8953 = vmatpush1.bf16.msra.mxu1 %v13646_v24  ;;  %v13653_v24 = vld [vmem:[#allocation20_spill] sm:$0xff]  ;;  %v13663_v27 = vld [vmem:[#allocation30_spill] sm:$0xff] }
 0x709   :  { %v4435_v30 = vmul.f32 %v10036_v60, %v10034_v15  ;;  %8955 = vmatprep.subr.bf16.mxu0 %v13647_v47  ;;  %8987 = vmatprep.subr.bf16.mxu1 %v13648_v38  ;;  %v13654_v15 = vld [vmem:[#allocation21_spill] sm:$0xff]  ;;  %v13655_v60 = vld [vmem:[#allocation22_spill] sm:$0xff]  ;;  %v13656_v47 = vld [vmem:[#allocation23_spill] sm:$0xff] }
 0x70a   :  { %v13658_v38 = vld [vmem:[#allocation25_spill] sm:$0xff] }
 0x70b   :  { %5140 = vmatmul.mubr.f32.vlgmr.msra.gmra.mrb[34].mxu0 %v4435_v30  ;;  %5211 = vmatmul.mubr.f32.vlgmr.msra.gmra.mrb[34].mxu1 %v4435_v30  ;;  %v13657_v30 = vld [vmem:[#allocation24_spill] sm:$0xff] }
 0x70c   :  { %8957 = vmatpush1.bf16.msra.mxu0 %v13649_v6  ;;  %8989 = vmatpush1.bf16.msra.mxu1 %v13650_v2  ;;  %v13659_v6 = vld [vmem:[#allocation26_spill] sm:$0xff]  ;;  %v13660_v2 = vld [vmem:[#allocation27_spill] sm:$0xff] }
 0x70d   :  { %8959 = vmatprep.subr.bf16.mxu0 %v13651_v22  ;;  %8991 = vmatprep.subr.bf16.mxu1 %v13652_v42  ;;  %v13661_v22 = vld [vmem:[#allocation28_spill] sm:$0xff]  ;;  %v13662_v42 = vld [vmem:[#allocation29_spill] sm:$0xff] }
 0x70e   :  { %5324 = vmatprep.mubr.f32.mxu0 %v12941_v44  ;;  %5395 = vmatprep.mubr.f32.mxu1 %v12941_v44 }
 0x710   :  { %8961 = vmatpush1.bf16.msra.mxu0 %v13653_v24  ;;  %8993 = vmatpush1.bf16.msra.mxu1 %v13654_v15  ;;  %v13664_v24 = vld [vmem:[#allocation31_spill] sm:$0xff]  ;;  %v13665_v15 = vld [vmem:[#allocation32_spill] sm:$0xff] }
 0x711   :  { %8963 = vmatprep.subr.bf16.mxu0 %v13655_v60  ;;  %8995 = vmatprep.subr.bf16.mxu1 %v13656_v47  ;;  %v13666_v60 = vld [vmem:[#allocation33_spill] sm:$0xff]  ;;  %v13667_v47 = vld [vmem:[#allocation34_spill] sm:$0xff] }
 0x714   :  { %8965 = vmatpush1.bf16.msra.mxu0 %v13657_v30  ;;  %8997 = vmatpush1.bf16.msra.mxu1 %v13658_v38  ;;  %v13668_v30 = vld [vmem:[#allocation35_spill] sm:$0xff]  ;;  %v13669_v38 = vld [vmem:[#allocation36_spill] sm:$0xff] }
 0x715   :  { %8967 = vmatprep.subr.bf16.mxu0 %v13659_v6  ;;  %8999 = vmatprep.subr.bf16.mxu1 %v13660_v2  ;;  %v13670_v6 = vld [vmem:[#allocation37_spill] sm:$0xff]  ;;  %v13671_v2 = vld [vmem:[#allocation38_spill] sm:$0xff] }
 0x718   :  { %8969 = vmatpush1.bf16.msra.mxu0 %v13661_v22  ;;  %9001 = vmatpush1.bf16.msra.mxu1 %v13662_v42  ;;  %v13672_v22 = vld [vmem:[#allocation39_spill] sm:$0xff]  ;;  %v13673_v42 = vld [vmem:[#allocation40_spill] sm:$0xff] }
 0x719   :  { %8971 = vmatprep.subr.bf16.mxu0 %v13663_v27  ;;  %9003 = vmatprep.subr.bf16.mxu1 %v13664_v24  ;;  %v13674_v27 = vld [vmem:[#allocation41_spill] sm:$0xff]  ;;  %v13675_v24 = vld [vmem:[#allocation42_spill] sm:$0xff] }
 0x71c   :  { %8973 = vmatpush1.bf16.msra.mxu0 %v13665_v15  ;;  %9005 = vmatpush1.bf16.msra.mxu1 %v13666_v60  ;;  %v13676_v15 = vld [vmem:[#allocation43_spill] sm:$0xff]  ;;  %v13677_v60 = vld [vmem:[#allocation44_spill] sm:$0xff] }
 0x71d   :  { %8975 = vmatprep.subr.bf16.mxu0 %v13667_v47  ;;  %9007 = vmatprep.subr.bf16.mxu1 %v13668_v30  ;;  %v13678_v47 = vld [vmem:[#allocation45_spill] sm:$0xff]  ;;  %v13679_v30 = vld [vmem:[#allocation46_spill] sm:$0xff] }
 0x720   :  { %8977 = vmatpush1.bf16.msra.mxu0 %v13669_v38  ;;  %9009 = vmatpush1.bf16.msra.mxu1 %v13670_v6  ;;  %v13680_v38 = vld [vmem:[#allocation47_spill] sm:$0xff]  ;;  %v4441_v6 = vpop.permute.xlu0 %4440 }
 0x721   :  { %8979 = vmatprep.subr.bf16.mxu0 %v13671_v2  ;;  %9011 = vmatprep.subr.bf16.mxu1 %v13672_v22  ;;  %v13681_v2 = vld [vmem:[#allocation50_spill] sm:$0xff]  ;;  %v13682_v22 = vld [vmem:[#allocation51_spill] sm:$0xff] }
 0x722   :  { %v4443_v1 = vmul.f32 %v4441_v6, %v13681_v2  ;;  %v4444_v61 = vmul.f32 %v4441_v6, %v13682_v22  ;;  %v4445_v22 = vmul.f32 %v4441_v6, %v12996_v17  ;;  %v13715_v17 = vld [vmem:[#allocation110_spill] sm:$0xff] }
 0x724   :  { %8981 = vmatpush1.bf16.msra.mxu0 %v13673_v42  ;;  %9013 = vmatpush1.bf16.msra.mxu1 %v13674_v27  ;;  %v13683_v42 = vld [vmem:[#allocation53_spill] sm:$0xff] }
 0x725   :  { %8983 = vmatprep.subr.bf16.mxu0 %v13675_v24  ;;  %9015 = vmatprep.subr.bf16.mxu1 %v13676_v15  ;;  %v4447_v8 = vadd.f32 %v4443_v1, %v13683_v42  ;;  %v4448_v24 = vadd.f32 %v4444_v61, %v13272_v49  ;;  %v4449_v1 = vadd.f32 %v4445_v22, %v12997_v31  ;;  %v13700_v31 = vld [vmem:[#allocation95_spill] sm:$0xff] }
 0x728   :  { %8985 = vmatpush1.bf16.msra.mxu0 %v13677_v60  ;;  %9017 = vmatpush1.bf16.msra.mxu1 %v13678_v47  ;;  %v4446_v47 = vmul.f32 %v4441_v6, %v13273_v40 }
 0x729   :  { %9019 = vmatprep.subr.bf16.mxu0 %v13679_v30  ;;  %9051 = vmatprep.subr.bf16.mxu1 %v13680_v38 }
 0x72a   :  { %v4450_v2 = vadd.f32 %v4446_v47, %v10650_v45 }
 0x75e   :  { %v4517_v27 = vpop.f32.mrb[30].mxu0  ;;  %v4588_v12 = vpop.f32.mrb[30].mxu1 }
 0x75f   :  { %v4593_v15 = vadd.f32 %v4517_v27, %v4447_v8  ;;  %v4519_v20 = vpop.f32.mrb[31].mxu0  ;;  %v4590_v60 = vpop.f32.mrb[31].mxu1  ;;  %v4595_v43 = vadd.f32 %v4588_v12, %v4449_v1 }
 0x760   :  { %v4594_v33 = vadd.f32 %v4519_v20, %v4448_v24  ;;  %v4596_v38 = vadd.f32 %v4590_v60, %v4450_v2 }
 0x761   :  { %v7068_v30 = vmul.f32 -1.442695, %v4593_v15 }
 0x762   :  { %v7069_v23 = vmul.f32 -1.442695, %v4594_v33  ;;  %v7070_v42 = vmul.f32 -1.442695, %v4596_v38 }
 0x763   :  { %10037 = vpow2.f32 %v7068_v30 }
 0x764   :  { %10039 = vpow2.f32 %v7069_v23 }
 0x765   :  { %10041 = vpow2.f32 %v7070_v42 }
 0x766   :  { %10043 = vtanh.f32 %v4595_v43 }
 0x76d   :  { %v10038_v61 = vpop.eup %10037 }
 0x76e   :  { %v10040_v8 = vpop.eup %10039  ;;  %v4600_v27 = vadd.f32 1.0, %v10038_v61  ;;  %v13685_v61 = vld [vmem:[#allocation78_spill] sm:$0xff] }
 0x76f   :  { %v4606_v20 = vadd.f32 1.0, %v10040_v8  ;;  %v10042_v33 = vpop.eup %10041  ;;  %v13686_v8 = vld [vmem:[#allocation79_spill] sm:$0xff] }
 0x770   :  { %10045 = vrcp.f32 %v4600_v27  ;;  %v10044_v30 = vpop.eup %10043  ;;  %v4613_v47 = vadd.f32 1.0, %v10042_v33 }
 0x771   :  { %10047 = vrcp.f32 %v4606_v20 }
 0x772   :  { %10049 = vrcp.f32 %v4613_v47  ;;  %v13690_v47 = vld [vmem:[#allocation84_spill] sm:$0xff] }
 0x77a   :  { %v10046_v23 = vpop.eup %10045 }
 0x77b   :  { %v10048_v24 = vpop.eup %10047  ;;  %v4617_v15 = vmul.f32 %v10046_v23, %v10044_v30  ;;  %v13687_v30 = vld [vmem:[#allocation80_spill] sm:$0xff]  ;;  %v13688_v23 = vld [vmem:[#allocation81_spill] sm:$0xff] }
 0x77c   :  { %v4616_v6 = vmul.f32 %v10048_v24, %v11867_v25  ;;  %v10050_v12 = vpop.eup %10049  ;;  %v13689_v24 = vld [vmem:[#allocation82_spill] sm:$0xff] }
 0x77e   :  { %v12065_v2 = vadd.f32 %v4617_v15, %v4616_v6  ;;  %v13691_v6 = vld [vmem:[#allocation85_spill] sm:$0xff] }
 0x780   :  { %13684 = vst [vmem:[#allocation150_spill] sm:$0xff] %v12065_v2  ;;  %10051 = vtanh.f32 %v12065_v2  ;;  %v13699_v2 = vld [vmem:[#allocation94_spill] sm:$0xff] }
 0x78a   :  { %v10052_v38 = vpop.eup %10051 }
 0x78b   :  { %v4620_v22 = vmul.f32 %v10052_v38, %v10050_v12  ;;  %v13692_v12 = vld [vmem:[#allocation86_spill] sm:$0xff]  ;;  %v13693_v38 = vld [vmem:[#allocation87_spill] sm:$0xff] }
 0x78d   :  { %5325 = vmatmul.mubr.f32.vlgmr.msra.gmra.mrb[36].mxu0 %v4620_v22  ;;  %5396 = vmatmul.mubr.f32.vlgmr.msra.gmra.mrb[36].mxu1 %v4620_v22 }
 0x78e   :  { %9021 = vmatpush1.bf16.msra.mxu0 %v13133_v55  ;;  %9053 = vmatpush1.bf16.msra.mxu1 %v13134_v32 }
 0x78f   :  { %9023 = vmatprep.subr.bf16.mxu0 %v13135_v62  ;;  %9055 = vmatprep.subr.bf16.mxu1 %v13136_v0 }
 0x790   :  { %5494 = vmatprep.mubr.f32.mxu0 %v12941_v44  ;;  %5565 = vmatprep.mubr.f32.mxu1 %v12941_v44 }
 0x792   :  { %9025 = vmatpush1.bf16.msra.mxu0 %v13137_v50  ;;  %9057 = vmatpush1.bf16.msra.mxu1 %v13138_v7 }
 0x793   :  { %9027 = vmatprep.subr.bf16.mxu0 %v13274_v11  ;;  %9059 = vmatprep.subr.bf16.mxu1 %v13275_v35 }
 0x796   :  { %9029 = vmatpush1.bf16.msra.mxu0 %v13276_v4  ;;  %9061 = vmatpush1.bf16.msra.mxu1 %v13277_v59 }
 0x797   :  { %9031 = vmatprep.subr.bf16.mxu0 %v13278_v41  ;;  %9063 = vmatprep.subr.bf16.mxu1 %v13279_v37 }
 0x79a   :  { %9033 = vmatpush1.bf16.msra.mxu0 %v13410_v52  ;;  %9065 = vmatpush1.bf16.msra.mxu1 %v13411_v46 }
 0x79b   :  { %9035 = vmatprep.subr.bf16.mxu0 %v13412_v36  ;;  %9067 = vmatprep.subr.bf16.mxu1 %v13547_v48 }
 0x79e   :  { %v4829_v25 = vpop.f32.mrb[32].mxu0  ;;  %v4900_v43 = vpop.f32.mrb[32].mxu1  ;;  %9037 = vmatpush1.bf16.msra.mxu0 %v13548_v19  ;;  %9069 = vmatpush1.bf16.msra.mxu1 %v13549_v9 }
 0x79f   :  { %v9694_v42 = vadd.f32 %v4829_v25, %v13550_v39  ;;  %v4831_v60 = vpop.f32.mrb[33].mxu0  ;;  %v4902_v1 = vpop.f32.mrb[33].mxu1  ;;  %9039 = vmatprep.subr.bf16.mxu0 %v13685_v61  ;;  %9071 = vmatprep.subr.bf16.mxu1 %v13686_v8  ;;  %v13698_v39 = vld [vmem:[#allocation93_spill] sm:$0xff] }
 0x7a0   :  { %v9695_v27 = vadd.f32 %v4831_v60, %v10947_v63  ;;  %v9697_v15 = vadd.f32 %v4902_v1, %v13422_v14  ;;  %v13695_v60 = vld [vmem:[#allocation89_spill] sm:$0xff]  ;;  %v13697_v63 = vld [vmem:[#allocation92_spill] sm:$0xff] }
 0x7a1   :  { %v7071_v20 = vmul.f32 -1.442695, %v9694_v42  ;;  %v13694_v42 = vld [vmem:[#allocation88_spill] sm:$0xff] }
 0x7a2   :  { %v7072_v33 = vmul.f32 -1.442695, %v9695_v27  ;;  %9041 = vmatpush1.bf16.msra.mxu0 %v13687_v30  ;;  %9073 = vmatpush1.bf16.msra.mxu1 %v13688_v23  ;;  %v7073_v25 = vmul.f32 -1.442695, %v9697_v15  ;;  %v9696_v27 = vadd.f32 %v4900_v43, %v13562_v58  ;;  %v13702_v43 = vld [vmem:[#allocation97_spill] sm:$0xff]  ;;  %v13707_v58 = vld [vmem:[#allocation102_spill] sm:$0xff] }
 0x7a3   :  { %10053 = vpow2.f32 %v7071_v20  ;;  %9043 = vmatprep.subr.bf16.mxu0 %v13689_v24  ;;  %9075 = vmatprep.subr.bf16.mxu1 %v13028_v51  ;;  %v13696_v20 = vld [vmem:[#allocation91_spill] sm:$0xff] }
 0x7a4   :  { %10055 = vpow2.f32 %v7072_v33 }
 0x7a5   :  { %10057 = vpow2.f32 %v7073_v25  ;;  %v13703_v25 = vld [vmem:[#allocation98_spill] sm:$0xff] }
 0x7a6   :  { %9045 = vmatpush1.bf16.msra.mxu0 %v13690_v47  ;;  %9077 = vmatpush1.bf16.msra.mxu1 %v13691_v6  ;;  %10059 = vtanh.f32 %v9696_v27  ;;  %v13705_v27 = vld [vmem:[#allocation100_spill] sm:$0xff] }
 0x7a7   :  { %9047 = vmatprep.subr.bf16.mxu0 %v13692_v12  ;;  %9079 = vmatprep.subr.bf16.mxu1 %v13693_v38 }
 0x7aa   :  { %9049 = vmatpush1.bf16.msra.mxu0 %v13694_v42  ;;  %9081 = vmatpush1.bf16.msra.mxu1 %v13695_v60 }
 0x7ab   :  { %9083 = vmatprep.subr.bf16.mxu0 %v13563_v13  ;;  %9115 = vmatprep.subr.bf16.mxu1 %v13696_v20 }
 0x7ad   :  { %v10054_v1 = vpop.eup %10053  ;;  %5495 = vmatmul.mubr.f32.vlgmr.msra.gmra.mrb[38].mxu0 %v4620_v22  ;;  %5566 = vmatmul.mubr.f32.vlgmr.msra.gmra.mrb[38].mxu1 %v4620_v22  ;;  %v13701_v22 = vld [vmem:[#allocation96_spill] sm:$0xff] }
 0x7ae   :  { %v10056_v33 = vpop.eup %10055  ;;  %v4912_v14 = vadd.f32 1.0, %v10054_v1  ;;  %9085 = vmatpush1.bf16.msra.mxu0 %v13697_v63  ;;  %9117 = vmatpush1.bf16.msra.mxu1 %v13698_v39  ;;  %v13704_v1 = vld [vmem:[#allocation99_spill] sm:$0xff] }
 0x7af   :  { %v4918_v15 = vadd.f32 1.0, %v10056_v33  ;;  %9087 = vmatprep.subr.bf16.mxu0 %v13699_v2  ;;  %9119 = vmatprep.subr.bf16.mxu1 %v13700_v31  ;;  %v13706_v33 = vld [vmem:[#allocation101_spill] sm:$0xff]  ;;  %v10058_v31 = vpop.eup %10057 }
 0x7b0   :  { %10061 = vrcp.f32 %v4912_v14  ;;  %5636 = vmatprep.mubr.f32.mxu0 %v12941_v44  ;;  %5707 = vmatprep.mubr.f32.mxu1 %v12941_v44  ;;  %v13708_v14 = vld [vmem:[#allocation103_spill] sm:$0xff]  ;;  %v10060_v2 = vpop.eup %10059 }
 0x7b1   :  { %10063 = vrcp.f32 %v4918_v15  ;;  %v13709_v15 = vld [vmem:[#allocation104_spill] sm:$0xff] }
 0x7b2   :  { %9089 = vmatpush1.bf16.msra.mxu0 %v13701_v22  ;;  %9121 = vmatpush1.bf16.msra.mxu1 %v13702_v43 }
 0x7b3   :  { %9091 = vmatprep.subr.bf16.mxu0 %v13703_v25  ;;  %9123 = vmatprep.subr.bf16.mxu1 %v13704_v1  ;;  %v4925_v25 = vadd.f32 1.0, %v10058_v31  ;;  %v13710_v1 = vld [vmem:[#allocation107_spill] sm:$0xff]  ;;  %v13717_v31 = vld [vmem:[#allocation112_spill] sm:$0xff] }
 0x7b5   :  { %10065 = vrcp.f32 %v4925_v25  ;;  %v13724_v25 = vld [vmem:[#allocation119_spill] sm:$0xff] }
 0x7b6   :  { %9093 = vmatpush1.bf16.msra.mxu0 %v13705_v27  ;;  %9125 = vmatpush1.bf16.msra.mxu1 %v13706_v33  ;;  %v13711_v27 = vld [vmem:[#allocation49_spill] sm:$0xff] }
 0x7b7   :  { %9095 = vmatprep.subr.bf16.mxu0 %v13707_v58  ;;  %9127 = vmatprep.subr.bf16.mxu1 %v13708_v14  ;;  %v13713_v58 = vld [vmem:[#allocation108_spill] sm:$0xff]  ;;  %v13714_v14 = vld [vmem:[#allocation109_spill] sm:$0xff] }
 0x7ba   :  { %v10062_v39 = vpop.eup %10061  ;;  %9097 = vmatpush1.bf16.msra.mxu0 %v13709_v15  ;;  %9129 = vmatpush1.bf16.msra.mxu1 %v13312_v54  ;;  %v13716_v15 = vld [vmem:[#allocation111_spill] sm:$0xff] }
 0x7bb   :  { %v10064_v43 = vpop.eup %10063  ;;  %v4929_v22 = vmul.f32 %v10062_v39, %v10060_v2  ;;  %9099 = vmatprep.subr.bf16.mxu0 %v13445_v56  ;;  %9131 = vmatprep.subr.bf16.mxu1 %v13710_v1  ;;  %v13718_v39 = vld [vmem:[#allocation113_spill] sm:$0xff]  ;;  %v13719_v2 = vld [vmem:[#allocation114_spill] sm:$0xff] }
 0x7bc   :  { %v4928_v33 = vmul.f32 %v10064_v43, %v13711_v27  ;;  %v13720_v43 = vld [vmem:[#allocation115_spill] sm:$0xff]  ;;  %v13722_v27 = vld [vmem:[#allocation117_spill] sm:$0xff] }
 0x7be   :  { %v12125_v63 = vadd.f32 %v4929_v22, %v4928_v33  ;;  %9101 = vmatpush1.bf16.msra.mxu0 %v13713_v58  ;;  %9133 = vmatpush1.bf16.msra.mxu1 %v13714_v14  ;;  %v13721_v22 = vld [vmem:[#allocation116_spill] sm:$0xff]  ;;  %v13723_v33 = vld [vmem:[#allocation118_spill] sm:$0xff] }
 0x7bf   :  { %9103 = vmatprep.subr.bf16.mxu0 %v13715_v17  ;;  %9135 = vmatprep.subr.bf16.mxu1 %v13716_v15  ;;  %v10066_v17 = vpop.eup %10065  ;;  %v13725_v14 = vld [vmem:[#allocation120_spill] sm:$0xff] }
 0x7c0   :  { %13712 = vst [vmem:[#allocation56_spill] sm:$0xff] %v12125_v63  ;;  %10067 = vtanh.f32 %v12125_v63  ;;  %v13726_v63 = vld [vmem:[#allocation121_spill] sm:$0xff] }
 0x7c2   :  { %9105 = vmatpush1.bf16.msra.mxu0 %v13717_v31  ;;  %9137 = vmatpush1.bf16.msra.mxu1 %v13718_v39  ;;  %v13727_v39 = vld [vmem:[#allocation125_spill] sm:$0xff] }
 0x7c3   :  { %9107 = vmatprep.subr.bf16.mxu0 %v13719_v2  ;;  %9139 = vmatprep.subr.bf16.mxu1 %v13720_v43  ;;  %v13728_v2 = vld [vmem:[#allocation126_spill] sm:$0xff]  ;;  %v13743_v43 = vld [vmem:[#allocation141_spill] sm:$0xff] }
 0x7c6   :  { %9109 = vmatpush1.bf16.msra.mxu0 %v13721_v22  ;;  %9141 = vmatpush1.bf16.msra.mxu1 %v13722_v27  ;;  %v13729_v22 = vld [vmem:[#allocation127_spill] sm:$0xff]  ;;  %v13730_v27 = vld [vmem:[#allocation128_spill] sm:$0xff] }
 0x7c7   :  { %9111 = vmatprep.subr.bf16.mxu0 %v13723_v33  ;;  %9143 = vmatprep.subr.bf16.mxu1 %v13724_v25  ;;  %v13731_v33 = vld [vmem:[#allocation129_spill] sm:$0xff]  ;;  %v13732_v25 = vld [vmem:[#allocation130_spill] sm:$0xff] }
 0x7ca   :  { %v10068_v15 = vpop.eup %10067  ;;  %9113 = vmatpush1.bf16.msra.mxu0 %v13725_v14  ;;  %9145 = vmatpush1.bf16.msra.mxu1 %v13726_v63  ;;  %v13733_v63 = vld [vmem:[#allocation131_spill] sm:$0xff]  ;;  %v13742_v14 = vld [vmem:[#allocation140_spill] sm:$0xff] }
 0x7cb   :  { %v4932_v31 = vmul.f32 %v10068_v15, %v10066_v17  ;;  %9147 = vmatprep.subr.bf16.mxu0 %v13727_v39  ;;  %9179 = vmatprep.subr.bf16.mxu1 %v13728_v2  ;;  %v13734_v17 = vld [vmem:[#allocation132_spill] sm:$0xff]  ;;  %v13735_v15 = vld [vmem:[#allocation133_spill] sm:$0xff]  ;;  %v13736_v2 = vld [vmem:[#allocation134_spill] sm:$0xff] }
 0x7cc   :  { %v13737_v39 = vld [vmem:[#allocation135_spill] sm:$0xff] }
 0x7cd   :  { %5637 = vmatmul.mubr.f32.vlgmr.msra.gmra.mrb[38].mxu0 %v4932_v31  ;;  %5708 = vmatmul.mubr.f32.vlgmr.msra.gmra.mrb[38].mxu1 %v4932_v31 }
 0x7ce   :  { %9149 = vmatpush1.bf16.msra.mxu0 %v13729_v22  ;;  %9181 = vmatpush1.bf16.msra.mxu1 %v13730_v27  ;;  %v13738_v22 = vld [vmem:[#allocation136_spill] sm:$0xff]  ;;  %v13739_v27 = vld [vmem:[#allocation137_spill] sm:$0xff] }
 0x7cf   :  { %9151 = vmatprep.subr.bf16.mxu0 %v13731_v33  ;;  %9183 = vmatprep.subr.bf16.mxu1 %v13732_v25  ;;  %v13740_v33 = vld [vmem:[#allocation138_spill] sm:$0xff]  ;;  %v13741_v25 = vld [vmem:[#allocation139_spill] sm:$0xff] }
 0x7d0   :  { %5806 = vmatprep.mubr.f32.mxu0 %v12941_v44  ;;  %5877 = vmatprep.mubr.f32.mxu1 %v12941_v44 }
 0x7d2   :  { %9153 = vmatpush1.bf16.msra.mxu0 %v13733_v63  ;;  %9185 = vmatpush1.bf16.msra.mxu1 %v13734_v17  ;;  %v13744_v63 = vld [vmem:[#allocation142_spill] sm:$0xff] }
 0x7d3   :  { %9155 = vmatprep.subr.bf16.mxu0 %v13735_v15  ;;  %9187 = vmatprep.subr.bf16.mxu1 %v13736_v2  ;;  %v13745_v2 = vld [vmem:[#allocation145_spill] sm:$0xff] }
 0x7d6   :  { %9157 = vmatpush1.bf16.msra.mxu0 %v13737_v39  ;;  %9189 = vmatpush1.bf16.msra.mxu1 %v13738_v22 }
 0x7d7   :  { %9159 = vmatprep.subr.bf16.mxu0 %v13739_v27  ;;  %9191 = vmatprep.subr.bf16.mxu1 %v13740_v33  ;;  %v13746_v33 = vld [vmem:[#allocation146_spill] sm:$0xff] }
 0x7da   :  { %9161 = vmatpush1.bf16.msra.mxu0 %v13741_v25  ;;  %9193 = vmatpush1.bf16.msra.mxu1 %v13742_v14 }
 0x7db   :  { %9163 = vmatprep.subr.bf16.mxu0 %v13743_v43  ;;  %9195 = vmatprep.subr.bf16.mxu1 %v13744_v63  ;;  %v13747_v63 = vld [vmem:[#allocation148_spill] sm:$0xff] }
 0x7de   :  { %v5141_v17 = vpop.f32.mrb[34].mxu0  ;;  %v5212_v15 = vpop.f32.mrb[34].mxu1  ;;  %9165 = vmatpush1.bf16.msra.mxu0 %v13612_v57  ;;  %9197 = vmatpush1.bf16.msra.mxu1 %v13350_v18 }
 0x7df   :  { %v9698_v22 = vadd.f32 %v5141_v17, %v13613_v28  ;;  %v5143_v39 = vpop.f32.mrb[35].mxu0  ;;  %v5214_v27 = vpop.f32.mrb[35].mxu1  ;;  %9167 = vmatprep.subr.bf16.mxu0 %v13745_v2  ;;  %9199 = vmatprep.subr.bf16.mxu1 %v13746_v33  ;;  %v13748_v2 = vld [vmem:[#allocation152_spill] sm:$0xff] }
 0x7e0   :  { %v9699_v14 = vadd.f32 %v5143_v39, %v11363_v3  ;;  %v9701_v17 = vadd.f32 %v5214_v27, %v11372_v26  ;;  %v13749_v39 = vld [vmem:[#allocation156_spill] sm:$0xff]  ;;  %v13772_v26 = vld [vmem:[#allocation177_spill] sm:$0xff] }
 0x7e1   :  { %v7074_v25 = vmul.f32 -1.442695, %v9698_v22  ;;  %v13750_v22 = vld [vmem:[#allocation64_spill] sm:$0xff] }
 0x7e2   :  { %v7075_v43 = vmul.f32 -1.442695, %v9699_v14  ;;  %9169 = vmatpush1.bf16.msra.mxu0 %v13353_v21  ;;  %9201 = vmatpush1.bf16.msra.mxu1 %v13747_v63  ;;  %v7076_v14 = vmul.f32 -1.442695, %v9701_v17 }
 0x7e3   :  { %10069 = vpow2.f32 %v7074_v25  ;;  %9171 = vmatprep.subr.bf16.mxu0 %v13485_v53  ;;  %9203 = vmatprep.subr.bf16.mxu1 %v13223_v16  ;;  %v9700_v25 = vadd.f32 %v5212_v15, %v13750_v22  ;;  %v13751_v53 = vld [vmem:[#allocation157_spill] sm:$0xff]  ;;  %v13758_v15 = vld [vmem:[#allocation164_spill] sm:$0xff] }
 0x7e4   :  { %10071 = vpow2.f32 %v7075_v43  ;;  %v13752_v43 = vld [vmem:[#allocation158_spill] sm:$0xff] }
 0x7e5   :  { %10073 = vpow2.f32 %v7076_v14  ;;  %v13759_v14 = vld [vmem:[#allocation165_spill] sm:$0xff] }
 0x7e6   :  { %9173 = vmatpush1.bf16.msra.mxu0 %v13486_v10  ;;  %9205 = vmatpush1.bf16.msra.mxu1 %v13748_v2  ;;  %10075 = vtanh.f32 %v9700_v25  ;;  %v13761_v25 = vld [vmem:[#allocation167_spill] sm:$0xff] }
 0x7e7   :  { %9175 = vmatprep.subr.bf16.mxu0 %v13618_v34  ;;  %9207 = vmatprep.subr.bf16.mxu1 %v13619_v5  ;;  %v13753_v34 = vld [vmem:[#allocation159_spill] sm:$0xff]  ;;  %v13754_v5 = vld [vmem:[#allocation160_spill] sm:$0xff] }
 0x7ea   :  { %9177 = vmatpush1.bf16.msra.mxu0 %v13620_v29  ;;  %9209 = vmatpush1.bf16.msra.mxu1 %v13749_v39  ;;  %v13755_v29 = vld [vmem:[#allocation161_spill] sm:$0xff]  ;;  %v13756_v39 = vld [vmem:[#allocation162_spill] sm:$0xff] }
 0x7eb   :  { %9211 = vmatprep.subr.bf16.mxu0 %v13751_v53  ;;  %9243 = vmatprep.subr.bf16.mxu1 %v13752_v43  ;;  %v13767_v53 = vld [vmem:[#allocation173_spill] sm:$0xff] }
 0x7ed   :  { %v10070_v27 = vpop.eup %10069  ;;  %5807 = vmatmul.mubr.f32.vlgmr.msra.gmra.mrb[40].mxu0 %v4932_v31  ;;  %5878 = vmatmul.mubr.f32.vlgmr.msra.gmra.mrb[40].mxu1 %v4932_v31  ;;  %v13757_v31 = vld [vmem:[#allocation163_spill] sm:$0xff] }
 0x7ee   :  { %v10072_v10 = vpop.eup %10071  ;;  %v5224_v2 = vadd.f32 1.0, %v10070_v27  ;;  %9213 = vmatpush1.bf16.msra.mxu0 %v13753_v34  ;;  %9245 = vmatpush1.bf16.msra.mxu1 %v13754_v5  ;;  %v13760_v27 = vld [vmem:[#allocation166_spill] sm:$0xff] }
 0x7ef   :  { %v5230_v17 = vadd.f32 1.0, %v10072_v10  ;;  %9215 = vmatprep.subr.bf16.mxu0 %v13755_v29  ;;  %9247 = vmatprep.subr.bf16.mxu1 %v13756_v39  ;;  %v13762_v10 = vld [vmem:[#allocation168_spill] sm:$0xff]  ;;  %v13763_v29 = vld [vmem:[#allocation169_spill] sm:$0xff]  ;;  %v10074_v39 = vpop.eup %10073 }
 0x7f0   :  { %10077 = vrcp.f32 %v5224_v2  ;;  %5948 = vmatprep.mubr.f32.mxu0 %v12941_v44  ;;  %6019 = vmatprep.mubr.f32.mxu1 %v12941_v44  ;;  %v13764_v2 = vld [vmem:[#allocation170_spill] sm:$0xff]  ;;  %v10076_v5 = vpop.eup %10075 }
 0x7f1   :  { %10079 = vrcp.f32 %v5230_v17  ;;  %v13765_v17 = vld [vmem:[#allocation171_spill] sm:$0xff] }
 0x7f2   :  { %9217 = vmatpush1.bf16.msra.mxu0 %v13757_v31  ;;  %9249 = vmatpush1.bf16.msra.mxu1 %v13758_v15  ;;  %v13766_v31 = vld [vmem:[#allocation172_spill] sm:$0xff] }
 0x7f3   :  { %9219 = vmatprep.subr.bf16.mxu0 %v13759_v14  ;;  %9251 = vmatprep.subr.bf16.mxu1 %v13760_v27  ;;  %v5237_v14 = vadd.f32 1.0, %v10074_v39  ;;  %v13768_v27 = vld [vmem:[#allocation174_spill] sm:$0xff]  ;;  %v13776_v39 = vld [vmem:[#allocation181_spill] sm:$0xff] }
 0x7f5   :  { %10081 = vrcp.f32 %v5237_v14  ;;  %v13781_v14 = vld [vmem:[#allocation186_spill] sm:$0xff] }
 0x7f6   :  { %9221 = vmatpush1.bf16.msra.mxu0 %v13761_v25  ;;  %9253 = vmatpush1.bf16.msra.mxu1 %v13762_v10  ;;  %v13769_v25 = vld [vmem:[#allocation52_spill] sm:$0xff] }
 0x7f7   :  { %9223 = vmatprep.subr.bf16.mxu0 %v13763_v29  ;;  %9255 = vmatprep.subr.bf16.mxu1 %v13764_v2  ;;  %v13770_v29 = vld [vmem:[#allocation175_spill] sm:$0xff]  ;;  %v13771_v2 = vld [vmem:[#allocation176_spill] sm:$0xff] }
 0x7fa   :  { %v10078_v34 = vpop.eup %10077  ;;  %9225 = vmatpush1.bf16.msra.mxu0 %v13765_v17  ;;  %9257 = vmatpush1.bf16.msra.mxu1 %v13766_v31  ;;  %v13773_v17 = vld [vmem:[#allocation178_spill] sm:$0xff] }
 0x7fb   :  { %v10080_v15 = vpop.eup %10079  ;;  %v5241_v43 = vmul.f32 %v10078_v34, %v10076_v5  ;;  %9227 = vmatprep.subr.bf16.mxu0 %v13767_v53  ;;  %9259 = vmatprep.subr.bf16.mxu1 %v13768_v27  ;;  %v13774_v34 = vld [vmem:[#allocation179_spill] sm:$0xff]  ;;  %v13775_v5 = vld [vmem:[#allocation180_spill] sm:$0xff] }
 0x7fc   :  { %v5240_v10 = vmul.f32 %v10080_v15, %v13769_v25  ;;  %v13777_v15 = vld [vmem:[#allocation182_spill] sm:$0xff]  ;;  %v13779_v25 = vld [vmem:[#allocation184_spill] sm:$0xff] }
 0x7fe   :  { %v12201_v22 = vadd.f32 %v5241_v43, %v5240_v10  ;;  %9229 = vmatpush1.bf16.msra.mxu0 %v13770_v29  ;;  %9261 = vmatpush1.bf16.msra.mxu1 %v13771_v2  ;;  %v13778_v43 = vld [vmem:[#allocation183_spill] sm:$0xff]  ;;  %v13780_v10 = vld [vmem:[#allocation185_spill] sm:$0xff]  ;;  %v13783_v29 = vld [vmem:[#allocation188_spill] sm:$0xff] }
 0x7ff   :  { %9231 = vmatprep.subr.bf16.mxu0 %v13772_v26  ;;  %9263 = vmatprep.subr.bf16.mxu1 %v13773_v17  ;;  %v10082_v26 = vpop.eup %10081  ;;  %v13782_v2 = vld [vmem:[#allocation187_spill] sm:$0xff] }
 0x800   :  { %10083 = vtanh.f32 %v12201_v22 }
 0x802   :  { %9233 = vmatpush1.bf16.msra.mxu0 %v13774_v34  ;;  %9265 = vmatpush1.bf16.msra.mxu1 %v13775_v5  ;;  %v13784_v5 = vld [vmem:[#allocation46_spill] sm:$0xff] }
 0x803   :  { %9235 = vmatprep.subr.bf16.mxu0 %v13776_v39  ;;  %9267 = vmatprep.subr.bf16.mxu1 %v13777_v15  ;;  %v13785_v39 = vld [vmem:[#allocation47_spill] sm:$0xff] }
 0x806   :  { %9237 = vmatpush1.bf16.msra.mxu0 %v13778_v43  ;;  %9269 = vmatpush1.bf16.msra.mxu1 %v13779_v25 }
 0x807   :  { %9239 = vmatprep.subr.bf16.mxu0 %v13780_v10  ;;  %9271 = vmatprep.subr.bf16.mxu1 %v13781_v14 }
 0x80a   :  { %v10084_v17 = vpop.eup %10083  ;;  %9241 = vmatpush1.bf16.msra.mxu0 %v13782_v2  ;;  %9273 = vmatpush1.bf16.msra.mxu1 %v13783_v29 }
 0x80b   :  { %v5244_v34 = vmul.f32 %v10084_v17, %v10082_v26  ;;  %9275 = vmatprep.subr.bf16.mxu0 %v13784_v5  ;;  %9307 = vmatprep.subr.bf16.mxu1 %v13785_v39  ;;  %v5250_v26 = vpop.permute.xlu1 %5249 }
 0x80d   :  { %5949 = vmatmul.mubr.f32.vlgmr.msra.gmra.mrb[40].mxu0 %v5244_v34  ;;  %6020 = vmatmul.mubr.f32.vlgmr.msra.gmra.mrb[40].mxu1 %v5244_v34 }
 0x80e   :  { %9277 = vmatpush1.bf16.msra.mxu0 %v13133_v55  ;;  %9309 = vmatpush1.bf16.msra.mxu1 %v13134_v32  ;;  %v13786_v55 = vld [vmem:[#allocation50_spill] sm:$0xff] }
 0x80f   :  { %9279 = vmatprep.subr.bf16.mxu0 %v13135_v62  ;;  %9311 = vmatprep.subr.bf16.mxu1 %v13136_v0  ;;  %v5252_v32 = vmul.f32 %v5250_v26, %v13786_v55  ;;  %v13788_v0 = vld [vmem:[#allocation53_spill] sm:$0xff]  ;;  %v13792_v55 = vld [vmem:[#allocation92_spill] sm:$0xff] }
 0x810   :  { %6118 = vmatprep.mubr.f32.mxu0 %v12941_v44  ;;  %6189 = vmatprep.mubr.f32.mxu1 %v12941_v44 }
 0x812   :  { %9281 = vmatpush1.bf16.msra.mxu0 %v13137_v50  ;;  %9313 = vmatpush1.bf16.msra.mxu1 %v13138_v7  ;;  %v5256_v50 = vadd.f32 %v5252_v32, %v13788_v0  ;;  %v13793_v32 = vld [vmem:[#allocation93_spill] sm:$0xff]  ;;  %v13796_v0 = vld [vmem:[#allocation96_spill] sm:$0xff] }
 0x813   :  { %9283 = vmatprep.subr.bf16.mxu0 %v13274_v11  ;;  %9315 = vmatprep.subr.bf16.mxu1 %v13275_v35 }
 0x816   :  { %9285 = vmatpush1.bf16.msra.mxu0 %v13276_v4  ;;  %9317 = vmatpush1.bf16.msra.mxu1 %v13277_v59 }
 0x817   :  { %9287 = vmatprep.subr.bf16.mxu0 %v13278_v41  ;;  %9319 = vmatprep.subr.bf16.mxu1 %v13279_v37  ;;  %v5255_v37 = vmul.f32 %v5250_v26, %v13273_v40 }
 0x81a   :  { %9289 = vmatpush1.bf16.msra.mxu0 %v13410_v52  ;;  %9321 = vmatpush1.bf16.msra.mxu1 %v13411_v46 }
 0x81b   :  { %9291 = vmatprep.subr.bf16.mxu0 %v13412_v36  ;;  %9323 = vmatprep.subr.bf16.mxu1 %v13547_v48  ;;  %v5259_v48 = vadd.f32 %v5255_v37, %v10650_v45  ;;  %v13804_v37 = vld [vmem:[#allocation104_spill] sm:$0xff] }
 0x81e   :  { %9293 = vmatpush1.bf16.msra.mxu0 %v13548_v19  ;;  %9325 = vmatpush1.bf16.msra.mxu1 %v13549_v9  ;;  %v13789_v19 = vld [vmem:[#allocation57_spill] sm:$0xff] }
 0x81f   :  { %9295 = vmatprep.subr.bf16.mxu0 %v13685_v61  ;;  %9327 = vmatprep.subr.bf16.mxu1 %v13686_v8  ;;  %v5254_v9 = vmul.f32 %v5250_v26, %v13789_v19  ;;  %v13790_v61 = vld [vmem:[#allocation58_spill] sm:$0xff] }
 0x821   :  { %v5258_v8 = vadd.f32 %v5254_v9, %v13790_v61  ;;  %v13807_v61 = vld [vmem:[#allocation110_spill] sm:$0xff] }
 0x822   :  { %9297 = vmatpush1.bf16.msra.mxu0 %v13687_v30  ;;  %9329 = vmatpush1.bf16.msra.mxu1 %v13688_v23 }
 0x823   :  { %9299 = vmatprep.subr.bf16.mxu0 %v13689_v24  ;;  %9331 = vmatprep.subr.bf16.mxu1 %v13028_v51  ;;  %v13787_v51 = vld [vmem:[#allocation51_spill] sm:$0xff] }
 0x824   :  { %v5253_v62 = vmul.f32 %v5250_v26, %v13787_v51  ;;  %v13794_v51 = vld [vmem:[#allocation94_spill] sm:$0xff] }
 0x826   :  { %9301 = vmatpush1.bf16.msra.mxu0 %v13690_v47  ;;  %9333 = vmatpush1.bf16.msra.mxu1 %v13691_v6  ;;  %v5257_v35 = vadd.f32 %v5253_v62, %v13272_v49  ;;  %v13795_v62 = vld [vmem:[#allocation95_spill] sm:$0xff] }
 0x827   :  { %9303 = vmatprep.subr.bf16.mxu0 %v13692_v12  ;;  %9335 = vmatprep.subr.bf16.mxu1 %v13693_v38 }
 0x82a   :  { %9305 = vmatpush1.bf16.msra.mxu0 %v13694_v42  ;;  %9337 = vmatpush1.bf16.msra.mxu1 %v13695_v60 }
 0x82b   :  { %9339 = vmatprep.subr.bf16.mxu0 %v13563_v13  ;;  %9371 = vmatprep.subr.bf16.mxu1 %v13696_v20  ;;  %v13791_v20 = vld [vmem:[#allocation150_spill] sm:$0xff] }
 0x860   :  { %v5326_v7 = vpop.f32.mrb[36].mxu0  ;;  %v5397_v11 = vpop.f32.mrb[36].mxu1 }
 0x861   :  { %v5402_v4 = vadd.f32 %v5326_v7, %v5256_v50  ;;  %v5328_v59 = vpop.f32.mrb[37].mxu0  ;;  %v5399_v41 = vpop.f32.mrb[37].mxu1  ;;  %v5404_v23 = vadd.f32 %v5397_v11, %v5258_v8  ;;  %v13797_v50 = vld [vmem:[#allocation97_spill] sm:$0xff]  ;;  %v13798_v7 = vld [vmem:[#allocation98_spill] sm:$0xff]  ;;  %v13799_v11 = vld [vmem:[#allocation99_spill] sm:$0xff] }
 0x862   :  { %v5403_v52 = vadd.f32 %v5328_v59, %v5257_v35  ;;  %v5405_v13 = vadd.f32 %v5399_v41, %v5259_v48  ;;  %v13800_v35 = vld [vmem:[#allocation100_spill] sm:$0xff]  ;;  %v13802_v59 = vld [vmem:[#allocation102_spill] sm:$0xff]  ;;  %v13803_v41 = vld [vmem:[#allocation103_spill] sm:$0xff] }
 0x863   :  { %v7078_v46 = vmul.f32 -1.442695, %v5402_v4  ;;  %v13801_v4 = vld [vmem:[#allocation101_spill] sm:$0xff]  ;;  %v13806_v48 = vld [vmem:[#allocation59_spill] sm:$0xff] }
 0x864   :  { %v7079_v36 = vmul.f32 -1.442695, %v5403_v52  ;;  %v7080_v30 = vmul.f32 -1.442695, %v5405_v13  ;;  %v13808_v8 = vld [vmem:[#allocation111_spill] sm:$0xff] }
 0x865   :  { %10085 = vpow2.f32 %v7078_v46 }
 0x866   :  { %10087 = vpow2.f32 %v7079_v36  ;;  %v13805_v36 = vld [vmem:[#allocation109_spill] sm:$0xff] }
 0x867   :  { %10089 = vpow2.f32 %v7080_v30  ;;  %v13809_v30 = vld [vmem:[#allocation122_spill] sm:$0xff] }
 0x868   :  { %10091 = vtanh.f32 %v5404_v23 }
 0x86f   :  { %v10086_v49 = vpop.eup %10085 }
 0x870   :  { %v10088_v24 = vpop.eup %10087  ;;  %v5409_v47 = vadd.f32 1.0, %v10086_v49  ;;  %v13810_v49 = vld [vmem:[#allocation112_spill] sm:$0xff] }
 0x871   :  { %v5415_v40 = vadd.f32 1.0, %v10088_v24  ;;  %v10090_v6 = vpop.eup %10089  ;;  %v13813_v24 = vld [vmem:[#allocation115_spill] sm:$0xff] }
 0x872   :  { %10093 = vrcp.f32 %v5409_v47  ;;  %v10092_v12 = vpop.eup %10091  ;;  %v5422_v60 = vadd.f32 1.0, %v10090_v6  ;;  %v13814_v47 = vld [vmem:[#allocation123_spill] sm:$0xff]  ;;  %v13815_v6 = vld [vmem:[#allocation116_spill] sm:$0xff] }
 0x873   :  { %10095 = vrcp.f32 %v5415_v40 }
 0x874   :  { %10097 = vrcp.f32 %v5422_v60  ;;  %v13819_v60 = vld [vmem:[#allocation120_spill] sm:$0xff] }
 0x87c   :  { %v10094_v38 = vpop.eup %10093 }
 0x87d   :  { %v10096_v42 = vpop.eup %10095  ;;  %v5426_v45 = vmul.f32 %v10094_v38, %v10092_v12  ;;  %v13816_v12 = vld [vmem:[#allocation117_spill] sm:$0xff]  ;;  %v13817_v38 = vld [vmem:[#allocation118_spill] sm:$0xff] }
 0x87e   :  { %v5425_v17 = vmul.f32 %v10096_v42, %v13791_v20  ;;  %v10098_v5 = vpop.eup %10097  ;;  %v13818_v42 = vld [vmem:[#allocation119_spill] sm:$0xff]  ;;  %v13820_v20 = vld [vmem:[#allocation121_spill] sm:$0xff] }
 0x880   :  { %v5427_v34 = vadd.f32 %v5426_v45, %v5425_v17  ;;  %v13821_v17 = vld [vmem:[#allocation83_spill] sm:$0xff] }
 0x882   :  { %10099 = vtanh.f32 %v5427_v34 }
 0x88c   :  { %v10100_v39 = vpop.eup %10099 }
 0x88d   :  { %v5429_v26 = vmul.f32 %v10100_v39, %v10098_v5  ;;  %v13822_v5 = vld [vmem:[#allocation125_spill] sm:$0xff]  ;;  %v13823_v39 = vld [vmem:[#allocation126_spill] sm:$0xff] }
 0x88f   :  { %6119 = vmatmul.mubr.f32.vlgmr.msra.gmra.mrb[42].mxu0 %v5429_v26  ;;  %6190 = vmatmul.mubr.f32.vlgmr.msra.gmra.mrb[42].mxu1 %v5429_v26 }
 0x890   :  { %9341 = vmatpush1.bf16.msra.mxu0 %v13792_v55  ;;  %9373 = vmatpush1.bf16.msra.mxu1 %v13793_v32 }
 0x891   :  { %9343 = vmatprep.subr.bf16.mxu0 %v13794_v51  ;;  %9375 = vmatprep.subr.bf16.mxu1 %v13795_v62 }
 0x892   :  { %6260 = vmatprep.mubr.f32.mxu0 %v12941_v44  ;;  %6331 = vmatprep.mubr.f32.mxu1 %v12941_v44 }
 0x894   :  { %9345 = vmatpush1.bf16.msra.mxu0 %v13796_v0  ;;  %9377 = vmatpush1.bf16.msra.mxu1 %v13797_v50 }
 0x895   :  { %9347 = vmatprep.subr.bf16.mxu0 %v13798_v7  ;;  %9379 = vmatprep.subr.bf16.mxu1 %v13799_v11 }
 0x898   :  { %9349 = vmatpush1.bf16.msra.mxu0 %v13800_v35  ;;  %9381 = vmatpush1.bf16.msra.mxu1 %v13801_v4  ;;  %v13824_v4 = vld [vmem:[#allocation56_spill] sm:$0xff] }
 0x899   :  { %9351 = vmatprep.subr.bf16.mxu0 %v13802_v59  ;;  %9383 = vmatprep.subr.bf16.mxu1 %v13803_v41 }
 0x89c   :  { %9353 = vmatpush1.bf16.msra.mxu0 %v13804_v37  ;;  %9385 = vmatpush1.bf16.msra.mxu1 %v13312_v54 }
 0x89d   :  { %9355 = vmatprep.subr.bf16.mxu0 %v13445_v56  ;;  %9387 = vmatprep.subr.bf16.mxu1 %v13710_v1  ;;  %v13811_v1 = vld [vmem:[#allocation113_spill] sm:$0xff] }
 0x8a0   :  { %v5638_v52 = vpop.f32.mrb[38].mxu0  ;;  %v5709_v46 = vpop.f32.mrb[38].mxu1  ;;  %9357 = vmatpush1.bf16.msra.mxu0 %v13713_v58  ;;  %9389 = vmatpush1.bf16.msra.mxu1 %v13805_v36  ;;  %v13812_v58 = vld [vmem:[#allocation114_spill] sm:$0xff]  ;;  %v13825_v36 = vld [vmem:[#allocation127_spill] sm:$0xff] }
 0x8a1   :  { %v9702_v19 = vadd.f32 %v5638_v52, %v13806_v48  ;;  %v5640_v9 = vpop.f32.mrb[39].mxu0  ;;  %v5711_v13 = vpop.f32.mrb[39].mxu1  ;;  %9359 = vmatprep.subr.bf16.mxu0 %v13807_v61  ;;  %9391 = vmatprep.subr.bf16.mxu1 %v13808_v8  ;;  %v9704_v34 = vadd.f32 %v5709_v46, %v13821_v17  ;;  %v13829_v61 = vld [vmem:[#allocation131_spill] sm:$0xff]  ;;  %v13830_v8 = vld [vmem:[#allocation132_spill] sm:$0xff] }
 0x8a2   :  { %v9703_v54 = vadd.f32 %v5640_v9, %v13809_v30  ;;  %v9705_v40 = vadd.f32 %v5711_v13, %v13814_v47  ;;  %v13827_v9 = vld [vmem:[#allocation129_spill] sm:$0xff]  ;;  %v13828_v13 = vld [vmem:[#allocation130_spill] sm:$0xff] }
 0x8a3   :  { %v7081_v23 = vmul.f32 -1.442695, %v9702_v19  ;;  %v13826_v19 = vld [vmem:[#allocation128_spill] sm:$0xff] }
 0x8a4   :  { %v7082_v56 = vmul.f32 -1.442695, %v9703_v54  ;;  %9361 = vmatpush1.bf16.msra.mxu0 %v13810_v49  ;;  %9393 = vmatpush1.bf16.msra.mxu1 %v13811_v1  ;;  %v7083_v45 = vmul.f32 -1.442695, %v9705_v40  ;;  %v13831_v54 = vld [vmem:[#allocation133_spill] sm:$0xff]  ;;  %v13834_v49 = vld [vmem:[#allocation136_spill] sm:$0xff] }
 0x8a5   :  { %10101 = vpow2.f32 %v7081_v23  ;;  %9363 = vmatprep.subr.bf16.mxu0 %v13812_v58  ;;  %9395 = vmatprep.subr.bf16.mxu1 %v13813_v24  ;;  %v13832_v23 = vld [vmem:[#allocation134_spill] sm:$0xff]  ;;  %v13835_v1 = vld [vmem:[#allocation137_spill] sm:$0xff]  ;;  %v13837_v24 = vld [vmem:[#allocation139_spill] sm:$0xff] }
 0x8a6   :  { %10103 = vpow2.f32 %v7082_v56  ;;  %v13833_v56 = vld [vmem:[#allocation135_spill] sm:$0xff]  ;;  %v13836_v58 = vld [vmem:[#allocation138_spill] sm:$0xff]  ;;  %v13838_v40 = vld [vmem:[#allocation140_spill] sm:$0xff] }
 0x8a7   :  { %10105 = vpow2.f32 %v7083_v45 }
 0x8a8   :  { %9365 = vmatpush1.bf16.msra.mxu0 %v13815_v6  ;;  %9397 = vmatpush1.bf16.msra.mxu1 %v13816_v12  ;;  %10107 = vtanh.f32 %v9704_v34  ;;  %v13839_v6 = vld [vmem:[#allocation141_spill] sm:$0xff]  ;;  %v13840_v12 = vld [vmem:[#allocation142_spill] sm:$0xff] }
 0x8a9   :  { %9367 = vmatprep.subr.bf16.mxu0 %v13817_v38  ;;  %9399 = vmatprep.subr.bf16.mxu1 %v13818_v42  ;;  %v13841_v34 = vld [vmem:[#allocation145_spill] sm:$0xff] }
 0x8ac   :  { %9369 = vmatpush1.bf16.msra.mxu0 %v13819_v60  ;;  %9401 = vmatpush1.bf16.msra.mxu1 %v13820_v20 }
 0x8ad   :  { %9403 = vmatprep.subr.bf16.mxu0 %v13822_v5  ;;  %9435 = vmatprep.subr.bf16.mxu1 %v13823_v39 }
 0x8af   :  { %v10102_v26 = vpop.eup %10101 }
 0x8b0   :  { %v10104_v55 = vpop.eup %10103  ;;  %v5721_v32 = vadd.f32 1.0, %v10102_v26 }
 0x8b1   :  { %v5727_v51 = vadd.f32 1.0, %v10104_v55  ;;  %v10106_v62 = vpop.eup %10105 }
 0x8b2   :  { %10109 = vrcp.f32 %v5721_v32  ;;  %v10108_v0 = vpop.eup %10107  ;;  %v5734_v35 = vadd.f32 1.0, %v10106_v62  ;;  %v13843_v62 = vld [vmem:[#allocation63_spill] sm:$0xff] }
 0x8b3   :  { %10111 = vrcp.f32 %v5727_v51  ;;  %v13842_v51 = vld [vmem:[#allocation149_spill] sm:$0xff] }
 0x8b4   :  { %10113 = vrcp.f32 %v5734_v35  ;;  %v13847_v35 = vld [vmem:[#allocation154_spill] sm:$0xff] }
 0x8bc   :  { %v10110_v50 = vpop.eup %10109 }
 0x8bd   :  { %v10112_v7 = vpop.eup %10111  ;;  %v5738_v11 = vmul.f32 %v10110_v50, %v10108_v0  ;;  %v13844_v50 = vld [vmem:[#allocation151_spill] sm:$0xff] }
 0x8be   :  { %v5737_v59 = vmul.f32 %v10112_v7, %v13824_v4  ;;  %v10114_v37 = vpop.eup %10113  ;;  %v13845_v7 = vld [vmem:[#allocation152_spill] sm:$0xff] }
 0x8c0   :  { %v12302_v41 = vadd.f32 %v5738_v11, %v5737_v59  ;;  %v13846_v11 = vld [vmem:[#allocation153_spill] sm:$0xff]  ;;  %v13848_v59 = vld [vmem:[#allocation155_spill] sm:$0xff] }
 0x8c2   :  { %10115 = vtanh.f32 %v12302_v41 }
 0x8cc   :  { %v10116_v52 = vpop.eup %10115 }
 0x8cd   :  { %v5741_v46 = vmul.f32 %v10116_v52, %v10114_v37  ;;  %v13849_v37 = vld [vmem:[#allocation156_spill] sm:$0xff] }
 0x8ce   :  { %v13850_v52 = vld [vmem:[#allocation64_spill] sm:$0xff] }
 0x8cf   :  { %6261 = vmatmul.mubr.f32.vlgmr.msra.gmra.mrb[42].mxu0 %v5741_v46  ;;  %6332 = vmatmul.mubr.f32.vlgmr.msra.gmra.mrb[42].mxu1 %v5741_v46 }
 0x8d0   :  { %9405 = vmatpush1.bf16.msra.mxu0 %v13825_v36  ;;  %9437 = vmatpush1.bf16.msra.mxu1 %v13826_v19 }
 0x8d1   :  { %9407 = vmatprep.subr.bf16.mxu0 %v13827_v9  ;;  %9439 = vmatprep.subr.bf16.mxu1 %v13828_v13 }
 0x8d2   :  { %6430 = vmatprep.mubr.f32.mxu0 %v12941_v44  ;;  %6501 = vmatprep.mubr.f32.mxu1 %v12941_v44 }
 0x8d4   :  { %9409 = vmatpush1.bf16.msra.mxu0 %v13829_v61  ;;  %9441 = vmatpush1.bf16.msra.mxu1 %v13830_v8 }
 0x8d5   :  { %9411 = vmatprep.subr.bf16.mxu0 %v13831_v54  ;;  %9443 = vmatprep.subr.bf16.mxu1 %v13832_v23 }
 0x8d8   :  { %9413 = vmatpush1.bf16.msra.mxu0 %v13833_v56  ;;  %9445 = vmatpush1.bf16.msra.mxu1 %v13834_v49 }
 0x8d9   :  { %9415 = vmatprep.subr.bf16.mxu0 %v13835_v1  ;;  %9447 = vmatprep.subr.bf16.mxu1 %v13836_v58 }
 0x8dc   :  { %9417 = vmatpush1.bf16.msra.mxu0 %v13837_v24  ;;  %9449 = vmatpush1.bf16.msra.mxu1 %v13838_v40 }
 0x8dd   :  { %9419 = vmatprep.subr.bf16.mxu0 %v13839_v6  ;;  %9451 = vmatprep.subr.bf16.mxu1 %v13840_v12 }
 0x8e0   :  { %9421 = vmatpush1.bf16.msra.mxu0 %v13612_v57  ;;  %9453 = vmatpush1.bf16.msra.mxu1 %v13350_v18  ;;  %v5950_v38 = vpop.f32.mrb[40].mxu0  ;;  %v6021_v42 = vpop.f32.mrb[40].mxu1 }
 0x8e1   :  { %v9706_v45 = vadd.f32 %v5950_v38, %v13613_v28  ;;  %v5952_v60 = vpop.f32.mrb[41].mxu0  ;;  %v6023_v20 = vpop.f32.mrb[41].mxu1  ;;  %9423 = vmatprep.subr.bf16.mxu0 %v13841_v34  ;;  %9455 = vmatprep.subr.bf16.mxu1 %v13746_v33  ;;  %v9708_v38 = vadd.f32 %v6021_v42, %v13850_v52  ;;  %v13856_v28 = vld [vmem:[#allocation162_spill] sm:$0xff]  ;;  %v13858_v42 = vld [vmem:[#allocation164_spill] sm:$0xff]  ;;  %v13863_v52 = vld [vmem:[#allocation169_spill] sm:$0xff] }
 0x8e2   :  { %v9707_v26 = vadd.f32 %v5952_v60, %v11363_v3  ;;  %v9709_v0 = vadd.f32 %v6023_v20, %v13843_v62  ;;  %v13852_v60 = vld [vmem:[#allocation158_spill] sm:$0xff]  ;;  %v13854_v62 = vld [vmem:[#allocation160_spill] sm:$0xff]  ;;  %v13855_v3 = vld [vmem:[#allocation161_spill] sm:$0xff] }
 0x8e3   :  { %v7084_v55 = vmul.f32 -1.442695, %v9706_v45  ;;  %v13851_v45 = vld [vmem:[#allocation157_spill] sm:$0xff] }
 0x8e4   :  { %v7085_v32 = vmul.f32 -1.442695, %v9707_v26  ;;  %9425 = vmatpush1.bf16.msra.mxu0 %v13353_v21  ;;  %9457 = vmatpush1.bf16.msra.mxu1 %v13747_v63  ;;  %v7086_v4 = vmul.f32 -1.442695, %v9709_v0 }
 0x8e5   :  { %10117 = vpow2.f32 %v7084_v55  ;;  %9427 = vmatprep.subr.bf16.mxu0 %v13842_v51  ;;  %9459 = vmatprep.subr.bf16.mxu1 %v13223_v16 }
 0x8e6   :  { %10119 = vpow2.f32 %v7085_v32  ;;  %v13853_v32 = vld [vmem:[#allocation159_spill] sm:$0xff] }
 0x8e7   :  { %10121 = vpow2.f32 %v7086_v4  ;;  %v13859_v4 = vld [vmem:[#allocation165_spill] sm:$0xff] }
 0x8e8   :  { %9429 = vmatpush1.bf16.msra.mxu0 %v13844_v50  ;;  %9461 = vmatpush1.bf16.msra.mxu1 %v13845_v7  ;;  %10123 = vtanh.f32 %v9708_v38  ;;  %v13861_v38 = vld [vmem:[#allocation167_spill] sm:$0xff] }
 0x8e9   :  { %9431 = vmatprep.subr.bf16.mxu0 %v13846_v11  ;;  %9463 = vmatprep.subr.bf16.mxu1 %v13847_v35 }
 0x8ec   :  { %9433 = vmatpush1.bf16.msra.mxu0 %v13848_v59  ;;  %9465 = vmatpush1.bf16.msra.mxu1 %v13849_v37 }
 0x8ed   :  { %9467 = vmatprep.subr.bf16.mxu0 %v13851_v45  ;;  %9499 = vmatprep.subr.bf16.mxu1 %v13852_v60 }
 0x8ef   :  { %v10118_v20 = vpop.eup %10117  ;;  %6431 = vmatmul.mubr.f32.vlgmr.msra.gmra.mrb[44].mxu0 %v5741_v46  ;;  %6502 = vmatmul.mubr.f32.vlgmr.msra.gmra.mrb[44].mxu1 %v5741_v46  ;;  %v13857_v46 = vld [vmem:[#allocation163_spill] sm:$0xff] }
 0x8f0   :  { %v10120_v26 = vpop.eup %10119  ;;  %v6033_v55 = vadd.f32 1.0, %v10118_v20  ;;  %9469 = vmatpush1.bf16.msra.mxu0 %v13853_v32  ;;  %9501 = vmatpush1.bf16.msra.mxu1 %v13854_v62  ;;  %v13860_v20 = vld [vmem:[#allocation166_spill] sm:$0xff] }
 0x8f1   :  { %v6039_v0 = vadd.f32 1.0, %v10120_v26  ;;  %9471 = vmatprep.subr.bf16.mxu0 %v13855_v3  ;;  %9503 = vmatprep.subr.bf16.mxu1 %v13856_v28  ;;  %v13862_v26 = vld [vmem:[#allocation168_spill] sm:$0xff]  ;;  %v10122_v28 = vpop.eup %10121 }
 0x8f2   :  { %10125 = vrcp.f32 %v6033_v55  ;;  %6572 = vmatprep.mubr.f32.mxu0 %v12941_v44  ;;  %6643 = vmatprep.mubr.f32.mxu1 %v12941_v44  ;;  %v13864_v55 = vld [vmem:[#allocation170_spill] sm:$0xff]  ;;  %v10124_v3 = vpop.eup %10123 }
 0x8f3   :  { %10127 = vrcp.f32 %v6039_v0  ;;  %v13865_v0 = vld [vmem:[#allocation171_spill] sm:$0xff] }
 0x8f4   :  { %9473 = vmatpush1.bf16.msra.mxu0 %v13857_v46  ;;  %9505 = vmatpush1.bf16.msra.mxu1 %v13858_v42 }
 0x8f5   :  { %9475 = vmatprep.subr.bf16.mxu0 %v13859_v4  ;;  %9507 = vmatprep.subr.bf16.mxu1 %v13860_v20  ;;  %v6046_v4 = vadd.f32 1.0, %v10122_v28  ;;  %v13868_v20 = vld [vmem:[#allocation177_spill] sm:$0xff]  ;;  %v13871_v28 = vld [vmem:[#allocation180_spill] sm:$0xff] }
 0x8f7   :  { %10129 = vrcp.f32 %v6046_v4 }
 0x8f8   :  { %9477 = vmatpush1.bf16.msra.mxu0 %v13861_v38  ;;  %9509 = vmatpush1.bf16.msra.mxu1 %v13862_v26 }
 0x8f9   :  { %9479 = vmatprep.subr.bf16.mxu0 %v13863_v52  ;;  %9511 = vmatprep.subr.bf16.mxu1 %v13864_v55  ;;  %v13866_v52 = vld [vmem:[#allocation175_spill] sm:$0xff]  ;;  %v13867_v55 = vld [vmem:[#allocation176_spill] sm:$0xff] }
 0x8fc   :  { %v10126_v62 = vpop.eup %10125  ;;  %9481 = vmatpush1.bf16.msra.mxu0 %v13865_v0  ;;  %9513 = vmatpush1.bf16.msra.mxu1 %v13766_v31  ;;  %v13869_v0 = vld [vmem:[#allocation178_spill] sm:$0xff] }
 0x8fd   :  { %v10128_v42 = vpop.eup %10127  ;;  %v6050_v46 = vmul.f32 %v10126_v62, %v10124_v3  ;;  %9483 = vmatprep.subr.bf16.mxu0 %v13767_v53  ;;  %9515 = vmatprep.subr.bf16.mxu1 %v13768_v27  ;;  %v13870_v3 = vld [vmem:[#allocation179_spill] sm:$0xff]  ;;  %v13872_v62 = vld [vmem:[#allocation181_spill] sm:$0xff] }
 0x8fe   :  { %v6049_v26 = vmul.f32 %v10128_v42, %v12201_v22 }
 0x900   :  { %v12362_v38 = vadd.f32 %v6050_v46, %v6049_v26  ;;  %9485 = vmatpush1.bf16.msra.mxu0 %v13866_v52  ;;  %9517 = vmatpush1.bf16.msra.mxu1 %v13867_v55 }
 0x901   :  { %9487 = vmatprep.subr.bf16.mxu0 %v13868_v20  ;;  %9519 = vmatprep.subr.bf16.mxu1 %v13869_v0  ;;  %v10130_v22 = vpop.eup %10129 }
 0x902   :  { %10131 = vtanh.f32 %v12362_v38 }
 0x904   :  { %9489 = vmatpush1.bf16.msra.mxu0 %v13870_v3  ;;  %9521 = vmatpush1.bf16.msra.mxu1 %v13871_v28 }
 0x905   :  { %9491 = vmatprep.subr.bf16.mxu0 %v13872_v62  ;;  %9523 = vmatprep.subr.bf16.mxu1 %v13777_v15 }
 0x908   :  { %9493 = vmatpush1.bf16.msra.mxu0 %v13778_v43  ;;  %9525 = vmatpush1.bf16.msra.mxu1 %v13779_v25 }
 0x909   :  { %9495 = vmatprep.subr.bf16.mxu0 %v13780_v10  ;;  %9527 = vmatprep.subr.bf16.mxu1 %v13781_v14 }
 0x90c   :  { %v10132_v46 = vpop.eup %10131  ;;  %9497 = vmatpush1.bf16.msra.mxu0 %v13782_v2  ;;  %9529 = vmatpush1.bf16.msra.mxu1 %v13783_v29 }
 0x90d   :  { %v6053_v42 = vmul.f32 %v10132_v46, %v10130_v22  ;;  %9531 = vmatprep.subr.bf16.mxu0 %v13822_v5  ;;  %9563 = vmatprep.subr.bf16.mxu1 %v13823_v39  ;;  %v13886_v46 = vld [vmem:[#allocation62_spill] sm:$0xff] }
 0x90f   :  { %6573 = vmatmul.mubr.f32.vlgmr.msra.gmra.mrb[44].mxu0 %v6053_v42  ;;  %6644 = vmatmul.mubr.f32.vlgmr.msra.gmra.mrb[44].mxu1 %v6053_v42 }
 0x910   :  { %9533 = vmatpush1.bf16.msra.mxu0 %v13825_v36  ;;  %9565 = vmatpush1.bf16.msra.mxu1 %v13826_v19 }
 0x911   :  { %9535 = vmatprep.subr.bf16.mxu0 %v13827_v9  ;;  %9567 = vmatprep.subr.bf16.mxu1 %v13828_v13 }
 0x912   :  { %6742 = vmatprep.mubr.f32.mxu0 %v12941_v44  ;;  %6813 = vmatprep.mubr.f32.mxu1 %v12941_v44 }
 0x914   :  { %9537 = vmatpush1.bf16.msra.mxu0 %v13829_v61  ;;  %9569 = vmatpush1.bf16.msra.mxu1 %v13830_v8 }
 0x915   :  { %9539 = vmatprep.subr.bf16.mxu0 %v13831_v54  ;;  %9571 = vmatprep.subr.bf16.mxu1 %v13832_v23 }
 0x918   :  { %9541 = vmatpush1.bf16.msra.mxu0 %v13833_v56  ;;  %9573 = vmatpush1.bf16.msra.mxu1 %v13834_v49 }
 0x919   :  { %9543 = vmatprep.subr.bf16.mxu0 %v13835_v1  ;;  %9575 = vmatprep.subr.bf16.mxu1 %v13836_v58 }
 0x91c   :  { %9545 = vmatpush1.bf16.msra.mxu0 %v13837_v24  ;;  %9577 = vmatpush1.bf16.msra.mxu1 %v13838_v40 }
 0x91d   :  { %9547 = vmatprep.subr.bf16.mxu0 %v13839_v6  ;;  %9579 = vmatprep.subr.bf16.mxu1 %v13840_v12  ;;  %v13873_v6 = vld [vmem:[#allocation160_spill] sm:$0xff]  ;;  %v13874_v12 = vld [vmem:[#allocation161_spill] sm:$0xff] }
 0x920   :  { %9549 = vmatpush1.bf16.msra.mxu0 %v13612_v57  ;;  %9581 = vmatpush1.bf16.msra.mxu1 %v13350_v18 }
 0x921   :  { %9551 = vmatprep.subr.bf16.mxu0 %v13841_v34  ;;  %9583 = vmatprep.subr.bf16.mxu1 %v13746_v33  ;;  %v13875_v34 = vld [vmem:[#allocation162_spill] sm:$0xff] }
 0x924   :  { %9553 = vmatpush1.bf16.msra.mxu0 %v13353_v21  ;;  %9585 = vmatpush1.bf16.msra.mxu1 %v13747_v63 }
 0x925   :  { %9555 = vmatprep.subr.bf16.mxu0 %v13842_v51  ;;  %9587 = vmatprep.subr.bf16.mxu1 %v13223_v16  ;;  %v13877_v51 = vld [vmem:[#allocation164_spill] sm:$0xff] }
 0x928   :  { %9557 = vmatpush1.bf16.msra.mxu0 %v13844_v50  ;;  %9589 = vmatpush1.bf16.msra.mxu1 %v13845_v7  ;;  %v13878_v50 = vld [vmem:[#allocation165_spill] sm:$0xff]  ;;  %v13879_v7 = vld [vmem:[#allocation166_spill] sm:$0xff] }
 0x929   :  { %9559 = vmatprep.subr.bf16.mxu0 %v13846_v11  ;;  %9591 = vmatprep.subr.bf16.mxu1 %v13847_v35  ;;  %v13880_v11 = vld [vmem:[#allocation167_spill] sm:$0xff]  ;;  %v13881_v35 = vld [vmem:[#allocation168_spill] sm:$0xff] }
 0x92c   :  { %9561 = vmatpush1.bf16.msra.mxu0 %v13848_v59  ;;  %9593 = vmatpush1.bf16.msra.mxu1 %v13849_v37  ;;  %v13882_v59 = vld [vmem:[#allocation169_spill] sm:$0xff]  ;;  %v13883_v37 = vld [vmem:[#allocation170_spill] sm:$0xff] }
 0x92d   :  { %9595 = vmatprep.subr.bf16.mxu0 %v13851_v45  ;;  %9627 = vmatprep.subr.bf16.mxu1 %v13852_v60  ;;  %v13884_v45 = vld [vmem:[#allocation171_spill] sm:$0xff] }
 0x9a2   :  { %v6262_v63 = vpop.f32.mrb[42].mxu0  ;;  %v6333_v21 = vpop.f32.mrb[42].mxu1 }
 0x9a3   :  { %v9710_v16 = vadd.f32 %v6262_v63, %v13806_v48  ;;  %v6264_v18 = vpop.f32.mrb[43].mxu0  ;;  %v6335_v57 = vpop.f32.mrb[43].mxu1  ;;  %v9712_v9 = vadd.f32 %v6333_v21, %v13821_v17 }
 0x9a4   :  { %v9711_v33 = vadd.f32 %v6264_v18, %v13809_v30  ;;  %v9713_v36 = vadd.f32 %v6335_v57, %v13814_v47 }
 0x9a5   :  { %v7087_v5 = vmul.f32 -1.442695, %v9710_v16 }
 0x9a6   :  { %v7088_v39 = vmul.f32 -1.442695, %v9711_v33  ;;  %v7089_v19 = vmul.f32 -1.442695, %v9713_v36 }
 0x9a7   :  { %10133 = vpow2.f32 %v7087_v5 }
 0x9a8   :  { %10135 = vpow2.f32 %v7088_v39 }
 0x9a9   :  { %10137 = vpow2.f32 %v7089_v19 }
 0x9aa   :  { %10139 = vtanh.f32 %v9712_v9 }
 0x9b1   :  { %v10134_v13 = vpop.eup %10133 }
 0x9b2   :  { %v10136_v61 = vpop.eup %10135  ;;  %v6345_v8 = vadd.f32 1.0, %v10134_v13 }
 0x9b3   :  { %v6351_v54 = vadd.f32 1.0, %v10136_v61  ;;  %v10138_v48 = vpop.eup %10137 }
 0x9b4   :  { %10141 = vrcp.f32 %v6345_v8  ;;  %v10140_v23 = vpop.eup %10139  ;;  %v6358_v1 = vadd.f32 1.0, %v10138_v48 }
 0x9b5   :  { %10143 = vrcp.f32 %v6351_v54 }
 0x9b6   :  { %10145 = vrcp.f32 %v6358_v1 }
 0x9be   :  { %v10142_v30 = vpop.eup %10141 }
 0x9bf   :  { %v10144_v56 = vpop.eup %10143  ;;  %v6362_v49 = vmul.f32 %v10142_v30, %v10140_v23 }
 0x9c0   :  { %v6361_v58 = vmul.f32 %v10144_v56, %v12302_v41  ;;  %v10146_v17 = vpop.eup %10145  ;;  %v13876_v41 = vld [vmem:[#allocation163_spill] sm:$0xff] }
 0x9c2   :  { %v6363_v47 = vadd.f32 %v6362_v49, %v6361_v58 }
 0x9c4   :  { %10147 = vtanh.f32 %v6363_v47 }
 0x9ce   :  { %v10148_v24 = vpop.eup %10147 }
 0x9cf   :  { %v6365_v40 = vmul.f32 %v10148_v24, %v10146_v17 }
 0x9d1   :  { %6743 = vmatmul.mubr.f32.vlgmr.msra.gmra.mrb[46].mxu0 %v6365_v40  ;;  %6814 = vmatmul.mubr.f32.vlgmr.msra.gmra.mrb[46].mxu1 %v6365_v40 }
 0x9d2   :  { %9597 = vmatpush1.bf16.msra.mxu0 %v13853_v32  ;;  %9629 = vmatpush1.bf16.msra.mxu1 %v13873_v6  ;;  %v13885_v32 = vld [vmem:[#allocation61_spill] sm:$0xff] }
 0x9d3   :  { %9599 = vmatprep.subr.bf16.mxu0 %v13874_v12  ;;  %9631 = vmatprep.subr.bf16.mxu1 %v13875_v34 }
 0x9d4   :  { %6884 = vmatprep.mubr.f32.mxu0 %v12941_v44  ;;  %6955 = vmatprep.mubr.f32.mxu1 %v12941_v44 }
 0x9d6   :  { %9601 = vmatpush1.bf16.msra.mxu0 %v13876_v41  ;;  %9633 = vmatpush1.bf16.msra.mxu1 %v13877_v51  ;;  %v7096_v41 = vld [vmem:[%s12477_s10] ss:$0 sm:$0xff] }
 0x9d7   :  { %9603 = vmatprep.subr.bf16.mxu0 %v13878_v50  ;;  %9635 = vmatprep.subr.bf16.mxu1 %v13879_v7  ;;  %v7097_v7 = vld [vmem:[#allocation2] ss:$0 sm:$0xff] }
 0x9da   :  { %9605 = vmatpush1.bf16.msra.mxu0 %v13880_v11  ;;  %9637 = vmatpush1.bf16.msra.mxu1 %v13881_v35 }
 0x9db   :  { %9607 = vmatprep.subr.bf16.mxu0 %v13882_v59  ;;  %9639 = vmatprep.subr.bf16.mxu1 %v13883_v37 }
 0x9de   :  { %9609 = vmatpush1.bf16.msra.mxu0 %v13884_v45  ;;  %9641 = vmatpush1.bf16.msra.mxu1 %v13766_v31 }
 0x9df   :  { %9611 = vmatprep.subr.bf16.mxu0 %v13767_v53  ;;  %9643 = vmatprep.subr.bf16.mxu1 %v13768_v27  ;;  %v13887_v27 = vld [vmem:[#allocation63_spill] sm:$0xff] }
 0x9e2   :  { %v6574_v44 = vpop.f32.mrb[44].mxu0  ;;  %v6645_v60 = vpop.f32.mrb[44].mxu1  ;;  %9613 = vmatpush1.bf16.msra.mxu0 %v13866_v52  ;;  %9645 = vmatpush1.bf16.msra.mxu1 %v13867_v55  ;;  %v13888_v55 = vld [vmem:[#allocation64_spill] sm:$0xff] }
 0x9e3   :  { %v9714_v4 = vadd.f32 %v6574_v44, %v13885_v32  ;;  %v6576_v26 = vpop.f32.mrb[45].mxu0  ;;  %v6647_v22 = vpop.f32.mrb[45].mxu1  ;;  %9615 = vmatprep.subr.bf16.mxu0 %v13868_v20  ;;  %9647 = vmatprep.subr.bf16.mxu1 %v13869_v0  ;;  %v9716_v0 = vadd.f32 %v6645_v60, %v13888_v55 }
 0x9e4   :  { %v9715_v31 = vadd.f32 %v6576_v26, %v13886_v46  ;;  %v9717_v52 = vadd.f32 %v6647_v22, %v13887_v27 }
 0x9e5   :  { %v7090_v42 = vmul.f32 -1.442695, %v9714_v4 }
 0x9e6   :  { %v7091_v53 = vmul.f32 -1.442695, %v9715_v31  ;;  %9617 = vmatpush1.bf16.msra.mxu0 %v13870_v3  ;;  %9649 = vmatpush1.bf16.msra.mxu1 %v13871_v28  ;;  %v7092_v20 = vmul.f32 -1.442695, %v9717_v52 }
 0x9e7   :  { %10149 = vpow2.f32 %v7090_v42  ;;  %9619 = vmatprep.subr.bf16.mxu0 %v13872_v62  ;;  %9651 = vmatprep.subr.bf16.mxu1 %v13777_v15 }
 0x9e8   :  { %10151 = vpow2.f32 %v7091_v53 }
 0x9e9   :  { %10153 = vpow2.f32 %v7092_v20 }
 0x9ea   :  { %9621 = vmatpush1.bf16.msra.mxu0 %v13778_v43  ;;  %9653 = vmatpush1.bf16.msra.mxu1 %v13779_v25  ;;  %10155 = vtanh.f32 %v9716_v0 }
 0x9eb   :  { %9623 = vmatprep.subr.bf16.mxu0 %v13780_v10  ;;  %9655 = vmatprep.subr.bf16.mxu1 %v13781_v14 }
 0x9ee   :  { %9625 = vmatpush1.bf16.msra.mxu0 %v13782_v2  ;;  %9657 = vmatpush1.bf16.msra.mxu1 %v13783_v29 }
 0x9f1   :  { %v10150_v3 = vpop.eup %10149 }
 0x9f2   :  { %v10152_v15 = vpop.eup %10151  ;;  %v6657_v28 = vadd.f32 1.0, %v10150_v3 }
 0x9f3   :  { %v6663_v62 = vadd.f32 1.0, %v10152_v15  ;;  %v10154_v43 = vpop.eup %10153 }
 0x9f4   :  { %10157 = vrcp.f32 %v6657_v28  ;;  %v10156_v25 = vpop.eup %10155  ;;  %v6670_v21 = vadd.f32 1.0, %v10154_v43 }
 0x9f5   :  { %10159 = vrcp.f32 %v6663_v62 }
 0x9f6   :  { %10161 = vrcp.f32 %v6670_v21 }
 0x9fe   :  { %v10158_v10 = vpop.eup %10157 }
 0x9ff   :  { %v10160_v63 = vpop.eup %10159  ;;  %v6674_v14 = vmul.f32 %v10158_v10, %v10156_v25 }
 0xa00   :  { %v6673_v2 = vmul.f32 %v10160_v63, %v12362_v38  ;;  %v10162_v29 = vpop.eup %10161 }
 0xa02   :  { %v6675_v16 = vadd.f32 %v6674_v14, %v6673_v2 }
 0xa04   :  { %10163 = vtanh.f32 %v6675_v16 }
 0xa0e   :  { %v10164_v18 = vpop.eup %10163 }
 0xa0f   :  { %v6677_v57 = vmul.f32 %v10164_v18, %v10162_v29 }
 0xa11   :  { %6885 = vmatmul.mubr.f32.vlgmr.msra.gmra.mrb[46].mxu0 %v6677_v57  ;;  %6956 = vmatmul.mubr.f32.vlgmr.msra.gmra.mrb[46].mxu1 %v6677_v57 }
 0xae4   :  { %v6886_v33 = vpop.f32.mrb[46].mxu0  ;;  %v6957_v5 = vpop.f32.mrb[46].mxu1 }
 0xae5   :  { %v9718_v39 = vadd.f32 %v6886_v33, %v13885_v32  ;;  %v6888_v36 = vpop.f32.mrb[47].mxu0  ;;  %v6959_v19 = vpop.f32.mrb[47].mxu1  ;;  %v9720_v54 = vadd.f32 %v6957_v5, %v13888_v55 }
 0xae6   :  { %v9719_v9 = vadd.f32 %v6888_v36, %v13886_v46  ;;  %v9721_v38 = vadd.f32 %v6959_v19, %v13887_v27 }
 0xae7   :  { %v7093_v13 = vmul.f32 -1.442695, %v9718_v39 }
 0xae8   :  { %v7094_v61 = vmul.f32 -1.442695, %v9719_v9  ;;  %v7095_v8 = vmul.f32 -1.442695, %v9721_v38 }
 0xae9   :  { %10165 = vpow2.f32 %v7093_v13 }
 0xaea   :  { %10167 = vpow2.f32 %v7094_v61 }
 0xaeb   :  { %10169 = vpow2.f32 %v7095_v8 }
 0xaec   :  { %10171 = vtanh.f32 %v9720_v54 }
 0xaf3   :  { %v10166_v48 = vpop.eup %10165 }
 0xaf4   :  { %v10168_v23 = vpop.eup %10167  ;;  %v6969_v30 = vadd.f32 1.0, %v10166_v48 }
 0xaf5   :  { %v6975_v56 = vadd.f32 1.0, %v10168_v23  ;;  %v10170_v49 = vpop.eup %10169 }
 0xaf6   :  { %10173 = vrcp.f32 %v6969_v30  ;;  %v10172_v1 = vpop.eup %10171  ;;  %v6982_v24 = vadd.f32 1.0, %v10170_v49 }
 0xaf7   :  { %10175 = vrcp.f32 %v6975_v56 }
 0xaf8   :  { %10177 = vrcp.f32 %v6982_v24 }
 0xb00   :  { %v10174_v58 = vpop.eup %10173 }
 0xb01   :  { %v10176_v47 = vpop.eup %10175  ;;  %v6986_v17 = vmul.f32 %v10174_v58, %v10172_v1 }
 0xb02   :  { %v6985_v40 = vmul.f32 %v10176_v47, %v6675_v16  ;;  %v10178_v12 = vpop.eup %10177 }
 0xb04   :  { %v6987_v6 = vadd.f32 %v6986_v17, %v6985_v40 }
 0xb06   :  { %10179 = vtanh.f32 %v6987_v6 }
 0xb10   :  { %v10180_v34 = vpop.eup %10179 }
 0xb11   :  { %v6989_v51 = vmul.f32 %v10180_v34, %v10178_v12 }
 0xb13   :  { %v6997_v50 = vmul.f32 %v7096_v41, %v6989_v51 }
 0xb15   :  { %6998 = vadd.xlane.f32.xlu0 %v6997_v50 }
 0xba2   :  { %v6999_v11 = vpop.xlane.xlu0 %6998 }
 0xba3   :  { %v7007_v35 = vadd.f32 %v7097_v7, %v6999_v11 }
 0xba5   :  { %7009 = vst.msk [vmem:[%s12479_s12] sm:$0xff] %vm7008_vm0, %v7007_v35 }
 0xba6   :  { %7014 = vsyncpa [#allocation4], 1 }
 0xba7   :  { %7015 = vsyncpa [#allocation6], 1 }
 0xba8   :  { %7016 = vsyncpa [#allocation9], 1 }

</bundles_post_ra>
